<compile_context>
chip_gen: v7x
topology: tpu7x:2x2x1
jax: 0.10.0
libtpu: 0.0.40
codegen_flags: <defaults>
</compile_context>

<pallas_src>
import functools

import jax
import jax.numpy as jnp
from jax.experimental import pallas as pl
from jax.experimental.pallas import tpu as pltpu


# ----------------------------------------------------------------------------
# Fused bottleneck kernel: one grid step = (stream s, group of G images)
# ----------------------------------------------------------------------------
def _bottleneck_kernel(xs_ref, xr_ref,
                       w1_ref, b1_ref, w2_ref, b2_ref, w3_ref, b3_ref,
                       o_ref, y1p_ref, *, H, W):
    G = xs_ref.shape[1]
    Cin = xs_ref.shape[-1]
    P = w1_ref.shape[-1]
    Cout = o_ref.shape[-1]
    HW = H * W
    M = G * HW

    # ---- conv1 (1x1) + bn1 + relu; (1 + ada) & bn1 scale folded into w1 ------
    xs = xs_ref[0].reshape(M, Cin)
    y1 = jnp.dot(xs, w1_ref[0], preferred_element_type=jnp.float32)
    y1 = jnp.maximum(y1 + b1_ref[0], 0.0)

    # Stage zero-padded y1 in VMEM (padding=1 for the 3x3 conv), never touch HBM.
    y1p_ref[...] = jnp.zeros_like(y1p_ref)
    y1p_ref[:, pl.ds(1, H), pl.ds(1, W), :] = (
        y1.astype(y1p_ref.dtype).reshape(G, H, W, P))

    # ---- conv2 (3x3, pad=1, stride=1) + bn2 + relu; bn2 scale folded into w2 --
    acc = jnp.zeros((M, P), jnp.float32)
    for dy in range(3):
        for dx in range(3):
            patch = y1p_ref[:, pl.ds(dy, H), pl.ds(dx, W), :].reshape(M, P)
            acc = acc + jnp.dot(patch, w2_ref[0, dy * 3 + dx],
                                preferred_element_type=jnp.float32)
    y2 = jnp.maximum(acc + b2_ref[0], 0.0).astype(xs_ref.dtype)

    # ---- conv3 (1x1) + bn3 + residual + relu; bn3 scale folded into w3 -------
    y3 = jnp.dot(y2, w3_ref[0], preferred_element_type=jnp.float32)
    y3 = y3 + b3_ref[0] + xr_ref[0].reshape(M, Cout).astype(jnp.float32)
    o_ref[0] = jnp.maximum(y3, 0.0).reshape(G, HW, Cout).astype(o_ref.dtype)


# ----------------------------------------------------------------------------
# pallas_call wrapper
# ----------------------------------------------------------------------------
def _pick_group(nt, HW, Cin, P, Cout, H, W, budget_bytes=16 * 1024 * 1024):
    """Largest divisor G of nt whose per-step buffers fit a conservative VMEM budget."""
    best = 1
    for g in range(1, nt + 1):
        if nt % g:
            continue
        io_blk = g * HW * (Cin + 2 * Cout) * 2          # xs + xr + out (bf16)
        scratch = g * (H + 2) * (W + 2) * P * 2         # padded y1 (bf16)
        live = 3 * g * HW * max(P, Cout) * 4            # rough f32 intermediates
        if 2 * io_blk + scratch + live <= budget_bytes and g * HW <= 4096:
            best = g
    return best


def fused_bottleneck(xs_all, xr_all, w1, b1, w2, b2, w3, b3, H, W):
    S, nt, HW, Cin = xs_all.shape
    P = w1.shape[-1]
    Cout = w3.shape[-1]
    G = _pick_group(nt, HW, Cin, P, Cout, H, W)
    grid = (S, nt // G)

    est = (2 * (G * HW * (Cin + 2 * Cout) * 2)
           + G * (H + 2) * (W + 2) * P * 2
           + 6 * G * HW * max(P, Cout) * 4
           + 2 * (Cin * P + 9 * P * P + P * Cout) * 2)
    # Explicit VMEM budget: stay well inside v7x's 64 MiB physical VMEM.
    vmem_limit = int(min(max(2 * est, 32 * 1024 * 1024), 48 * 1024 * 1024))

    kernel = functools.partial(_bottleneck_kernel, H=H, W=W)
    return pl.pallas_call(
        kernel,
        out_shape=jax.ShapeDtypeStruct((S, nt, HW, Cout), jnp.bfloat16),
        grid_spec=pltpu.PrefetchScalarGridSpec(
            num_scalar_prefetch=0,
            grid=grid,
            in_specs=[
                pl.BlockSpec((1, G, HW, Cin), lambda s, n: (s, n, 0, 0)),   # shifted x
                pl.BlockSpec((1, G, HW, Cout), lambda s, n: (s, n, 0, 0)),  # residual
                pl.BlockSpec((1, Cin, P), lambda s, n: (s, 0, 0)),          # w1 folded
                pl.BlockSpec((1, 1, P), lambda s, n: (s, 0, 0)),            # b1
                pl.BlockSpec((1, 9, P, P), lambda s, n: (s, 0, 0, 0)),      # w2 folded
                pl.BlockSpec((1, 1, P), lambda s, n: (s, 0, 0)),            # b2
                pl.BlockSpec((1, P, Cout), lambda s, n: (s, 0, 0)),         # w3 folded
                pl.BlockSpec((1, 1, Cout), lambda s, n: (s, 0, 0)),         # b3
            ],
            out_specs=pl.BlockSpec((1, G, HW, Cout), lambda s, n: (s, n, 0, 0)),
            scratch_shapes=[pltpu.VMEM((G, H + 2, W + 2, P), jnp.bfloat16)],
        ),
        compiler_params=pltpu.CompilerParams(
            dimension_semantics=("parallel", "parallel"),
            vmem_limit_bytes=vmem_limit,
        ),
    )(xs_all, xr_all, w1, b1, w2, b2, w3, b3)


# ----------------------------------------------------------------------------
# Glue: TSM shift (NHWC), BN/ada weight folding, forward pass
# ----------------------------------------------------------------------------
def tsm_shift_nhwc(x, n_segment, fold_div=8):
    nt, h, w, c = x.shape
    nb = nt // n_segment
    fold = c // fold_div
    xr = x.reshape(nb, n_segment, h, w, c)
    out = jnp.zeros_like(xr)
    out = out.at[:, :-1, :, :, :fold].set(xr[:, 1:, :, :, :fold])
    out = out.at[:, 1:, :, :, fold:2 * fold].set(xr[:, :-1, :, :, fold:2 * fold])
    out = out.at[:, :, :, :, 2 * fold:].set(xr[:, :, :, :, 2 * fold:])
    return out.reshape(nt, h, w, c)


def _fold_bn(bn, eps=1e-5):
    gamma, beta, mean, var = bn
    scale = gamma * jax.lax.rsqrt(var + eps)
    bias = beta - mean * scale
    return scale, bias


def _fold_stream_weights(W1, W2, W3, ada, bn1, bn2, bn3):
    """Fold (1+ada) and BN scales into the conv weights (host-side, f32)."""
    P = W1.shape[0]
    s1, b1 = _fold_bn(bn1)
    s2, b2 = _fold_bn(bn2)
    s3, b3 = _fold_bn(bn3)
    w1f = (1.0 + ada)[:, None] * W1.T * s1[None, :]                           # (Cin, P)
    w2f = jnp.transpose(W2, (2, 3, 1, 0)).reshape(9, P, P) * s2[None, None, :]  # (9, P, P)
    w3f = W3.T * s3[None, :]                                                  # (P, Cout)
    return w1f, b1, w2f, b2, w3f, b3


def bottleneck_forward(x_4, x_8, x_16, params, n_segment):
    """Equivalent to Bottleneck.forward(x_4, x_8, x, training=True); bf16 outputs."""
    W1, W2, W3 = params["W1"], params["W2"], params["W3"]
    nt, Cin, H, Wd = x_4.shape
    Cout = W3.shape[0]
    assert Cout == Cin, "no-downsample residual path requires inplanes == planes*expansion"

    xs_list, xr_list = [], []
    w1_l, b1_l, w2_l, b2_l, w3_l, b3_l = [], [], [], [], [], []
    for name, xin in (("4", x_4), ("8", x_8), ("16", x_16)):
        sp = params["streams"][name]
        x_nhwc = jnp.transpose(xin, (0, 2, 3, 1))
        xr_list.append(x_nhwc.reshape(nt, H * Wd, Cin).astype(jnp.bfloat16))
        xsh = tsm_shift_nhwc(x_nhwc, n_segment, fold_div=8)
        xs_list.append(xsh.reshape(nt, H * Wd, Cin).astype(jnp.bfloat16))
        w1f, b1, w2f, b2, w3f, b3 = _fold_stream_weights(
            W1, W2, W3, sp["ada"], sp["bn1"], sp["bn2"], sp["bn3"])
        w1_l.append(w1f); b1_l.append(b1); w2_l.append(w2f)
        b2_l.append(b2); w3_l.append(w3f); b3_l.append(b3)

    xs_all = jnp.stack(xs_list)                                   # (3, nt, HW, Cin) bf16
    xr_all = jnp.stack(xr_list)                                   # (3, nt, HW, Cout) bf16
    w1_all = jnp.stack(w1_l).astype(jnp.bfloat16)                 # (3, Cin, P)
    w2_all = jnp.stack(w2_l).astype(jnp.bfloat16)                 # (3, 9, P, P)
    w3_all = jnp.stack(w3_l).astype(jnp.bfloat16)                 # (3, P, Cout)
    b1_all = jnp.stack(b1_l)[:, None, :].astype(jnp.float32)      # (3, 1, P)
    b2_all = jnp.stack(b2_l)[:, None, :].astype(jnp.float32)
    b3_all = jnp.stack(b3_l)[:, None, :].astype(jnp.float32)

    out = fused_bottleneck(xs_all, xr_all, w1_all, b1_all, w2_all, b2_all,
                           w3_all, b3_all, H, Wd)
    out = out.reshape(3, nt, H, Wd, Cout)
    out = jnp.transpose(out, (0, 1, 4, 2, 3))                     # back to NCHW
    return out[0], out[1], out[2]


# ----------------------------------------------------------------------------
# Pure-JAX f32 reference (for a numerical sanity check)
# ----------------------------------------------------------------------------
def _reference_stream(x_nchw, W1, W2, W3, ada, bn1, bn2, bn3, n_segment, eps=1e-5):
    nt, C, H, Wd = x_nchw.shape
    x = jnp.transpose(x_nchw, (0, 2, 3, 1)).astype(jnp.float32)
    xs = tsm_shift_nhwc(x, n_segment, fold_div=8)
    xs = xs * (1.0 + ada)[None, None, None, :]

    def bn(v, p):
        g, b, m, var = p
        return (v - m) * (g * jax.lax.rsqrt(var + eps)) + b

    y1 = jax.nn.relu(bn(jnp.einsum('nhwc,pc->nhwp', xs, W1), bn1))
    y1p = jnp.pad(y1, ((0, 0), (1, 1), (1, 1), (0, 0)))
    y2 = jnp.zeros_like(y1)
    for dy in range(3):
        for dx in range(3):
            y2 = y2 + jnp.einsum('nhwc,oc->nhwo',
                                 y1p[:, dy:dy + H, dx:dx + Wd, :], W2[:, :, dy, dx])
    y2 = jax.nn.relu(bn(y2, bn2))
    y3 = bn(jnp.einsum('nhwp,op->nhwo', y2, W3), bn3) + x
    return jnp.transpose(jax.nn.relu(y3), (0, 3, 1, 2))


# ----------------------------------------------------------------------------
# Deterministic parameter init (synthetic, PyTorch-layout shapes)
# ----------------------------------------------------------------------------
def _init_bn(key, c):
    k1, k2, k3, k4 = jax.random.split(key, 4)
    gamma = jax.random.uniform(k1, (c,), jnp.float32, 0.8, 1.2)
    beta = 0.05 * jax.random.normal(k2, (c,), jnp.float32)
    mean = 0.05 * jax.random.normal(k3, (c,), jnp.float32)
    var = jax.random.uniform(k4, (c,), jnp.float32, 0.5, 1.5)
    return (gamma, beta, mean, var)


def init_params(key, inplanes, planes, expansion=4):
    outc = planes * expansion
    keys = jax.random.split(key, 16)
    W1 = 0.05 * jax.random.normal(keys[0], (planes, inplanes), jnp.float32)      # conv1
    W2 = 0.05 * jax.random.normal(keys[1], (planes, planes, 3, 3), jnp.float32)  # conv2
    W3 = 0.05 * jax.random.normal(keys[2], (outc, planes), jnp.float32)          # conv3
    streams = {}
    for i, name in enumerate(("4", "8", "16")):
        base = 3 + i * 4
        streams[name] = {
            "ada": 0.001 * jax.random.normal(keys[base], (inplanes,), jnp.float32),
            "bn1": _init_bn(keys[base + 1], planes),
            "bn2": _init_bn(keys[base + 2], planes),
            "bn3": _init_bn(keys[base + 3], outc),
        }
    return {"W1": W1, "W2": W2, "W3": W3, "streams": streams}


# ----------------------------------------------------------------------------
if __name__ == "__main__":
    key = jax.random.PRNGKey(0)
    kp, k4, k8, k16 = jax.random.split(key, 4)

    # Small but lane-dense shapes: inplanes = planes*expansion = 128 so the
    # no-downsample residual add is valid AND input/output channel dims fill
    # the 128-lane vregs; nt = n_batch * n_segment.
    planes = 32
    inplanes = planes * 4          # 128
    n_segment = 4                  # num_segments_H
    n_batch = 2
    nt, H, W = n_batch * n_segment, 8, 8

    params = init_params(kp, inplanes, planes)

    x_4 = jax.random.normal(k4, (nt, inplanes, H, W), jnp.float32)
    x_8 = jax.random.normal(k8, (nt, inplanes, H, W), jnp.float32)
    x_16 = jax.random.normal(k16, (nt, inplanes, H, W), jnp.float32)

    fwd = jax.jit(bottleneck_forward, static_argnums=(4,))
    out_4, out_8, out_16 = fwd(x_4, x_8, x_16, params, n_segment)
    jax.block_until_ready((out_4, out_8, out_16))

    assert out_4.shape == (nt, planes * 4, H, W)
    assert out_8.shape == (nt, planes * 4, H, W)
    assert out_16.shape == (nt, planes * 4, H, W)

    # Numerical sanity check against the f32 reference (bf16-class tolerance).
    for name, xin, out in (("4", x_4, out_4), ("8", x_8, out_8), ("16", x_16, out_16)):
        sp = params["streams"][name]
        ref = _reference_stream(xin, params["W1"], params["W2"], params["W3"],
                                sp["ada"], sp["bn1"], sp["bn2"], sp["bn3"], n_segment)
        err = float(jnp.max(jnp.abs(out.astype(jnp.float32) - ref)))
        assert err < 0.15, f"stream {name}: max abs err {err}"

    print("KERNEL_OK")
</pallas_src>

<mosaic_0001>
module attributes {stable_mosaic.version = 11 : i64} {
  func.func @_bottleneck_kernel(%arg0: i32, %arg1: i32, %arg2: memref<1x8x64x128xbf16, #tpu.memory_space<vmem>>, %arg3: memref<1x8x64x128xbf16, #tpu.memory_space<vmem>>, %arg4: memref<1x128x32xbf16, #tpu.memory_space<vmem>>, %arg5: memref<1x1x32xf32, #tpu.memory_space<vmem>>, %arg6: memref<1x9x32x32xbf16, #tpu.memory_space<vmem>>, %arg7: memref<1x1x32xf32, #tpu.memory_space<vmem>>, %arg8: memref<1x32x128xbf16, #tpu.memory_space<vmem>>, %arg9: memref<1x1x128xf32, #tpu.memory_space<vmem>>, %arg10: memref<1x8x64x128xbf16, #tpu.memory_space<vmem>>, %arg11: memref<8x10x10x32xbf16, #tpu.memory_space<vmem>>) attributes {dimension_semantics = [#tpu.dimension_semantics<parallel>, #tpu.dimension_semantics<parallel>], iteration_bounds = array<i64: 3, 1>, scalar_prefetch = 0 : i64, scratch_operands = 1 : i64, tpu.core_type = #tpu.core_type<tc>, window_params = [{transform_indices = @transform_0, window_bounds = array<i64: 1, 8, 64, 128>}, {transform_indices = @transform_1, window_bounds = array<i64: 1, 8, 64, 128>}, {transform_indices = @transform_2, window_bounds = array<i64: 1, 128, 32>}, {transform_indices = @transform_3, window_bounds = array<i64: 1, 1, 32>}, {transform_indices = @transform_4, window_bounds = array<i64: 1, 9, 32, 32>}, {transform_indices = @transform_5, window_bounds = array<i64: 1, 1, 32>}, {transform_indices = @transform_6, window_bounds = array<i64: 1, 32, 128>}, {transform_indices = @transform_7, window_bounds = array<i64: 1, 1, 128>}, {transform_indices = @transform_8, window_bounds = array<i64: 1, 8, 64, 128>}]} {
    %c0 = arith.constant 0 : index
    %c0_0 = arith.constant 0 : index
    %c0_1 = arith.constant 0 : index
    %c0_2 = arith.constant 0 : index
    %0 = vector.load %arg2[%c0, %c0_0, %c0_1, %c0_2] : memref<1x8x64x128xbf16, #tpu.memory_space<vmem>>, vector<1x8x64x128xbf16>
    %1 = vector.shape_cast %0 : vector<1x8x64x128xbf16> to vector<8x64x128xbf16>
    %2 = vector.shape_cast %1 : vector<8x64x128xbf16> to vector<512x128xbf16>
    %c0_3 = arith.constant 0 : index
    %c0_4 = arith.constant 0 : index
    %c0_5 = arith.constant 0 : index
    %3 = vector.load %arg4[%c0_3, %c0_4, %c0_5] : memref<1x128x32xbf16, #tpu.memory_space<vmem>>, vector<1x128x32xbf16>
    %4 = vector.shape_cast %3 : vector<1x128x32xbf16> to vector<128x32xbf16>
    %cst = arith.constant dense<0.000000e+00> : vector<512x32xf32>
    %5 = tpu.matmul %2, %4, %cst {dimension_numbers = #tpu.dot_dimension_numbers<[1], [0], [0], [1], [0, 0, 1, 1], [], []>} : vector<512x128xbf16>, vector<128x32xbf16>, vector<512x32xf32> -> vector<512x32xf32>
    %c0_6 = arith.constant 0 : index
    %c0_7 = arith.constant 0 : index
    %c0_8 = arith.constant 0 : index
    %6 = vector.load %arg5[%c0_6, %c0_7, %c0_8] : memref<1x1x32xf32, #tpu.memory_space<vmem>>, vector<1x1x32xf32>
    %7 = vector.shape_cast %6 : vector<1x1x32xf32> to vector<1x32xf32>
    %8 = vector.broadcast %7 : vector<1x32xf32> to vector<512x32xf32>
    %9 = arith.addf %5, %8 : vector<512x32xf32>
    %cst_9 = arith.constant 0.000000e+00 : f32
    %10 = vector.broadcast %cst_9 : f32 to vector<512x32xf32>
    %11 = arith.maximumf %9, %10 : vector<512x32xf32>
    %cst_10 = arith.constant 0.000000e+00 : bf16
    %12 = vector.broadcast %cst_10 : bf16 to vector<8x10x10x32xbf16>
    %c0_11 = arith.constant 0 : index
    %c0_12 = arith.constant 0 : index
    %c0_13 = arith.constant 0 : index
    %c0_14 = arith.constant 0 : index
    %13 = vector.load %arg11[%c0_11, %c0_12, %c0_13, %c0_14] : memref<8x10x10x32xbf16, #tpu.memory_space<vmem>>, vector<8x10x10x32xbf16>
    tpu.vector_store %arg11[%c0_11, %c0_12, %c0_13, %c0_14], %12 {strides = array<i32>} : memref<8x10x10x32xbf16, #tpu.memory_space<vmem>>, vector<8x10x10x32xbf16>,
    %14 = arith.truncf %11 : vector<512x32xf32> to vector<512x32xbf16>
    %15 = vector.shape_cast %14 : vector<512x32xbf16> to vector<8x8x8x32xbf16>
    %c0_15 = arith.constant 0 : index
    %c1 = arith.constant 1 : index
    %c1_16 = arith.constant 1 : index
    %c0_17 = arith.constant 0 : index
    %16 = vector.load %arg11[%c0_15, %c1, %c1_16, %c0_17] : memref<8x10x10x32xbf16, #tpu.memory_space<vmem>>, vector<8x8x8x32xbf16>
    tpu.vector_store %arg11[%c0_15, %c1, %c1_16, %c0_17], %15 {strides = array<i32>} : memref<8x10x10x32xbf16, #tpu.memory_space<vmem>>, vector<8x8x8x32xbf16>,
    %cst_18 = arith.constant 0.000000e+00 : f32
    %17 = vector.broadcast %cst_18 : f32 to vector<512x32xf32>
    %c0_19 = arith.constant 0 : index
    %c0_20 = arith.constant 0 : index
    %c0_21 = arith.constant 0 : index
    %c0_22 = arith.constant 0 : index
    %18 = vector.load %arg11[%c0_19, %c0_20, %c0_21, %c0_22] : memref<8x10x10x32xbf16, #tpu.memory_space<vmem>>, vector<8x8x8x32xbf16>
    %19 = vector.shape_cast %18 : vector<8x8x8x32xbf16> to vector<512x32xbf16>
    %c0_23 = arith.constant 0 : index
    %c0_24 = arith.constant 0 : index
    %c0_25 = arith.constant 0 : index
    %c0_26 = arith.constant 0 : index
    %20 = vector.load %arg6[%c0_23, %c0_24, %c0_25, %c0_26] : memref<1x9x32x32xbf16, #tpu.memory_space<vmem>>, vector<1x1x32x32xbf16>
    %21 = vector.shape_cast %20 : vector<1x1x32x32xbf16> to vector<32x32xbf16>
    %cst_27 = arith.constant dense<0.000000e+00> : vector<512x32xf32>
    %22 = tpu.matmul %19, %21, %cst_27 {dimension_numbers = #tpu.dot_dimension_numbers<[1], [0], [0], [1], [0, 0, 1, 1], [], []>} : vector<512x32xbf16>, vector<32x32xbf16>, vector<512x32xf32> -> vector<512x32xf32>
    %23 = arith.addf %17, %22 : vector<512x32xf32>
    %c0_28 = arith.constant 0 : index
    %c0_29 = arith.constant 0 : index
    %c1_30 = arith.constant 1 : index
    %c0_31 = arith.constant 0 : index
    %24 = vector.load %arg11[%c0_28, %c0_29, %c1_30, %c0_31] : memref<8x10x10x32xbf16, #tpu.memory_space<vmem>>, vector<8x8x8x32xbf16>
    %25 = vector.shape_cast %24 : vector<8x8x8x32xbf16> to vector<512x32xbf16>
    %c0_32 = arith.constant 0 : index
    %c1_33 = arith.constant 1 : index
    %c0_34 = arith.constant 0 : index
    %c0_35 = arith.constant 0 : index
    %26 = vector.load %arg6[%c0_32, %c1_33, %c0_34, %c0_35] : memref<1x9x32x32xbf16, #tpu.memory_space<vmem>>, vector<1x1x32x32xbf16>
    %27 = vector.shape_cast %26 : vector<1x1x32x32xbf16> to vector<32x32xbf16>
    %cst_36 = arith.constant dense<0.000000e+00> : vector<512x32xf32>
    %28 = tpu.matmul %25, %27, %cst_36 {dimension_numbers = #tpu.dot_dimension_numbers<[1], [0], [0], [1], [0, 0, 1, 1], [], []>} : vector<512x32xbf16>, vector<32x32xbf16>, vector<512x32xf32> -> vector<512x32xf32>
    %29 = arith.addf %23, %28 : vector<512x32xf32>
    %c0_37 = arith.constant 0 : index
    %c0_38 = arith.constant 0 : index
    %c2 = arith.constant 2 : index
    %c0_39 = arith.constant 0 : index
    %30 = vector.load %arg11[%c0_37, %c0_38, %c2, %c0_39] : memref<8x10x10x32xbf16, #tpu.memory_space<vmem>>, vector<8x8x8x32xbf16>
    %31 = vector.shape_cast %30 : vector<8x8x8x32xbf16> to vector<512x32xbf16>
    %c0_40 = arith.constant 0 : index
    %c2_41 = arith.constant 2 : index
    %c0_42 = arith.constant 0 : index
    %c0_43 = arith.constant 0 : index
    %32 = vector.load %arg6[%c0_40, %c2_41, %c0_42, %c0_43] : memref<1x9x32x32xbf16, #tpu.memory_space<vmem>>, vector<1x1x32x32xbf16>
    %33 = vector.shape_cast %32 : vector<1x1x32x32xbf16> to vector<32x32xbf16>
    %cst_44 = arith.constant dense<0.000000e+00> : vector<512x32xf32>
    %34 = tpu.matmul %31, %33, %cst_44 {dimension_numbers = #tpu.dot_dimension_numbers<[1], [0], [0], [1], [0, 0, 1, 1], [], []>} : vector<512x32xbf16>, vector<32x32xbf16>, vector<512x32xf32> -> vector<512x32xf32>
    %35 = arith.addf %29, %34 : vector<512x32xf32>
    %c0_45 = arith.constant 0 : index
    %c1_46 = arith.constant 1 : index
    %c0_47 = arith.constant 0 : index
    %c0_48 = arith.constant 0 : index
    %36 = vector.load %arg11[%c0_45, %c1_46, %c0_47, %c0_48] : memref<8x10x10x32xbf16, #tpu.memory_space<vmem>>, vector<8x8x8x32xbf16>
    %37 = vector.shape_cast %36 : vector<8x8x8x32xbf16> to vector<512x32xbf16>
    %c0_49 = arith.constant 0 : index
    %c3 = arith.constant 3 : index
    %c0_50 = arith.constant 0 : index
    %c0_51 = arith.constant 0 : index
    %38 = vector.load %arg6[%c0_49, %c3, %c0_50, %c0_51] : memref<1x9x32x32xbf16, #tpu.memory_space<vmem>>, vector<1x1x32x32xbf16>
    %39 = vector.shape_cast %38 : vector<1x1x32x32xbf16> to vector<32x32xbf16>
    %cst_52 = arith.constant dense<0.000000e+00> : vector<512x32xf32>
    %40 = tpu.matmul %37, %39, %cst_52 {dimension_numbers = #tpu.dot_dimension_numbers<[1], [0], [0], [1], [0, 0, 1, 1], [], []>} : vector<512x32xbf16>, vector<32x32xbf16>, vector<512x32xf32> -> vector<512x32xf32>
    %41 = arith.addf %35, %40 : vector<512x32xf32>
    %c0_53 = arith.constant 0 : index
    %c1_54 = arith.constant 1 : index
    %c1_55 = arith.constant 1 : index
    %c0_56 = arith.constant 0 : index
    %42 = vector.load %arg11[%c0_53, %c1_54, %c1_55, %c0_56] : memref<8x10x10x32xbf16, #tpu.memory_space<vmem>>, vector<8x8x8x32xbf16>
    %43 = vector.shape_cast %42 : vector<8x8x8x32xbf16> to vector<512x32xbf16>
    %c0_57 = arith.constant 0 : index
    %c4 = arith.constant 4 : index
    %c0_58 = arith.constant 0 : index
    %c0_59 = arith.constant 0 : index
    %44 = vector.load %arg6[%c0_57, %c4, %c0_58, %c0_59] : memref<1x9x32x32xbf16, #tpu.memory_space<vmem>>, vector<1x1x32x32xbf16>
    %45 = vector.shape_cast %44 : vector<1x1x32x32xbf16> to vector<32x32xbf16>
    %cst_60 = arith.constant dense<0.000000e+00> : vector<512x32xf32>
    %46 = tpu.matmul %43, %45, %cst_60 {dimension_numbers = #tpu.dot_dimension_numbers<[1], [0], [0], [1], [0, 0, 1, 1], [], []>} : vector<512x32xbf16>, vector<32x32xbf16>, vector<512x32xf32> -> vector<512x32xf32>
    %47 = arith.addf %41, %46 : vector<512x32xf32>
    %c0_61 = arith.constant 0 : index
    %c1_62 = arith.constant 1 : index
    %c2_63 = arith.constant 2 : index
    %c0_64 = arith.constant 0 : index
    %48 = vector.load %arg11[%c0_61, %c1_62, %c2_63, %c0_64] : memref<8x10x10x32xbf16, #tpu.memory_space<vmem>>, vector<8x8x8x32xbf16>
    %49 = vector.shape_cast %48 : vector<8x8x8x32xbf16> to vector<512x32xbf16>
    %c0_65 = arith.constant 0 : index
    %c5 = arith.constant 5 : index
    %c0_66 = arith.constant 0 : index
    %c0_67 = arith.constant 0 : index
    %50 = vector.load %arg6[%c0_65, %c5, %c0_66, %c0_67] : memref<1x9x32x32xbf16, #tpu.memory_space<vmem>>, vector<1x1x32x32xbf16>
    %51 = vector.shape_cast %50 : vector<1x1x32x32xbf16> to vector<32x32xbf16>
    %cst_68 = arith.constant dense<0.000000e+00> : vector<512x32xf32>
    %52 = tpu.matmul %49, %51, %cst_68 {dimension_numbers = #tpu.dot_dimension_numbers<[1], [0], [0], [1], [0, 0, 1, 1], [], []>} : vector<512x32xbf16>, vector<32x32xbf16>, vector<512x32xf32> -> vector<512x32xf32>
    %53 = arith.addf %47, %52 : vector<512x32xf32>
    %c0_69 = arith.constant 0 : index
    %c2_70 = arith.constant 2 : index
    %c0_71 = arith.constant 0 : index
    %c0_72 = arith.constant 0 : index
    %54 = vector.load %arg11[%c0_69, %c2_70, %c0_71, %c0_72] : memref<8x10x10x32xbf16, #tpu.memory_space<vmem>>, vector<8x8x8x32xbf16>
    %55 = vector.shape_cast %54 : vector<8x8x8x32xbf16> to vector<512x32xbf16>
    %c0_73 = arith.constant 0 : index
    %c6 = arith.constant 6 : index
    %c0_74 = arith.constant 0 : index
    %c0_75 = arith.constant 0 : index
    %56 = vector.load %arg6[%c0_73, %c6, %c0_74, %c0_75] : memref<1x9x32x32xbf16, #tpu.memory_space<vmem>>, vector<1x1x32x32xbf16>
    %57 = vector.shape_cast %56 : vector<1x1x32x32xbf16> to vector<32x32xbf16>
    %cst_76 = arith.constant dense<0.000000e+00> : vector<512x32xf32>
    %58 = tpu.matmul %55, %57, %cst_76 {dimension_numbers = #tpu.dot_dimension_numbers<[1], [0], [0], [1], [0, 0, 1, 1], [], []>} : vector<512x32xbf16>, vector<32x32xbf16>, vector<512x32xf32> -> vector<512x32xf32>
    %59 = arith.addf %53, %58 : vector<512x32xf32>
    %c0_77 = arith.constant 0 : index
    %c2_78 = arith.constant 2 : index
    %c1_79 = arith.constant 1 : index
    %c0_80 = arith.constant 0 : index
    %60 = vector.load %arg11[%c0_77, %c2_78, %c1_79, %c0_80] : memref<8x10x10x32xbf16, #tpu.memory_space<vmem>>, vector<8x8x8x32xbf16>
    %61 = vector.shape_cast %60 : vector<8x8x8x32xbf16> to vector<512x32xbf16>
    %c0_81 = arith.constant 0 : index
    %c7 = arith.constant 7 : index
    %c0_82 = arith.constant 0 : index
    %c0_83 = arith.constant 0 : index
    %62 = vector.load %arg6[%c0_81, %c7, %c0_82, %c0_83] : memref<1x9x32x32xbf16, #tpu.memory_space<vmem>>, vector<1x1x32x32xbf16>
    %63 = vector.shape_cast %62 : vector<1x1x32x32xbf16> to vector<32x32xbf16>
    %cst_84 = arith.constant dense<0.000000e+00> : vector<512x32xf32>
    %64 = tpu.matmul %61, %63, %cst_84 {dimension_numbers = #tpu.dot_dimension_numbers<[1], [0], [0], [1], [0, 0, 1, 1], [], []>} : vector<512x32xbf16>, vector<32x32xbf16>, vector<512x32xf32> -> vector<512x32xf32>
    %65 = arith.addf %59, %64 : vector<512x32xf32>
    %c0_85 = arith.constant 0 : index
    %c2_86 = arith.constant 2 : index
    %c2_87 = arith.constant 2 : index
    %c0_88 = arith.constant 0 : index
    %66 = vector.load %arg11[%c0_85, %c2_86, %c2_87, %c0_88] : memref<8x10x10x32xbf16, #tpu.memory_space<vmem>>, vector<8x8x8x32xbf16>
    %67 = vector.shape_cast %66 : vector<8x8x8x32xbf16> to vector<512x32xbf16>
    %c0_89 = arith.constant 0 : index
    %c8 = arith.constant 8 : index
    %c0_90 = arith.constant 0 : index
    %c0_91 = arith.constant 0 : index
    %68 = vector.load %arg6[%c0_89, %c8, %c0_90, %c0_91] : memref<1x9x32x32xbf16, #tpu.memory_space<vmem>>, vector<1x1x32x32xbf16>
    %69 = vector.shape_cast %68 : vector<1x1x32x32xbf16> to vector<32x32xbf16>
    %cst_92 = arith.constant dense<0.000000e+00> : vector<512x32xf32>
    %70 = tpu.matmul %67, %69, %cst_92 {dimension_numbers = #tpu.dot_dimension_numbers<[1], [0], [0], [1], [0, 0, 1, 1], [], []>} : vector<512x32xbf16>, vector<32x32xbf16>, vector<512x32xf32> -> vector<512x32xf32>
    %71 = arith.addf %65, %70 : vector<512x32xf32>
    %c0_93 = arith.constant 0 : index
    %c0_94 = arith.constant 0 : index
    %c0_95 = arith.constant 0 : index
    %72 = vector.load %arg7[%c0_93, %c0_94, %c0_95] : memref<1x1x32xf32, #tpu.memory_space<vmem>>, vector<1x1x32xf32>
    %73 = vector.shape_cast %72 : vector<1x1x32xf32> to vector<1x32xf32>
    %74 = vector.broadcast %73 : vector<1x32xf32> to vector<512x32xf32>
    %75 = arith.addf %71, %74 : vector<512x32xf32>
    %cst_96 = arith.constant 0.000000e+00 : f32
    %76 = vector.broadcast %cst_96 : f32 to vector<512x32xf32>
    %77 = arith.maximumf %75, %76 : vector<512x32xf32>
    %78 = arith.truncf %77 : vector<512x32xf32> to vector<512x32xbf16>
    %c0_97 = arith.constant 0 : index
    %c0_98 = arith.constant 0 : index
    %c0_99 = arith.constant 0 : index
    %79 = vector.load %arg8[%c0_97, %c0_98, %c0_99] : memref<1x32x128xbf16, #tpu.memory_space<vmem>>, vector<1x32x128xbf16>
    %80 = vector.shape_cast %79 : vector<1x32x128xbf16> to vector<32x128xbf16>
    %cst_100 = arith.constant dense<0.000000e+00> : vector<512x128xf32>
    %81 = tpu.matmul %78, %80, %cst_100 {dimension_numbers = #tpu.dot_dimension_numbers<[1], [0], [0], [1], [0, 0, 1, 1], [], []>} : vector<512x32xbf16>, vector<32x128xbf16>, vector<512x128xf32> -> vector<512x128xf32>
    %c0_101 = arith.constant 0 : index
    %c0_102 = arith.constant 0 : index
    %c0_103 = arith.constant 0 : index
    %82 = vector.load %arg9[%c0_101, %c0_102, %c0_103] : memref<1x1x128xf32, #tpu.memory_space<vmem>>, vector<1x1x128xf32>
    %83 = vector.shape_cast %82 : vector<1x1x128xf32> to vector<1x128xf32>
    %84 = vector.broadcast %83 : vector<1x128xf32> to vector<512x128xf32>
    %85 = arith.addf %81, %84 : vector<512x128xf32>
    %c0_104 = arith.constant 0 : index
    %c0_105 = arith.constant 0 : index
    %c0_106 = arith.constant 0 : index
    %c0_107 = arith.constant 0 : index
    %86 = vector.load %arg3[%c0_104, %c0_105, %c0_106, %c0_107] : memref<1x8x64x128xbf16, #tpu.memory_space<vmem>>, vector<1x8x64x128xbf16>
    %87 = vector.shape_cast %86 : vector<1x8x64x128xbf16> to vector<8x64x128xbf16>
    %88 = vector.shape_cast %87 : vector<8x64x128xbf16> to vector<512x128xbf16>
    %89 = arith.extf %88 : vector<512x128xbf16> to vector<512x128xf32>
    %90 = arith.addf %85, %89 : vector<512x128xf32>
    %cst_108 = arith.constant 0.000000e+00 : f32
    %91 = vector.broadcast %cst_108 : f32 to vector<512x128xf32>
    %92 = arith.maximumf %90, %91 : vector<512x128xf32>
    %93 = vector.shape_cast %92 : vector<512x128xf32> to vector<8x64x128xf32>
    %94 = arith.truncf %93 : vector<8x64x128xf32> to vector<8x64x128xbf16>
    %c0_109 = arith.constant 0 : index
    %c0_110 = arith.constant 0 : index
    %c0_111 = arith.constant 0 : index
    %c0_112 = arith.constant 0 : index
    %95 = vector.load %arg10[%c0_109, %c0_110, %c0_111, %c0_112] : memref<1x8x64x128xbf16, #tpu.memory_space<vmem>>, vector<1x8x64x128xbf16>
    %96 = vector.shape_cast %95 : vector<1x8x64x128xbf16> to vector<8x64x128xbf16>
    %97 = vector.shape_cast %94 : vector<8x64x128xbf16> to vector<1x8x64x128xbf16>
    tpu.vector_store %arg10[%c0_109, %c0_110, %c0_111, %c0_112], %97 {strides = array<i32>} : memref<1x8x64x128xbf16, #tpu.memory_space<vmem>>, vector<1x8x64x128xbf16>,
    return
  }
  func.func @transform_0(%arg0: i32, %arg1: i32) -> (i32, i32, i32, i32) {
    %c0_i32 = arith.constant 0 : i32
    %c0_i32_0 = arith.constant 0 : i32
    %c0_i32_1 = arith.constant 0 : i32
    return %arg0, %arg1, %c0_i32, %c0_i32_0 : i32, i32, i32, i32
  }
  func.func @transform_1(%arg0: i32, %arg1: i32) -> (i32, i32, i32, i32) {
    %c0_i32 = arith.constant 0 : i32
    %c0_i32_0 = arith.constant 0 : i32
    %c0_i32_1 = arith.constant 0 : i32
    return %arg0, %arg1, %c0_i32, %c0_i32_0 : i32, i32, i32, i32
  }
  func.func @transform_2(%arg0: i32, %arg1: i32) -> (i32, i32, i32) {
    %c0_i32 = arith.constant 0 : i32
    %c0_i32_0 = arith.constant 0 : i32
    %c0_i32_1 = arith.constant 0 : i32
    return %arg0, %c0_i32, %c0_i32_0 : i32, i32, i32
  }
  func.func @transform_3(%arg0: i32, %arg1: i32) -> (i32, i32, i32) {
    %c0_i32 = arith.constant 0 : i32
    %c0_i32_0 = arith.constant 0 : i32
    %c0_i32_1 = arith.constant 0 : i32
    return %arg0, %c0_i32, %c0_i32_0 : i32, i32, i32
  }
  func.func @transform_4(%arg0: i32, %arg1: i32) -> (i32, i32, i32, i32) {
    %c0_i32 = arith.constant 0 : i32
    %c0_i32_0 = arith.constant 0 : i32
    %c0_i32_1 = arith.constant 0 : i32
    %c0_i32_2 = arith.constant 0 : i32
    return %arg0, %c0_i32, %c0_i32_0, %c0_i32_1 : i32, i32, i32, i32
  }
  func.func @transform_5(%arg0: i32, %arg1: i32) -> (i32, i32, i32) {
    %c0_i32 = arith.constant 0 : i32
    %c0_i32_0 = arith.constant 0 : i32
    %c0_i32_1 = arith.constant 0 : i32
    return %arg0, %c0_i32, %c0_i32_0 : i32, i32, i32
  }
  func.func @transform_6(%arg0: i32, %arg1: i32) -> (i32, i32, i32) {
    %c0_i32 = arith.constant 0 : i32
    %c0_i32_0 = arith.constant 0 : i32
    %c0_i32_1 = arith.constant 0 : i32
    return %arg0, %c0_i32, %c0_i32_0 : i32, i32, i32
  }
  func.func @transform_7(%arg0: i32, %arg1: i32) -> (i32, i32, i32) {
    %c0_i32 = arith.constant 0 : i32
    %c0_i32_0 = arith.constant 0 : i32
    %c0_i32_1 = arith.constant 0 : i32
    return %arg0, %c0_i32, %c0_i32_0 : i32, i32, i32
  }
  func.func @transform_8(%arg0: i32, %arg1: i32) -> (i32, i32, i32, i32) {
    %c0_i32 = arith.constant 0 : i32
    %c0_i32_0 = arith.constant 0 : i32
    %c0_i32_1 = arith.constant 0 : i32
    return %arg0, %arg1, %c0_i32, %c0_i32_0 : i32, i32, i32, i32
  }
}

</mosaic_0001>

<bundles_post_ra>
// kernel: bottleneck_forward.1
= control target key start
LH: loop header
LB: loop body
LE: loop exit
PB: predicated region body
PF: predicated region fallthrough
CT: control target
= control target key end

     0   :  { %s17238_s27 = smov 0   ;;  %s17240_s28 = smov 0   ;;  %s19962_s0 = inlined_call_operand.vmem [shape: bf16[3,8,64,128], index: 0, kind: input, shape index: {}]   ;;  %s19963_s1 = inlined_call_operand.vmem [shape: bf16[3,8,64,128], index: 1, kind: input, shape index: {}]   ;;  %s19964_s2 = inlined_call_operand.vmem [shape: bf16[3,128,32], index: 2, kind: input, shape index: {}]   ;;  %s19965_s3 = inlined_call_operand.vmem [shape: f32[3,1,32], index: 3, kind: input, shape index: {}]   ;;  %s19966_s4 = inlined_call_operand.vmem [shape: bf16[3,9,32,32], index: 4, kind: input, shape index: {}]   ;;  %s19967_s5 = inlined_call_operand.vmem [shape: f32[3,1,32], index: 5, kind: input, shape index: {}]   ;;  %s19968_s6 = inlined_call_operand.vmem [shape: bf16[3,32,128], index: 6, kind: input, shape index: {}]   ;;  %s19969_s7 = inlined_call_operand.vmem [shape: f32[3,1,128], index: 7, kind: input, shape index: {}]   ;;  %s19970_s8 = inlined_call_operand.vmem [shape: bf16[3,8,64,128], index: 8, kind: output, shape index: {}]  }
   0x1   :  { %s17242_s29 = smov 0  }
   0x2 LB: > { %s30_s30 = sadd.s32 1, %s17186_s28  ;;  %p13565_p0 = scmp.ge.s32.totalorder %s17190_s29, 1  ;;  %s17190_s29 = sphi %s17242_s29, %s18_s29   ;;  %s17186_s28 = sphi %s17240_s28, %s20072_s28   ;;  %s17182_s27 = sphi %s17238_s27, %s20071_s27  }
   0x3   : > { %p32_p1 = scmp.ge.s32.totalorder %s30_s30, 3  ;;  %p356_p2 = scmp.lt.s32.totalorder %s17190_s29, 4 }
   0x5   : > { %s20074_s30 = smov (%p32_p1, %s30_s30), 0  ;;  %p357_p3 = pnand %p13565_p0, %p356_p2 }
   0x7   : > { %360 = sbr.rel (%p357_p3) target bundleno = 1706 (0x6aa), region = 52 }
   0xe   : > { %p435_p4 = scmp.lt.s32.totalorder %s17182_s27, 2  ;;  %vm1172_vm0 = vcmask 257024   ;;  %vm1174_vm1 = vcmask 253952   ;;  %v17192_v33 = vmov 0   ;;  %vm2689_vm2 = vsmask.f32 3328 }
   0xf   : > { %1180 = vst.msk [vmem:[#allocation2 + $0x18] sm:$0xf] %vm1172_vm0, %v17192_v33  ;;  %1173 = vst.msk [vmem:[#allocation2] sm:$0xf] %vm1172_vm0, %v17192_v33  ;;  %vm2690_vm3 = vsmask.f32 7440 }
  0x10   : > { %s20076_s27 = smov (!%p435_p4, %s17182_s27), 2  ;;  %1181 = vst.msk [vmem:[#allocation2 + $0x1c] sm:$0x1] %vm1174_vm1, %v17192_v33  ;;  %1175 = vst.msk [vmem:[#allocation2 + $0x4] sm:$0x1] %vm1174_vm1, %v17192_v33  ;;  %vm3701_vm9 = vcmask 261120  }
  0x11   : > { %s14604_s9 = sshll.u32 %s20076_s27, 6  ;;  %s17263_s13 = sshll.u32 %s20076_s27, 8  ;;  %1176 = vst.msk [vmem:[#allocation2 + $0x8] sm:$0xf] %vm1172_vm0, %v17192_v33  ;;  %1178 = vst.msk [vmem:[#allocation2 + $0x10] sm:$0xf] %vm1172_vm0, %v17192_v33 }
  0x12   : > { %s460_s12 = scalar_lea.vmem %s19964_s2, %s14604_s9  ;;  %s17269_s16 = scalar_lea.vmem %s19962_s0, %s17263_s13  ;;  %1177 = vst.msk [vmem:[#allocation2 + $0xc] sm:$0x1] %vm1174_vm1, %v17192_v33  ;;  %1179 = vst.msk [vmem:[#allocation2 + $0x14] sm:$0x1] %vm1174_vm1, %v17192_v33  ;;  %vm2168_vm5 = vsmask.f32 7938 }
  0x13   : > { %v16767_v0 = vld [vmem:[%s460_s12] sm:$0xff]   ;;  %v16768_v1 = vld [vmem:[%s460_s12 + $0x8] sm:$0xff]   ;;  %v16769_v2 = vld [vmem:[%s460_s12 + $0x10] sm:$0xff]   ;;  %s16741_s17 = smul.u32 144, %s20076_s27  ;;  %1182 = vst.msk [vmem:[#allocation2 + $0x20] sm:$0xf] %vm1172_vm0, %v17192_v33  ;;  %s17641_s23 = scalar_lea.vmem %s19965_s3, %s20076_s27 }
  0x14   : > { %15465 = vmatprep.subr.bf16.mxu0 %v16767_v0  ;;  %v16770_v3 = vld [vmem:[%s460_s12 + $0x18] sm:$0xff]   ;;  %v16775_v4 = vld [vmem:[%s17269_s16] sm:$0xff]   ;;  %v16772_v6 = vld [vmem:[%s460_s12 + $0x28] sm:$0xff]   ;;  %1183 = vst.msk [vmem:[#allocation2 + $0x24] sm:$0x1] %vm1174_vm1, %v17192_v33  ;;  %vm4836_vm10 = vcmask 1042432   ;;  %s479_s19 = scalar_lea.vmem %s19969_s7, %s20076_s27  ;;  %s19831_s21 = scalar_lea.vmem %s19970_s8, %s17263_s13 }
  0x15   : > { %15466 = vmatpush3.bf16.msra.mxu0 %v16767_v0  ;;  %15481 = vmatprep.mubr.bf16.mxu0 %v16775_v4  ;;  %v16771_v5 = vld [vmem:[%s460_s12 + $0x20] sm:$0xff]   ;;  %v16773_v7 = vld [vmem:[%s460_s12 + $0x30] sm:$0xff]   ;;  %v16774_v8 = vld [vmem:[%s460_s12 + $0x38] sm:$0xff]   ;;  %s17280_s20 = scalar_lea.vmem %s19966_s4, %s16741_s17  ;;  %1184 = vst.msk [vmem:[#allocation2 + $0x28] sm:$0xf] %vm1172_vm0, %v17192_v33  ;;  %vm4837_vm11 = vcmask 1046532   ;;  %s471_s12 = scalar_lea.vmem %s19967_s5, %s20076_s27 }
  0x16   : > { %15467 = vmatprep.subr.bf16.mxu0 %v16768_v1  ;;  %v16776_v9 = vld [vmem:[%s17269_s16 + $0x8] sm:$0xff]   ;;  %v16777_v10 = vld [vmem:[%s17269_s16 + $0x10] sm:$0xff]   ;;  %v16778_v11 = vld [vmem:[%s17269_s16 + $0x18] sm:$0xff]   ;;  %1185 = vst.msk [vmem:[#allocation2 + $0x2c] sm:$0x1] %vm1174_vm1, %v17192_v33  ;;  %s14605_s24 = sshll.u32 %s20076_s27, 4 }
  0x17   : > { %v16779_v12 = vld [vmem:[%s17269_s16 + $0x20] sm:$0xff]   ;;  %v16780_v13 = vld [vmem:[%s17269_s16 + $0x28] sm:$0xff]   ;;  %v16781_v14 = vld [vmem:[%s17269_s16 + $0x30] sm:$0xff]   ;;  %1186 = vst.msk [vmem:[#allocation2 + $0x30] sm:$0xf] %vm1172_vm0, %v17192_v33  ;;  %s476_s9 = scalar_lea.vmem %s19968_s6, %s14605_s24 }
  0x18   : > { %v16782_v15 = vld [vmem:[%s17269_s16 + $0x38] sm:$0xff]   ;;  %v16783_v16 = vld [vmem:[%s17269_s16 + $0x40] sm:$0xff]   ;;  %v16784_v17 = vld [vmem:[%s17269_s16 + $0x48] sm:$0xff]   ;;  %1187 = vst.msk [vmem:[#allocation2 + $0x34] sm:$0x1] %vm1174_vm1, %v17192_v33 }
  0x19   : > { %15468 = vmatpush3.bf16.msra.mxu0 %v16768_v1  ;;  %v16785_v18 = vld [vmem:[%s17269_s16 + $0x50] sm:$0xff]   ;;  %v16786_v19 = vld [vmem:[%s17269_s16 + $0x58] sm:$0xff]   ;;  %v16787_v20 = vld [vmem:[%s17269_s16 + $0x60] sm:$0xff]   ;;  %1188 = vst.msk [vmem:[#allocation2 + $0x38] sm:$0xf] %vm1172_vm0, %v17192_v33 }
  0x1a   : > { %15469 = vmatprep.subr.bf16.mxu0 %v16769_v2  ;;  %v16788_v21 = vld [vmem:[%s17269_s16 + $0x68] sm:$0xff]   ;;  %v16789_v22 = vld [vmem:[%s17269_s16 + $0x70] sm:$0xff]   ;;  %v16790_v23 = vld [vmem:[%s17269_s16 + $0x78] sm:$0xff]   ;;  %1189 = vst.msk [vmem:[#allocation2 + $0x3c] sm:$0x1] %vm1174_vm1, %v17192_v33 }
  0x1b   : > { %v16791_v24 = vld [vmem:[%s17269_s16 + $0x80] sm:$0xff]   ;;  %v16792_v25 = vld [vmem:[%s17269_s16 + $0x88] sm:$0xff]   ;;  %v16793_v26 = vld [vmem:[%s17269_s16 + $0x90] sm:$0xff]   ;;  %1190 = vst.msk [vmem:[#allocation2 + $0x40] sm:$0xf] %vm1172_vm0, %v17192_v33 }
  0x1c   : > { %v16794_v27 = vld [vmem:[%s17269_s16 + $0x98] sm:$0xff]   ;;  %v16795_v28 = vld [vmem:[%s17269_s16 + $0xa0] sm:$0xff]   ;;  %v16796_v29 = vld [vmem:[%s17269_s16 + $0xa8] sm:$0xff]   ;;  %1191 = vst.msk [vmem:[#allocation2 + $0x44] sm:$0x1] %vm1174_vm1, %v17192_v33 }
  0x1d   : > { %15470 = vmatpush3.bf16.msra.mxu0 %v16769_v2  ;;  %v16797_v30 = vld [vmem:[%s17269_s16 + $0xb0] sm:$0xff]   ;;  %v17301_v31 = vld [vmem:[%s17269_s16 + $0xb8] sm:$0xff]   ;;  %v17304_v32 = vld [vmem:[%s17269_s16 + $0xc0] sm:$0xff]   ;;  %1192 = vst.msk [vmem:[#allocation2 + $0x48] sm:$0xf] %vm1172_vm0, %v17192_v33 }
  0x1e   : > { %15471 = vmatprep.subr.bf16.mxu0 %v16770_v3  ;;  %1193 = vst.msk [vmem:[#allocation2 + $0x4c] sm:$0x1] %vm1174_vm1, %v17192_v33  ;;  %1195 = vst.msk [vmem:[#allocation2 + $0x54] sm:$0x1] %vm1174_vm1, %v17192_v33  ;;  %v16800_v34 = vld [vmem:[%s17269_s16 + $0xc8] sm:$0xff]   ;;  %v16801_v35 = vld [vmem:[%s17269_s16 + $0xd0] sm:$0xff]  }
  0x1f   : > { %1194 = vst.msk [vmem:[#allocation2 + $0x50] sm:$0xf] %vm1172_vm0, %v17192_v33  ;;  %1196 = vst.msk [vmem:[#allocation2 + $0x58] sm:$0xf] %vm1172_vm0, %v17192_v33  ;;  %v16802_v36 = vld [vmem:[%s17269_s16 + $0xd8] sm:$0xff]   ;;  %v16803_v37 = vld [vmem:[%s17269_s16 + $0xe0] sm:$0xff]  }
  0x20   : > { %1197 = vst.msk [vmem:[#allocation2 + $0x5c] sm:$0x1] %vm1174_vm1, %v17192_v33  ;;  %1199 = vst.msk [vmem:[#allocation2 + $0x64] sm:$0x1] %vm1174_vm1, %v17192_v33  ;;  %v16804_v38 = vld [vmem:[%s17269_s16 + $0xe8] sm:$0xff]   ;;  %v16805_v39 = vld [vmem:[%s17269_s16 + $0xf0] sm:$0xff]  }
  0x21   : > { %15472 = vmatpush3.bf16.msra.mxu0 %v16770_v3  ;;  %1198 = vst.msk [vmem:[#allocation2 + $0x60] sm:$0xf] %vm1172_vm0, %v17192_v33  ;;  %1200 = vst.msk [vmem:[#allocation2 + $0x68] sm:$0xf] %vm1172_vm0, %v17192_v33  ;;  %v16806_v40 = vld [vmem:[%s17269_s16 + $0xf8] sm:$0xff]   ;;  %v16807_v41 = vld [vmem:[%s17280_s20 + $0x10] sm:$0xff]   ;;  %s19811_s16 = scalar_lea.vmem %s19963_s1, %s17263_s13 }
  0x22   : > { %15473 = vmatprep.subr.bf16.mxu0 %v16771_v5  ;;  %1201 = vst.msk [vmem:[#allocation2 + $0x6c] sm:$0x1] %vm1174_vm1, %v17192_v33  ;;  %1203 = vst.msk [vmem:[#allocation2 + $0x74] sm:$0x1] %vm1174_vm1, %v17192_v33  ;;  %v16808_v42 = vld [vmem:[%s17280_s20 + $0x18] sm:$0xff]  }
  0x23   : > { %1202 = vst.msk [vmem:[#allocation2 + $0x70] sm:$0xf] %vm1172_vm0, %v17192_v33  ;;  %1204 = vst.msk [vmem:[#allocation2 + $0x78] sm:$0xf] %vm1172_vm0, %v17192_v33  ;;  %v2557_v43 = vld [vmem:[#allocation2] sm:$0xf] }
  0x24   : > { %1205 = vst.msk [vmem:[#allocation2 + $0x7c] sm:$0x1] %vm1174_vm1, %v17192_v33  ;;  %1207 = vst.msk [vmem:[#allocation2 + $0x84] sm:$0x1] %vm1174_vm1, %v17192_v33  ;;  %v2693_v45 = vshrl.u32 %v2557_v43, 16  ;;  %v2696_v46 = vshll.u32 %v2557_v43, 16 }
  0x25   : > { %15474 = vmatpush3.bf16.msra.mxu0 %v16771_v5  ;;  %1206 = vst.msk [vmem:[#allocation2 + $0x80] sm:$0xf] %vm1172_vm0, %v17192_v33  ;;  %1208 = vst.msk [vmem:[#allocation2 + $0x88] sm:$0xf] %vm1172_vm0, %v17192_v33  ;;  %v2625_v56 = vld [vmem:[#allocation2 + $0x4] sm:$0x1] }
  0x26   : > { %15475 = vmatprep.subr.bf16.mxu0 %v16772_v6  ;;  %1209 = vst.msk [vmem:[#allocation2 + $0x8c] sm:$0x1] %vm1174_vm1, %v17192_v33  ;;  %1211 = vst.msk [vmem:[#allocation2 + $0x94] sm:$0x1] %vm1174_vm1, %v17192_v33  ;;  %v2565_v44 = vld [vmem:[#allocation2 + $0x50] sm:$0xf] }
  0x27   : > { %1210 = vst.msk [vmem:[#allocation2 + $0x90] sm:$0xf] %vm1172_vm0, %v17192_v33  ;;  %1212 = vst.msk [vmem:[#allocation2 + $0x98] sm:$0xf] %vm1172_vm0, %v17192_v33  ;;  %v2805_v47 = vshrl.u32 %v2565_v44, 16  ;;  %v2808_v48 = vshll.u32 %v2565_v44, 16 }
  0x28   : > { %1213 = vst.msk [vmem:[#allocation2 + $0x9c] sm:$0x1] %vm1174_vm1, %v17192_v33  ;;  %1215 = vst.msk [vmem:[#allocation2 + $0xa4] sm:$0x1] %vm1174_vm1, %v17192_v33  ;;  %v2695_v49 = vrot.slane %v2693_v45, 4  ;;  %v2698_v50 = vrot.slane %v2696_v46, 5 }
  0x29   : > { %15476 = vmatpush3.bf16.msra.mxu0 %v16772_v6  ;;  %1214 = vst.msk [vmem:[#allocation2 + $0xa0] sm:$0xf] %vm1172_vm0, %v17192_v33  ;;  %1216 = vst.msk [vmem:[#allocation2 + $0xa8] sm:$0xf] %vm1172_vm0, %v17192_v33  ;;  %v2807_v51 = vrot.slane %v2805_v47, 4  ;;  %v2810_v52 = vrot.slane %v2808_v48, 5 }
  0x2a   : > { %15477 = vmatprep.subr.bf16.mxu0 %v16773_v7  ;;  %1217 = vst.msk [vmem:[#allocation2 + $0xac] sm:$0x1] %vm1174_vm1, %v17192_v33  ;;  %1219 = vst.msk [vmem:[#allocation2 + $0xb4] sm:$0x1] %vm1174_vm1, %v17192_v33  ;;  %v2699_v57 = vor.u32 %v2698_v50, %v2695_v49  ;;  %v2633_v58 = vld [vmem:[#allocation2 + $0x54] sm:$0x1] }
  0x2b   : > { %1218 = vst.msk [vmem:[#allocation2 + $0xb0] sm:$0xf] %vm1172_vm0, %v17192_v33  ;;  %1220 = vst.msk [vmem:[#allocation2 + $0xb8] sm:$0xf] %vm1172_vm0, %v17192_v33  ;;  %v17644_v59 = vld [vmem:[%s17641_s23] ss:$0 sm:$0xff]  ;;  %v2811_v61 = vor.u32 %v2810_v52, %v2807_v51 }
  0x2c   : > { %1221 = vst.msk [vmem:[#allocation2 + $0xbc] sm:$0x1] %vm1174_vm1, %v17192_v33  ;;  %1223 = vst.msk [vmem:[#allocation2 + $0xc4] sm:$0x1] %vm1174_vm1, %v17192_v33  ;;  %v2702_v60 = vshll.u32 %v2625_v56, 16  ;;  %v2814_v62 = vshll.u32 %v2633_v58, 16 }
  0x2d   : > { %15478 = vmatpush3.bf16.msra.mxu0 %v16773_v7  ;;  %1222 = vst.msk [vmem:[#allocation2 + $0xc0] sm:$0xf] %vm1172_vm0, %v17192_v33  ;;  %1224 = vst.msk [vmem:[#allocation2 + $0xc8] sm:$0xf] %vm1172_vm0, %v17192_v33  ;;  %v17647_v4 = vrot.slane %v2699_v57, 4 }
  0x2e   : > { %15479 = vmatprep.subr.bf16.mxu0 %v16774_v8  ;;  %1225 = vst.msk [vmem:[#allocation2 + $0xcc] sm:$0x1] %vm1174_vm1, %v17192_v33  ;;  %1227 = vst.msk [vmem:[#allocation2 + $0xd4] sm:$0x1] %vm1174_vm1, %v17192_v33  ;;  %v17650_v7 = vrot.slane %v2702_v60, 5 }
  0x2f   : > { %1226 = vst.msk [vmem:[#allocation2 + $0xd0] sm:$0xf] %vm1172_vm0, %v17192_v33  ;;  %1228 = vst.msk [vmem:[#allocation2 + $0xd8] sm:$0xf] %vm1172_vm0, %v17192_v33  ;;  %vm2174_vm6 = vsmask.f32 256 }
  0x30   : > { %1229 = vst.msk [vmem:[#allocation2 + $0xdc] sm:$0x1] %vm1174_vm1, %v17192_v33  ;;  %1231 = vst.msk [vmem:[#allocation2 + $0xe4] sm:$0x1] %vm1174_vm1, %v17192_v33  ;;  %v2573_v53 = vld [vmem:[#allocation2 + $0xa0] sm:$0xf] }
  0x31   : > { %15480 = vmatpush3.bf16.msra.mxu0 %v16774_v8  ;;  %1230 = vst.msk [vmem:[#allocation2 + $0xe0] sm:$0xf] %vm1172_vm0, %v17192_v33  ;;  %1232 = vst.msk [vmem:[#allocation2 + $0xe8] sm:$0xf] %vm1172_vm0, %v17192_v33  ;;  %v2917_v54 = vshrl.u32 %v2573_v53, 16  ;;  %v2920_v55 = vshll.u32 %v2573_v53, 16 }
  0x32   : > { %1233 = vst.msk [vmem:[#allocation2 + $0xec] sm:$0x1] %vm1174_vm1, %v17192_v33  ;;  %1235 = vst.msk [vmem:[#allocation2 + $0xf4] sm:$0x1] %vm1174_vm1, %v17192_v33  ;;  %15545 = vmatprep.subr.bf16.mxu0 %v16807_v41  ;;  %v17652_v8 = vrot.slane %v2811_v61, 4 }
  0x33   : > { %1234 = vst.msk [vmem:[#allocation2 + $0xf0] sm:$0xf] %vm1172_vm0, %v17192_v33  ;;  %1236 = vst.msk [vmem:[#allocation2 + $0xf8] sm:$0xf] %vm1172_vm0, %v17192_v33  ;;  %v2919_v63 = vrot.slane %v2917_v54, 4  ;;  %v2922_v0 = vrot.slane %v2920_v55, 5 }
  0x34   : > { %15482 = vmatmul.mubr.bf16.vlgmr.msra.gmra.mrb[0].mxu0 %v16776_v9  ;;  %1237 = vst.msk [vmem:[#allocation2 + $0xfc] sm:$0x1] %vm1174_vm1, %v17192_v33  ;;  %1239 = vst.msk [vmem:[#allocation2 + $0x104] sm:$0x1] %vm1174_vm1, %v17192_v33  ;;  %v17654_v9 = vrot.slane %v2814_v62, 5 }
  0x35   : > { %15485 = vmatprep.mubr.bf16.mxu0 %v16777_v10  ;;  %1238 = vst.msk [vmem:[#allocation2 + $0x100] sm:$0xf] %vm1172_vm0, %v17192_v33  ;;  %1240 = vst.msk [vmem:[#allocation2 + $0x108] sm:$0xf] %vm1172_vm0, %v17192_v33  ;;  %15546 = vmatpush3.bf16.msra.mxu0 %v16807_v41  ;;  %v2641_v10 = vld [vmem:[#allocation2 + $0xa4] sm:$0x1] }
  0x36   : > { %1241 = vst.msk [vmem:[#allocation2 + $0x10c] sm:$0x1] %vm1174_vm1, %v17192_v33  ;;  %1243 = vst.msk [vmem:[#allocation2 + $0x114] sm:$0x1] %vm1174_vm1, %v17192_v33  ;;  %15547 = vmatprep.subr.bf16.mxu0 %v16808_v42  ;;  %v2176_v46 = vld [vmem:[#allocation2 + $0xc] sm:$0x1] }
  0x37   : > { %1242 = vst.msk [vmem:[#allocation2 + $0x110] sm:$0xf] %vm1172_vm0, %v17192_v33  ;;  %1244 = vst.msk [vmem:[#allocation2 + $0x118] sm:$0xf] %vm1172_vm0, %v17192_v33  ;;  %v2191_v54 = vld [vmem:[#allocation2 + $0x20] sm:$0xf] }
  0x38   : > { %1245 = vst.msk [vmem:[#allocation2 + $0x11c] sm:$0x1] %vm1174_vm1, %v17192_v33  ;;  %1247 = vst.msk [vmem:[#allocation2 + $0x124] sm:$0x1] %vm1174_vm1, %v17192_v33  ;;  %v2194_v60 = vld [vmem:[#allocation2 + $0x24] sm:$0x1] }
  0x39   : > { %1246 = vst.msk [vmem:[#allocation2 + $0x120] sm:$0xf] %vm1172_vm0, %v17192_v33  ;;  %1248 = vst.msk [vmem:[#allocation2 + $0x128] sm:$0xf] %vm1172_vm0, %v17192_v33  ;;  %15548 = vmatpush3.bf16.msra.mxu0 %v16808_v42 }
  0x3a   : > { %1249 = vst.msk [vmem:[#allocation2 + $0x12c] sm:$0x1] %vm1174_vm1, %v17192_v33  ;;  %1251 = vst.msk [vmem:[#allocation2 + $0x134] sm:$0x1] %vm1174_vm1, %v17192_v33 }
  0x3b   : > { %1250 = vst.msk [vmem:[#allocation2 + $0x130] sm:$0xf] %vm1172_vm0, %v17192_v33  ;;  %1252 = vst.msk [vmem:[#allocation2 + $0x138] sm:$0xf] %vm1172_vm0, %v17192_v33 }
  0x3c   : > { %15486 = vmatmul.mubr.bf16.gmra.mrb[4].mxu0 %v16778_v11  ;;  %1253 = vst.msk [vmem:[#allocation2 + $0x13c] sm:$0x1] %vm1174_vm1, %v17192_v33  ;;  %1255 = vst.msk [vmem:[#allocation2 + $0x144] sm:$0x1] %vm1174_vm1, %v17192_v33 }
  0x3d   : > { %15489 = vmatprep.mubr.bf16.mxu0 %v16779_v12  ;;  %1254 = vst.msk [vmem:[#allocation2 + $0x140] sm:$0xf] %vm1172_vm0, %v17192_v33  ;;  %1256 = vst.msk [vmem:[#allocation2 + $0x148] sm:$0xf] %vm1172_vm0, %v17192_v33 }
  0x3e   : > { %1257 = vst.msk [vmem:[#allocation2 + $0x14c] sm:$0x1] %vm1174_vm1, %v17192_v33  ;;  %1259 = vst.msk [vmem:[#allocation2 + $0x154] sm:$0x1] %vm1174_vm1, %v17192_v33 }
  0x3f   : > { %1258 = vst.msk [vmem:[#allocation2 + $0x150] sm:$0xf] %vm1172_vm0, %v17192_v33  ;;  %1260 = vst.msk [vmem:[#allocation2 + $0x158] sm:$0xf] %vm1172_vm0, %v17192_v33 }
  0x40   : > { %1261 = vst.msk [vmem:[#allocation2 + $0x15c] sm:$0x1] %vm1174_vm1, %v17192_v33  ;;  %1263 = vst.msk [vmem:[#allocation2 + $0x164] sm:$0x1] %vm1174_vm1, %v17192_v33 }
  0x41   : > { %1262 = vst.msk [vmem:[#allocation2 + $0x160] sm:$0xf] %vm1172_vm0, %v17192_v33  ;;  %1264 = vst.msk [vmem:[#allocation2 + $0x168] sm:$0xf] %vm1172_vm0, %v17192_v33 }
  0x42   : > { %1265 = vst.msk [vmem:[#allocation2 + $0x16c] sm:$0x1] %vm1174_vm1, %v17192_v33  ;;  %1267 = vst.msk [vmem:[#allocation2 + $0x174] sm:$0x1] %vm1174_vm1, %v17192_v33 }
  0x43   : > { %1266 = vst.msk [vmem:[#allocation2 + $0x170] sm:$0xf] %vm1172_vm0, %v17192_v33  ;;  %1268 = vst.msk [vmem:[#allocation2 + $0x178] sm:$0xf] %vm1172_vm0, %v17192_v33 }
  0x44   : > { %15490 = vmatmul.mubr.bf16.gmra.mrb[8].mxu0 %v16780_v13  ;;  %1269 = vst.msk [vmem:[#allocation2 + $0x17c] sm:$0x1] %vm1174_vm1, %v17192_v33  ;;  %1271 = vst.msk [vmem:[#allocation2 + $0x184] sm:$0x1] %vm1174_vm1, %v17192_v33 }
  0x45   : > { %15493 = vmatprep.mubr.bf16.mxu0 %v16781_v14  ;;  %1270 = vst.msk [vmem:[#allocation2 + $0x180] sm:$0xf] %vm1172_vm0, %v17192_v33  ;;  %1272 = vst.msk [vmem:[#allocation2 + $0x188] sm:$0xf] %vm1172_vm0, %v17192_v33 }
  0x46   : > { %1273 = vst.msk [vmem:[#allocation2 + $0x18c] sm:$0x1] %vm1174_vm1, %v17192_v33  ;;  %1275 = vst.msk [vmem:[#allocation2 + $0x194] sm:$0x1] %vm1174_vm1, %v17192_v33 }
  0x47   : > { %1274 = vst.msk [vmem:[#allocation2 + $0x190] sm:$0xf] %vm1172_vm0, %v17192_v33  ;;  %1276 = vst.msk [vmem:[#allocation2 + $0x198] sm:$0xf] %vm1172_vm0, %v17192_v33 }
  0x48   : > { %1277 = vst.msk [vmem:[#allocation2 + $0x19c] sm:$0x1] %vm1174_vm1, %v17192_v33  ;;  %1279 = vst.msk [vmem:[#allocation2 + $0x1a4] sm:$0x1] %vm1174_vm1, %v17192_v33 }
  0x49   : > { %1278 = vst.msk [vmem:[#allocation2 + $0x1a0] sm:$0xf] %vm1172_vm0, %v17192_v33  ;;  %1280 = vst.msk [vmem:[#allocation2 + $0x1a8] sm:$0xf] %vm1172_vm0, %v17192_v33 }
  0x4a   : > { %1281 = vst.msk [vmem:[#allocation2 + $0x1ac] sm:$0x1] %vm1174_vm1, %v17192_v33  ;;  %1283 = vst.msk [vmem:[#allocation2 + $0x1b4] sm:$0x1] %vm1174_vm1, %v17192_v33 }
  0x4b   : > { %1282 = vst.msk [vmem:[#allocation2 + $0x1b0] sm:$0xf] %vm1172_vm0, %v17192_v33  ;;  %1284 = vst.msk [vmem:[#allocation2 + $0x1b8] sm:$0xf] %vm1172_vm0, %v17192_v33 }
  0x4c   : > { %15494 = vmatmul.mubr.bf16.gmra.mrb[12].mxu0 %v16782_v15  ;;  %1285 = vst.msk [vmem:[#allocation2 + $0x1bc] sm:$0x1] %vm1174_vm1, %v17192_v33  ;;  %1287 = vst.msk [vmem:[#allocation2 + $0x1c4] sm:$0x1] %vm1174_vm1, %v17192_v33  ;;  %v2923_v15 = vor.u32 %v2922_v0, %v2919_v63 }
  0x4d   : > { %15497 = vmatprep.mubr.bf16.mxu0 %v16783_v16  ;;  %1286 = vst.msk [vmem:[#allocation2 + $0x1c0] sm:$0xf] %vm1172_vm0, %v17192_v33  ;;  %1288 = vst.msk [vmem:[#allocation2 + $0x1c8] sm:$0xf] %vm1172_vm0, %v17192_v33  ;;  %v2926_v16 = vshll.u32 %v2641_v10, 16 }
  0x4e   : > { %1289 = vst.msk [vmem:[#allocation2 + $0x1cc] sm:$0x1] %vm1174_vm1, %v17192_v33  ;;  %1291 = vst.msk [vmem:[#allocation2 + $0x1d4] sm:$0x1] %vm1174_vm1, %v17192_v33 }
  0x4f   : > { %1290 = vst.msk [vmem:[#allocation2 + $0x1d0] sm:$0xf] %vm1172_vm0, %v17192_v33  ;;  %1292 = vst.msk [vmem:[#allocation2 + $0x1d8] sm:$0xf] %vm1172_vm0, %v17192_v33 }
  0x50   : > { %1293 = vst.msk [vmem:[#allocation2 + $0x1dc] sm:$0x1] %vm1174_vm1, %v17192_v33  ;;  %1295 = vst.msk [vmem:[#allocation2 + $0x1e4] sm:$0x1] %vm1174_vm1, %v17192_v33 }
  0x51   : > { %1294 = vst.msk [vmem:[#allocation2 + $0x1e0] sm:$0xf] %vm1172_vm0, %v17192_v33  ;;  %1296 = vst.msk [vmem:[#allocation2 + $0x1e8] sm:$0xf] %vm1172_vm0, %v17192_v33 }
  0x52   : > { %1297 = vst.msk [vmem:[#allocation2 + $0x1ec] sm:$0x1] %vm1174_vm1, %v17192_v33  ;;  %1299 = vst.msk [vmem:[#allocation2 + $0x1f4] sm:$0x1] %vm1174_vm1, %v17192_v33 }
  0x53   : > { %1298 = vst.msk [vmem:[#allocation2 + $0x1f0] sm:$0xf] %vm1172_vm0, %v17192_v33  ;;  %1300 = vst.msk [vmem:[#allocation2 + $0x1f8] sm:$0xf] %vm1172_vm0, %v17192_v33 }
  0x54   : > { %15498 = vmatmul.mubr.bf16.gmra.mrb[16].mxu0 %v16784_v17  ;;  %1301 = vst.msk [vmem:[#allocation2 + $0x1fc] sm:$0x1] %vm1174_vm1, %v17192_v33  ;;  %1303 = vst.msk [vmem:[#allocation2 + $0x204] sm:$0x1] %vm1174_vm1, %v17192_v33 }
  0x55   : > { %15501 = vmatprep.mubr.bf16.mxu0 %v16785_v18  ;;  %1302 = vst.msk [vmem:[#allocation2 + $0x200] sm:$0xf] %vm1172_vm0, %v17192_v33  ;;  %1304 = vst.msk [vmem:[#allocation2 + $0x208] sm:$0xf] %vm1172_vm0, %v17192_v33 }
  0x56   : > { %1305 = vst.msk [vmem:[#allocation2 + $0x20c] sm:$0x1] %vm1174_vm1, %v17192_v33  ;;  %1307 = vst.msk [vmem:[#allocation2 + $0x214] sm:$0x1] %vm1174_vm1, %v17192_v33 }
  0x57   : > { %1306 = vst.msk [vmem:[#allocation2 + $0x210] sm:$0xf] %vm1172_vm0, %v17192_v33  ;;  %1308 = vst.msk [vmem:[#allocation2 + $0x218] sm:$0xf] %vm1172_vm0, %v17192_v33 }
  0x58   : > { %1309 = vst.msk [vmem:[#allocation2 + $0x21c] sm:$0x1] %vm1174_vm1, %v17192_v33  ;;  %1311 = vst.msk [vmem:[#allocation2 + $0x224] sm:$0x1] %vm1174_vm1, %v17192_v33 }
  0x59   : > { %1310 = vst.msk [vmem:[#allocation2 + $0x220] sm:$0xf] %vm1172_vm0, %v17192_v33  ;;  %1312 = vst.msk [vmem:[#allocation2 + $0x228] sm:$0xf] %vm1172_vm0, %v17192_v33 }
  0x5a   : > { %1313 = vst.msk [vmem:[#allocation2 + $0x22c] sm:$0x1] %vm1174_vm1, %v17192_v33  ;;  %1315 = vst.msk [vmem:[#allocation2 + $0x234] sm:$0x1] %vm1174_vm1, %v17192_v33 }
  0x5b   : > { %1314 = vst.msk [vmem:[#allocation2 + $0x230] sm:$0xf] %vm1172_vm0, %v17192_v33  ;;  %1316 = vst.msk [vmem:[#allocation2 + $0x238] sm:$0xf] %vm1172_vm0, %v17192_v33 }
  0x5c   : > { %15502 = vmatmul.mubr.bf16.gmra.mrb[20].mxu0 %v16786_v19  ;;  %1317 = vst.msk [vmem:[#allocation2 + $0x23c] sm:$0x1] %vm1174_vm1, %v17192_v33  ;;  %1319 = vst.msk [vmem:[#allocation2 + $0x244] sm:$0x1] %vm1174_vm1, %v17192_v33 }
  0x5d   : > { %15505 = vmatprep.mubr.bf16.mxu0 %v16787_v20  ;;  %1318 = vst.msk [vmem:[#allocation2 + $0x240] sm:$0xf] %vm1172_vm0, %v17192_v33  ;;  %1320 = vst.msk [vmem:[#allocation2 + $0x248] sm:$0xf] %vm1172_vm0, %v17192_v33 }
  0x5e   : > { %1321 = vst.msk [vmem:[#allocation2 + $0x24c] sm:$0x1] %vm1174_vm1, %v17192_v33  ;;  %1323 = vst.msk [vmem:[#allocation2 + $0x254] sm:$0x1] %vm1174_vm1, %v17192_v33 }
  0x5f   : > { %1322 = vst.msk [vmem:[#allocation2 + $0x250] sm:$0xf] %vm1172_vm0, %v17192_v33  ;;  %1324 = vst.msk [vmem:[#allocation2 + $0x258] sm:$0xf] %vm1172_vm0, %v17192_v33 }
  0x60   : > { %1325 = vst.msk [vmem:[#allocation2 + $0x25c] sm:$0x1] %vm1174_vm1, %v17192_v33  ;;  %1327 = vst.msk [vmem:[#allocation2 + $0x264] sm:$0x1] %vm1174_vm1, %v17192_v33 }
  0x61   : > { %1326 = vst.msk [vmem:[#allocation2 + $0x260] sm:$0xf] %vm1172_vm0, %v17192_v33  ;;  %1328 = vst.msk [vmem:[#allocation2 + $0x268] sm:$0xf] %vm1172_vm0, %v17192_v33 }
  0x62   : > { %1329 = vst.msk [vmem:[#allocation2 + $0x26c] sm:$0x1] %vm1174_vm1, %v17192_v33  ;;  %1331 = vst.msk [vmem:[#allocation2 + $0x274] sm:$0x1] %vm1174_vm1, %v17192_v33 }
  0x63   : > { %1330 = vst.msk [vmem:[#allocation2 + $0x270] sm:$0xf] %vm1172_vm0, %v17192_v33  ;;  %1332 = vst.msk [vmem:[#allocation2 + $0x278] sm:$0xf] %vm1172_vm0, %v17192_v33 }
  0x64   : > { %15506 = vmatmul.mubr.bf16.gmra.mrb[24].mxu0 %v16788_v21  ;;  %1333 = vst.msk [vmem:[#allocation2 + $0x27c] sm:$0x1] %vm1174_vm1, %v17192_v33  ;;  %vm17657_vm4 = vmor %vm2689_vm2, %vm2690_vm3 }
  0x65   : > { %15509 = vmatprep.mubr.bf16.mxu0 %v16789_v22  ;;  %vm17677_vm7 = vmand %vm1172_vm0, %vm2168_vm5 }
  0x66   : > { %vm17684_vm8 = vmand %vm1174_vm1, %vm2174_vm6 }
  0x67   : > { %vm18562_vm12 = vmor %vm4836_vm10, %vm4837_vm11 }
  0x6c   : > { %15510 = vmatmul.mubr.bf16.gmra.mrb[28].mxu0 %v16790_v23  ;;  %v2705_v23 = vsel %vm17657_vm4, %v17647_v4, %v17650_v7 }
  0x6d   : > { %15513 = vmatprep.mubr.bf16.mxu0 %v16791_v24  ;;  %v2817_v24 = vsel %vm17657_vm4, %v17652_v8, %v17654_v9 }
  0x74   : > { %15514 = vmatmul.mubr.bf16.gmra.mrb[32].mxu0 %v16792_v25  ;;  %v16809_v25 = vld [vmem:[%s17280_s20 + $0x30] sm:$0xff]  }
  0x75   : > { %15517 = vmatprep.mubr.bf16.mxu0 %v16793_v26  ;;  %16225 = vmatprep.subr.bf16.mxu1 %v16809_v25 }
  0x76   : > { %16227 = vmatpush3.bf16.msra.mxu1 %v16809_v25 }
  0x7c   : > { %15518 = vmatmul.mubr.bf16.gmra.mrb[36].mxu0 %v16794_v27 }
  0x7d   : > { %15521 = vmatprep.mubr.bf16.mxu0 %v16795_v28  ;;  %v17671_v28 = vrot.slane %v2923_v15, 4 }
  0x84   : > { %15522 = vmatmul.mubr.bf16.gmra.mrb[40].mxu0 %v16796_v29  ;;  %v17673_v29 = vrot.slane %v2926_v16, 5 }
  0x85   : > { %15525 = vmatprep.mubr.bf16.mxu0 %v16797_v30 }
  0x8c   : > { %15526 = vmatmul.mubr.bf16.gmra.mrb[44].mxu0 %v17301_v31  ;;  %v2185_v31 = vld [vmem:[#allocation2 + $0x18] sm:$0xf] }
  0x8d   : > { %15529 = vmatprep.mubr.bf16.mxu0 %v17304_v32  ;;  %v2188_v32 = vld [vmem:[#allocation2 + $0x1c] sm:$0x1] }
  0x94   : > { %15530 = vmatmul.mubr.bf16.gmra.mrb[48].mxu0 %v16800_v34 }
  0x95   : > { %15533 = vmatprep.mubr.bf16.mxu0 %v16801_v35 }
  0x9c   : > { %15534 = vmatmul.mubr.bf16.gmra.mrb[52].mxu0 %v16802_v36 }
  0x9d   : > { %15537 = vmatprep.mubr.bf16.mxu0 %v16803_v37 }
  0xa4   : > { %15538 = vmatmul.mubr.bf16.gmra.mrb[56].mxu0 %v16804_v38 }
  0xa5   : > { %15541 = vmatprep.mubr.bf16.mxu0 %v16805_v39  ;;  %v2170_v39 = vld [vmem:[#allocation2 + $0x8] sm:$0xf] }
  0xac   : > { %15542 = vmatmul.mubr.bf16.gmra.mrb[60].mxu0 %v16806_v40 }
 0x107   : > { %v15483_v1 = vpop.f32.mrb[0].mxu0 }
 0x108   : > { %v862_v2 = vadd.f32 %v15483_v1, %v17644_v59  ;;  %v853_v3 = vpop.f32.mrb[1].mxu0 }
 0x109   : > { %v854_v5 = vadd.f32 %v17644_v59, %v853_v3  ;;  %v15484_v6 = vpop.f32.mrb[2].mxu0  ;;  %v2179_v3 = vld [vmem:[#allocation2 + $0x10] sm:$0xf] }
 0x10a   : > { %v1110_v11 = vmax.f32 %v862_v2, 0.0  ;;  %v865_v12 = vadd.f32 %v15484_v6, %v17644_v59  ;;  %v856_v13 = vpop.f32.mrb[3].mxu0  ;;  %v16810_v6 = vld [vmem:[%s17280_s20 + $0x38] sm:$0xff]  }
 0x10b   : > { %v1108_v17 = vmax.f32 %v854_v5, 0.0  ;;  %v857_v18 = vadd.f32 %v17644_v59, %v856_v13  ;;  %v2182_v5 = vld [vmem:[#allocation2 + $0x14] sm:$0x1]  ;;  %16226 = vmatprep.subr.bf16.mxu1 %v16810_v6 }
 0x10c   : > { %v14609_v19 = vpack.c.bf16 %v1110_v11, %v1110_v11  ;;  %v1111_v20 = vmax.f32 %v865_v12, 0.0  ;;  %16228 = vmatpush3.bf16.msra.mxu1 %v16810_v6 }
 0x10d   : > { %v14607_v21 = vpack.c.bf16 %v1108_v17, %v1108_v17  ;;  %v1109_v22 = vmax.f32 %v857_v18, 0.0 }
 0x10e   : > { %v1543_v26 = vshrl.u32 %v14609_v19, 16  ;;  %v14610_v27 = vpack.c.bf16 %v1111_v20, %v1111_v20  ;;  %v1546_v30 = vshll.u32 %v14609_v19, 16 }
 0x10f   : > { %v1527_v33 = vshrl.u32 %v14607_v21, 16  ;;  %v1530_v34 = vshll.u32 %v14607_v21, 16  ;;  %v14608_v35 = vpack.c.bf16 %v1109_v22, %v1109_v22  ;;  %v15487_v36 = vpop.f32.mrb[4].mxu0 }
 0x110   : > { %v1545_v37 = vrot.slane %v1543_v26, 7  ;;  %v1551_v40 = vshrl.u32 %v14610_v27, 16  ;;  %v1554_v41 = vshll.u32 %v14610_v27, 16  ;;  %v878_v42 = vadd.f32 %v15487_v36, %v17644_v59  ;;  %v869_v43 = vpop.f32.mrb[5].mxu0 }
 0x111   : > { %v1529_v45 = vrot.slane %v1527_v33, 7  ;;  %v1535_v47 = vshrl.u32 %v14608_v35, 16  ;;  %v1538_v48 = vshll.u32 %v14608_v35, 16  ;;  %v870_v49 = vadd.f32 %v17644_v59, %v869_v43  ;;  %v15488_v50 = vpop.f32.mrb[6].mxu0  ;;  %v2209_v33 = vld [vmem:[#allocation2 + $0x38] sm:$0xf] }
 0x112   : > { %v1548_v51 = vor.u32 %v1546_v30, %v1545_v37  ;;  %v1549_v52 = vrot.slane %v1545_v37, 4  ;;  %v1553_v53 = vrot.slane %v1551_v40, 7  ;;  %v1114_v55 = vmax.f32 %v878_v42, 0.0  ;;  %v872_v56 = vpop.f32.mrb[7].mxu0 }
 0x113   : > { %v1532_v57 = vor.u32 %v1530_v34, %v1529_v45  ;;  %v1533_v58 = vrot.slane %v1529_v45, 4  ;;  %v1537_v61 = vrot.slane %v1535_v47, 7  ;;  %v1112_v62 = vmax.f32 %v870_v49, 0.0  ;;  %v2197_v47 = vld [vmem:[#allocation2 + $0x28] sm:$0xf] }
 0x114   : > { %v2186_v63 = vsel %vm17677_vm7, %v1548_v51, %v2185_v31  ;;  %v2189_v0 = vsel %vm17684_vm8, %v1549_v52, %v2188_v32  ;;  %v1556_v1 = vor.u32 %v1554_v41, %v1553_v53  ;;  %v1557_v2 = vrot.slane %v1553_v53, 4  ;;  %v2212_v41 = vld [vmem:[#allocation2 + $0x3c] sm:$0x1] }
 0x115   : > { %2187 = vst [vmem:[#allocation2 + $0x18] sm:$0xf] %v2186_v63  ;;  %2190 = vst [vmem:[#allocation2 + $0x1c] sm:$0x1] %v2189_v0  ;;  %v2171_v10 = vsel %vm17677_vm7, %v1532_v57, %v2170_v39  ;;  %v2177_v11 = vsel %vm17684_vm8, %v1533_v58, %v2176_v46  ;;  %v1540_v12 = vor.u32 %v1538_v48, %v1537_v61  ;;  %v1541_v13 = vrot.slane %v1537_v61, 4 }
 0x116   : > { %2172 = vst [vmem:[#allocation2 + $0x8] sm:$0xf] %v2171_v10  ;;  %2178 = vst [vmem:[#allocation2 + $0xc] sm:$0x1] %v2177_v11  ;;  %v2192_v15 = vsel %vm17677_vm7, %v1556_v1, %v2191_v54  ;;  %v2195_v16 = vsel %vm17684_vm8, %v1557_v2, %v2194_v60  ;;  %v14613_v17 = vpack.c.bf16 %v1114_v55, %v1114_v55  ;;  %v2200_v48 = vld [vmem:[#allocation2 + $0x2c] sm:$0x1] }
 0x117   : > { %v14611_v18 = vpack.c.bf16 %v1112_v62, %v1112_v62  ;;  %2193 = vst [vmem:[#allocation2 + $0x20] sm:$0xf] %v2192_v15  ;;  %2196 = vst [vmem:[#allocation2 + $0x24] sm:$0x1] %v2195_v16  ;;  %v2180_v19 = vsel %vm17677_vm7, %v1540_v12, %v2179_v3  ;;  %v2183_v20 = vsel %vm17684_vm8, %v1541_v13, %v2182_v5  ;;  %v15491_v25 = vpop.f32.mrb[8].mxu0 }
 0x118   : > { %v881_v21 = vadd.f32 %v15488_v50, %v17644_v59  ;;  %v873_v22 = vadd.f32 %v17644_v59, %v872_v56  ;;  %2181 = vst [vmem:[#allocation2 + $0x10] sm:$0xf] %v2180_v19  ;;  %2184 = vst [vmem:[#allocation2 + $0x14] sm:$0x1] %v2183_v20  ;;  %v1575_v26 = vshrl.u32 %v14613_v17, 16  ;;  %v1578_v27 = vshll.u32 %v14613_v17, 16 }
 0x119   : > { %v1559_v30 = vshrl.u32 %v14611_v18, 16  ;;  %v885_v31 = vpop.f32.mrb[9].mxu0  ;;  %v2929_v32 = vsel %vm17657_vm4, %v17671_v28, %v17673_v29  ;;  %v894_v36 = vadd.f32 %v15491_v25, %v17644_v59  ;;  %v1562_v43 = vshll.u32 %v14611_v18, 16  ;;  %v2215_v3 = vld [vmem:[#allocation2 + $0x40] sm:$0xf] }
 0x11a   : > { %v1115_v34 = vmax.f32 %v881_v21, 0.0  ;;  %v1113_v35 = vmax.f32 %v873_v22, 0.0  ;;  %v886_v37 = vadd.f32 %v17644_v59, %v885_v31  ;;  %v15492_v39 = vpop.f32.mrb[10].mxu0  ;;  %v1577_v40 = vrot.slane %v1575_v26, 7  ;;  %v2218_v5 = vld [vmem:[#allocation2 + $0x44] sm:$0x1] }
 0x11b   : > { %v1561_v42 = vrot.slane %v1559_v30, 7  ;;  %v897_v45 = vadd.f32 %v15492_v39, %v17644_v59  ;;  %v888_v46 = vpop.f32.mrb[11].mxu0  ;;  %v1118_v51 = vmax.f32 %v894_v36, 0.0  ;;  %v2203_v11 = vld [vmem:[#allocation2 + $0x30] sm:$0xf] }
 0x11c   : > { %v14614_v49 = vpack.c.bf16 %v1115_v34, %v1115_v34  ;;  %v14612_v50 = vpack.c.bf16 %v1113_v35, %v1113_v35  ;;  %v1116_v52 = vmax.f32 %v886_v37, 0.0  ;;  %v1580_v53 = vor.u32 %v1578_v27, %v1577_v40  ;;  %v2206_v16 = vld [vmem:[#allocation2 + $0x34] sm:$0x1] }
 0x11d   : > { %v1581_v54 = vrot.slane %v1577_v40, 4  ;;  %v1564_v55 = vor.u32 %v1562_v43, %v1561_v42  ;;  %v1565_v56 = vrot.slane %v1561_v42, 4  ;;  %v17715_v62 = vld [vmem:[#allocation2 + $0x8] sm:$0xf]  ;;  %v14617_v12 = vpack.c.bf16 %v1118_v51, %v1118_v51 }
 0x11e   : > { %v1583_v57 = vshrl.u32 %v14614_v49, 16  ;;  %v1586_v58 = vshll.u32 %v14614_v49, 16  ;;  %v1567_v60 = vshrl.u32 %v14612_v50, 16  ;;  %v1570_v61 = vshll.u32 %v14612_v50, 16  ;;  %v2233_v42 = vld [vmem:[#allocation2 + $0x68] sm:$0xf] }
 0x11f   : > { %v2210_v63 = vsel %vm17677_vm7, %v1580_v53, %v2209_v33  ;;  %v2213_v0 = vsel %vm17684_vm8, %v1581_v54, %v2212_v41  ;;  %v2198_v1 = vsel %vm17677_vm7, %v1564_v55, %v2197_v47  ;;  %v2201_v2 = vsel %vm17684_vm8, %v1565_v56, %v2200_v48  ;;  %v15495_v15 = vpop.f32.mrb[12].mxu0  ;;  %v2221_v49 = vld [vmem:[#allocation2 + $0x58] sm:$0xf]  ;;  %v2224_v50 = vld [vmem:[#allocation2 + $0x5c] sm:$0x1] }
 0x120   : > { %2211 = vst [vmem:[#allocation2 + $0x38] sm:$0xf] %v2210_v63  ;;  %2214 = vst [vmem:[#allocation2 + $0x3c] sm:$0x1] %v2213_v0  ;;  %v1585_v6 = vrot.slane %v1583_v57, 7  ;;  %v1569_v10 = vrot.slane %v1567_v60, 7  ;;  %v14615_v13 = vpack.c.bf16 %v1116_v52, %v1116_v52  ;;  %v889_v18 = vadd.f32 %v17644_v59, %v888_v46 }
 0x121   : > { %2199 = vst [vmem:[#allocation2 + $0x28] sm:$0xf] %v2198_v1  ;;  %2202 = vst [vmem:[#allocation2 + $0x2c] sm:$0x1] %v2201_v2  ;;  %v1119_v17 = vmax.f32 %v897_v45, 0.0  ;;  %v910_v19 = vadd.f32 %v15495_v15, %v17644_v59  ;;  %v901_v20 = vpop.f32.mrb[13].mxu0 }
 0x122   : > { %v2707_v21 = vshrl.u32 %v17715_v62, 16  ;;  %v1588_v22 = vor.u32 %v1586_v58, %v1585_v6  ;;  %v1589_v25 = vrot.slane %v1585_v6, 4  ;;  %v1572_v26 = vor.u32 %v1570_v61, %v1569_v10  ;;  %v15496_v30 = vpop.f32.mrb[14].mxu0  ;;  %v2236_v45 = vld [vmem:[#allocation2 + $0x6c] sm:$0x1]  ;;  %v17740_v2 = vld [vmem:[%s17280_s20 + $0x40] sm:$0xff]  }
 0x123   : > { %v1573_v27 = vrot.slane %v1569_v10, 4  ;;  %v1607_v31 = vshrl.u32 %v14617_v12, 16  ;;  %v1610_v33 = vshll.u32 %v14617_v12, 16  ;;  %v1591_v34 = vshrl.u32 %v14615_v13, 16  ;;  %v904_v36 = vpop.f32.mrb[15].mxu0  ;;  %15817 = vmatprep.subr.bf16.mxu1 %v17740_v2 }
 0x124   : > { %v1594_v35 = vshll.u32 %v14615_v13, 16  ;;  %v2216_v37 = vsel %vm17677_vm7, %v1588_v22, %v2215_v3  ;;  %v2219_v39 = vsel %vm17684_vm8, %v1589_v25, %v2218_v5  ;;  %v2204_v40 = vsel %vm17677_vm7, %v1572_v26, %v2203_v11  ;;  %v2239_v11 = vld [vmem:[#allocation2 + $0x70] sm:$0xf]  ;;  %v2242_v12 = vld [vmem:[#allocation2 + $0x74] sm:$0x1] }
 0x125   : > { %v2207_v41 = vsel %vm17684_vm8, %v1573_v27, %v2206_v16  ;;  %2217 = vst [vmem:[#allocation2 + $0x40] sm:$0xf] %v2216_v37  ;;  %2220 = vst [vmem:[#allocation2 + $0x44] sm:$0x1] %v2219_v39  ;;  %v1609_v43 = vrot.slane %v1607_v31, 7  ;;  %v1593_v46 = vrot.slane %v1591_v34, 7  ;;  %v14618_v47 = vpack.c.bf16 %v1119_v17, %v1119_v17 }
 0x126   : > { %2205 = vst [vmem:[#allocation2 + $0x30] sm:$0xf] %v2204_v40  ;;  %2208 = vst [vmem:[#allocation2 + $0x34] sm:$0x1] %v2207_v41  ;;  %v1117_v48 = vmax.f32 %v889_v18, 0.0  ;;  %v1122_v51 = vmax.f32 %v910_v19, 0.0  ;;  %v902_v52 = vadd.f32 %v17644_v59, %v901_v20  ;;  %v913_v53 = vadd.f32 %v15496_v30, %v17644_v59 }
 0x127   : > { %v905_v54 = vadd.f32 %v17644_v59, %v904_v36  ;;  %v1612_v55 = vor.u32 %v1610_v33, %v1609_v43  ;;  %v1613_v56 = vrot.slane %v1609_v43, 4  ;;  %v1596_v57 = vor.u32 %v1594_v35, %v1593_v46  ;;  %v15499_v1 = vpop.f32.mrb[16].mxu0  ;;  %v2227_v35 = vld [vmem:[#allocation2 + $0x60] sm:$0xf]  ;;  %v2230_v36 = vld [vmem:[#allocation2 + $0x64] sm:$0x1] }
 0x128   : > { %v1597_v58 = vrot.slane %v1593_v46, 4  ;;  %v1615_v60 = vshrl.u32 %v14618_v47, 16  ;;  %v1618_v61 = vshll.u32 %v14618_v47, 16  ;;  %v14616_v63 = vpack.c.bf16 %v1117_v48, %v1117_v48  ;;  %v917_v13 = vpop.f32.mrb[17].mxu0  ;;  %v2257_v47 = vld [vmem:[#allocation2 + $0x88] sm:$0xf] }
 0x129   : > { %v14621_v0 = vpack.c.bf16 %v1122_v51, %v1122_v51  ;;  %v2234_v3 = vsel %vm17677_vm7, %v1612_v55, %v2233_v42  ;;  %v2237_v5 = vsel %vm17684_vm8, %v1613_v56, %v2236_v45  ;;  %v2222_v6 = vsel %vm17677_vm7, %v1596_v57, %v2221_v49  ;;  %v15500_v19 = vpop.f32.mrb[18].mxu0  ;;  %v2260_v48 = vld [vmem:[#allocation2 + $0x8c] sm:$0x1]  ;;  %v2245_v55 = vld [vmem:[#allocation2 + $0x78] sm:$0xf] }
 0x12a   : > { %v2225_v10 = vsel %vm17684_vm8, %v1597_v58, %v2224_v50  ;;  %2235 = vst [vmem:[#allocation2 + $0x68] sm:$0xf] %v2234_v3  ;;  %2238 = vst [vmem:[#allocation2 + $0x6c] sm:$0x1] %v2237_v5  ;;  %v1617_v15 = vrot.slane %v1615_v60, 7  ;;  %v1599_v16 = vshrl.u32 %v14616_v63, 16  ;;  %v926_v41 = vadd.f32 %v15499_v1, %v17644_v59 }
 0x12b   : > { %2223 = vst [vmem:[#allocation2 + $0x58] sm:$0xf] %v2222_v6  ;;  %2226 = vst [vmem:[#allocation2 + $0x5c] sm:$0x1] %v2225_v10  ;;  %v1602_v17 = vshll.u32 %v14616_v63, 16  ;;  %v1639_v18 = vshrl.u32 %v14621_v0, 16 }
 0x12c   : > { %v1642_v20 = vshll.u32 %v14621_v0, 16  ;;  %v1120_v22 = vmax.f32 %v902_v52, 0.0  ;;  %v1123_v25 = vmax.f32 %v913_v53, 0.0  ;;  %v1121_v26 = vmax.f32 %v905_v54, 0.0  ;;  %v17751_v27 = vpop.f32.mrb[19].mxu0 }
 0x12d   : > { %v1620_v30 = vor.u32 %v1618_v61, %v1617_v15  ;;  %v1621_v31 = vrot.slane %v1617_v15, 4  ;;  %v1601_v33 = vrot.slane %v1599_v16, 7  ;;  %v1641_v34 = vrot.slane %v1639_v18, 7  ;;  %v2248_v56 = vld [vmem:[#allocation2 + $0x7c] sm:$0x1] }
 0x12e   : > { %v14619_v37 = vpack.c.bf16 %v1120_v22, %v1120_v22  ;;  %v14622_v39 = vpack.c.bf16 %v1123_v25, %v1123_v25  ;;  %v14620_v40 = vpack.c.bf16 %v1121_v26, %v1121_v26  ;;  %v2263_v1 = vld [vmem:[#allocation2 + $0x90] sm:$0xf]  ;;  %v2266_v3 = vld [vmem:[#allocation2 + $0x94] sm:$0x1]  ;;  %v1126_v15 = vmax.f32 %v926_v41, 0.0 }
 0x12f   : > { %v2240_v42 = vsel %vm17677_vm7, %v1620_v30, %v2239_v11  ;;  %v2243_v43 = vsel %vm17684_vm8, %v1621_v31, %v2242_v12  ;;  %v1604_v45 = vor.u32 %v1602_v17, %v1601_v33  ;;  %v1605_v46 = vrot.slane %v1601_v33, 4  ;;  %v17762_v60 = vpop.f32.mrb[20].mxu0  ;;  %v2251_v12 = vld [vmem:[#allocation2 + $0x80] sm:$0xf]  ;;  %v2254_v25 = vld [vmem:[#allocation2 + $0x84] sm:$0x1] }
 0x130   : > { %2241 = vst [vmem:[#allocation2 + $0x70] sm:$0xf] %v2240_v42  ;;  %2244 = vst [vmem:[#allocation2 + $0x74] sm:$0x1] %v2243_v43  ;;  %v1644_v49 = vor.u32 %v1642_v20, %v1641_v34  ;;  %v1645_v50 = vrot.slane %v1641_v34, 4  ;;  %v1623_v51 = vshrl.u32 %v14619_v37, 16  ;;  %v918_v16 = vadd.f32 %v17644_v59, %v917_v13 }
 0x131   : > { %v1626_v52 = vshll.u32 %v14619_v37, 16  ;;  %v2228_v53 = vsel %vm17677_vm7, %v1604_v45, %v2227_v35  ;;  %v2231_v54 = vsel %vm17684_vm8, %v1605_v46, %v2230_v36  ;;  %v1647_v57 = vshrl.u32 %v14622_v39, 16  ;;  %v17768_v6 = vpop.f32.mrb[21].mxu0  ;;  %v2626_v36 = vld [vmem:[#allocation2 + $0xc] sm:$0x1] }
 0x132   : > { %v1650_v58 = vshll.u32 %v14622_v39, 16  ;;  %2229 = vst [vmem:[#allocation2 + $0x60] sm:$0xf] %v2228_v53  ;;  %2232 = vst [vmem:[#allocation2 + $0x64] sm:$0x1] %v2231_v54  ;;  %v2258_v61 = vsel %vm17677_vm7, %v1644_v49, %v2257_v47  ;;  %v2261_v63 = vsel %vm17684_vm8, %v1645_v50, %v2260_v48  ;;  %v1625_v0 = vrot.slane %v1623_v51, 7 }
 0x133   : > { %v1631_v5 = vshrl.u32 %v14620_v40, 16  ;;  %2259 = vst [vmem:[#allocation2 + $0x88] sm:$0xf] %v2258_v61  ;;  %2262 = vst [vmem:[#allocation2 + $0x8c] sm:$0x1] %v2261_v63  ;;  %v1649_v10 = vrot.slane %v1647_v57, 7  ;;  %v929_v26 = vadd.f32 %v15500_v19, %v17644_v59  ;;  %v14625_v34 = vpack.c.bf16 %v1126_v15, %v1126_v15 }
 0x134   : > { %v1634_v11 = vshll.u32 %v14620_v40, 16  ;;  %v17771_v17 = vpop.f32.mrb[22].mxu0  ;;  %v1628_v18 = vor.u32 %v1626_v52, %v1625_v0  ;;  %v1629_v20 = vrot.slane %v1625_v0, 4  ;;  %v1124_v35 = vmax.f32 %v918_v16, 0.0  ;;  %v2281_v47 = vld [vmem:[#allocation2 + $0xb8] sm:$0xf] }
 0x135   : > { %v1633_v22 = vrot.slane %v1631_v5, 7  ;;  %v17774_v30 = vpop.f32.mrb[23].mxu0  ;;  %v1652_v31 = vor.u32 %v1650_v58, %v1649_v10  ;;  %v1653_v33 = vrot.slane %v1649_v10, 4  ;;  %v1671_v42 = vshrl.u32 %v14625_v34, 16  ;;  %v2284_v48 = vld [vmem:[#allocation2 + $0xbc] sm:$0x1] }
 0x136   : > { %v2246_v37 = vsel %vm17677_vm7, %v1628_v18, %v2245_v55  ;;  %v2249_v13 = vsel %vm17684_vm8, %v1629_v20, %v2248_v56  ;;  %v1674_v43 = vshll.u32 %v14625_v34, 16  ;;  %v14623_v49 = vpack.c.bf16 %v1124_v35, %v1124_v35  ;;  %v2559_v63 = vld [vmem:[#allocation2 + $0x10] sm:$0xf]  ;;  %v17126_v14 = vld [vmem:[#allocation2 + $0x2c] sm:$0x1] }
 0x137   : > { %v1636_v39 = vor.u32 %v1634_v11, %v1633_v22  ;;  %v1637_v40 = vrot.slane %v1633_v22, 4  ;;  %2247 = vst [vmem:[#allocation2 + $0x78] sm:$0xf] %v2246_v37  ;;  %2250 = vst [vmem:[#allocation2 + $0x7c] sm:$0x1] %v2249_v13  ;;  %v2264_v19 = vsel %vm17677_vm7, %v1652_v31, %v2263_v1  ;;  %v2267_v41 = vsel %vm17684_vm8, %v1653_v33, %v2266_v3  ;;  %v17791_v55 = vpop.f32.mrb[24].mxu0 }
 0x138   : > { %2265 = vst [vmem:[#allocation2 + $0x90] sm:$0xf] %v2264_v19  ;;  %2268 = vst [vmem:[#allocation2 + $0x94] sm:$0x1] %v2267_v41  ;;  %v1127_v50 = vmax.f32 %v929_v26, 0.0  ;;  %v1673_v51 = vrot.slane %v1671_v42, 7  ;;  %v921_v61 = vadd.f32 %v17644_v59, %v17751_v27  ;;  %v942_v4 = vadd.f32 %v17762_v60, %v17644_v59 }
 0x139   : > { %v2252_v45 = vsel %vm17677_vm7, %v1636_v39, %v2251_v12  ;;  %v2255_v46 = vsel %vm17684_vm8, %v1637_v40, %v2254_v25  ;;  %v2709_v52 = vrot.slane %v2707_v21, 4  ;;  %v2710_v53 = vshll.u32 %v17715_v62, 16  ;;  %v17795_v0 = vpop.f32.mrb[25].mxu0  ;;  %v2627_v21 = vld [vmem:[#allocation2 + $0x14] sm:$0x1] }
 0x13a   : > { %2253 = vst [vmem:[#allocation2 + $0x80] sm:$0xf] %v2252_v45  ;;  %2256 = vst [vmem:[#allocation2 + $0x84] sm:$0x1] %v2255_v46  ;;  %v2716_v54 = vshll.u32 %v2626_v36, 16  ;;  %v1655_v56 = vshrl.u32 %v14623_v49, 16  ;;  %v14626_v58 = vpack.c.bf16 %v1127_v50, %v1127_v50  ;;  %v1676_v1 = vor.u32 %v1674_v43, %v1673_v51 }
 0x13b   : > { %v1658_v57 = vshll.u32 %v14623_v49, 16  ;;  %v1677_v3 = vrot.slane %v1673_v51, 4  ;;  %v2712_v5 = vrot.slane %v2710_v53, 5  ;;  %v17797_v11 = vpop.f32.mrb[26].mxu0  ;;  %v1125_v16 = vmax.f32 %v921_v61, 0.0 }
 0x13c   : > { %v2718_v10 = vrot.slane %v2716_v54, 5  ;;  %v1657_v62 = vrot.slane %v1655_v56, 7  ;;  %v1679_v12 = vshrl.u32 %v14626_v58, 16  ;;  %v1682_v15 = vshll.u32 %v14626_v58, 16  ;;  %v17799_v18 = vpop.f32.mrb[27].mxu0 }
 0x13d   : > { %v2282_v20 = vsel %vm17677_vm7, %v1676_v1, %v2281_v47  ;;  %v2285_v27 = vsel %vm17684_vm8, %v1677_v3, %v2284_v48  ;;  %v2269_v22 = vld [vmem:[#allocation2 + $0xa8] sm:$0xf]  ;;  %v2272_v25 = vld [vmem:[#allocation2 + $0xac] sm:$0x1]  ;;  %v2713_v26 = vor.u32 %v2712_v5, %v2709_v52  ;;  %v2721_v31 = vshrl.u32 %v2559_v63, 16 }
 0x13e   : > { %2283 = vst [vmem:[#allocation2 + $0xb8] sm:$0xf] %v2282_v20  ;;  %2286 = vst [vmem:[#allocation2 + $0xbc] sm:$0x1] %v2285_v27  ;;  %v1660_v33 = vor.u32 %v1658_v57, %v1657_v62  ;;  %v1661_v34 = vrot.slane %v1657_v62, 4  ;;  %v1681_v35 = vrot.slane %v1679_v12, 7  ;;  %v14624_v37 = vpack.c.bf16 %v1125_v16, %v1125_v16 }
 0x13f   : > { %v2287_v36 = vld [vmem:[#allocation2 + $0xc0] sm:$0xf]  ;;  %v2290_v13 = vld [vmem:[#allocation2 + $0xc4] sm:$0x1]  ;;  %v2714_v39 = vrot.slane %v2713_v26, 4  ;;  %v2723_v40 = vrot.slane %v2721_v31, 4  ;;  %v934_v7 = vadd.f32 %v17644_v59, %v17768_v6 }
 0x140   : > { %v2724_v19 = vshll.u32 %v2559_v63, 16  ;;  %v2730_v41 = vshll.u32 %v2627_v21, 16  ;;  %v2270_v42 = vsel %vm17677_vm7, %v1660_v33, %v2269_v22  ;;  %v2273_v43 = vsel %vm17684_vm8, %v1661_v34, %v2272_v25  ;;  %v2560_v47 = vld [vmem:[#allocation2 + $0x18] sm:$0xf]  ;;  %v2628_v51 = vld [vmem:[#allocation2 + $0x1c] sm:$0x1] }
 0x141   : > { %v1684_v45 = vor.u32 %v1682_v15, %v1681_v35  ;;  %v1685_v46 = vrot.slane %v1681_v35, 4  ;;  %2271 = vst [vmem:[#allocation2 + $0xa8] sm:$0xf] %v2270_v42  ;;  %2274 = vst [vmem:[#allocation2 + $0xac] sm:$0x1] %v2273_v43  ;;  %v2719_v48 = vsel %vm17657_vm4, %v2714_v39, %v2718_v10  ;;  %v1663_v49 = vshrl.u32 %v14624_v37, 16 }
 0x142   : > { %v1666_v50 = vshll.u32 %v14624_v37, 16  ;;  %v2726_v52 = vrot.slane %v2724_v19, 5  ;;  %v17811_v53 = vpop.f32.mrb[28].mxu0  ;;  %v13686_v57 = vcombine.low %v2705_v23, %v2719_v48  ;;  %v2732_v58 = vrot.slane %v2730_v41, 5  ;;  %v2275_v1 = vld [vmem:[#allocation2 + $0xb0] sm:$0xf] }
 0x143   : > { %v2288_v54 = vsel %vm17677_vm7, %v1684_v45, %v2287_v36  ;;  %v2291_v56 = vsel %vm17684_vm8, %v1685_v46, %v2290_v13  ;;  %v17822_v61 = vpop.f32.mrb[29].mxu0  ;;  %v1665_v63 = vrot.slane %v1663_v49, 7  ;;  %v2735_v5 = vshrl.u32 %v2560_v47, 16  ;;  %v2278_v62 = vld [vmem:[#allocation2 + $0xb4] sm:$0x1] }
 0x144   : > { %2289 = vst [vmem:[#allocation2 + $0xc0] sm:$0xf] %v2288_v54  ;;  %2292 = vst [vmem:[#allocation2 + $0xc4] sm:$0x1] %v2291_v56  ;;  %v2727_v3 = vor.u32 %v2726_v52, %v2723_v40  ;;  %v2738_v10 = vshll.u32 %v2560_v47, 16  ;;  %v17824_v21 = vpop.f32.mrb[30].mxu0  ;;  %15549 = vmatprep.mubr.msk.bf16.mxu0 %vm3701_vm9, %v13686_v57  ;;  %v945_v23 = vadd.f32 %v17771_v17, %v17644_v59 }
 0x145   : > { %v2744_v12 = vshll.u32 %v2628_v51, 16  ;;  %v2561_v15 = vld [vmem:[#allocation2 + $0x20] sm:$0xf]  ;;  %v17833_v16 = vpop.f32.mrb[31].mxu0  ;;  %v1668_v20 = vor.u32 %v1666_v50, %v1665_v63  ;;  %v1669_v27 = vrot.slane %v1665_v63, 4  ;;  %v2737_v25 = vrot.slane %v2735_v5, 4 }
 0x146   : > { %v2728_v22 = vrot.slane %v2727_v3, 4  ;;  %v2629_v26 = vld [vmem:[#allocation2 + $0x24] sm:$0x1]  ;;  %v2740_v31 = vrot.slane %v2738_v10, 5  ;;  %v1130_v34 = vmax.f32 %v942_v4, 0.0  ;;  %v1128_v35 = vmax.f32 %v934_v7, 0.0 }
 0x147   : > { %v2746_v33 = vrot.slane %v2744_v12, 5  ;;  %v17835_v36 = vld [vmem:[#allocation2 + $0x28] sm:$0xf]  ;;  %v2276_v60 = vsel %vm17677_vm7, %v1668_v20, %v2275_v1  ;;  %v2279_v6 = vsel %vm17684_vm8, %v1669_v27, %v2278_v62  ;;  %v1131_v37 = vmax.f32 %v945_v23, 0.0  ;;  %v17844_v46 = vpop.f32.mrb[32].mxu0 }
 0x148   : > { %v2733_v17 = vsel %vm17657_vm4, %v2728_v22, %v2732_v58  ;;  %2277 = vst [vmem:[#allocation2 + $0xb0] sm:$0xf] %v2276_v60  ;;  %2280 = vst [vmem:[#allocation2 + $0xb4] sm:$0x1] %v2279_v6  ;;  %v2741_v13 = vor.u32 %v2740_v31, %v2737_v25  ;;  %v14629_v39 = vpack.c.bf16 %v1130_v34, %v1130_v34  ;;  %v2749_v19 = vshrl.u32 %v2561_v15, 16  ;;  %v17846_v51 = vpop.f32.mrb[33].mxu0 }
 0x149   : > { %v14627_v40 = vpack.c.bf16 %v1128_v35, %v1128_v35  ;;  %v14630_v41 = vpack.c.bf16 %v1131_v37, %v1131_v37  ;;  %v2752_v42 = vshll.u32 %v2561_v15, 16  ;;  %v2758_v43 = vshll.u32 %v2629_v26, 16  ;;  %v2305_v52 = vld [vmem:[#allocation2 + $0xd8] sm:$0xf]  ;;  %v2308_v54 = vld [vmem:[#allocation2 + $0xdc] sm:$0x1] }
 0x14a   : > { %v2763_v45 = vshrl.u32 %v17835_v36, 16  ;;  %v2742_v47 = vrot.slane %v2741_v13, 4  ;;  %v1703_v48 = vshrl.u32 %v14629_v39, 16  ;;  %v1706_v49 = vshll.u32 %v14629_v39, 16  ;;  %v17848_v1 = vpop.f32.mrb[34].mxu0 }
 0x14b   : > { %v1687_v50 = vshrl.u32 %v14627_v40, 16  ;;  %v1690_v56 = vshll.u32 %v14627_v40, 16  ;;  %v1711_v57 = vshrl.u32 %v14630_v41, 16  ;;  %v1714_v58 = vshll.u32 %v14630_v41, 16  ;;  %v2293_v62 = vld [vmem:[#allocation2 + $0xc8] sm:$0xf] }
 0x14c   : > { %v2751_v63 = vrot.slane %v2749_v19, 4  ;;  %v2747_v3 = vsel %vm17657_vm4, %v2742_v47, %v2746_v33  ;;  %v1705_v5 = vrot.slane %v1703_v48, 7  ;;  %v2754_v12 = vrot.slane %v2752_v42, 5  ;;  %v17852_v4 = vpop.f32.mrb[35].mxu0  ;;  %v2296_v23 = vld [vmem:[#allocation2 + $0xcc] sm:$0x1] }
 0x14d   : > { %v1689_v10 = vrot.slane %v1687_v50, 7  ;;  %v13687_v7 = vcombine.low %v2733_v17, %v2747_v3  ;;  %v1713_v15 = vrot.slane %v1711_v57, 7  ;;  %v2760_v20 = vrot.slane %v2758_v43, 5  ;;  %v2311_v34 = vld [vmem:[#allocation2 + $0xe0] sm:$0xf] }
 0x14e   : > { %v2765_v27 = vrot.slane %v2763_v45, 4  ;;  %v1708_v22 = vor.u32 %v1706_v49, %v1705_v5  ;;  %v1709_v25 = vrot.slane %v1705_v5, 4  ;;  %v2314_v35 = vld [vmem:[#allocation2 + $0xe4] sm:$0x1]  ;;  %v2630_v6 = vld [vmem:[#allocation2 + $0x2c] sm:$0x1]  ;;  %v2755_v37 = vor.u32 %v2754_v12, %v2751_v63 }
 0x14f   : > { %v1692_v26 = vor.u32 %v1690_v56, %v1689_v10  ;;  %v1693_v31 = vrot.slane %v1689_v10, 4  ;;  %15550 = vmatmul.mubr.msk.bf16.vlgmr.msra.gmra.mrb[64].mxu0 %vm3701_vm9, %v13687_v7  ;;  %v1716_v33 = vor.u32 %v1714_v58, %v1713_v15  ;;  %v1717_v60 = vrot.slane %v1713_v15, 4  ;;  %v2563_v39 = vld [vmem:[#allocation2 + $0x30] sm:$0xf]  ;;  %v2564_v42 = vld [vmem:[#allocation2 + $0x38] sm:$0xf] }
 0x150   : > { %v2766_v13 = vshll.u32 %v17835_v36, 16  ;;  %v2306_v17 = vsel %vm17677_vm7, %v1708_v22, %v2305_v52  ;;  %v2309_v40 = vsel %vm17684_vm8, %v1709_v25, %v2308_v54  ;;  %v2631_v43 = vld [vmem:[#allocation2 + $0x34] sm:$0x1]  ;;  %v2756_v47 = vrot.slane %v2755_v37, 4  ;;  %v17868_v49 = vpop.f32.mrb[36].mxu0 }
 0x151   : > { %v2294_v19 = vsel %vm17677_vm7, %v1692_v26, %v2293_v62  ;;  %v2297_v41 = vsel %vm17684_vm8, %v1693_v31, %v2296_v23  ;;  %2307 = vst [vmem:[#allocation2 + $0xd8] sm:$0xf] %v2306_v17  ;;  %2310 = vst [vmem:[#allocation2 + $0xdc] sm:$0x1] %v2309_v40  ;;  %v2312_v36 = vsel %vm17677_vm7, %v1716_v33, %v2311_v34  ;;  %v2772_v50 = vshll.u32 %v2630_v6, 16  ;;  %v17872_v58 = vpop.f32.mrb[37].mxu0 }
 0x152   : > { %2295 = vst [vmem:[#allocation2 + $0xc8] sm:$0xf] %v2294_v19  ;;  %2298 = vst [vmem:[#allocation2 + $0xcc] sm:$0x1] %v2297_v41  ;;  %v2315_v45 = vsel %vm17684_vm8, %v1717_v60, %v2314_v35  ;;  %v2768_v48 = vrot.slane %v2766_v13, 5  ;;  %v937_v52 = vadd.f32 %v17644_v59, %v17774_v30  ;;  %v2777_v56 = vshrl.u32 %v2563_v39, 16 }
 0x153   : > { %2313 = vst [vmem:[#allocation2 + $0xe0] sm:$0xf] %v2312_v36  ;;  %2316 = vst [vmem:[#allocation2 + $0xe4] sm:$0x1] %v2315_v45  ;;  %v2632_v54 = vld [vmem:[#allocation2 + $0x3c] sm:$0x1]  ;;  %v2761_v63 = vsel %vm17657_vm4, %v2756_v47, %v2760_v20  ;;  %v958_v20 = vadd.f32 %v17791_v55, %v17644_v59  ;;  %v950_v6 = vadd.f32 %v17644_v59, %v17795_v0 }
 0x154   : > { %v2780_v57 = vshll.u32 %v2563_v39, 16  ;;  %v2769_v3 = vor.u32 %v2768_v48, %v2765_v27  ;;  %v2786_v5 = vshll.u32 %v2631_v43, 16  ;;  %v2791_v10 = vshrl.u32 %v2564_v42, 16  ;;  %v17876_v62 = vpop.f32.mrb[38].mxu0  ;;  %v2566_v13 = vld [vmem:[#allocation2 + $0x58] sm:$0xf] }
 0x155   : > { %v2774_v12 = vrot.slane %v2772_v50, 5  ;;  %v1129_v7 = vmax.f32 %v937_v52, 0.0  ;;  %v2779_v23 = vrot.slane %v2777_v56, 4  ;;  %v17878_v22 = vpop.f32.mrb[39].mxu0  ;;  %v2794_v31 = vshll.u32 %v2564_v42, 16 }
 0x156   : > { %v2782_v15 = vrot.slane %v2780_v57, 5  ;;  %v2770_v30 = vrot.slane %v2769_v3, 4  ;;  %v2788_v25 = vrot.slane %v2786_v5, 5  ;;  %v2793_v26 = vrot.slane %v2791_v10, 4  ;;  %v2299_v41 = vld [vmem:[#allocation2 + $0xd0] sm:$0xf] }
 0x157   : > { %v14628_v34 = vpack.c.bf16 %v1129_v7, %v1129_v7  ;;  %v2800_v33 = vshll.u32 %v2632_v54, 16  ;;  %v2796_v60 = vrot.slane %v2794_v31, 5  ;;  %v961_v37 = vadd.f32 %v17797_v11, %v17644_v59  ;;  %v17888_v45 = vpop.f32.mrb[40].mxu0  ;;  %v2302_v48 = vld [vmem:[#allocation2 + $0xd4] sm:$0x1] }
 0x158   : > { %v2783_v35 = vor.u32 %v2782_v15, %v2779_v23  ;;  %v2775_v27 = vsel %vm17657_vm4, %v2770_v30, %v2774_v12  ;;  %v1134_v36 = vmax.f32 %v958_v20, 0.0  ;;  %v1132_v55 = vmax.f32 %v950_v6, 0.0  ;;  %v17893_v50 = vpop.f32.mrb[41].mxu0  ;;  %v2634_v57 = vld [vmem:[#allocation2 + $0x5c] sm:$0x1] }
 0x159   : > { %v13688_v39 = vcombine.low %v2761_v63, %v2775_v27  ;;  %v1695_v17 = vshrl.u32 %v14628_v34, 16  ;;  %v1698_v40 = vshll.u32 %v14628_v34, 16  ;;  %v2797_v42 = vor.u32 %v2796_v60, %v2793_v26  ;;  %v17895_v3 = vld [vmem:[#allocation2 + $0x60] sm:$0xf]  ;;  %v17897_v5 = vpop.f32.mrb[42].mxu0 }
 0x15a   : > { %v2784_v19 = vrot.slane %v2783_v35, 4  ;;  %v2802_v43 = vrot.slane %v2800_v33, 5  ;;  %v1135_v59 = vmax.f32 %v961_v37, 0.0  ;;  %v2819_v11 = vshrl.u32 %v2566_v13, 16  ;;  %v17899_v15 = vpop.f32.mrb[43].mxu0 }
 0x15b   : > { %15553 = vmatprep.mubr.msk.bf16.mxu0 %vm3701_vm9, %v13688_v39  ;;  %v1697_v47 = vrot.slane %v1695_v17, 7  ;;  %v2798_v52 = vrot.slane %v2797_v42, 4  ;;  %v14633_v54 = vpack.c.bf16 %v1134_v36, %v1134_v36  ;;  %v14631_v56 = vpack.c.bf16 %v1132_v55, %v1132_v55  ;;  %v2329_v20 = vld [vmem:[#allocation2 + $0x108] sm:$0xf]  ;;  %v2332_v27 = vld [vmem:[#allocation2 + $0x10c] sm:$0x1] }
 0x15c   : > { %v2789_v0 = vsel %vm17657_vm4, %v2784_v19, %v2788_v25  ;;  %v2822_v63 = vshll.u32 %v2566_v13, 16  ;;  %v14634_v7 = vpack.c.bf16 %v1135_v59, %v1135_v59  ;;  %v2821_v23 = vrot.slane %v2819_v11, 4  ;;  %v2317_v6 = vld [vmem:[#allocation2 + $0xf8] sm:$0xf]  ;;  %v2320_v37 = vld [vmem:[#allocation2 + $0xfc] sm:$0x1] }
 0x15d   : > { %v1700_v10 = vor.u32 %v1698_v40, %v1697_v47  ;;  %v1701_v12 = vrot.slane %v1697_v47, 4  ;;  %v2803_v30 = vsel %vm17657_vm4, %v2798_v52, %v2802_v43  ;;  %v1735_v25 = vshrl.u32 %v14633_v54, 16  ;;  %v17909_v42 = vld [vmem:[%s17641_s23] ss:$0 sm:$0xff]  ;;  %v2568_v36 = vld [vmem:[#allocation2 + $0x68] sm:$0xf] }
 0x15e   : > { %v1738_v26 = vshll.u32 %v14633_v54, 16  ;;  %v1719_v31 = vshrl.u32 %v14631_v56, 16  ;;  %v13689_v33 = vcombine.low %v2789_v0, %v2803_v30  ;;  %v1722_v60 = vshll.u32 %v14631_v56, 16  ;;  %v2635_v55 = vld [vmem:[#allocation2 + $0x64] sm:$0x1] }
 0x15f   : > { %v2300_v34 = vsel %vm17677_vm7, %v1700_v10, %v2299_v41  ;;  %v2303_v35 = vsel %vm17684_vm8, %v1701_v12, %v2302_v48  ;;  %v1737_v13 = vrot.slane %v1735_v25, 7  ;;  %v1743_v17 = vshrl.u32 %v14634_v7, 16  ;;  %v2335_v52 = vld [vmem:[#allocation2 + $0x110] sm:$0xf]  ;;  %v17914_v54 = vpop.f32.mrb[44].mxu0 }
 0x160   : > { %2301 = vst [vmem:[#allocation2 + $0xd0] sm:$0xf] %v2300_v34  ;;  %2304 = vst [vmem:[#allocation2 + $0xd4] sm:$0x1] %v2303_v35  ;;  %v1721_v39 = vrot.slane %v1719_v31, 7  ;;  %v1746_v40 = vshll.u32 %v14634_v7, 16  ;;  %15554 = vmatmul.mubr.msk.bf16.gmra.mrb[68].mxu0 %vm3701_vm9, %v13689_v33  ;;  %v953_v43 = vadd.f32 %v17909_v42, %v17799_v18  ;;  %v977_v8 = vadd.f32 %v17909_v42, %v17824_v21 }
 0x161   : > { %v2824_v19 = vrot.slane %v2822_v63, 5  ;;  %v2828_v41 = vshll.u32 %v2634_v57, 16  ;;  %v2833_v47 = vshrl.u32 %v17895_v3, 16  ;;  %v1740_v48 = vor.u32 %v1738_v26, %v1737_v13  ;;  %v17916_v12 = vpop.f32.mrb[45].mxu0  ;;  %v2338_v26 = vld [vmem:[#allocation2 + $0x114] sm:$0x1] }
 0x162   : > { %v1741_v0 = vrot.slane %v1737_v13, 4  ;;  %v1724_v59 = vor.u32 %v1722_v60, %v1721_v39  ;;  %v1725_v11 = vrot.slane %v1721_v39, 4  ;;  %v1745_v56 = vrot.slane %v1743_v17, 7  ;;  %v17926_v31 = vpop.f32.mrb[46].mxu0  ;;  %v2569_v9 = vld [vmem:[#allocation2 + $0x70] sm:$0xf] }
 0x163   : > { %v2825_v10 = vor.u32 %v2824_v19, %v2821_v23  ;;  %v2830_v63 = vrot.slane %v2828_v41, 5  ;;  %v1133_v57 = vmax.f32 %v953_v43, 0.0  ;;  %v2330_v18 = vsel %vm17677_vm7, %v1740_v48, %v2329_v20  ;;  %v17928_v20 = vpop.f32.mrb[47].mxu0  ;;  %v2323_v48 = vld [vmem:[#allocation2 + $0x100] sm:$0xf] }
 0x164   : > { %v2333_v7 = vsel %vm17684_vm8, %v1741_v0, %v2332_v27  ;;  %v2318_v30 = vsel %vm17677_vm7, %v1724_v59, %v2317_v6  ;;  %v2321_v25 = vsel %vm17684_vm8, %v1725_v11, %v2320_v37  ;;  %2331 = vst [vmem:[#allocation2 + $0x108] sm:$0xf] %v2330_v18  ;;  %v1748_v23 = vor.u32 %v1746_v40, %v1745_v56  ;;  %v2636_v27 = vld [vmem:[#allocation2 + $0x6c] sm:$0x1] }
 0x165   : > { %2334 = vst [vmem:[#allocation2 + $0x10c] sm:$0x1] %v2333_v7  ;;  %2319 = vst [vmem:[#allocation2 + $0xf8] sm:$0xf] %v2318_v30  ;;  %v1749_v34 = vrot.slane %v1745_v56, 4  ;;  %v2826_v35 = vrot.slane %v2825_v10, 4  ;;  %v14632_v33 = vpack.c.bf16 %v1133_v57, %v1133_v57  ;;  %v974_v10 = vadd.f32 %v17909_v42, %v17811_v53 }
 0x166   : > { %2322 = vst [vmem:[#allocation2 + $0xfc] sm:$0x1] %v2321_v25  ;;  %v2835_v60 = vrot.slane %v2833_v47, 4  ;;  %v2836_v6 = vshll.u32 %v17895_v3, 16  ;;  %v2842_v13 = vshll.u32 %v2635_v55, 16  ;;  %v2847_v39 = vshrl.u32 %v2568_v36, 16 }
 0x167   : > { %v2336_v37 = vsel %vm17677_vm7, %v1748_v23, %v2335_v52  ;;  %v2339_v17 = vsel %vm17684_vm8, %v1749_v34, %v2338_v26  ;;  %v2831_v40 = vsel %vm17657_vm4, %v2826_v35, %v2830_v63  ;;  %v1727_v19 = vshrl.u32 %v14632_v33, 16  ;;  %v2326_v52 = vld [vmem:[#allocation2 + $0x104] sm:$0x1]  ;;  %v2637_v30 = vld [vmem:[#allocation2 + $0x74] sm:$0x1] }
 0x168   : > { %2337 = vst [vmem:[#allocation2 + $0x110] sm:$0xf] %v2336_v37  ;;  %2340 = vst [vmem:[#allocation2 + $0x114] sm:$0x1] %v2339_v17  ;;  %v13690_v3 = vcombine.low %v2817_v24, %v2831_v40  ;;  %v1730_v41 = vshll.u32 %v14632_v33, 16  ;;  %v2838_v43 = vrot.slane %v2836_v6, 5  ;;  %v966_v63 = vadd.f32 %v17909_v42, %v17822_v61 }
 0x169   : > { %v2844_v55 = vrot.slane %v2842_v13, 5  ;;  %v1729_v47 = vrot.slane %v1727_v19, 7  ;;  %v2849_v0 = vrot.slane %v2847_v39, 4  ;;  %v2850_v59 = vshll.u32 %v2568_v36, 16  ;;  %v17949_v24 = vpop.f32.mrb[48].mxu0 }
 0x16a   : > { %v2856_v11 = vshll.u32 %v2636_v27, 16  ;;  %15557 = vmatprep.mubr.msk.bf16.mxu0 %vm3701_vm9, %v13690_v3  ;;  %v2839_v56 = vor.u32 %v2838_v43, %v2835_v60  ;;  %v17951_v25 = vpop.f32.mrb[49].mxu0  ;;  %v1138_v23 = vmax.f32 %v974_v10, 0.0  ;;  %v1136_v34 = vmax.f32 %v966_v63, 0.0 }
 0x16b   : > { %v1732_v57 = vor.u32 %v1730_v41, %v1729_v47  ;;  %v1733_v18 = vrot.slane %v1729_v47, 4  ;;  %v2852_v36 = vrot.slane %v2850_v59, 5  ;;  %v1139_v53 = vmax.f32 %v977_v8, 0.0  ;;  %v17957_v27 = vpop.f32.mrb[50].mxu0  ;;  %v2353_v59 = vld [vmem:[#allocation2 + $0x128] sm:$0xf] }
 0x16c   : > { %v2858_v7 = vrot.slane %v2856_v11, 5  ;;  %v2840_v26 = vrot.slane %v2839_v56, 4  ;;  %v2861_v33 = vshrl.u32 %v2569_v9, 16  ;;  %v14637_v6 = vpack.c.bf16 %v1138_v23, %v1138_v23  ;;  %v2356_v11 = vld [vmem:[#allocation2 + $0x12c] sm:$0x1]  ;;  %v17963_v8 = vpop.f32.mrb[51].mxu0 }
 0x16d   : > { %v2324_v61 = vsel %vm17677_vm7, %v1732_v57, %v2323_v48  ;;  %v2327_v21 = vsel %vm17684_vm8, %v1733_v18, %v2326_v52  ;;  %v2853_v35 = vor.u32 %v2852_v36, %v2849_v0  ;;  %v14635_v13 = vpack.c.bf16 %v1136_v34, %v1136_v34  ;;  %v2570_v48 = vld [vmem:[#allocation2 + $0x78] sm:$0xf]  ;;  %v2344_v56 = vld [vmem:[#allocation2 + $0x11c] sm:$0x1]  ;;  %v2359_v36 = vld [vmem:[#allocation2 + $0x130] sm:$0xf] }
 0x16e   : > { %2325 = vst [vmem:[#allocation2 + $0x100] sm:$0xf] %v2324_v61  ;;  %2328 = vst [vmem:[#allocation2 + $0x104] sm:$0x1] %v2327_v21  ;;  %v2845_v60 = vsel %vm17657_vm4, %v2840_v26, %v2844_v55  ;;  %v14638_v39 = vpack.c.bf16 %v1139_v53, %v1139_v53  ;;  %v2863_v17 = vrot.slane %v2861_v33, 4  ;;  %v2864_v40 = vshll.u32 %v2569_v9, 16 }
 0x16f   : > { %v2854_v37 = vrot.slane %v2853_v35, 4  ;;  %v2870_v19 = vshll.u32 %v2637_v30, 16  ;;  %v1767_v3 = vshrl.u32 %v14637_v6, 16  ;;  %v1770_v41 = vshll.u32 %v14637_v6, 16  ;;  %v2341_v52 = vld [vmem:[#allocation2 + $0x118] sm:$0xf] }
 0x170   : > { %v1751_v43 = vshrl.u32 %v14635_v13, 16  ;;  %v1754_v47 = vshll.u32 %v14635_v13, 16  ;;  %v1775_v55 = vshrl.u32 %v14638_v39, 16  ;;  %v1778_v10 = vshll.u32 %v14638_v39, 16  ;;  %v2362_v30 = vld [vmem:[#allocation2 + $0x134] sm:$0x1] }
 0x171   : > { %v2859_v0 = vsel %vm17657_vm4, %v2854_v37, %v2858_v7  ;;  %v2866_v63 = vrot.slane %v2864_v40, 5  ;;  %v1769_v9 = vrot.slane %v1767_v3, 7  ;;  %v17965_v26 = vrot.slane %v2870_v19, 5  ;;  %v17967_v23 = vpop.f32.mrb[52].mxu0  ;;  %v2638_v7 = vld [vmem:[#allocation2 + $0x7c] sm:$0x1] }
 0x172   : > { %v13691_v57 = vcombine.low %v2845_v60, %v2859_v0  ;;  %v1753_v18 = vrot.slane %v1751_v43, 7  ;;  %v1777_v34 = vrot.slane %v1775_v55, 7  ;;  %v2875_v61 = vshrl.u32 %v2570_v48, 16  ;;  %v17969_v35 = vpop.f32.mrb[53].mxu0  ;;  %v2571_v39 = vld [vmem:[#allocation2 + $0x80] sm:$0xf] }
 0x173   : > { %v2867_v53 = vor.u32 %v2866_v63, %v2863_v17  ;;  %v2878_v21 = vshll.u32 %v2570_v48, 16  ;;  %v1772_v33 = vor.u32 %v1770_v41, %v1769_v9  ;;  %v1773_v6 = vrot.slane %v1769_v9, 4  ;;  %v17972_v37 = vpop.f32.mrb[54].mxu0  ;;  %v2572_v55 = vld [vmem:[#allocation2 + $0x88] sm:$0xf] }
 0x174   : > { %15558 = vmatmul.mubr.msk.bf16.gmra.mrb[72].mxu0 %vm3701_vm9, %v13691_v57  ;;  %v1756_v60 = vor.u32 %v1754_v47, %v1753_v18  ;;  %v1757_v13 = vrot.slane %v1753_v18, 4  ;;  %v1780_v40 = vor.u32 %v1778_v10, %v1777_v34  ;;  %v1781_v19 = vrot.slane %v1777_v34, 4  ;;  %v17974_v0 = vpop.f32.mrb[55].mxu0  ;;  %v2639_v63 = vld [vmem:[#allocation2 + $0x84] sm:$0x1] }
 0x175   : > { %v2868_v3 = vrot.slane %v2867_v53, 4  ;;  %v2877_v43 = vrot.slane %v2875_v61, 4  ;;  %v2354_v17 = vsel %vm17677_vm7, %v1772_v33, %v2353_v59  ;;  %v2357_v48 = vsel %vm17684_vm8, %v1773_v6, %v2356_v11  ;;  %v16811_v10 = vld [vmem:[#allocation2 + $0xf8] ss:$8 sps:$4 sm:$0xff]   ;;  %v16813_v9 = vld [vmem:[#allocation2 + $0x108] ss:$8 sps:$4 sm:$0xff]  }
 0x176   : > { %v2342_v41 = vsel %vm17677_vm7, %v1756_v60, %v2341_v52  ;;  %v2345_v47 = vsel %vm17684_vm8, %v1757_v13, %v2344_v56  ;;  %2355 = vst [vmem:[#allocation2 + $0x128] sm:$0xf] %v2354_v17  ;;  %2358 = vst [vmem:[#allocation2 + $0x12c] sm:$0x1] %v2357_v48  ;;  %v2360_v57 = vsel %vm17677_vm7, %v1780_v40, %v2359_v36  ;;  %v2880_v52 = vrot.slane %v2878_v21, 5 }
 0x177   : > { %2343 = vst [vmem:[#allocation2 + $0x118] sm:$0xf] %v2342_v41  ;;  %2346 = vst [vmem:[#allocation2 + $0x11c] sm:$0x1] %v2345_v47  ;;  %v2363_v59 = vsel %vm17684_vm8, %v1781_v19, %v2362_v30  ;;  %v2873_v11 = vsel %vm17657_vm4, %v2868_v3, %v17965_v26  ;;  %v2884_v56 = vshll.u32 %v2638_v7, 16  ;;  %v969_v18 = vadd.f32 %v17909_v42, %v17833_v16  ;;  %v17996_v7 = vpop.f32.mrb[56].mxu0 }
 0x178   : > { %2361 = vst [vmem:[#allocation2 + $0x130] sm:$0xf] %v2360_v57  ;;  %2364 = vst [vmem:[#allocation2 + $0x134] sm:$0x1] %v2363_v59  ;;  %v2889_v34 = vshrl.u32 %v2571_v39, 16  ;;  %v2892_v53 = vshll.u32 %v2571_v39, 16  ;;  %15777 = vmatprep.mubr.msk.bf16.mxu1 %vm3701_vm9, %v16811_v10  ;;  %v2881_v36 = vor.u32 %v2880_v52, %v2877_v43  ;;  %v990_v48 = vadd.f32 %v17909_v42, %v17844_v46 }
 0x179   : > { %v2640_v61 = vld [vmem:[#allocation2 + $0x8c] sm:$0x1]  ;;  %v2898_v33 = vshll.u32 %v2639_v63, 16  ;;  %v2903_v30 = vshrl.u32 %v2572_v55, 16  ;;  %v2906_v6 = vshll.u32 %v2572_v55, 16  ;;  %15778 = vmatmul.mubr.msk.bf16.vlgmr.msra.gmra.mrb[0].mxu1 %vm3701_vm9, %v16813_v9  ;;  %v2886_v26 = vrot.slane %v2884_v56, 5 }
 0x17a   : > { %v1137_v21 = vmax.f32 %v969_v18, 0.0  ;;  %v2891_v60 = vrot.slane %v2889_v34, 4  ;;  %v2894_v13 = vrot.slane %v2892_v53, 5  ;;  %15818 = vmatpush3.bf16.msra.mxu1 %v17740_v2  ;;  %v2882_v16 = vrot.slane %v2881_v36, 4  ;;  %v2574_v41 = vld [vmem:[#allocation2 + $0xa8] sm:$0xf] }
 0x17b   : > { %v2900_v40 = vrot.slane %v2898_v33, 5  ;;  %v2905_v39 = vrot.slane %v2903_v30, 4  ;;  %v2908_v19 = vrot.slane %v2906_v6, 5  ;;  %v2912_v17 = vshll.u32 %v2640_v61, 16  ;;  %v18000_v47 = vpop.f32.mrb[57].mxu0 }
 0x17c   : > { %v14636_v3 = vpack.c.bf16 %v1137_v21, %v1137_v21  ;;  %v2895_v43 = vor.u32 %v2894_v13, %v2891_v60  ;;  %v2887_v55 = vsel %vm17657_vm4, %v2882_v16, %v2886_v26  ;;  %v982_v2 = vadd.f32 %v17909_v42, %v17846_v51  ;;  %v18008_v56 = vpop.f32.mrb[58].mxu0  ;;  %v2347_v30 = vld [vmem:[#allocation2 + $0x120] sm:$0xf] }
 0x17d   : > { %v2909_v63 = vor.u32 %v2908_v19, %v2905_v39  ;;  %v993_v10 = vadd.f32 %v17909_v42, %v17848_v1  ;;  %v13692_v57 = vcombine.low %v2873_v11, %v2887_v55  ;;  %v2914_v18 = vrot.slane %v2912_v17, 5  ;;  %v2350_v1 = vld [vmem:[#allocation2 + $0x124] sm:$0x1]  ;;  %v2642_v19 = vld [vmem:[#allocation2 + $0xac] sm:$0x1] }
 0x17e   : > { %v1759_v59 = vshrl.u32 %v14636_v3, 16  ;;  %v1762_v52 = vshll.u32 %v14636_v3, 16  ;;  %v2896_v9 = vrot.slane %v2895_v43, 4  ;;  %v1142_v34 = vmax.f32 %v990_v48, 0.0 }
 0x17f   : > { %v2910_v46 = vrot.slane %v2909_v63, 4  ;;  %v1140_v53 = vmax.f32 %v982_v2, 0.0  ;;  %15561 = vmatprep.mubr.msk.bf16.mxu0 %vm3701_vm9, %v13692_v57  ;;  %v1143_v51 = vmax.f32 %v993_v10, 0.0  ;;  %v2931_v33 = vshrl.u32 %v2574_v41, 16  ;;  %v2377_v2 = vld [vmem:[#allocation2 + $0x158] sm:$0xf] }
 0x180   : > { %v1761_v36 = vrot.slane %v1759_v59, 7  ;;  %v2901_v61 = vsel %vm17657_vm4, %v2896_v9, %v2900_v40  ;;  %v14641_v6 = vpack.c.bf16 %v1142_v34, %v1142_v34  ;;  %v2934_v21 = vshll.u32 %v2574_v41, 16  ;;  %v2575_v40 = vld [vmem:[#allocation2 + $0xb0] sm:$0xf]  ;;  %v2380_v41 = vld [vmem:[#allocation2 + $0x15c] sm:$0x1] }
 0x181   : > { %v2915_v11 = vsel %vm17657_vm4, %v2910_v46, %v2914_v18  ;;  %v14639_v26 = vpack.c.bf16 %v1140_v53, %v1140_v53  ;;  %v14642_v39 = vpack.c.bf16 %v1143_v51, %v1143_v51  ;;  %v2365_v10 = vld [vmem:[#allocation2 + $0x148] sm:$0xf]  ;;  %v2368_v57 = vld [vmem:[#allocation2 + $0x14c] sm:$0x1]  ;;  %v2383_v18 = vld [vmem:[#allocation2 + $0x160] sm:$0xf]  ;;  %v1006_v28 = vadd.f32 %v17909_v42, %v17868_v49 }
 0x182   : > { %v1764_v60 = vor.u32 %v1762_v52, %v1761_v36  ;;  %v1765_v13 = vrot.slane %v1761_v36, 4  ;;  %v13693_v16 = vcombine.low %v2901_v61, %v2915_v11  ;;  %v1799_v3 = vshrl.u32 %v14641_v6, 16  ;;  %v2386_v34 = vld [vmem:[#allocation2 + $0x164] sm:$0x1] }
 0x183   : > { %v1802_v43 = vshll.u32 %v14641_v6, 16  ;;  %v1783_v17 = vshrl.u32 %v14639_v26, 16  ;;  %v1786_v48 = vshll.u32 %v14639_v26, 16  ;;  %v1807_v59 = vshrl.u32 %v14642_v39, 16  ;;  %v18022_v6 = vpop.f32.mrb[59].mxu0 }
 0x184   : > { %v2348_v55 = vsel %vm17677_vm7, %v1764_v60, %v2347_v30  ;;  %v2351_v63 = vsel %vm17684_vm8, %v1765_v13, %v2350_v1  ;;  %15562 = vmatmul.mubr.msk.bf16.gmra.mrb[76].mxu0 %vm3701_vm9, %v13693_v16  ;;  %v1810_v52 = vshll.u32 %v14642_v39, 16  ;;  %v1801_v9 = vrot.slane %v1799_v3, 7  ;;  %v2576_v1 = vld [vmem:[#allocation2 + $0xb8] sm:$0xf]  ;;  %v2643_v39 = vld [vmem:[#allocation2 + $0xb4] sm:$0x1] }
 0x185   : > { %2349 = vst [vmem:[#allocation2 + $0x120] sm:$0xf] %v2348_v55  ;;  %2352 = vst [vmem:[#allocation2 + $0x124] sm:$0x1] %v2351_v63  ;;  %v1785_v46 = vrot.slane %v1783_v17, 7  ;;  %v2933_v53 = vrot.slane %v2931_v33, 4  ;;  %v985_v30 = vadd.f32 %v17909_v42, %v17852_v4  ;;  %v998_v29 = vadd.f32 %v17909_v42, %v17872_v58 }
 0x186   : > { %v2936_v36 = vrot.slane %v2934_v21, 5  ;;  %v1809_v61 = vrot.slane %v1807_v59, 7  ;;  %v2940_v51 = vshll.u32 %v2642_v19, 16  ;;  %v2945_v11 = vshrl.u32 %v2575_v40, 16  ;;  %v2644_v3 = vld [vmem:[#allocation2 + $0xbc] sm:$0x1] }
 0x187   : > { %v1804_v26 = vor.u32 %v1802_v43, %v1801_v9  ;;  %v1805_v60 = vrot.slane %v1801_v9, 4  ;;  %v1788_v13 = vor.u32 %v1786_v48, %v1785_v46  ;;  %v1789_v16 = vrot.slane %v1785_v46, 4  ;;  %v16823_v9 = vld [vmem:[%s17280_s20 + $0x48] sm:$0xff]  }
 0x188   : > { %v1812_v17 = vor.u32 %v1810_v52, %v1809_v61  ;;  %v1813_v55 = vrot.slane %v1809_v61, 4  ;;  %v2937_v33 = vor.u32 %v2936_v36, %v2933_v53  ;;  %v2942_v21 = vrot.slane %v2940_v51, 5  ;;  %15819 = vmatprep.subr.bf16.mxu1 %v16823_v9 }
 0x189   : > { %v2378_v19 = vsel %vm17677_vm7, %v1804_v26, %v2377_v2  ;;  %v2381_v4 = vsel %vm17684_vm8, %v1805_v60, %v2380_v41  ;;  %v2366_v63 = vsel %vm17677_vm7, %v1788_v13, %v2365_v10  ;;  %v2369_v43 = vsel %vm17684_vm8, %v1789_v16, %v2368_v57  ;;  %v18037_v57 = vpop.f32.mrb[60].mxu0  ;;  %v2577_v60 = vld [vmem:[#allocation2 + $0xc0] sm:$0xf]  ;;  %15820 = vmatpush3.bf16.msra.mxu1 %v16823_v9 }
 0x18a   : > { %2379 = vst [vmem:[#allocation2 + $0x158] sm:$0xf] %v2378_v19  ;;  %2382 = vst [vmem:[#allocation2 + $0x15c] sm:$0x1] %v2381_v4  ;;  %v2384_v48 = vsel %vm17677_vm7, %v1812_v17, %v2383_v18  ;;  %v2387_v59 = vsel %vm17684_vm8, %v1813_v55, %v2386_v34  ;;  %v2938_v2 = vrot.slane %v2937_v33, 4  ;;  %v1141_v52 = vmax.f32 %v985_v30, 0.0 }
 0x18b   : > { %2367 = vst [vmem:[#allocation2 + $0x148] sm:$0xf] %v2366_v63  ;;  %2370 = vst [vmem:[#allocation2 + $0x14c] sm:$0x1] %v2369_v43  ;;  %v2947_v41 = vrot.slane %v2945_v11, 4  ;;  %v2948_v10 = vshll.u32 %v2575_v40, 16 }
 0x18c   : > { %2385 = vst [vmem:[#allocation2 + $0x160] sm:$0xf] %v2384_v48  ;;  %2388 = vst [vmem:[#allocation2 + $0x164] sm:$0x1] %v2387_v59  ;;  %v2954_v46 = vshll.u32 %v2643_v39, 16  ;;  %v2959_v53 = vshrl.u32 %v2576_v1, 16  ;;  %v2943_v36 = vsel %vm17657_vm4, %v2938_v2, %v2942_v21  ;;  %v14640_v61 = vpack.c.bf16 %v1141_v52, %v1141_v52 }
 0x18d   : > { %v2962_v51 = vshll.u32 %v2576_v1, 16  ;;  %v2968_v18 = vshll.u32 %v2644_v3, 16  ;;  %v16814_v26 = vld [vmem:[#allocation2 + $0x118] ss:$8 sps:$4 sm:$0xff]   ;;  %v13694_v34 = vcombine.low %v2929_v32, %v2943_v36  ;;  %v2950_v30 = vrot.slane %v2948_v10, 5  ;;  %v18055_v10 = vpop.f32.mrb[61].mxu0 }
 0x18e   : > { %v2956_v40 = vrot.slane %v2954_v46, 5  ;;  %v2961_v11 = vrot.slane %v2959_v53, 4  ;;  %v1791_v13 = vshrl.u32 %v14640_v61, 16  ;;  %v1794_v16 = vshll.u32 %v14640_v61, 16  ;;  %15781 = vmatprep.mubr.msk.bf16.mxu1 %vm3701_vm9, %v16814_v26  ;;  %v16815_v1 = vld [vmem:[#allocation2 + $0x128] ss:$8 sps:$4 sm:$0xff]  }
 0x18f   : > { %v2964_v39 = vrot.slane %v2962_v51, 5  ;;  %v2970_v17 = vrot.slane %v2968_v18, 5  ;;  %15565 = vmatprep.mubr.msk.bf16.mxu0 %vm3701_vm9, %v13694_v34  ;;  %v2371_v3 = vld [vmem:[#allocation2 + $0x150] sm:$0xf]  ;;  %v2374_v55 = vld [vmem:[#allocation2 + $0x154] sm:$0x1]  ;;  %v2951_v33 = vor.u32 %v2950_v30, %v2947_v41  ;;  %v1009_v32 = vadd.f32 %v17909_v42, %v17876_v62  ;;  %15782 = vmatmul.mubr.msk.bf16.gmra.mrb[4].mxu1 %vm3701_vm9, %v16815_v1 }
 0x190   : > { %v1793_v21 = vrot.slane %v1791_v13, 7  ;;  %v2973_v4 = vshrl.u32 %v2577_v60, 16  ;;  %v2976_v63 = vshll.u32 %v2577_v60, 16  ;;  %v1146_v48 = vmax.f32 %v1006_v28, 0.0  ;;  %v2578_v18 = vld [vmem:[#allocation2 + $0xc8] sm:$0xf] }
 0x191   : > { %v2965_v19 = vor.u32 %v2964_v39, %v2961_v11  ;;  %v2952_v43 = vrot.slane %v2951_v33, 4  ;;  %v1144_v59 = vmax.f32 %v998_v29, 0.0  ;;  %v1147_v2 = vmax.f32 %v1009_v32, 0.0  ;;  %v2645_v26 = vld [vmem:[#allocation2 + $0xc4] sm:$0x1]  ;;  %v18065_v30 = vpop.f32.mrb[62].mxu0 }
 0x192   : > { %v1796_v52 = vor.u32 %v1794_v16, %v1793_v21  ;;  %v1797_v9 = vrot.slane %v1793_v21, 4  ;;  %v2975_v49 = vrot.slane %v2973_v4, 4  ;;  %v14645_v62 = vpack.c.bf16 %v1146_v48, %v1146_v48  ;;  %v2646_v16 = vld [vmem:[#allocation2 + $0xcc] sm:$0x1]  ;;  %v2401_v39 = vld [vmem:[#allocation2 + $0x178] sm:$0xf] }
 0x193   : > { %v2966_v41 = vrot.slane %v2965_v19, 4  ;;  %v2957_v58 = vsel %vm17657_vm4, %v2952_v43, %v2956_v40  ;;  %v14643_v46 = vpack.c.bf16 %v1144_v59, %v1144_v59  ;;  %v14646_v53 = vpack.c.bf16 %v1147_v2, %v1147_v2  ;;  %v2404_v1 = vld [vmem:[#allocation2 + $0x17c] sm:$0x1]  ;;  %v2389_v33 = vld [vmem:[#allocation2 + $0x168] sm:$0xf] }
 0x194   : > { %v2372_v36 = vsel %vm17677_vm7, %v1796_v52, %v2371_v3  ;;  %v2375_v61 = vsel %vm17684_vm8, %v1797_v9, %v2374_v55  ;;  %v2978_v34 = vrot.slane %v2976_v63, 5  ;;  %v1831_v11 = vshrl.u32 %v14645_v62, 16  ;;  %v2392_v21 = vld [vmem:[#allocation2 + $0x16c] sm:$0x1]  ;;  %v2407_v43 = vld [vmem:[#allocation2 + $0x180] sm:$0xf] }
 0x195   : > { %v2971_v51 = vsel %vm17657_vm4, %v2966_v41, %v2970_v17  ;;  %2373 = vst [vmem:[#allocation2 + $0x150] sm:$0xf] %v2372_v36  ;;  %2376 = vst [vmem:[#allocation2 + $0x154] sm:$0x1] %v2375_v61  ;;  %v1834_v60 = vshll.u32 %v14645_v62, 16  ;;  %v1815_v13 = vshrl.u32 %v14643_v46, 16 }
 0x196   : > { %v13695_v40 = vcombine.low %v2957_v58, %v2971_v51  ;;  %v1818_v3 = vshll.u32 %v14643_v46, 16  ;;  %v1839_v55 = vshrl.u32 %v14646_v53, 16  ;;  %v1842_v28 = vshll.u32 %v14646_v53, 16  ;;  %v2410_v62 = vld [vmem:[#allocation2 + $0x184] sm:$0x1] }
 0x197   : > { %v2979_v29 = vor.u32 %v2978_v34, %v2975_v49  ;;  %v1833_v17 = vrot.slane %v1831_v11, 7  ;;  %v1817_v32 = vrot.slane %v1815_v13, 7  ;;  %v2982_v19 = vshll.u32 %v2645_v26, 16  ;;  %v2580_v46 = vld [vmem:[#allocation2 + $0xd8] sm:$0xf] }
 0x198   : > { %15566 = vmatmul.mubr.msk.bf16.gmra.mrb[80].mxu0 %vm3701_vm9, %v13695_v40  ;;  %v2987_v4 = vshrl.u32 %v2578_v18, 16  ;;  %v1841_v63 = vrot.slane %v1839_v55, 7  ;;  %v2990_v59 = vshll.u32 %v2578_v18, 16  ;;  %v2996_v2 = vshll.u32 %v2646_v16, 16  ;;  %v2579_v51 = vld [vmem:[#allocation2 + $0xd0] sm:$0xf] }
 0x199   : > { %v2980_v48 = vrot.slane %v2979_v29, 4  ;;  %v1836_v52 = vor.u32 %v1834_v60, %v1833_v17  ;;  %v1837_v9 = vrot.slane %v1833_v17, 4  ;;  %v1820_v41 = vor.u32 %v1818_v3, %v1817_v32  ;;  %v2648_v34 = vld [vmem:[#allocation2 + $0xdc] sm:$0x1]  ;;  %v18068_v40 = vpop.f32.mrb[63].mxu0 }
 0x19a   : > { %v1821_v58 = vrot.slane %v1817_v32, 4  ;;  %v1844_v53 = vor.u32 %v1842_v28, %v1841_v63  ;;  %v1845_v49 = vrot.slane %v1841_v63, 4  ;;  %v2984_v36 = vrot.slane %v2982_v19, 5  ;;  %v2647_v13 = vld [vmem:[#allocation2 + $0xd4] sm:$0x1] }
 0x19b   : > { %v2989_v61 = vrot.slane %v2987_v4, 4  ;;  %v2402_v26 = vsel %vm17677_vm7, %v1836_v52, %v2401_v39  ;;  %v2405_v18 = vsel %vm17684_vm8, %v1837_v9, %v2404_v1  ;;  %v2390_v11 = vsel %vm17677_vm7, %v1820_v41, %v2389_v33  ;;  %v16817_v32 = vld [vmem:[#allocation2 + $0x158] ss:$8 sps:$4 sm:$0xff]  }
 0x19c   : > { %v2393_v60 = vsel %vm17684_vm8, %v1821_v58, %v2392_v21  ;;  %2403 = vst [vmem:[#allocation2 + $0x178] sm:$0xf] %v2402_v26  ;;  %2406 = vst [vmem:[#allocation2 + $0x17c] sm:$0x1] %v2405_v18  ;;  %v2408_v16 = vsel %vm17677_vm7, %v1844_v53, %v2407_v43  ;;  %v2411_v39 = vsel %vm17684_vm8, %v1845_v49, %v2410_v62  ;;  %v2992_v3 = vrot.slane %v2990_v59, 5 }
 0x19d   : > { %2391 = vst [vmem:[#allocation2 + $0x168] sm:$0xf] %v2390_v11  ;;  %2394 = vst [vmem:[#allocation2 + $0x16c] sm:$0x1] %v2393_v60  ;;  %v2985_v1 = vsel %vm17657_vm4, %v2980_v48, %v2984_v36  ;;  %v16816_v55 = vld [vmem:[#allocation2 + $0x148] ss:$8 sps:$4 sm:$0xff]   ;;  %v1001_v28 = vadd.f32 %v17909_v42, %v17878_v22  ;;  %v1022_v49 = vadd.f32 %v17909_v42, %v17888_v45 }
 0x19e   : > { %2409 = vst [vmem:[#allocation2 + $0x180] sm:$0xf] %v2408_v16  ;;  %2412 = vst [vmem:[#allocation2 + $0x184] sm:$0x1] %v2411_v39  ;;  %v2998_v33 = vrot.slane %v2996_v2, 5  ;;  %v3001_v29 = vshrl.u32 %v2579_v51, 16  ;;  %v2993_v21 = vor.u32 %v2992_v3, %v2989_v61  ;;  %15785 = vmatprep.mubr.msk.bf16.mxu1 %vm3701_vm9, %v16816_v55 }
 0x19f   : > { %v3004_v17 = vshll.u32 %v2579_v51, 16  ;;  %v3010_v19 = vshll.u32 %v2647_v13, 16  ;;  %v3015_v4 = vshrl.u32 %v2580_v46, 16  ;;  %v3018_v63 = vshll.u32 %v2580_v46, 16  ;;  %15786 = vmatmul.mubr.msk.bf16.gmra.mrb[8].mxu1 %vm3701_vm9, %v16817_v32  ;;  %v2581_v36 = vld [vmem:[#allocation2 + $0xf0] sm:$0xf] }
 0x1a0   : > { %v1145_v43 = vmax.f32 %v1001_v28, 0.0  ;;  %v3003_v52 = vrot.slane %v3001_v29, 4  ;;  %v3024_v59 = vshll.u32 %v2648_v34, 16  ;;  %v2994_v9 = vrot.slane %v2993_v21, 4  ;;  %v2398_v29 = vld [vmem:[#allocation2 + $0x174] sm:$0x1] }
 0x1a1   : > { %v3006_v48 = vrot.slane %v3004_v17, 5  ;;  %v3012_v2 = vrot.slane %v3010_v19, 5  ;;  %v3017_v41 = vrot.slane %v3015_v4, 4  ;;  %v3020_v58 = vrot.slane %v3018_v63, 5  ;;  %v2582_v4 = vld [vmem:[#allocation2 + $0xf8] sm:$0xf] }
 0x1a2   : > { %v14644_v22 = vpack.c.bf16 %v1145_v43, %v1145_v43  ;;  %v3026_v53 = vrot.slane %v3024_v59, 5  ;;  %v2999_v46 = vsel %vm17657_vm4, %v2994_v9, %v2998_v33  ;;  %v1014_v51 = vadd.f32 %v17909_v42, %v17893_v50  ;;  %v2395_v50 = vld [vmem:[#allocation2 + $0x170] sm:$0xf]  ;;  %v2649_v63 = vld [vmem:[#allocation2 + $0xf4] sm:$0x1] }
 0x1a3   : > { %v3007_v62 = vor.u32 %v3006_v48, %v3003_v52  ;;  %v3021_v61 = vor.u32 %v3020_v58, %v3017_v41  ;;  %v1025_v34 = vadd.f32 %v17909_v42, %v17897_v5  ;;  %v13696_v26 = vcombine.low %v2985_v1, %v2999_v46  ;;  %v2650_v43 = vld [vmem:[#allocation2 + $0xfc] sm:$0x1] }
 0x1a4   : > { %v1823_v18 = vshrl.u32 %v14644_v22, 16  ;;  %v1826_v11 = vshll.u32 %v14644_v22, 16  ;;  %v1150_v16 = vmax.f32 %v1022_v49, 0.0  ;;  %v1148_v39 = vmax.f32 %v1014_v51, 0.0  ;;  %v2425_v22 = vld [vmem:[#allocation2 + $0x1a8] sm:$0xf] }
 0x1a5   : > { %v3008_v60 = vrot.slane %v3007_v62, 4  ;;  %v3022_v13 = vrot.slane %v3021_v61, 4  ;;  %v1151_v3 = vmax.f32 %v1025_v34, 0.0  ;;  %15569 = vmatprep.mubr.msk.bf16.mxu0 %vm3701_vm9, %v13696_v26  ;;  %v3029_v33 = vshrl.u32 %v2581_v36, 16  ;;  %v2428_v62 = vld [vmem:[#allocation2 + $0x1ac] sm:$0x1] }
 0x1a6   : > { %v1825_v45 = vrot.slane %v1823_v18, 7  ;;  %v3032_v28 = vshll.u32 %v2581_v36, 16  ;;  %v14649_v42 = vpack.c.bf16 %v1150_v16, %v1150_v16  ;;  %v14647_v1 = vpack.c.bf16 %v1148_v39, %v1148_v39  ;;  %v2416_v49 = vld [vmem:[#allocation2 + $0x19c] sm:$0x1]  ;;  %v2431_v34 = vld [vmem:[#allocation2 + $0x1b0] sm:$0xf] }
 0x1a7   : > { %v3013_v55 = vsel %vm17657_vm4, %v3008_v60, %v3012_v2  ;;  %v3027_v5 = vsel %vm17657_vm4, %v3022_v13, %v3026_v53  ;;  %v14650_v17 = vpack.c.bf16 %v1151_v3, %v1151_v3  ;;  %v3031_v52 = vrot.slane %v3029_v33, 4  ;;  %v2413_v53 = vld [vmem:[#allocation2 + $0x198] sm:$0xf]  ;;  %v2434_v26 = vld [vmem:[#allocation2 + $0x1b4] sm:$0x1] }
 0x1a8   : > { %v1828_v32 = vor.u32 %v1826_v11, %v1825_v45  ;;  %v1829_v21 = vrot.slane %v1825_v45, 4  ;;  %v13697_v19 = vcombine.low %v3013_v55, %v3027_v5  ;;  %v1863_v48 = vshrl.u32 %v14649_v42, 16  ;;  %v2583_v3 = vld [vmem:[#allocation2 + $0x100] sm:$0xf]  ;;  %v2651_v5 = vld [vmem:[#allocation2 + $0x104] sm:$0x1] }
 0x1a9   : > { %v1866_v59 = vshll.u32 %v14649_v42, 16  ;;  %v1847_v9 = vshrl.u32 %v14647_v1, 16  ;;  %v1850_v2 = vshll.u32 %v14647_v1, 16  ;;  %v1871_v36 = vshrl.u32 %v14650_v17, 16 }
 0x1aa   : > { %v2396_v41 = vsel %vm17677_vm7, %v1828_v32, %v2395_v50  ;;  %v2399_v58 = vsel %vm17684_vm8, %v1829_v21, %v2398_v29  ;;  %15570 = vmatmul.mubr.msk.bf16.gmra.mrb[84].mxu0 %vm3701_vm9, %v13697_v19  ;;  %v1874_v46 = vshll.u32 %v14650_v17, 16  ;;  %v1865_v61 = vrot.slane %v1863_v48, 7  ;;  %v2584_v29 = vld [vmem:[#allocation2 + $0x108] sm:$0xf] }
 0x1ab   : > { %2397 = vst [vmem:[#allocation2 + $0x170] sm:$0xf] %v2396_v41  ;;  %2400 = vst [vmem:[#allocation2 + $0x174] sm:$0x1] %v2399_v58  ;;  %v1849_v51 = vrot.slane %v1847_v9, 7  ;;  %v3034_v18 = vrot.slane %v3032_v28, 5 }
 0x1ac   : > { %v3038_v11 = vshll.u32 %v2649_v63, 16  ;;  %v1873_v60 = vrot.slane %v1871_v36, 7  ;;  %v3043_v13 = vshrl.u32 %v2582_v4, 16  ;;  %v3046_v16 = vshll.u32 %v2582_v4, 16  ;;  %v2652_v63 = vld [vmem:[#allocation2 + $0x10c] sm:$0x1] }
 0x1ad   : > { %v3052_v39 = vshll.u32 %v2650_v43, 16  ;;  %v1868_v45 = vor.u32 %v1866_v59, %v1865_v61  ;;  %v1869_v55 = vrot.slane %v1865_v61, 4  ;;  %v1852_v33 = vor.u32 %v1850_v2, %v1849_v51  ;;  %v18119_v41 = vld [vmem:[%s17641_s23] ss:$0 sm:$0xff] }
 0x1ae   : > { %v1853_v50 = vrot.slane %v1849_v51, 4  ;;  %v1876_v42 = vor.u32 %v1874_v46, %v1873_v60  ;;  %v1877_v1 = vrot.slane %v1873_v60, 4  ;;  %v3035_v17 = vor.u32 %v3034_v18, %v3031_v52 }
 0x1af   : > { %v3040_v32 = vrot.slane %v3038_v11, 5  ;;  %v2426_v21 = vsel %vm17677_vm7, %v1868_v45, %v2425_v22  ;;  %v2429_v28 = vsel %vm17684_vm8, %v1869_v55, %v2428_v62  ;;  %v2414_v19 = vsel %vm17677_vm7, %v1852_v33, %v2413_v53 }
 0x1b0   : > { %v2417_v4 = vsel %vm17684_vm8, %v1853_v50, %v2416_v49  ;;  %2427 = vst [vmem:[#allocation2 + $0x1a8] sm:$0xf] %v2426_v21  ;;  %2430 = vst [vmem:[#allocation2 + $0x1ac] sm:$0x1] %v2429_v28  ;;  %v2432_v43 = vsel %vm17677_vm7, %v1876_v42, %v2431_v34  ;;  %v2435_v52 = vsel %vm17684_vm8, %v1877_v1, %v2434_v26  ;;  %v3036_v48 = vrot.slane %v3035_v17, 4 }
 0x1b1   : > { %2415 = vst [vmem:[#allocation2 + $0x198] sm:$0xf] %v2414_v19  ;;  %2418 = vst [vmem:[#allocation2 + $0x19c] sm:$0x1] %v2417_v4  ;;  %v3045_v59 = vrot.slane %v3043_v13, 4  ;;  %v3048_v9 = vrot.slane %v3046_v16, 5  ;;  %v1017_v58 = vadd.f32 %v18119_v41, %v17899_v15  ;;  %v1038_v55 = vadd.f32 %v18119_v41, %v17914_v54 }
 0x1b2   : > { %2433 = vst [vmem:[#allocation2 + $0x1b0] sm:$0xf] %v2432_v43  ;;  %2436 = vst [vmem:[#allocation2 + $0x1b4] sm:$0x1] %v2435_v52  ;;  %v3054_v2 = vrot.slane %v3052_v39, 5  ;;  %v3057_v22 = vshrl.u32 %v2583_v3, 16  ;;  %v3041_v62 = vsel %vm17657_vm4, %v3036_v48, %v3040_v32  ;;  %v1030_v50 = vadd.f32 %v18119_v41, %v17916_v12 }
 0x1b3   : > { %v3060_v53 = vshll.u32 %v2583_v3, 16  ;;  %v3066_v49 = vshll.u32 %v2651_v5, 16  ;;  %v3071_v36 = vshrl.u32 %v2584_v29, 16  ;;  %v3049_v46 = vor.u32 %v3048_v9, %v3045_v59  ;;  %v16818_v26 = vld [vmem:[#allocation2 + $0x168] ss:$8 sps:$4 sm:$0xff]  }
 0x1b4   : > { %v1149_v61 = vmax.f32 %v1017_v58, 0.0  ;;  %v3059_v51 = vrot.slane %v3057_v22, 4  ;;  %v3074_v34 = vshll.u32 %v2584_v29, 16  ;;  %v3080_v13 = vshll.u32 %v2652_v63, 16  ;;  %v16819_v16 = vld [vmem:[#allocation2 + $0x178] ss:$8 sps:$4 sm:$0xff]   ;;  %15789 = vmatprep.mubr.msk.bf16.mxu1 %vm3701_vm9, %v16818_v26 }
 0x1b5   : > { %v3062_v18 = vrot.slane %v3060_v53, 5  ;;  %v3068_v11 = vrot.slane %v3066_v49, 5  ;;  %v3073_v60 = vrot.slane %v3071_v36, 4  ;;  %v3050_v39 = vrot.slane %v3049_v46, 4  ;;  %v2585_v5 = vld [vmem:[#allocation2 + $0x110] sm:$0xf]  ;;  %15790 = vmatmul.mubr.msk.bf16.gmra.mrb[12].mxu1 %vm3701_vm9, %v16819_v16 }
 0x1b6   : > { %v14648_v45 = vpack.c.bf16 %v1149_v61, %v1149_v61  ;;  %v3076_v15 = vrot.slane %v3074_v34, 5  ;;  %v3082_v33 = vrot.slane %v3080_v13, 5  ;;  %v1041_v29 = vadd.f32 %v18119_v41, %v17926_v31  ;;  %v2419_v31 = vld [vmem:[#allocation2 + $0x1a0] sm:$0xf]  ;;  %v2422_v52 = vld [vmem:[#allocation2 + $0x1a4] sm:$0x1] }
 0x1b7   : > { %v3063_v3 = vor.u32 %v3062_v18, %v3059_v51  ;;  %v3055_v42 = vsel %vm17657_vm4, %v3050_v39, %v3054_v2  ;;  %v1154_v28 = vmax.f32 %v1038_v55, 0.0  ;;  %v1152_v19 = vmax.f32 %v1030_v50, 0.0  ;;  %v2653_v49 = vld [vmem:[#allocation2 + $0x114] sm:$0x1]  ;;  %v2586_v34 = vld [vmem:[#allocation2 + $0x118] sm:$0xf] }
 0x1b8   : > { %v1855_v1 = vshrl.u32 %v14648_v45, 16  ;;  %v1858_v17 = vshll.u32 %v14648_v45, 16  ;;  %v3077_v32 = vor.u32 %v3076_v15, %v3073_v60  ;;  %v13698_v54 = vcombine.low %v3041_v62, %v3055_v42  ;;  %v2452_v60 = vld [vmem:[#allocation2 + $0x1cc] sm:$0x1]  ;;  %v2437_v16 = vld [vmem:[#allocation2 + $0x1b8] sm:$0xf] }
 0x1b9   : > { %v3064_v21 = vrot.slane %v3063_v3, 4  ;;  %v1155_v43 = vmax.f32 %v1041_v29, 0.0  ;;  %v3085_v12 = vshrl.u32 %v2585_v5, 16  ;;  %v14653_v59 = vpack.c.bf16 %v1154_v28, %v1154_v28  ;;  %v2440_v39 = vld [vmem:[#allocation2 + $0x1bc] sm:$0x1] }
 0x1ba   : > { %v1857_v4 = vrot.slane %v1855_v1, 7  ;;  %v3078_v63 = vrot.slane %v3077_v32, 4  ;;  %15573 = vmatprep.mubr.msk.bf16.mxu0 %vm3701_vm9, %v13698_v54  ;;  %v14651_v9 = vpack.c.bf16 %v1152_v19, %v1152_v19  ;;  %v3088_v2 = vshll.u32 %v2585_v5, 16  ;;  %v2458_v50 = vld [vmem:[#allocation2 + $0x1d4] sm:$0x1] }
 0x1bb   : > { %v3069_v48 = vsel %vm17657_vm4, %v3064_v21, %v3068_v11  ;;  %v14654_v53 = vpack.c.bf16 %v1155_v43, %v1155_v43  ;;  %v1895_v46 = vshrl.u32 %v14653_v59, 16  ;;  %v1898_v61 = vshll.u32 %v14653_v59, 16  ;;  %v2449_v11 = vld [vmem:[#allocation2 + $0x1c8] sm:$0xf]  ;;  %v2654_v42 = vld [vmem:[#allocation2 + $0x11c] sm:$0x1] }
 0x1bc   : > { %v1860_v58 = vor.u32 %v1858_v17, %v1857_v4  ;;  %v1861_v22 = vrot.slane %v1857_v4, 4  ;;  %v3083_v62 = vsel %vm17657_vm4, %v3078_v63, %v3082_v33  ;;  %v1879_v51 = vshrl.u32 %v14651_v9, 16  ;;  %v2455_v33 = vld [vmem:[#allocation2 + $0x1d0] sm:$0xf]  ;;  %v2587_v54 = vld [vmem:[#allocation2 + $0x120] sm:$0xf] }
 0x1bd   : > { %v13699_v36 = vcombine.low %v3069_v48, %v3083_v62  ;;  %v1882_v13 = vshll.u32 %v14651_v9, 16  ;;  %v1903_v45 = vshrl.u32 %v14654_v53, 16  ;;  %v1897_v15 = vrot.slane %v1895_v46, 7  ;;  %v2588_v63 = vld [vmem:[#allocation2 + $0x128] sm:$0xf] }
 0x1be   : > { %v2420_v26 = vsel %vm17677_vm7, %v1860_v58, %v2419_v31  ;;  %v2423_v18 = vsel %vm17684_vm8, %v1861_v22, %v2422_v52  ;;  %v1881_v55 = vrot.slane %v1879_v51, 7  ;;  %v1906_v3 = vshll.u32 %v14654_v53, 16  ;;  %v2655_v43 = vld [vmem:[#allocation2 + $0x124] sm:$0x1]  ;;  %v2656_v51 = vld [vmem:[#allocation2 + $0x12c] sm:$0x1] }
 0x1bf   : > { %2421 = vst [vmem:[#allocation2 + $0x1a0] sm:$0xf] %v2420_v26  ;;  %2424 = vst [vmem:[#allocation2 + $0x1a4] sm:$0x1] %v2423_v18  ;;  %15574 = vmatmul.mubr.msk.bf16.gmra.mrb[88].mxu0 %vm3701_vm9, %v13699_v36  ;;  %v3087_v29 = vrot.slane %v3085_v12, 4  ;;  %v1905_v5 = vrot.slane %v1903_v45, 7  ;;  %v1900_v21 = vor.u32 %v1898_v61, %v1897_v15  ;;  %v1033_v61 = vadd.f32 %v18119_v41, %v17928_v20 }
 0x1c0   : > { %v3090_v1 = vrot.slane %v3088_v2, 5  ;;  %v3094_v17 = vshll.u32 %v2653_v49, 16  ;;  %v3099_v32 = vshrl.u32 %v2586_v34, 16  ;;  %v1901_v28 = vrot.slane %v1897_v15, 4 }
 0x1c1   : > { %v1884_v19 = vor.u32 %v1882_v13, %v1881_v55  ;;  %v1885_v4 = vrot.slane %v1881_v55, 4  ;;  %v1908_v31 = vor.u32 %v1906_v3, %v1905_v5  ;;  %v1909_v52 = vrot.slane %v1905_v5, 4 }
 0x1c2   : > { %v3091_v48 = vor.u32 %v3090_v1, %v3087_v29  ;;  %v3096_v59 = vrot.slane %v3094_v17, 5  ;;  %v2450_v9 = vsel %vm17677_vm7, %v1900_v21, %v2449_v11  ;;  %v2453_v12 = vsel %vm17684_vm8, %v1901_v28, %v2452_v60  ;;  %v16821_v29 = vld [vmem:[#allocation2 + $0x1a8] ss:$8 sps:$4 sm:$0xff]   ;;  %v18168_v28 = vld [vmem:[#allocation2 + $0x140] sm:$0xf] }
 0x1c3   : > { %v2438_v2 = vsel %vm17677_vm7, %v1884_v19, %v2437_v16  ;;  %v2441_v58 = vsel %vm17684_vm8, %v1885_v4, %v2440_v39  ;;  %2451 = vst [vmem:[#allocation2 + $0x1c8] sm:$0xf] %v2450_v9  ;;  %2454 = vst [vmem:[#allocation2 + $0x1cc] sm:$0x1] %v2453_v12  ;;  %v2456_v22 = vsel %vm17677_vm7, %v1908_v31, %v2455_v33  ;;  %v3101_v49 = vrot.slane %v3099_v32, 4  ;;  %v16833_v19 = vld [vmem:[%s17280_s20 + $0x50] sm:$0xff]  }
 0x1c4   : > { %2439 = vst [vmem:[#allocation2 + $0x1b8] sm:$0xf] %v2438_v2  ;;  %2442 = vst [vmem:[#allocation2 + $0x1bc] sm:$0x1] %v2441_v58  ;;  %v2459_v62 = vsel %vm17684_vm8, %v1909_v52, %v2458_v50  ;;  %v3092_v53 = vrot.slane %v3091_v48, 4  ;;  %v3102_v36 = vshll.u32 %v2586_v34, 16  ;;  %v1054_v1 = vadd.f32 %v18119_v41, %v17949_v24  ;;  %15885 = vmatprep.subr.bf16.mxu1 %v16833_v19 }
 0x1c5   : > { %2457 = vst [vmem:[#allocation2 + $0x1d0] sm:$0xf] %v2456_v22  ;;  %2460 = vst [vmem:[#allocation2 + $0x1d4] sm:$0x1] %v2459_v62  ;;  %v3108_v46 = vshll.u32 %v2654_v42, 16  ;;  %v3113_v26 = vshrl.u32 %v2587_v54, 16  ;;  %v1057_v21 = vadd.f32 %v18119_v41, %v17957_v27 }
 0x1c6   : > { %v3097_v18 = vsel %vm17657_vm4, %v3092_v53, %v3096_v59  ;;  %v3116_v11 = vshll.u32 %v2587_v54, 16  ;;  %v3122_v60 = vshll.u32 %v2655_v43, 16  ;;  %v3127_v13 = vshrl.u32 %v2588_v63, 16  ;;  %v16820_v55 = vld [vmem:[#allocation2 + $0x198] ss:$8 sps:$4 sm:$0xff]  }
 0x1c7   : > { %v3104_v16 = vrot.slane %v3102_v36, 5  ;;  %v3110_v39 = vrot.slane %v3108_v46, 5  ;;  %v1153_v45 = vmax.f32 %v1033_v61, 0.0  ;;  %v3115_v15 = vrot.slane %v3113_v26, 4  ;;  %15793 = vmatprep.mubr.msk.bf16.mxu1 %vm3701_vm9, %v16820_v55  ;;  %v2443_v58 = vld [vmem:[#allocation2 + $0x1c0] sm:$0xf] }
 0x1c8   : > { %v3118_v3 = vrot.slane %v3116_v11, 5  ;;  %v3124_v34 = vrot.slane %v3122_v60, 5  ;;  %v3129_v33 = vrot.slane %v3127_v13, 4  ;;  %v3130_v50 = vshll.u32 %v2588_v63, 16  ;;  %15794 = vmatmul.mubr.msk.bf16.gmra.mrb[16].mxu1 %vm3701_vm9, %v16821_v29  ;;  %v2446_v22 = vld [vmem:[#allocation2 + $0x1c4] sm:$0x1] }
 0x1c9   : > { %v3105_v20 = vor.u32 %v3104_v16, %v3101_v49  ;;  %v14652_v5 = vpack.c.bf16 %v1153_v45, %v1153_v45  ;;  %v3136_v42 = vshll.u32 %v2656_v51, 16  ;;  %v1046_v54 = vadd.f32 %v18119_v41, %v17951_v25  ;;  %v16834_v36 = vld [vmem:[%s17280_s20] sm:$0xff]  }
 0x1ca   : > { %v3119_v17 = vor.u32 %v3118_v3, %v3115_v15  ;;  %v3132_v32 = vrot.slane %v3130_v50, 5  ;;  %v1158_v48 = vmax.f32 %v1054_v1, 0.0  ;;  %v1159_v27 = vmax.f32 %v1057_v21, 0.0  ;;  %v2657_v16 = vld [vmem:[#allocation2 + $0x144] sm:$0x1]  ;;  %15613 = vmatprep.subr.bf16.mxu0 %v16834_v36 }
 0x1cb   : > { %v3106_v4 = vrot.slane %v3105_v20, 4  ;;  %v1887_v63 = vshrl.u32 %v14652_v5, 16  ;;  %v1890_v43 = vshll.u32 %v14652_v5, 16  ;;  %v3138_v31 = vrot.slane %v3136_v42, 5  ;;  %v2473_v3 = vld [vmem:[#allocation2 + $0x1f8] sm:$0xf]  ;;  %15614 = vmatpush3.bf16.msra.mxu0 %v16834_v36 }
 0x1cc   : > { %v3120_v24 = vrot.slane %v3119_v17, 4  ;;  %v3133_v52 = vor.u32 %v3132_v32, %v3129_v33  ;;  %v1156_v59 = vmax.f32 %v1046_v54, 0.0  ;;  %v3141_v12 = vshrl.u32 %v18168_v28, 16  ;;  %v2461_v20 = vld [vmem:[#allocation2 + $0x1e8] sm:$0xf] }
 0x1cd   : > { %v3111_v25 = vsel %vm17657_vm4, %v3106_v4, %v3110_v39  ;;  %v1889_v9 = vrot.slane %v1887_v63, 7  ;;  %v14657_v49 = vpack.c.bf16 %v1158_v48, %v1158_v48  ;;  %v14658_v26 = vpack.c.bf16 %v1159_v27, %v1159_v27  ;;  %v2464_v5 = vld [vmem:[#allocation2 + $0x1ec] sm:$0x1]  ;;  %v2479_v32 = vld [vmem:[#allocation2 + $0x200] sm:$0xf] }
 0x1ce   : > { %v13700_v2 = vcombine.low %v3097_v18, %v3111_v25  ;;  %v3125_v62 = vsel %vm17657_vm4, %v3120_v24, %v3124_v34  ;;  %v3134_v53 = vrot.slane %v3133_v52, 4  ;;  %v14655_v51 = vpack.c.bf16 %v1156_v59, %v1156_v59  ;;  %v2590_v18 = vld [vmem:[#allocation2 + $0x148] sm:$0xf]  ;;  %v2476_v34 = vld [vmem:[#allocation2 + $0x1fc] sm:$0x1] }
 0x1cf   : > { %v1892_v46 = vor.u32 %v1890_v43, %v1889_v9  ;;  %v1893_v61 = vrot.slane %v1889_v9, 4  ;;  %v1927_v60 = vshrl.u32 %v14657_v49, 16  ;;  %v1930_v13 = vshll.u32 %v14657_v49, 16  ;;  %v2482_v54 = vld [vmem:[#allocation2 + $0x204] sm:$0x1] }
 0x1d0   : > { %15577 = vmatprep.mubr.msk.bf16.mxu0 %vm3701_vm9, %v13700_v2  ;;  %v3139_v11 = vsel %vm17657_vm4, %v3134_v53, %v3138_v31  ;;  %v3143_v39 = vrot.slane %v3141_v12, 4  ;;  %v1911_v33 = vshrl.u32 %v14655_v51, 16  ;;  %v1914_v29 = vshll.u32 %v14655_v51, 16  ;;  %v2658_v24 = vld [vmem:[#allocation2 + $0x14c] sm:$0x1] }
 0x1d1   : > { %v2444_v45 = vsel %vm17677_vm7, %v1892_v46, %v2443_v58  ;;  %v2447_v15 = vsel %vm17684_vm8, %v1893_v61, %v2446_v22  ;;  %v13701_v55 = vcombine.low %v3125_v62, %v3139_v11  ;;  %v1929_v50 = vrot.slane %v1927_v60, 7  ;;  %v2592_v27 = vld [vmem:[#allocation2 + $0x158] sm:$0xf]  ;;  %v2591_v22 = vld [vmem:[#allocation2 + $0x150] sm:$0xf] }
 0x1d2   : > { %2445 = vst [vmem:[#allocation2 + $0x1c0] sm:$0xf] %v2444_v45  ;;  %2448 = vst [vmem:[#allocation2 + $0x1c4] sm:$0x1] %v2447_v15  ;;  %v1935_v42 = vshrl.u32 %v14658_v26, 16  ;;  %v1938_v1 = vshll.u32 %v14658_v26, 16 }
 0x1d3   : > { %15578 = vmatmul.mubr.msk.bf16.gmra.mrb[92].mxu0 %vm3701_vm9, %v13701_v55  ;;  %v1913_v17 = vrot.slane %v1911_v33, 7  ;;  %v3144_v21 = vshll.u32 %v18168_v28, 16  ;;  %v3150_v19 = vshll.u32 %v2657_v16, 16  ;;  %v3155_v4 = vshrl.u32 %v2590_v18, 16  ;;  %v2659_v62 = vld [vmem:[#allocation2 + $0x154] sm:$0x1] }
 0x1d4   : > { %v1932_v63 = vor.u32 %v1930_v13, %v1929_v50  ;;  %v1933_v43 = vrot.slane %v1929_v50, 4  ;;  %v1937_v31 = vrot.slane %v1935_v42, 7  ;;  %v3158_v52 = vshll.u32 %v2590_v18, 16  ;;  %v2660_v60 = vld [vmem:[#allocation2 + $0x15c] sm:$0x1]  ;;  %v16836_v13 = vld [vmem:[%s17280_s20 + $0x8] sm:$0xff]  }
 0x1d5   : > { %v1916_v48 = vor.u32 %v1914_v29, %v1913_v17  ;;  %v1917_v59 = vrot.slane %v1913_v17, 4  ;;  %v3146_v25 = vrot.slane %v3144_v21, 5  ;;  %v3152_v9 = vrot.slane %v3150_v19, 5  ;;  %15615 = vmatprep.subr.bf16.mxu0 %v16836_v13  ;;  %v16824_v42 = vld [vmem:[#allocation2 + $0x1c8] ss:$8 sps:$4 sm:$0xff]  }
 0x1d6   : > { %v2474_v12 = vsel %vm17677_vm7, %v1932_v63, %v2473_v3  ;;  %v2477_v2 = vsel %vm17684_vm8, %v1933_v43, %v2476_v34  ;;  %v1940_v58 = vor.u32 %v1938_v1, %v1937_v31  ;;  %v1941_v28 = vrot.slane %v1937_v31, 4  ;;  %15616 = vmatpush3.bf16.msra.mxu0 %v16836_v13 }
 0x1d7   : > { %2475 = vst [vmem:[#allocation2 + $0x1f8] sm:$0xf] %v2474_v12  ;;  %2478 = vst [vmem:[#allocation2 + $0x1fc] sm:$0x1] %v2477_v2  ;;  %v2462_v53 = vsel %vm17677_vm7, %v1916_v48, %v2461_v20  ;;  %v2465_v49 = vsel %vm17684_vm8, %v1917_v59, %v2464_v5  ;;  %v3147_v36 = vor.u32 %v3146_v25, %v3143_v39  ;;  %v3157_v46 = vrot.slane %v3155_v4, 4 }
 0x1d8   : > { %2463 = vst [vmem:[#allocation2 + $0x1e8] sm:$0xf] %v2462_v53  ;;  %2466 = vst [vmem:[#allocation2 + $0x1ec] sm:$0x1] %v2465_v49  ;;  %v2480_v61 = vsel %vm17677_vm7, %v1940_v58, %v2479_v32  ;;  %v2483_v51 = vsel %vm17684_vm8, %v1941_v28, %v2482_v54  ;;  %v3160_v26 = vrot.slane %v3158_v52, 5  ;;  %v3164_v11 = vshll.u32 %v2658_v24, 16 }
 0x1d9   : > { %2481 = vst [vmem:[#allocation2 + $0x200] sm:$0xf] %v2480_v61  ;;  %2484 = vst [vmem:[#allocation2 + $0x204] sm:$0x1] %v2483_v51  ;;  %v3148_v18 = vrot.slane %v3147_v36, 4  ;;  %v1049_v16 = vadd.f32 %v18119_v41, %v17963_v8  ;;  %v3169_v39 = vshrl.u32 %v2591_v22, 16  ;;  %v1070_v4 = vadd.f32 %v18119_v41, %v17967_v23 }
 0x1da   : > { %v3172_v45 = vshll.u32 %v2591_v22, 16  ;;  %v3161_v15 = vor.u32 %v3160_v26, %v3157_v46  ;;  %v3166_v55 = vrot.slane %v3164_v11, 5  ;;  %v3178_v3 = vshll.u32 %v2659_v62, 16  ;;  %v16822_v33 = vld [vmem:[#allocation2 + $0x1b8] ss:$8 sps:$4 sm:$0xff]  }
 0x1db   : > { %v3183_v34 = vshrl.u32 %v2592_v27, 16  ;;  %v3153_v50 = vsel %vm17657_vm4, %v3148_v18, %v3152_v9  ;;  %v1157_v29 = vmax.f32 %v1049_v16, 0.0  ;;  %v3171_v20 = vrot.slane %v3169_v39, 4  ;;  %15797 = vmatprep.mubr.msk.bf16.mxu1 %vm3701_vm9, %v16822_v33  ;;  %v2593_v52 = vld [vmem:[#allocation2 + $0x160] sm:$0xf] }
 0x1dc   : > { %v3174_v5 = vrot.slane %v3172_v45, 5  ;;  %v3162_v1 = vrot.slane %v3161_v15, 4  ;;  %v3180_v17 = vrot.slane %v3178_v3, 5  ;;  %v3186_v8 = vshll.u32 %v2592_v27, 16  ;;  %15798 = vmatmul.mubr.msk.bf16.gmra.mrb[20].mxu1 %vm3701_vm9, %v16824_v42  ;;  %v2467_v62 = vld [vmem:[#allocation2 + $0x1f0] sm:$0xf] }
 0x1dd   : > { %v3185_v32 = vrot.slane %v3183_v34, 4  ;;  %v14656_v54 = vpack.c.bf16 %v1157_v29, %v1157_v29  ;;  %v3192_v19 = vshll.u32 %v2660_v60, 16  ;;  %v1062_v31 = vadd.f32 %v18119_v41, %v17969_v35  ;;  %v2470_v53 = vld [vmem:[#allocation2 + $0x1f4] sm:$0x1]  ;;  %v2661_v11 = vld [vmem:[#allocation2 + $0x164] sm:$0x1] }
 0x1de   : > { %v3175_v21 = vor.u32 %v3174_v5, %v3171_v20  ;;  %v3167_v63 = vsel %vm17657_vm4, %v3162_v1, %v3166_v55  ;;  %v3188_v43 = vrot.slane %v3186_v8, 5  ;;  %v1073_v24 = vadd.f32 %v18119_v41, %v17972_v37  ;;  %v2594_v45 = vld [vmem:[#allocation2 + $0x168] sm:$0xf]  ;;  %v2497_v34 = vld [vmem:[#allocation2 + $0x218] sm:$0xf] }
 0x1df   : > { %v13702_v48 = vcombine.low %v3153_v50, %v3167_v63  ;;  %v1919_v59 = vshrl.u32 %v14656_v54, 16  ;;  %v1922_v25 = vshll.u32 %v14656_v54, 16  ;;  %v3194_v12 = vrot.slane %v3192_v19, 5  ;;  %v2500_v33 = vld [vmem:[#allocation2 + $0x21c] sm:$0x1] }
 0x1e0   : > { %v3176_v9 = vrot.slane %v3175_v21, 4  ;;  %v3189_v27 = vor.u32 %v3188_v43, %v3185_v32  ;;  %v1162_v23 = vmax.f32 %v1070_v4, 0.0  ;;  %v1160_v2 = vmax.f32 %v1062_v31, 0.0  ;;  %v2485_v5 = vld [vmem:[#allocation2 + $0x208] sm:$0xf] }
 0x1e1   : > { %15581 = vmatprep.mubr.msk.bf16.mxu0 %vm3701_vm9, %v13702_v48  ;;  %v1921_v58 = vrot.slane %v1919_v59, 7  ;;  %v1163_v22 = vmax.f32 %v1073_v24, 0.0  ;;  %v3197_v35 = vshrl.u32 %v2593_v52, 16  ;;  %v3200_v46 = vshll.u32 %v2593_v52, 16  ;;  %v2662_v31 = vld [vmem:[#allocation2 + $0x16c] sm:$0x1] }
 0x1e2   : > { %v3181_v28 = vsel %vm17657_vm4, %v3176_v9, %v3180_v17  ;;  %v3190_v37 = vrot.slane %v3189_v27, 4  ;;  %v14661_v49 = vpack.c.bf16 %v1162_v23, %v1162_v23  ;;  %v14659_v36 = vpack.c.bf16 %v1160_v2, %v1160_v2  ;;  %v2488_v17 = vld [vmem:[#allocation2 + $0x20c] sm:$0x1]  ;;  %v2503_v2 = vld [vmem:[#allocation2 + $0x220] sm:$0xf] }
 0x1e3   : > { %v1924_v61 = vor.u32 %v1922_v25, %v1921_v58  ;;  %v1925_v51 = vrot.slane %v1921_v58, 4  ;;  %v14662_v26 = vpack.c.bf16 %v1163_v22, %v1163_v22  ;;  %v3199_v60 = vrot.slane %v3197_v35, 4  ;;  %v2595_v25 = vld [vmem:[#allocation2 + $0x170] sm:$0xf]  ;;  %v2506_v58 = vld [vmem:[#allocation2 + $0x224] sm:$0x1] }
 0x1e4   : > { %v3195_v13 = vsel %vm17657_vm4, %v3190_v37, %v3194_v12  ;;  %v1959_v18 = vshrl.u32 %v14661_v49, 16  ;;  %v1962_v16 = vshll.u32 %v14661_v49, 16  ;;  %v1943_v39 = vshrl.u32 %v14659_v36, 16 }
 0x1e5   : > { %v2468_v15 = vsel %vm17677_vm7, %v1924_v61, %v2467_v62  ;;  %v2471_v55 = vsel %vm17684_vm8, %v1925_v51, %v2470_v53  ;;  %v13703_v3 = vcombine.low %v3181_v28, %v3195_v13  ;;  %v1946_v50 = vshll.u32 %v14659_v36, 16  ;;  %v2596_v53 = vld [vmem:[#allocation2 + $0x178] sm:$0xf]  ;;  %v2663_v36 = vld [vmem:[#allocation2 + $0x174] sm:$0x1] }
 0x1e6   : > { %2469 = vst [vmem:[#allocation2 + $0x1f0] sm:$0xf] %v2468_v15  ;;  %2472 = vst [vmem:[#allocation2 + $0x1f4] sm:$0x1] %v2471_v55  ;;  %v1961_v29 = vrot.slane %v1959_v18, 7  ;;  %v1945_v20 = vrot.slane %v1943_v39, 7  ;;  %v1065_v49 = vadd.f32 %v18119_v41, %v17974_v0 }
 0x1e7   : > { %v1967_v42 = vshrl.u32 %v14662_v26, 16  ;;  %v1970_v1 = vshll.u32 %v14662_v26, 16  ;;  %15582 = vmatmul.mubr.msk.bf16.gmra.mrb[96].mxu0 %vm3701_vm9, %v13703_v3  ;;  %v3202_v32 = vrot.slane %v3200_v46, 5  ;;  %v3206_v8 = vshll.u32 %v2661_v11, 16  ;;  %v2664_v13 = vld [vmem:[#allocation2 + $0x17c] sm:$0x1] }
 0x1e8   : > { %v3211_v54 = vshrl.u32 %v2594_v45, 16  ;;  %v3214_v21 = vshll.u32 %v2594_v45, 16  ;;  %v1964_v19 = vor.u32 %v1962_v16, %v1961_v29  ;;  %v1965_v4 = vrot.slane %v1961_v29, 4  ;;  %v16826_v15 = vld [vmem:[#allocation2 + $0x1f8] ss:$8 sps:$4 sm:$0xff]  }
 0x1e9   : > { %v1948_v63 = vor.u32 %v1946_v50, %v1945_v20  ;;  %v1949_v43 = vrot.slane %v1945_v20, 4  ;;  %v1969_v24 = vrot.slane %v1967_v42, 7  ;;  %v3203_v52 = vor.u32 %v3202_v32, %v3199_v60 }
 0x1ea   : > { %v3208_v48 = vrot.slane %v3206_v8, 5  ;;  %v3213_v59 = vrot.slane %v3211_v54, 4  ;;  %v2498_v9 = vsel %vm17677_vm7, %v1964_v19, %v2497_v34  ;;  %v2501_v27 = vsel %vm17684_vm8, %v1965_v4, %v2500_v33  ;;  %v2597_v8 = vld [vmem:[#allocation2 + $0x190] sm:$0xf] }
 0x1eb   : > { %v2486_v12 = vsel %vm17677_vm7, %v1948_v63, %v2485_v5  ;;  %v2489_v23 = vsel %vm17684_vm8, %v1949_v43, %v2488_v17  ;;  %2499 = vst [vmem:[#allocation2 + $0x218] sm:$0xf] %v2498_v9  ;;  %2502 = vst [vmem:[#allocation2 + $0x21c] sm:$0x1] %v2501_v27  ;;  %v1972_v28 = vor.u32 %v1970_v1, %v1969_v24  ;;  %v1973_v22 = vrot.slane %v1969_v24, 4 }
 0x1ec   : > { %2487 = vst [vmem:[#allocation2 + $0x208] sm:$0xf] %v2486_v12  ;;  %2490 = vst [vmem:[#allocation2 + $0x20c] sm:$0x1] %v2489_v23  ;;  %v3204_v35 = vrot.slane %v3203_v52, 4  ;;  %v3216_v62 = vrot.slane %v3214_v21, 5  ;;  %v1086_v5 = vadd.f32 %v18119_v41, %v17996_v7  ;;  %v1078_v24 = vadd.f32 %v18119_v41, %v18000_v47 }
 0x1ed   : > { %v3220_v37 = vshll.u32 %v2662_v31, 16  ;;  %v3225_v46 = vshrl.u32 %v2595_v25, 16  ;;  %v3228_v61 = vshll.u32 %v2595_v25, 16  ;;  %v2504_v51 = vsel %vm17677_vm7, %v1972_v28, %v2503_v2  ;;  %v16825_v18 = vld [vmem:[#allocation2 + $0x1e8] ss:$8 sps:$4 sm:$0xff]  }
 0x1ee   : > { %v2507_v26 = vsel %vm17684_vm8, %v1973_v22, %v2506_v58  ;;  %v3209_v11 = vsel %vm17657_vm4, %v3204_v35, %v3208_v48  ;;  %v3217_v60 = vor.u32 %v3216_v62, %v3213_v59  ;;  %2505 = vst [vmem:[#allocation2 + $0x220] sm:$0xf] %v2504_v51  ;;  %v1161_v39 = vmax.f32 %v1065_v49, 0.0  ;;  %15801 = vmatprep.mubr.msk.bf16.mxu1 %vm3701_vm9, %v16825_v18  ;;  %v2491_v52 = vld [vmem:[#allocation2 + $0x210] sm:$0xf] }
 0x1ef   : > { %2508 = vst [vmem:[#allocation2 + $0x224] sm:$0x1] %v2507_v26  ;;  %v3222_v16 = vrot.slane %v3220_v37, 5  ;;  %v3227_v0 = vrot.slane %v3225_v46, 4  ;;  %v3230_v45 = vrot.slane %v3228_v61, 5  ;;  %v3234_v3 = vshll.u32 %v2663_v36, 16  ;;  %15802 = vmatmul.mubr.msk.bf16.gmra.mrb[24].mxu1 %vm3701_vm9, %v16826_v15 }
 0x1f0   : > { %v3218_v55 = vrot.slane %v3217_v60, 4  ;;  %v3239_v34 = vshrl.u32 %v2596_v53, 16  ;;  %v3242_v33 = vshll.u32 %v2596_v53, 16  ;;  %v14660_v50 = vpack.c.bf16 %v1161_v39, %v1161_v39  ;;  %v2494_v48 = vld [vmem:[#allocation2 + $0x214] sm:$0x1] }
 0x1f1   : > { %v3231_v29 = vor.u32 %v3230_v45, %v3227_v0  ;;  %v3248_v20 = vshll.u32 %v2664_v13, 16  ;;  %v3236_v1 = vrot.slane %v3234_v3, 5  ;;  %v1166_v31 = vmax.f32 %v1086_v5, 0.0  ;;  %v2598_v49 = vld [vmem:[#allocation2 + $0x198] sm:$0xf] }
 0x1f2   : > { %v3223_v42 = vsel %vm17657_vm4, %v3218_v55, %v3222_v16  ;;  %v3241_v17 = vrot.slane %v3239_v34, 4  ;;  %v3244_v32 = vrot.slane %v3242_v33, 5  ;;  %v1951_v21 = vshrl.u32 %v14660_v50, 16  ;;  %v2665_v51 = vld [vmem:[#allocation2 + $0x194] sm:$0x1] }
 0x1f3   : > { %v13704_v54 = vcombine.low %v3209_v11, %v3223_v42  ;;  %v1954_v19 = vshll.u32 %v14660_v50, 16  ;;  %v3232_v4 = vrot.slane %v3231_v29, 4  ;;  %v3250_v43 = vrot.slane %v3248_v20, 5  ;;  %v2521_v11 = vld [vmem:[#allocation2 + $0x248] sm:$0xf] }
 0x1f4   : > { %v3245_v63 = vor.u32 %v3244_v32, %v3241_v17  ;;  %v1953_v7 = vrot.slane %v1951_v21, 7  ;;  %v1089_v25 = vadd.f32 %v18119_v41, %v18008_v56  ;;  %v3253_v9 = vshrl.u32 %v2597_v8, 16  ;;  %v2524_v16 = vld [vmem:[#allocation2 + $0x24c] sm:$0x1]  ;;  %v2509_v33 = vld [vmem:[#allocation2 + $0x238] sm:$0xf] }
 0x1f5   : > { %15585 = vmatprep.mubr.msk.bf16.mxu0 %vm3701_vm9, %v13704_v54  ;;  %v3237_v59 = vsel %vm17657_vm4, %v3232_v4, %v3236_v1  ;;  %v14665_v12 = vpack.c.bf16 %v1166_v31, %v1166_v31  ;;  %v1164_v23 = vmax.f32 %v1078_v24, 0.0  ;;  %v3256_v2 = vshll.u32 %v2597_v8, 16  ;;  %v2512_v50 = vld [vmem:[#allocation2 + $0x23c] sm:$0x1]  ;;  %v2530_v4 = vld [vmem:[#allocation2 + $0x254] sm:$0x1] }
 0x1f6   : > { %v3246_v27 = vrot.slane %v3245_v63, 4  ;;  %v1956_v58 = vor.u32 %v1954_v19, %v1953_v7  ;;  %v1957_v28 = vrot.slane %v1953_v7, 4  ;;  %v1167_v22 = vmax.f32 %v1089_v25, 0.0  ;;  %v2666_v5 = vld [vmem:[#allocation2 + $0x19c] sm:$0x1] }
 0x1f7   : > { %v3255_v47 = vrot.slane %v3253_v9, 4  ;;  %v1991_v62 = vshrl.u32 %v14665_v12, 16  ;;  %v1994_v53 = vshll.u32 %v14665_v12, 16  ;;  %v14663_v37 = vpack.c.bf16 %v1164_v23, %v1164_v23  ;;  %v2527_v19 = vld [vmem:[#allocation2 + $0x250] sm:$0xf] }
 0x1f8   : > { %v3251_v35 = vsel %vm17657_vm4, %v3246_v27, %v3250_v43  ;;  %v2492_v36 = vsel %vm17677_vm7, %v1956_v58, %v2491_v52  ;;  %v2495_v56 = vsel %vm17684_vm8, %v1957_v28, %v2494_v48  ;;  %v14666_v61 = vpack.c.bf16 %v1167_v22, %v1167_v22  ;;  %v2599_v7 = vld [vmem:[#allocation2 + $0x1a0] sm:$0xf]  ;;  %v2600_v9 = vld [vmem:[#allocation2 + $0x1a8] sm:$0xf]  ;;  %v2667_v27 = vld [vmem:[#allocation2 + $0x1a4] sm:$0x1] }
 0x1f9   : > { %v13705_v46 = vcombine.low %v3237_v59, %v3251_v35  ;;  %2493 = vst [vmem:[#allocation2 + $0x210] sm:$0xf] %v2492_v36  ;;  %2496 = vst [vmem:[#allocation2 + $0x214] sm:$0x1] %v2495_v56  ;;  %v1993_v26 = vrot.slane %v1991_v62, 7  ;;  %v1975_v60 = vshrl.u32 %v14663_v37, 16  ;;  %v1081_v25 = vadd.f32 %v18119_v41, %v18022_v6 }
 0x1fa   : > { %v1978_v13 = vshll.u32 %v14663_v37, 16  ;;  %v3258_v18 = vrot.slane %v3256_v2, 5  ;;  %v1999_v39 = vshrl.u32 %v14666_v61, 16  ;;  %v2002_v0 = vshll.u32 %v14666_v61, 16  ;;  %v2668_v28 = vld [vmem:[#allocation2 + $0x1ac] sm:$0x1] }
 0x1fb   : > { %15586 = vmatmul.mubr.msk.bf16.gmra.mrb[100].mxu0 %vm3701_vm9, %v13705_v46  ;;  %v3262_v45 = vshll.u32 %v2665_v51, 16  ;;  %v3267_v15 = vshrl.u32 %v2598_v49, 16  ;;  %v1996_v55 = vor.u32 %v1994_v53, %v1993_v26  ;;  %v1997_v3 = vrot.slane %v1993_v26, 4  ;;  %v16828_v53 = vld [vmem:[#allocation2 + $0x218] ss:$8 sps:$4 sm:$0xff]  }
 0x1fc   : > { %v1977_v34 = vrot.slane %v1975_v60, 7  ;;  %v3259_v29 = vor.u32 %v3258_v18, %v3255_v47  ;;  %v2001_v20 = vrot.slane %v1999_v39, 7  ;;  %v3270_v17 = vshll.u32 %v2598_v49, 16 }
 0x1fd   : > { %v3264_v42 = vrot.slane %v3262_v45, 5  ;;  %v3269_v1 = vrot.slane %v3267_v15, 4  ;;  %v2522_v32 = vsel %vm17677_vm7, %v1996_v55, %v2521_v11  ;;  %v2525_v8 = vsel %vm17684_vm8, %v1997_v3, %v2524_v16  ;;  %v2601_v16 = vld [vmem:[#allocation2 + $0x1b0] sm:$0xf]  ;;  %v2515_v55 = vld [vmem:[#allocation2 + $0x240] sm:$0xf] }
 0x1fe   : > { %v1980_v54 = vor.u32 %v1978_v13, %v1977_v34  ;;  %v1981_v21 = vrot.slane %v1977_v34, 4  ;;  %2523 = vst [vmem:[#allocation2 + $0x248] sm:$0xf] %v2522_v32  ;;  %2526 = vst [vmem:[#allocation2 + $0x24c] sm:$0x1] %v2525_v8  ;;  %v2004_v63 = vor.u32 %v2002_v0, %v2001_v20  ;;  %v2005_v43 = vrot.slane %v2001_v20, 4 }
 0x1ff   : > { %v3260_v31 = vrot.slane %v3259_v29, 4  ;;  %v3272_v24 = vrot.slane %v3270_v17, 5  ;;  %v3276_v59 = vshll.u32 %v2666_v5, 16  ;;  %v1165_v6 = vmax.f32 %v1081_v25, 0.0  ;;  %v2518_v3 = vld [vmem:[#allocation2 + $0x244] sm:$0x1] }
 0x200   : > { %v2510_v52 = vsel %vm17677_vm7, %v1980_v54, %v2509_v33  ;;  %v2513_v48 = vsel %vm17684_vm8, %v1981_v21, %v2512_v50  ;;  %v2528_v12 = vsel %vm17677_vm7, %v2004_v63, %v2527_v19  ;;  %v2531_v23 = vsel %vm17684_vm8, %v2005_v43, %v2530_v4  ;;  %v16827_v22 = vld [vmem:[#allocation2 + $0x208] ss:$8 sps:$4 sm:$0xff]  }
 0x201   : > { %2511 = vst [vmem:[#allocation2 + $0x238] sm:$0xf] %v2510_v52  ;;  %2514 = vst [vmem:[#allocation2 + $0x23c] sm:$0x1] %v2513_v48  ;;  %v3265_v2 = vsel %vm17657_vm4, %v3260_v31, %v3264_v42  ;;  %v3273_v58 = vor.u32 %v3272_v24, %v3269_v1  ;;  %v3278_v47 = vrot.slane %v3276_v59, 5  ;;  %v3281_v35 = vshrl.u32 %v2599_v7, 16  ;;  %15805 = vmatprep.mubr.msk.bf16.mxu1 %vm3701_vm9, %v16827_v22 }
 0x202   : > { %2529 = vst [vmem:[#allocation2 + $0x250] sm:$0xf] %v2528_v12  ;;  %2532 = vst [vmem:[#allocation2 + $0x254] sm:$0x1] %v2531_v23  ;;  %v3284_v62 = vshll.u32 %v2599_v7, 16  ;;  %v3290_v49 = vshll.u32 %v2667_v27, 16  ;;  %v14664_v46 = vpack.c.bf16 %v1165_v6, %v1165_v6  ;;  %15806 = vmatmul.mubr.msk.bf16.gmra.mrb[28].mxu1 %vm3701_vm9, %v16828_v53  ;;  %v1102_v50 = vadd.f32 %v18119_v41, %v18037_v57 }
 0x203   : > { %v3274_v37 = vrot.slane %v3273_v58, 4  ;;  %v3295_v36 = vshrl.u32 %v2600_v9, 16  ;;  %v3298_v56 = vshll.u32 %v2600_v9, 16  ;;  %v3283_v61 = vrot.slane %v3281_v35, 4  ;;  %v2669_v31 = vld [vmem:[#allocation2 + $0x1b4] sm:$0x1] }
 0x204   : > { %v3286_v51 = vrot.slane %v3284_v62, 5  ;;  %v3304_v26 = vshll.u32 %v2668_v28, 16  ;;  %v3292_v60 = vrot.slane %v3290_v49, 5  ;;  %v1983_v0 = vshrl.u32 %v14664_v46, 16  ;;  %v2602_v48 = vld [vmem:[#allocation2 + $0x1b8] sm:$0xf] }
 0x205   : > { %v3279_v11 = vsel %vm17657_vm4, %v3274_v37, %v3278_v47  ;;  %v3297_v13 = vrot.slane %v3295_v36, 4  ;;  %v3300_v18 = vrot.slane %v3298_v56, 5  ;;  %v1986_v45 = vshll.u32 %v14664_v46, 16  ;;  %v2670_v12 = vld [vmem:[#allocation2 + $0x1bc] sm:$0x1] }
 0x206   : > { %v13706_v39 = vcombine.low %v3265_v2, %v3279_v11  ;;  %v3287_v15 = vor.u32 %v3286_v51, %v3283_v61  ;;  %v3306_v33 = vrot.slane %v3304_v26, 5  ;;  %v1094_v29 = vadd.f32 %v18119_v41, %v18055_v10  ;;  %v2545_v23 = vld [vmem:[#allocation2 + $0x268] sm:$0xf]  ;;  %v2548_v2 = vld [vmem:[#allocation2 + $0x26c] sm:$0x1] }
 0x207   : > { %v3301_v34 = vor.u32 %v3300_v18, %v3297_v13  ;;  %v1985_v20 = vrot.slane %v1983_v0, 7  ;;  %v1105_v42 = vadd.f32 %v18119_v41, %v18065_v30  ;;  %v3309_v1 = vshrl.u32 %v2601_v16, 16  ;;  %v2533_v62 = vld [vmem:[#allocation2 + $0x258] sm:$0xf]  ;;  %v2536_v49 = vld [vmem:[#allocation2 + $0x25c] sm:$0x1] }
 0x208   : > { %15589 = vmatprep.mubr.msk.bf16.mxu0 %vm3701_vm9, %v13706_v39  ;;  %v3288_v5 = vrot.slane %v3287_v15, 4  ;;  %v1170_v32 = vmax.f32 %v1102_v50, 0.0  ;;  %v1168_v8 = vmax.f32 %v1094_v29, 0.0  ;;  %v3312_v54 = vshll.u32 %v2601_v16, 16  ;;  %v2551_v13 = vld [vmem:[#allocation2 + $0x270] sm:$0xf] }
 0x209   : > { %v3302_v17 = vrot.slane %v3301_v34, 4  ;;  %v1988_v21 = vor.u32 %v1986_v45, %v1985_v20  ;;  %v1989_v19 = vrot.slane %v1985_v20, 4  ;;  %v1171_v4 = vmax.f32 %v1105_v42, 0.0  ;;  %v2554_v18 = vld [vmem:[#allocation2 + $0x274] sm:$0x1] }
 0x20a   : > { %v3293_v57 = vsel %vm17657_vm4, %v3288_v5, %v3292_v60  ;;  %v14669_v63 = vpack.c.bf16 %v1170_v32, %v1170_v32  ;;  %v14667_v43 = vpack.c.bf16 %v1168_v8, %v1168_v8  ;;  %v3311_v24 = vrot.slane %v3309_v1, 4  ;;  %v2603_v15 = vld [vmem:[#allocation2 + $0x1c0] sm:$0xf]  ;;  %v2604_v50 = vld [vmem:[#allocation2 + $0x1c8] sm:$0xf] }
 0x20b   : > { %v3307_v10 = vsel %vm17657_vm4, %v3302_v17, %v3306_v33  ;;  %v2516_v30 = vsel %vm17677_vm7, %v1988_v21, %v2515_v55  ;;  %v2519_v41 = vsel %vm17684_vm8, %v1989_v19, %v2518_v3  ;;  %v14670_v52 = vpack.c.bf16 %v1171_v4, %v1171_v4  ;;  %v2671_v29 = vld [vmem:[#allocation2 + $0x1c4] sm:$0x1]  ;;  %v2672_v20 = vld [vmem:[#allocation2 + $0x1cc] sm:$0x1]  ;;  %v16830_v4 = vld [vmem:[#allocation2 + $0x248] ss:$8 sps:$4 sm:$0xff]  }
 0x20c   : > { %v13707_v7 = vcombine.low %v3293_v57, %v3307_v10  ;;  %2517 = vst [vmem:[#allocation2 + $0x240] sm:$0xf] %v2516_v30  ;;  %2520 = vst [vmem:[#allocation2 + $0x244] sm:$0x1] %v2519_v41  ;;  %v2023_v59 = vshrl.u32 %v14669_v63, 16  ;;  %v2026_v25 = vshll.u32 %v14669_v63, 16 }
 0x20d   : > { %v2007_v9 = vshrl.u32 %v14667_v43, 16  ;;  %v2010_v27 = vshll.u32 %v14667_v43, 16  ;;  %v2031_v58 = vshrl.u32 %v14670_v52, 16  ;;  %v2034_v28 = vshll.u32 %v14670_v52, 16 }
 0x20e   : > { %15590 = vmatmul.mubr.msk.bf16.gmra.mrb[104].mxu0 %vm3701_vm9, %v13707_v7  ;;  %v3314_v22 = vrot.slane %v3312_v54, 5  ;;  %v3318_v47 = vshll.u32 %v2669_v31, 16  ;;  %v2025_v6 = vrot.slane %v2023_v59, 7  ;;  %v3323_v53 = vshrl.u32 %v2602_v48, 16  ;;  %v16925_v54 = vld [vmem:[%s17641_s23] ss:$0 sm:$0xff] }
 0x20f   : > { %v2009_v35 = vrot.slane %v2007_v9, 7  ;;  %v3326_v37 = vshll.u32 %v2602_v48, 16  ;;  %v2033_v36 = vrot.slane %v2031_v58, 7  ;;  %v3332_v61 = vshll.u32 %v2670_v12, 16 }
 0x210   : > { %v3315_v56 = vor.u32 %v3314_v22, %v3311_v24  ;;  %v18296_v46 = vrot.slane %v3318_v47, 5  ;;  %v2028_v51 = vor.u32 %v2026_v25, %v2025_v6  ;;  %v2029_v26 = vrot.slane %v2025_v6, 4  ;;  %v2605_v24 = vld [vmem:[#allocation2 + $0x1e0] sm:$0xf]  ;;  %v2674_v47 = vld [vmem:[#allocation2 + $0x1ec] sm:$0x1] }
 0x211   : > { %v2012_v11 = vor.u32 %v2010_v27, %v2009_v35  ;;  %v2013_v60 = vrot.slane %v2009_v35, 4  ;;  %v2036_v16 = vor.u32 %v2034_v28, %v2033_v36  ;;  %v2037_v39 = vrot.slane %v2033_v36, 4 }
 0x212   : > { %v3316_v0 = vrot.slane %v3315_v56, 4  ;;  %v3325_v45 = vrot.slane %v3323_v53, 4  ;;  %v2546_v55 = vsel %vm17677_vm7, %v2028_v51, %v2545_v23  ;;  %v2549_v3 = vsel %vm17684_vm8, %v2029_v26, %v2548_v2  ;;  %v2606_v23 = vld [vmem:[#allocation2 + $0x1e8] sm:$0xf]  ;;  %v2673_v2 = vld [vmem:[#allocation2 + $0x1e4] sm:$0x1] }
 0x213   : > { %v2534_v34 = vsel %vm17677_vm7, %v2012_v11, %v2533_v62  ;;  %v2537_v33 = vsel %vm17684_vm8, %v2013_v60, %v2536_v49  ;;  %2547 = vst [vmem:[#allocation2 + $0x268] sm:$0xf] %v2546_v55  ;;  %2550 = vst [vmem:[#allocation2 + $0x26c] sm:$0x1] %v2549_v3  ;;  %v2552_v5 = vsel %vm17677_vm7, %v2036_v16, %v2551_v13  ;;  %v3328_v17 = vrot.slane %v3326_v37, 5 }
 0x214   : > { %2535 = vst [vmem:[#allocation2 + $0x258] sm:$0xf] %v2534_v34  ;;  %2538 = vst [vmem:[#allocation2 + $0x25c] sm:$0x1] %v2537_v33  ;;  %v2555_v42 = vsel %vm17684_vm8, %v2037_v39, %v2554_v18  ;;  %v3321_v1 = vsel %vm17657_vm4, %v3316_v0, %v18296_v46  ;;  %v16829_v32 = vld [vmem:[#allocation2 + $0x238] ss:$8 sps:$4 sm:$0xff]   ;;  %v1097_v21 = vadd.f32 %v16925_v54, %v18068_v40 }
 0x215   : > { %2553 = vst [vmem:[#allocation2 + $0x270] sm:$0xf] %v2552_v5  ;;  %2556 = vst [vmem:[#allocation2 + $0x274] sm:$0x1] %v2555_v42  ;;  %v3334_v8 = vrot.slane %v3332_v61, 5  ;;  %v3337_v19 = vshrl.u32 %v2603_v15, 16  ;;  %v3329_v10 = vor.u32 %v3328_v17, %v3325_v45  ;;  %15809 = vmatprep.mubr.msk.bf16.mxu1 %vm3701_vm9, %v16829_v32 }
 0x216   : > { %v3340_v57 = vshll.u32 %v2603_v15, 16  ;;  %v3346_v63 = vshll.u32 %v2671_v29, 16  ;;  %v3351_v43 = vshrl.u32 %v2604_v50, 16  ;;  %v3354_v31 = vshll.u32 %v2604_v50, 16  ;;  %15810 = vmatmul.mubr.msk.bf16.gmra.mrb[32].mxu1 %vm3701_vm9, %v16830_v4  ;;  %v2607_v62 = vld [vmem:[#allocation2 + $0x1f0] sm:$0xf] }
 0x217   : > { %v1169_v30 = vmax.f32 %v1097_v21, 0.0  ;;  %v3339_v41 = vrot.slane %v3337_v19, 4  ;;  %v3360_v52 = vshll.u32 %v2672_v20, 16  ;;  %v3330_v48 = vrot.slane %v3329_v10, 4  ;;  %v2539_v56 = vld [vmem:[#allocation2 + $0x260] sm:$0xf] }
 0x218   : > { %v3342_v7 = vrot.slane %v3340_v57, 5  ;;  %v3348_v59 = vrot.slane %v3346_v63, 5  ;;  %v3353_v25 = vrot.slane %v3351_v43, 4  ;;  %v3356_v40 = vrot.slane %v3354_v31, 5  ;;  %v2542_v16 = vld [vmem:[#allocation2 + $0x264] sm:$0x1] }
 0x219   : > { %v14668_v9 = vpack.c.bf16 %v1169_v30, %v1169_v30  ;;  %v3362_v12 = vrot.slane %v3360_v52, 5  ;;  %v3365_v58 = vshrl.u32 %v2605_v24, 16  ;;  %v3335_v28 = vsel %vm17657_vm4, %v3330_v48, %v3334_v8  ;;  %v2675_v15 = vld [vmem:[#allocation2 + $0x1f4] sm:$0x1]  ;;  %v2608_v29 = vld [vmem:[#allocation2 + $0x1f8] sm:$0xf] }
 0x21a   : > { %v3343_v27 = vor.u32 %v3342_v7, %v3339_v41  ;;  %v3357_v22 = vor.u32 %v3356_v40, %v3353_v25  ;;  %v3368_v6 = vshll.u32 %v2605_v24, 16  ;;  %v3374_v35 = vshll.u32 %v2673_v2, 16  ;;  %v2676_v20 = vld [vmem:[#allocation2 + $0x1fc] sm:$0x1]  ;;  %v2609_v32 = vld [vmem:[#allocation2 + $0x200] sm:$0xf] }
 0x21b   : > { %v13708_v53 = vcombine.low %v3321_v1, %v3335_v28  ;;  %v2015_v37 = vshrl.u32 %v14668_v9, 16  ;;  %v2018_v49 = vshll.u32 %v14668_v9, 16  ;;  %v3367_v61 = vrot.slane %v3365_v58, 4  ;;  %v2677_v43 = vld [vmem:[#allocation2 + $0x204] sm:$0x1] }
 0x21c   : > { %v3344_v36 = vrot.slane %v3343_v27, 4  ;;  %v3358_v46 = vrot.slane %v3357_v22, 4  ;;  %v3370_v51 = vrot.slane %v3368_v6, 5  ;;  %v3376_v26 = vrot.slane %v3374_v35, 5  ;;  %v2610_v30 = vld [vmem:[#allocation2 + $0x208] sm:$0xf] }
 0x21d   : > { %15593 = vmatprep.mubr.msk.bf16.mxu0 %vm3701_vm9, %v13708_v53  ;;  %v2017_v11 = vrot.slane %v2015_v37, 7  ;;  %v3379_v13 = vshrl.u32 %v2606_v23, 16  ;;  %v3382_v18 = vshll.u32 %v2606_v23, 16  ;;  %v3388_v45 = vshll.u32 %v2674_v47, 16  ;;  %v2678_v40 = vld [vmem:[#allocation2 + $0x20c] sm:$0x1] }
 0x21e   : > { %v3349_v60 = vsel %vm17657_vm4, %v3344_v36, %v3348_v59  ;;  %v3363_v39 = vsel %vm17657_vm4, %v3358_v46, %v3362_v12  ;;  %v3371_v0 = vor.u32 %v3370_v51, %v3367_v61  ;;  %v3393_v55 = vshrl.u32 %v2607_v62, 16  ;;  %v2611_v28 = vld [vmem:[#allocation2 + $0x210] sm:$0xf]  ;;  %v2679_v53 = vld [vmem:[#allocation2 + $0x214] sm:$0x1] }
 0x21f   : > { %v2020_v3 = vor.u32 %v2018_v49, %v2017_v11  ;;  %v2021_v34 = vrot.slane %v2017_v11, 4  ;;  %v13709_v33 = vcombine.low %v3349_v60, %v3363_v39  ;;  %v3381_v50 = vrot.slane %v3379_v13, 4  ;;  %v2680_v46 = vld [vmem:[#allocation2 + $0x21c] sm:$0x1]  ;;  %v2613_v61 = vld [vmem:[#allocation2 + $0x230] sm:$0xf] }
 0x220   : > { %v3372_v5 = vrot.slane %v3371_v0, 4  ;;  %v3384_v42 = vrot.slane %v3382_v18, 5  ;;  %v3390_v1 = vrot.slane %v3388_v45, 5  ;;  %v3395_v17 = vrot.slane %v3393_v55, 4 }
 0x221   : > { %v2540_v8 = vsel %vm17677_vm7, %v2020_v3, %v2539_v56  ;;  %v2543_v54 = vsel %vm17684_vm8, %v2021_v34, %v2542_v16  ;;  %15594 = vmatmul.mubr.msk.bf16.gmra.mrb[108].mxu0 %vm3701_vm9, %v13709_v33  ;;  %v3396_v21 = vshll.u32 %v2607_v62, 16  ;;  %v3402_v19 = vshll.u32 %v2675_v15, 16  ;;  %v2612_v62 = vld [vmem:[#allocation2 + $0x218] sm:$0xf]  ;;  %v16832_v34 = vld [vmem:[#allocation2 + $0x268] ss:$8 sps:$4 sm:$0xff]  }
 0x222   : > { %2541 = vst [vmem:[#allocation2 + $0x260] sm:$0xf] %v2540_v8  ;;  %2544 = vst [vmem:[#allocation2 + $0x264] sm:$0x1] %v2543_v54  ;;  %v3377_v57 = vsel %vm17657_vm4, %v3372_v5, %v3376_v26  ;;  %v3385_v4 = vor.u32 %v3384_v42, %v3381_v50  ;;  %v3407_v10 = vshrl.u32 %v2608_v29, 16  ;;  %v3410_v63 = vshll.u32 %v2608_v29, 16 }
 0x223   : > { %v3398_v31 = vrot.slane %v3396_v21, 5  ;;  %v3404_v24 = vrot.slane %v3402_v19, 5  ;;  %v3416_v38 = vshll.u32 %v2676_v20, 16  ;;  %v3421_v41 = vshrl.u32 %v2609_v32, 16  ;;  %v2681_v5 = vld [vmem:[#allocation2 + $0x234] sm:$0x1] }
 0x224   : > { %v3386_v44 = vrot.slane %v3385_v4, 4  ;;  %v3409_v7 = vrot.slane %v3407_v10, 4  ;;  %v3412_v52 = vrot.slane %v3410_v63, 5  ;;  %v3424_v48 = vshll.u32 %v2609_v32, 16  ;;  %v2614_v32 = vld [vmem:[#allocation2 + $0x238] sm:$0xf] }
 0x225   : > { %v3399_v59 = vor.u32 %v3398_v31, %v3395_v17  ;;  %v3418_v25 = vrot.slane %v3416_v38, 5  ;;  %v3423_v9 = vrot.slane %v3421_v41, 4  ;;  %v3430_v27 = vshll.u32 %v2677_v43, 16  ;;  %v2682_v19 = vld [vmem:[#allocation2 + $0x23c] sm:$0x1] }
 0x226   : > { %v3391_v12 = vsel %vm17657_vm4, %v3386_v44, %v3390_v1  ;;  %v3413_v23 = vor.u32 %v3412_v52, %v3409_v7  ;;  %v3426_v2 = vrot.slane %v3424_v48, 5  ;;  %v3435_v58 = vshrl.u32 %v2610_v30, 16  ;;  %v2683_v7 = vld [vmem:[#allocation2 + $0x244] sm:$0x1] }
 0x227   : > { %v13710_v22 = vcombine.low %v3377_v57, %v3391_v12  ;;  %v3400_v47 = vrot.slane %v3399_v59, 4  ;;  %v3432_v6 = vrot.slane %v3430_v27, 5  ;;  %v3438_v35 = vshll.u32 %v2610_v30, 16  ;;  %v2616_v27 = vld [vmem:[#allocation2 + $0x248] sm:$0xf] }
 0x228   : > { %v3414_v37 = vrot.slane %v3413_v23, 4  ;;  %v3427_v49 = vor.u32 %v3426_v2, %v3423_v9  ;;  %v3437_v36 = vrot.slane %v3435_v58, 4  ;;  %v3444_v56 = vshll.u32 %v2678_v40, 16  ;;  %v6347_v2 = vld [vmem:[#allocation2 + $0x8] sm:$0xf] }
 0x229   : > { %15597 = vmatprep.mubr.msk.bf16.mxu0 %vm3701_vm9, %v13710_v22  ;;  %v3405_v51 = vsel %vm17657_vm4, %v3400_v47, %v3404_v24  ;;  %v3440_v26 = vrot.slane %v3438_v35, 5  ;;  %v3449_v11 = vshrl.u32 %v2611_v28, 16  ;;  %v3452_v60 = vshll.u32 %v2611_v28, 16  ;;  %v16831_v0 = vld [vmem:[#allocation2 + $0x258] ss:$8 sps:$4 sm:$0xff]  }
 0x22a   : > { %v3419_v13 = vsel %vm17657_vm4, %v3414_v37, %v3418_v25  ;;  %v3428_v18 = vrot.slane %v3427_v49, 4  ;;  %v3446_v16 = vrot.slane %v3444_v56, 5  ;;  %v3458_v39 = vshll.u32 %v2679_v53, 16  ;;  %15813 = vmatprep.mubr.msk.bf16.mxu1 %vm3701_vm9, %v16831_v0  ;;  %v2615_v24 = vld [vmem:[#allocation2 + $0x240] sm:$0xf] }
 0x22b   : > { %v13711_v45 = vcombine.low %v3405_v51, %v3419_v13  ;;  %v3441_v15 = vor.u32 %v3440_v26, %v3437_v36  ;;  %v3451_v55 = vrot.slane %v3449_v11, 4  ;;  %v3454_v3 = vrot.slane %v3452_v60, 5  ;;  %15814 = vmatmul.mubr.msk.bf16.gmra.mrb[36].mxu1 %vm3701_vm9, %v16832_v34  ;;  %v2684_v22 = vld [vmem:[#allocation2 + $0x24c] sm:$0x1]  ;;  %v6349_v60 = vld [vmem:[#allocation2 + $0x10] sm:$0xf] }
 0x22c   : > { %v3433_v33 = vsel %vm17657_vm4, %v3428_v18, %v3432_v6  ;;  %v3460_v50 = vrot.slane %v3458_v39, 5  ;;  %v3463_v29 = vshrl.u32 %v2612_v62, 16  ;;  %v3466_v20 = vshll.u32 %v2612_v62, 16  ;;  %v6348_v6 = vld [vmem:[#allocation2 + $0xc] sm:$0x1] }
 0x22d   : > { %15598 = vmatmul.mubr.msk.bf16.gmra.mrb[112].mxu0 %vm3701_vm9, %v13711_v45  ;;  %v3442_v42 = vrot.slane %v3441_v15, 4  ;;  %v3455_v1 = vor.u32 %v3454_v3, %v3451_v55  ;;  %v3472_v17 = vshll.u32 %v2680_v46, 16  ;;  %v3477_v8 = vshrl.u32 %v2613_v61, 16  ;;  %v2617_v34 = vld [vmem:[#allocation2 + $0x250] sm:$0xf] }
 0x22e   : > { %v3465_v54 = vrot.slane %v3463_v29, 4  ;;  %v3468_v21 = vrot.slane %v3466_v20, 5  ;;  %v3480_v57 = vshll.u32 %v2613_v61, 16  ;;  %v3486_v4 = vshll.u32 %v2681_v5, 16  ;;  %v2685_v5 = vld [vmem:[#allocation2 + $0x254] sm:$0x1] }
 0x22f   : > { %v3447_v10 = vsel %vm17657_vm4, %v3442_v42, %v3446_v16  ;;  %v3456_v63 = vrot.slane %v3455_v1, 4  ;;  %v3474_v43 = vrot.slane %v3472_v17, 5  ;;  %v3479_v31 = vrot.slane %v3477_v8, 4  ;;  %v6350_v16 = vld [vmem:[#allocation2 + $0x14] sm:$0x1] }
 0x230   : > { %v13712_v38 = vcombine.low %v3433_v33, %v3447_v10  ;;  %v3469_v30 = vor.u32 %v3468_v21, %v3465_v54  ;;  %v3482_v41 = vrot.slane %v3480_v57, 5  ;;  %v3488_v44 = vrot.slane %v3486_v4, 5  ;;  %v2618_v8 = vld [vmem:[#allocation2 + $0x258] sm:$0xf]  ;;  %v2686_v4 = vld [vmem:[#allocation2 + $0x25c] sm:$0x1] }
 0x231   : > { %v3461_v52 = vsel %vm17657_vm4, %v3456_v63, %v3460_v50  ;;  %v3491_v48 = vshrl.u32 %v2614_v32, 16  ;;  %v3494_v59 = vshll.u32 %v2614_v32, 16  ;;  %v3500_v25 = vshll.u32 %v2682_v19, 16  ;;  %v2619_v10 = vld [vmem:[#allocation2 + $0x260] sm:$0xf] }
 0x232   : > { %15601 = vmatprep.mubr.msk.bf16.mxu0 %vm3701_vm9, %v13712_v38  ;;  %v3470_v40 = vrot.slane %v3469_v30, 4  ;;  %v3483_v9 = vor.u32 %v3482_v41, %v3479_v31  ;;  %v3505_v12 = vshrl.u32 %v2615_v24, 16  ;;  %v3508_v23 = vshll.u32 %v2615_v24, 16  ;;  %v2620_v38 = vld [vmem:[#allocation2 + $0x268] sm:$0xf] }
 0x233   : > { %v3493_v58 = vrot.slane %v3491_v48, 4  ;;  %v3496_v28 = vrot.slane %v3494_v59, 5  ;;  %v3514_v47 = vshll.u32 %v2683_v7, 16  ;;  %v3502_v56 = vrot.slane %v3500_v25, 5  ;;  %v2687_v30 = vld [vmem:[#allocation2 + $0x264] sm:$0x1] }
 0x234   : > { %v3475_v35 = vsel %vm17657_vm4, %v3470_v40, %v3474_v43  ;;  %v3484_v62 = vrot.slane %v3483_v9, 4  ;;  %v3507_v53 = vrot.slane %v3505_v12, 4  ;;  %v3510_v37 = vrot.slane %v3508_v23, 5 }
 0x235   : > { %v13713_v49 = vcombine.low %v3461_v52, %v3475_v35  ;;  %v3497_v36 = vor.u32 %v3496_v28, %v3493_v58  ;;  %v3519_v46 = vshrl.u32 %v2616_v27, 16  ;;  %v3522_v26 = vshll.u32 %v2616_v27, 16 }
 0x236   : > { %v3489_v61 = vsel %vm17657_vm4, %v3484_v62, %v3488_v44  ;;  %v3511_v51 = vor.u32 %v3510_v37, %v3507_v53  ;;  %v3528_v11 = vshll.u32 %v2684_v22, 16  ;;  %v6476_v39 = vshrl.u32 %v6347_v2, 16  ;;  %v6352_v37 = vld [vmem:[#allocation2 + $0x1c] sm:$0x1] }
 0x237   : > { %15602 = vmatmul.mubr.msk.bf16.gmra.mrb[116].mxu0 %vm3701_vm9, %v13713_v49  ;;  %v3498_v13 = vrot.slane %v3497_v36, 4  ;;  %v3521_v18 = vrot.slane %v3519_v46, 4  ;;  %v6479_v0 = vshll.u32 %v6347_v2, 16  ;;  %v3516_v15 = vrot.slane %v3514_v47, 5  ;;  %v6351_v47 = vld [vmem:[#allocation2 + $0x18] sm:$0xf] }
 0x238   : > { %v3512_v45 = vrot.slane %v3511_v51, 4  ;;  %v3524_v55 = vrot.slane %v3522_v26, 5  ;;  %v6485_v3 = vshll.u32 %v6348_v6, 16  ;;  %v6478_v50 = vrot.slane %v6476_v39, 4  ;;  %v2688_v46 = vld [vmem:[#allocation2 + $0x26c] sm:$0x1] }
 0x239   : > { %v3503_v33 = vsel %vm17657_vm4, %v3498_v13, %v3502_v56  ;;  %v6481_v29 = vrot.slane %v6479_v0, 5  ;;  %v6490_v20 = vshrl.u32 %v6349_v60, 16  ;;  %v3530_v32 = vrot.slane %v3528_v11, 5  ;;  %v6353_v13 = vld [vmem:[#allocation2 + $0x20] sm:$0xf] }
 0x23a   : > { %v13714_v42 = vcombine.low %v3489_v61, %v3503_v33  ;;  %v3517_v1 = vsel %vm17657_vm4, %v3512_v45, %v3516_v15  ;;  %v3525_v17 = vor.u32 %v3524_v55, %v3521_v18  ;;  %v6493_v19 = vshll.u32 %v6349_v60, 16  ;;  %v6354_v55 = vld [vmem:[#allocation2 + $0x24] sm:$0x1]  ;;  %v6355_v33 = vld [vmem:[#allocation2 + $0x28] sm:$0xf] }
 0x23b   : > { %v6482_v54 = vor.u32 %v6481_v29, %v6478_v50  ;;  %v6492_v21 = vrot.slane %v6490_v20, 4  ;;  %v6499_v57 = vshll.u32 %v6350_v16, 16  ;;  %v3533_v43 = vshrl.u32 %v2617_v34, 16 }
 0x23c   : > { %15605 = vmatprep.mubr.msk.bf16.mxu0 %vm3701_vm9, %v13714_v42  ;;  %v3526_v63 = vrot.slane %v3525_v17, 4  ;;  %v3536_v31 = vshll.u32 %v2617_v34, 16  ;;  %v3542_v24 = vshll.u32 %v2685_v5, 16  ;;  %v6487_v44 = vrot.slane %v6485_v3, 5  ;;  %v6356_v42 = vld [vmem:[#allocation2 + $0x2c] sm:$0x1] }
 0x23d   : > { %v6483_v41 = vrot.slane %v6482_v54, 4  ;;  %v6495_v7 = vrot.slane %v6493_v19, 5  ;;  %v3547_v52 = vshrl.u32 %v2618_v8, 16  ;;  %v6501_v59 = vrot.slane %v6499_v57, 5  ;;  %v6357_v54 = vld [vmem:[#allocation2 + $0x30] sm:$0xf] }
 0x23e   : > { %v3531_v48 = vsel %vm17657_vm4, %v3526_v63, %v3530_v32  ;;  %v3535_v25 = vrot.slane %v3533_v43, 4  ;;  %v3538_v40 = vrot.slane %v3536_v31, 5  ;;  %v3544_v12 = vrot.slane %v3542_v24, 5 }
 0x23f   : > { %v13715_v9 = vcombine.low %v3517_v1, %v3531_v48  ;;  %v6496_v27 = vor.u32 %v6495_v7, %v6492_v21  ;;  %v3549_v23 = vrot.slane %v3547_v52, 4  ;;  %v3550_v58 = vshll.u32 %v2618_v8, 16  ;;  %v6358_v52 = vld [vmem:[#allocation2 + $0x34] sm:$0x1] }
 0x240   : > { %v3539_v2 = vor.u32 %v3538_v40, %v3535_v25  ;;  %v3556_v28 = vshll.u32 %v2686_v4, 16  ;;  %v3561_v22 = vshrl.u32 %v2619_v10, 16  ;;  %v3564_v35 = vshll.u32 %v2619_v10, 16  ;;  %v16926_v40 = vld [vmem:[#allocation2] sm:$0xf] }
 0x241   : > { %15606 = vmatmul.mubr.msk.bf16.gmra.mrb[120].mxu0 %vm3701_vm9, %v13715_v9  ;;  %v6497_v6 = vrot.slane %v6496_v27, 4  ;;  %v3570_v62 = vshll.u32 %v2687_v30, 16  ;;  %v3575_v53 = vshrl.u32 %v2620_v38, 16  ;;  %v6488_v49 = vsel %vm17657_vm4, %v6483_v41, %v6487_v44  ;;  %v16927_v9 = vld [vmem:[#allocation2 + $0x8] sm:$0xf] }
 0x242   : > { %v3540_v36 = vrot.slane %v3539_v2, 4  ;;  %v3552_v56 = vrot.slane %v3550_v58, 5  ;;  %v3563_v61 = vrot.slane %v3561_v22, 4  ;;  %v3558_v26 = vrot.slane %v3556_v28, 5  ;;  %v6359_v2 = vld [vmem:[#allocation2 + $0x38] sm:$0xf] }
 0x243   : > { %v6502_v51 = vsel %vm17657_vm4, %v6497_v6, %v6501_v59  ;;  %v3566_v11 = vrot.slane %v3564_v35, 5  ;;  %v3572_v60 = vrot.slane %v3570_v62, 5  ;;  %v3577_v39 = vrot.slane %v3575_v53, 4  ;;  %v6360_v6 = vld [vmem:[#allocation2 + $0x3c] sm:$0x1] }
 0x244   : > { %v14026_v18 = vcombine.low %v6488_v49, %v6502_v51  ;;  %v3553_v16 = vor.u32 %v3552_v56, %v3549_v23  ;;  %v3578_v0 = vshll.u32 %v2620_v38, 16  ;;  %v3584_v15 = vshll.u32 %v2688_v46, 16  ;;  %v6361_v49 = vld [vmem:[#allocation2 + $0x40] sm:$0xf] }
 0x245   : > { %v3567_v45 = vor.u32 %v3566_v11, %v3563_v61  ;;  %v6504_v3 = vshrl.u32 %v6351_v47, 16  ;;  %v6507_v34 = vshll.u32 %v6351_v47, 16  ;;  %v6513_v20 = vshll.u32 %v6352_v37, 16  ;;  %v6362_v61 = vld [vmem:[#allocation2 + $0x44] sm:$0x1] }
 0x246   : > { %15821 = vmatprep.mubr.msk.bf16.mxu1 %vm3701_vm9, %v14026_v18  ;;  %v3554_v50 = vrot.slane %v3553_v16, 4  ;;  %v3580_v29 = vrot.slane %v3578_v0, 5  ;;  %v6518_v5 = vshrl.u32 %v6353_v13, 16  ;;  %v3545_v1 = vsel %vm17657_vm4, %v3540_v36, %v3544_v12  ;;  %v16928_v11 = vld [vmem:[#allocation2 + $0x10] sm:$0xf] }
 0x247   : > { %v3568_v17 = vrot.slane %v3567_v45, 4  ;;  %v6506_v32 = vrot.slane %v6504_v3, 4  ;;  %v6509_v8 = vrot.slane %v6507_v34, 5  ;;  %v3586_v57 = vrot.slane %v3584_v15, 5 }
 0x248   : > { %v3559_v21 = vsel %vm17657_vm4, %v3554_v50, %v3558_v26  ;;  %v3581_v19 = vor.u32 %v3580_v29, %v3577_v39  ;;  %v6515_v4 = vrot.slane %v6513_v20, 5  ;;  %v6520_v43 = vrot.slane %v6518_v5, 4  ;;  %v6364_v29 = vld [vmem:[#allocation2 + $0x5c] sm:$0x1] }
 0x249   : > { %v13716_v10 = vcombine.low %v3545_v1, %v3559_v21  ;;  %v6510_v63 = vor.u32 %v6509_v8, %v6506_v32  ;;  %v6521_v31 = vshll.u32 %v6353_v13, 16  ;;  %v3573_v24 = vsel %vm17657_vm4, %v3568_v17, %v3572_v60  ;;  %v16929_v60 = vld [vmem:[#allocation2 + $0x18] sm:$0xf]  ;;  %v6365_v32 = vld [vmem:[#allocation2 + $0x60] sm:$0xf] }
 0x24a   : > { %v3582_v38 = vrot.slane %v3581_v19, 4  ;;  %v6527_v30 = vshll.u32 %v6354_v55, 16  ;;  %v6532_v41 = vshrl.u32 %v6355_v33, 16  ;;  %v6535_v48 = vshll.u32 %v6355_v33, 16  ;;  %v6363_v55 = vld [vmem:[#allocation2 + $0x58] sm:$0xf] }
 0x24b   : > { %15609 = vmatprep.mubr.msk.bf16.mxu0 %vm3701_vm9, %v13716_v10  ;;  %v6511_v44 = vrot.slane %v6510_v63, 4  ;;  %v6523_v7 = vrot.slane %v6521_v31, 5  ;;  %v6541_v59 = vshll.u32 %v6356_v42, 16  ;;  %v13752_v27 = vcombine.low %v16926_v40, %v16927_v9  ;;  %v16851_v20 = vld [vmem:[%s17280_s20 + $0x58] sm:$0xff]   ;;  %v16931_v10 = vld [vmem:[#allocation2 + $0x20] sm:$0xf] }
 0x24c   : > { %v3587_v25 = vsel %vm17657_vm4, %v3582_v38, %v3586_v57  ;;  %v6534_v12 = vrot.slane %v6532_v41, 4  ;;  %v6546_v23 = vshrl.u32 %v6357_v54, 16  ;;  %v6529_v22 = vrot.slane %v6527_v30, 5  ;;  %v16930_v57 = vld [vmem:[%s17280_s20 + $0x50] sm:$0xff]   ;;  %v16932_v63 = vld [vmem:[#allocation2 + $0x28] sm:$0xf] }
 0x24d   : > { %v13717_v58 = vcombine.low %v3573_v24, %v3587_v25  ;;  %v6524_v28 = vor.u32 %v6523_v7, %v6520_v43  ;;  %v6537_v47 = vrot.slane %v6535_v48, 5  ;;  %v6516_v35 = vsel %vm17657_vm4, %v6511_v44, %v6515_v4  ;;  %v6366_v31 = vld [vmem:[#allocation2 + $0x64] sm:$0x1]  ;;  %v6368_v9 = vld [vmem:[#allocation2 + $0x6c] sm:$0x1] }
 0x24e   : > { %v6548_v62 = vrot.slane %v6546_v23, 4  ;;  %v6549_v53 = vshll.u32 %v6357_v54, 16  ;;  %v6555_v37 = vshll.u32 %v6358_v52, 16  ;;  %v6543_v46 = vrot.slane %v6541_v59, 5  ;;  %v6367_v52 = vld [vmem:[#allocation2 + $0x68] sm:$0xf] }
 0x24f   : > { %15610 = vmatmul.mubr.msk.bf16.gmra.mrb[124].mxu0 %vm3701_vm9, %v13717_v58  ;;  %v6525_v36 = vrot.slane %v6524_v28, 4  ;;  %v6538_v56 = vor.u32 %v6537_v47, %v6534_v12  ;;  %v6560_v51 = vshrl.u32 %v6359_v2, 16  ;;  %v13753_v13 = vcombine.low %v16928_v11, %v16929_v60  ;;  %v6369_v58 = vld [vmem:[#allocation2 + $0x70] sm:$0xf]  ;;  %v6371_v11 = vld [vmem:[#allocation2 + $0x78] sm:$0xf] }
 0x250   : > { %15617 = vmatprep.mubr.msk.bf16.mxu0 %vm3701_vm9, %v13752_v27  ;;  %v6551_v26 = vrot.slane %v6549_v53, 5  ;;  %v6563_v18 = vshll.u32 %v6359_v2, 16  ;;  %v6569_v16 = vshll.u32 %v6360_v6, 16  ;;  %v6574_v15 = vshrl.u32 %v6361_v49, 16  ;;  %v16934_v53 = vld [vmem:[#allocation2 + $0x38] sm:$0xf] }
 0x251   : > { %v6530_v39 = vsel %vm17657_vm4, %v6525_v36, %v6529_v22  ;;  %v6539_v0 = vrot.slane %v6538_v56, 4  ;;  %v6562_v45 = vrot.slane %v6560_v51, 4  ;;  %v6557_v33 = vrot.slane %v6555_v37, 5 }
 0x252   : > { %v14027_v3 = vcombine.low %v6516_v35, %v6530_v39  ;;  %v6552_v34 = vor.u32 %v6551_v26, %v6548_v62  ;;  %v6565_v50 = vrot.slane %v6563_v18, 5  ;;  %v6571_v5 = vrot.slane %v6569_v16, 5  ;;  %v16933_v62 = vld [vmem:[#allocation2 + $0x30] sm:$0xf]  ;;  %v6372_v39 = vld [vmem:[#allocation2 + $0x7c] sm:$0x1] }
 0x253   : > { %v6576_v42 = vrot.slane %v6574_v15, 4  ;;  %v6577_v1 = vshll.u32 %v6361_v49, 16  ;;  %v6583_v17 = vshll.u32 %v6362_v61, 16  ;;  %v6544_v8 = vsel %vm17657_vm4, %v6539_v0, %v6543_v46  ;;  %v6370_v49 = vld [vmem:[#allocation2 + $0x74] sm:$0x1] }
 0x254   : > { %15822 = vmatmul.mubr.msk.bf16.vlgmr.msra.gmra.mrb[40].mxu1 %vm3701_vm9, %v14027_v3  ;;  %v6553_v54 = vrot.slane %v6552_v34, 4  ;;  %v6566_v21 = vor.u32 %v6565_v50, %v6562_v45  ;;  %v6588_v19 = vshrl.u32 %v6363_v55, 16  ;;  %v13754_v43 = vcombine.low %v16931_v10, %v16932_v63  ;;  %v6373_v3 = vld [vmem:[#allocation2 + $0x80] sm:$0xf]  ;;  %v16935_v50 = vld [vmem:[#allocation2 + $0x50] sm:$0xf] }
 0x255   : > { %15886 = vmatpush3.bf16.msra.mxu1 %v16930_v57  ;;  %v6579_v4 = vrot.slane %v6577_v1, 5  ;;  %v6591_v24 = vshll.u32 %v6363_v55, 16  ;;  %v6597_v38 = vshll.u32 %v6364_v29, 16  ;;  %v6602_v7 = vshrl.u32 %v6365_v32, 16  ;;  %v16936_v29 = vld [vmem:[#allocation2 + $0x58] sm:$0xf] }
 0x256   : > { %v6558_v30 = vsel %vm17657_vm4, %v6553_v54, %v6557_v33  ;;  %v6567_v41 = vrot.slane %v6566_v21, 4  ;;  %v6590_v44 = vrot.slane %v6588_v19, 4  ;;  %15887 = vmatprep.subr.bf16.mxu1 %v16851_v20  ;;  %v6585_v25 = vrot.slane %v6583_v17, 5  ;;  %v6374_v17 = vld [vmem:[#allocation2 + $0x84] sm:$0x1] }
 0x257   : > { %v14028_v48 = vcombine.low %v6544_v8, %v6558_v30  ;;  %15618 = vmatmul.mubr.msk.bf16.vlgmr.msra.gmra.mrb[64].mxu0 %vm3701_vm9, %v13753_v13  ;;  %v6580_v59 = vor.u32 %v6579_v4, %v6576_v42  ;;  %v6593_v40 = vrot.slane %v6591_v24, 5  ;;  %v6599_v27 = vrot.slane %v6597_v38, 5  ;;  %v6375_v4 = vld [vmem:[#allocation2 + $0x88] sm:$0xf]  ;;  %v6376_v24 = vld [vmem:[#allocation2 + $0x8c] sm:$0x1] }
 0x258   : > { %15621 = vmatprep.mubr.msk.bf16.mxu0 %vm3701_vm9, %v13754_v43  ;;  %v6604_v12 = vrot.slane %v6602_v7, 4  ;;  %v6605_v23 = vshll.u32 %v6365_v32, 16  ;;  %v6611_v2 = vshll.u32 %v6366_v31, 16  ;;  %v6572_v28 = vsel %vm17657_vm4, %v6567_v41, %v6571_v5  ;;  %v6377_v7 = vld [vmem:[#allocation2 + $0x90] sm:$0xf] }
 0x259   : > { %15825 = vmatprep.mubr.msk.bf16.mxu1 %vm3701_vm9, %v14028_v48  ;;  %v6581_v22 = vrot.slane %v6580_v59, 4  ;;  %v6594_v47 = vor.u32 %v6593_v40, %v6590_v44  ;;  %v6616_v6 = vshrl.u32 %v6367_v52, 16  ;;  %15888 = vmatpush3.bf16.msra.mxu1 %v16851_v20  ;;  %v13755_v37 = vcombine.low %v16933_v62, %v16934_v53 }
 0x25a   : > { %v6607_v35 = vrot.slane %v6605_v23, 5  ;;  %v6619_v36 = vshll.u32 %v6367_v52, 16  ;;  %v6625_v56 = vshll.u32 %v6368_v9, 16  ;;  %v6630_v26 = vshrl.u32 %v6369_v58, 16  ;;  %v16937_v9 = vld [vmem:[#allocation2 + $0x60] sm:$0xf] }
 0x25b   : > { %v6586_v46 = vsel %vm17657_vm4, %v6581_v22, %v6585_v25  ;;  %v6595_v61 = vrot.slane %v6594_v47, 4  ;;  %v6618_v51 = vrot.slane %v6616_v6, 4  ;;  %v6613_v18 = vrot.slane %v6611_v2, 5  ;;  %v6378_v23 = vld [vmem:[#allocation2 + $0x94] sm:$0x1] }
 0x25c   : > { %v14029_v60 = vcombine.low %v6572_v28, %v6586_v46  ;;  %v6608_v13 = vor.u32 %v6607_v35, %v6604_v12  ;;  %v6621_v16 = vrot.slane %v6619_v36, 5  ;;  %v6627_v0 = vrot.slane %v6625_v56, 5  ;;  %v6379_v35 = vld [vmem:[#allocation2 + $0xa8] sm:$0xf]  ;;  %v6380_v36 = vld [vmem:[#allocation2 + $0xac] sm:$0x1] }
 0x25d   : > { %v6632_v45 = vrot.slane %v6630_v26, 4  ;;  %v6633_v15 = vshll.u32 %v6369_v58, 16  ;;  %v6639_v55 = vshll.u32 %v6370_v49, 16  ;;  %v13756_v20 = vcombine.low %v16935_v50, %v16936_v29  ;;  %v6381_v26 = vld [vmem:[#allocation2 + $0xb0] sm:$0xf] }
 0x25e   : > { %15826 = vmatmul.mubr.msk.bf16.gmra.mrb[44].mxu1 %vm3701_vm9, %v14029_v60  ;;  %v6609_v34 = vrot.slane %v6608_v13, 4  ;;  %v6622_v33 = vor.u32 %v6621_v16, %v6618_v51  ;;  %v6644_v5 = vshrl.u32 %v6371_v11, 16  ;;  %v6600_v42 = vsel %vm17657_vm4, %v6595_v61, %v6599_v27  ;;  %v16938_v27 = vld [vmem:[#allocation2 + $0x68] sm:$0xf]  ;;  %v16939_v13 = vld [vmem:[#allocation2 + $0x70] sm:$0xf] }
 0x25f   : > { %15622 = vmatmul.mubr.msk.bf16.gmra.mrb[68].mxu0 %vm3701_vm9, %v13755_v37  ;;  %v6635_v1 = vrot.slane %v6633_v15, 5  ;;  %v6647_v32 = vshll.u32 %v6371_v11, 16  ;;  %v6653_v8 = vshll.u32 %v6372_v39, 16  ;;  %v6658_v57 = vshrl.u32 %v6373_v3, 16  ;;  %v6382_v15 = vld [vmem:[#allocation2 + $0xb4] sm:$0x1] }
 0x260   : > { %v6614_v54 = vsel %vm17657_vm4, %v6609_v34, %v6613_v18  ;;  %v6623_v21 = vrot.slane %v6622_v33, 4  ;;  %15625 = vmatprep.mubr.msk.bf16.mxu0 %vm3701_vm9, %v13756_v20  ;;  %v6646_v19 = vrot.slane %v6644_v5, 4  ;;  %v6641_v43 = vrot.slane %v6639_v55, 5  ;;  %v16940_v18 = vld [vmem:[#allocation2 + $0x78] sm:$0xf] }
 0x261   : > { %v14030_v10 = vcombine.low %v6600_v42, %v6614_v54  ;;  %v6636_v63 = vor.u32 %v6635_v1, %v6632_v45  ;;  %v6649_v31 = vrot.slane %v6647_v32, 5  ;;  %v6655_v38 = vrot.slane %v6653_v8, 5  ;;  %v6383_v20 = vld [vmem:[#allocation2 + $0xb8] sm:$0xf]  ;;  %v6384_v32 = vld [vmem:[#allocation2 + $0xbc] sm:$0x1] }
 0x262   : > { %v6660_v30 = vrot.slane %v6658_v57, 4  ;;  %v6661_v41 = vshll.u32 %v6373_v3, 16  ;;  %v6667_v44 = vshll.u32 %v6374_v17, 16  ;;  %v6628_v52 = vsel %vm17657_vm4, %v6623_v21, %v6627_v0  ;;  %v16868_v8 = vld [vmem:[%s17280_s20 + $0x60] sm:$0xff]  }
 0x263   : > { %15829 = vmatprep.mubr.msk.bf16.mxu1 %vm3701_vm9, %v14030_v10  ;;  %v6637_v48 = vrot.slane %v6636_v63, 4  ;;  %v6650_v59 = vor.u32 %v6649_v31, %v6646_v19  ;;  %v6672_v25 = vshrl.u32 %v6375_v4, 16  ;;  %v13757_v12 = vcombine.low %v16937_v9, %v16938_v27  ;;  %v16870_v54 = vld [vmem:[%s17280_s20 + $0x20] sm:$0xff]   ;;  %15953 = vmatprep.subr.bf16.mxu1 %v16868_v8  ;;  %v6387_v27 = vld [vmem:[#allocation2 + $0xc8] sm:$0xf] }
 0x264   : > { %v6663_v40 = vrot.slane %v6661_v41, 5  ;;  %v6675_v2 = vshll.u32 %v6375_v4, 16  ;;  %v6681_v58 = vshll.u32 %v6376_v24, 16  ;;  %v6686_v6 = vshrl.u32 %v6377_v7, 16  ;;  %v6385_v10 = vld [vmem:[#allocation2 + $0xc0] sm:$0xf]  ;;  %15681 = vmatprep.subr.bf16.mxu0 %v16870_v54 }
 0x265   : > { %v6642_v28 = vsel %vm17657_vm4, %v6637_v48, %v6641_v43  ;;  %v6651_v22 = vrot.slane %v6650_v59, 4  ;;  %v6674_v47 = vrot.slane %v6672_v25, 4  ;;  %v6669_v37 = vrot.slane %v6667_v44, 5  ;;  %v16941_v31 = vld [vmem:[#allocation2 + $0x80] sm:$0xf]  ;;  %15682 = vmatpush3.bf16.msra.mxu0 %v16870_v54 }
 0x266   : > { %v14031_v62 = vcombine.low %v6628_v52, %v6642_v28  ;;  %v6664_v53 = vor.u32 %v6663_v40, %v6660_v30  ;;  %v6677_v49 = vrot.slane %v6675_v2, 5  ;;  %v6683_v56 = vrot.slane %v6681_v58, 5  ;;  %v16942_v24 = vld [vmem:[#allocation2 + $0x88] sm:$0xf]  ;;  %v6388_v28 = vld [vmem:[#allocation2 + $0xcc] sm:$0x1] }
 0x267   : > { %15626 = vmatmul.mubr.msk.bf16.gmra.mrb[72].mxu0 %vm3701_vm9, %v13757_v12  ;;  %v6688_v46 = vrot.slane %v6686_v6, 4  ;;  %v6689_v61 = vshll.u32 %v6377_v7, 16  ;;  %v6695_v51 = vshll.u32 %v6378_v23, 16  ;;  %v13758_v16 = vcombine.low %v16939_v13, %v16940_v18  ;;  %v6386_v7 = vld [vmem:[#allocation2 + $0xc4] sm:$0x1]  ;;  %v16871_v13 = vld [vmem:[%s17280_s20 + $0x28] sm:$0xff]  }
 0x268   : > { %15830 = vmatmul.mubr.msk.bf16.gmra.mrb[48].mxu1 %vm3701_vm9, %v14031_v62  ;;  %v6665_v11 = vrot.slane %v6664_v53, 4  ;;  %v6678_v60 = vor.u32 %v6677_v49, %v6674_v47  ;;  %v6700_v39 = vshrl.u32 %v6379_v35, 16  ;;  %v6656_v0 = vsel %vm17657_vm4, %v6651_v22, %v6655_v38  ;;  %v6389_v62 = vld [vmem:[#allocation2 + $0xd0] sm:$0xf]  ;;  %v16943_v49 = vld [vmem:[#allocation2 + $0xa0] sm:$0xf]  ;;  %15683 = vmatprep.subr.bf16.mxu0 %v16871_v13 }
 0x269   : > { %v6691_v45 = vrot.slane %v6689_v61, 5  ;;  %v6703_v55 = vshll.u32 %v6379_v35, 16  ;;  %v6709_v3 = vshll.u32 %v6380_v36, 16  ;;  %15629 = vmatprep.mubr.msk.bf16.mxu0 %vm3701_vm9, %v13758_v16  ;;  %v6714_v29 = vshrl.u32 %v6381_v26, 16  ;;  %v16944_v36 = vld [vmem:[#allocation2 + $0xa8] sm:$0xf]  ;;  %15684 = vmatpush3.bf16.msra.mxu0 %v16871_v13 }
 0x26a   : > { %v6670_v34 = vsel %vm17657_vm4, %v6665_v11, %v6669_v37  ;;  %v6679_v33 = vrot.slane %v6678_v60, 4  ;;  %v6702_v50 = vrot.slane %v6700_v39, 4  ;;  %v6697_v1 = vrot.slane %v6695_v51, 5  ;;  %v16946_v8 = vld [vmem:[#allocation2 + $0xb8] sm:$0xf] }
 0x26b   : > { %v14032_v5 = vcombine.low %v6656_v0, %v6670_v34  ;;  %v6692_v42 = vor.u32 %v6691_v45, %v6688_v46  ;;  %v6705_v17 = vrot.slane %v6703_v55, 5  ;;  %v6711_v21 = vrot.slane %v6709_v3, 5  ;;  %v6391_v45 = vld [vmem:[#allocation2 + $0xd8] sm:$0xf]  ;;  %v6400_v13 = vld [vmem:[#allocation2 + $0x10c] sm:$0x1] }
 0x26c   : > { %v6716_v19 = vrot.slane %v6714_v29, 4  ;;  %v6717_v57 = vshll.u32 %v6381_v26, 16  ;;  %v6723_v4 = vshll.u32 %v6382_v15, 16  ;;  %v13759_v38 = vcombine.low %v16941_v31, %v16942_v24  ;;  %v6390_v26 = vld [vmem:[#allocation2 + $0xd4] sm:$0x1] }
 0x26d   : > { %15833 = vmatprep.mubr.msk.bf16.mxu1 %vm3701_vm9, %v14032_v5  ;;  %v6693_v63 = vrot.slane %v6692_v42, 4  ;;  %v6706_v43 = vor.u32 %v6705_v17, %v6702_v50  ;;  %v6728_v30 = vshrl.u32 %v6383_v20, 16  ;;  %v6684_v41 = vsel %vm17657_vm4, %v6679_v33, %v6683_v56  ;;  %v6392_v33 = vld [vmem:[#allocation2 + $0xdc] sm:$0x1]  ;;  %v6393_v42 = vld [vmem:[#allocation2 + $0xe0] sm:$0xf] }
 0x26e   : > { %v6719_v44 = vrot.slane %v6717_v57, 5  ;;  %v6731_v52 = vshll.u32 %v6383_v20, 16  ;;  %v6737_v48 = vshll.u32 %v6384_v32, 16  ;;  %v6742_v9 = vshrl.u32 %v6385_v10, 16  ;;  %v16945_v32 = vld [vmem:[#allocation2 + $0xb0] sm:$0xf] }
 0x26f   : > { %v6698_v59 = vsel %vm17657_vm4, %v6693_v63, %v6697_v1  ;;  %v6707_v25 = vrot.slane %v6706_v43, 4  ;;  %15630 = vmatmul.mubr.msk.bf16.gmra.mrb[76].mxu0 %vm3701_vm9, %v13759_v38  ;;  %v6730_v40 = vrot.slane %v6728_v30, 4  ;;  %v6725_v2 = vrot.slane %v6723_v4, 5 }
 0x270   : > { %v14033_v12 = vcombine.low %v6684_v41, %v6698_v59  ;;  %v6720_v23 = vor.u32 %v6719_v44, %v6716_v19  ;;  %v6733_v58 = vrot.slane %v6731_v52, 5  ;;  %v6739_v22 = vrot.slane %v6737_v48, 5  ;;  %v16947_v19 = vld [vmem:[%s17280_s20 + $0x30] sm:$0xff]   ;;  %v6395_v41 = vld [vmem:[#allocation2 + $0xf8] sm:$0xf] }
 0x271   : > { %v6744_v47 = vrot.slane %v6742_v9, 4  ;;  %v6745_v6 = vshll.u32 %v6385_v10, 16  ;;  %v6751_v35 = vshll.u32 %v6386_v7, 16  ;;  %v13760_v56 = vcombine.low %v16943_v49, %v16944_v36  ;;  %15749 = vmatprep.subr.bf16.mxu0 %v16947_v19  ;;  %v6394_v10 = vld [vmem:[#allocation2 + $0xe4] sm:$0x1] }
 0x272   : > { %15834 = vmatmul.mubr.msk.bf16.gmra.mrb[52].mxu1 %vm3701_vm9, %v14033_v12  ;;  %v6721_v53 = vrot.slane %v6720_v23, 4  ;;  %v6734_v37 = vor.u32 %v6733_v58, %v6730_v40  ;;  %v6756_v46 = vshrl.u32 %v6387_v27, 16  ;;  %v6712_v61 = vsel %vm17657_vm4, %v6707_v25, %v6711_v21  ;;  %v6396_v59 = vld [vmem:[#allocation2 + $0xfc] sm:$0x1]  ;;  %v6397_v12 = vld [vmem:[#allocation2 + $0x100] sm:$0xf] }
 0x273   : > { %v6747_v51 = vrot.slane %v6745_v6, 5  ;;  %v6759_v11 = vshll.u32 %v6387_v27, 16  ;;  %v6765_v60 = vshll.u32 %v6388_v28, 16  ;;  %15633 = vmatprep.mubr.msk.bf16.mxu0 %vm3701_vm9, %v13760_v56  ;;  %v6770_v0 = vshrl.u32 %v6389_v62, 16  ;;  %v16948_v58 = vld [vmem:[#allocation2 + $0xc0] sm:$0xf] }
 0x274   : > { %v6726_v18 = vsel %vm17657_vm4, %v6721_v53, %v6725_v2  ;;  %v6735_v16 = vrot.slane %v6734_v37, 4  ;;  %v6758_v39 = vrot.slane %v6756_v46, 4  ;;  %v6753_v3 = vrot.slane %v6751_v35, 5  ;;  %v16949_v28 = vld [vmem:[#allocation2 + $0xc8] sm:$0xf] }
 0x275   : > { %v14034_v15 = vcombine.low %v6712_v61, %v6726_v18  ;;  %v6748_v55 = vor.u32 %v6747_v51, %v6744_v47  ;;  %v6761_v34 = vrot.slane %v6759_v11, 5  ;;  %v6767_v50 = vrot.slane %v6765_v60, 5  ;;  %v6399_v61 = vld [vmem:[#allocation2 + $0x108] sm:$0xf] }
 0x276   : > { %v6772_v29 = vrot.slane %v6770_v0, 4  ;;  %v6773_v20 = vshll.u32 %v6389_v62, 16  ;;  %v6779_v5 = vshll.u32 %v6390_v26, 16  ;;  %v13761_v54 = vcombine.low %v16945_v32, %v16946_v8  ;;  %v6398_v62 = vld [vmem:[#allocation2 + $0x104] sm:$0x1] }
 0x277   : > { %15837 = vmatprep.mubr.msk.bf16.mxu1 %vm3701_vm9, %v14034_v15  ;;  %v6749_v1 = vrot.slane %v6748_v55, 4  ;;  %v6762_v17 = vor.u32 %v6761_v34, %v6758_v39  ;;  %v6784_v21 = vshrl.u32 %v6391_v45, 16  ;;  %v6740_v57 = vsel %vm17657_vm4, %v6735_v16, %v6739_v22  ;;  %v16951_v34 = vld [vmem:[#allocation2 + $0xd0] sm:$0xf] }
 0x278   : > { %v6775_v4 = vrot.slane %v6773_v20, 5  ;;  %v6787_v63 = vshll.u32 %v6391_v45, 16  ;;  %v6793_v43 = vshll.u32 %v6392_v33, 16  ;;  %15634 = vmatmul.mubr.msk.bf16.gmra.mrb[80].mxu0 %vm3701_vm9, %v13761_v54  ;;  %v6798_v30 = vshrl.u32 %v6393_v42, 16  ;;  %v6401_v45 = vld [vmem:[#allocation2 + $0x110] sm:$0xf] }
 0x279   : > { %v6754_v31 = vsel %vm17657_vm4, %v6749_v1, %v6753_v3  ;;  %v6763_v24 = vrot.slane %v6762_v17, 4  ;;  %v6786_v38 = vrot.slane %v6784_v21, 4  ;;  %v6781_v52 = vrot.slane %v6779_v5, 5  ;;  %v16950_v3 = vld [vmem:[#allocation2 + $0xd8] sm:$0xf] }
 0x27a   : > { %v14035_v44 = vcombine.low %v6740_v57, %v6754_v31  ;;  %v6776_v7 = vor.u32 %v6775_v4, %v6772_v29  ;;  %v6789_v48 = vrot.slane %v6787_v63, 5  ;;  %v6795_v25 = vrot.slane %v6793_v43, 5  ;;  %v6402_v5 = vld [vmem:[#allocation2 + $0x114] sm:$0x1]  ;;  %v6403_v21 = vld [vmem:[#allocation2 + $0x118] sm:$0xf] }
 0x27b   : > { %v6800_v40 = vrot.slane %v6798_v30, 4  ;;  %v6801_v9 = vshll.u32 %v6393_v42, 16  ;;  %v6807_v27 = vshll.u32 %v6394_v10, 16  ;;  %v13762_v22 = vcombine.low %v16948_v58, %v16949_v28  ;;  %v6404_v63 = vld [vmem:[#allocation2 + $0x11c] sm:$0x1] }
 0x27c   : > { %15838 = vmatmul.mubr.msk.bf16.gmra.mrb[56].mxu1 %vm3701_vm9, %v14035_v44  ;;  %v6777_v23 = vrot.slane %v6776_v7, 4  ;;  %v6790_v2 = vor.u32 %v6789_v48, %v6786_v38  ;;  %v6812_v47 = vshrl.u32 %v6395_v41, 16  ;;  %v6768_v6 = vsel %vm17657_vm4, %v6763_v24, %v6767_v50  ;;  %v6405_v30 = vld [vmem:[#allocation2 + $0x120] sm:$0xf]  ;;  %v16952_v7 = vld [vmem:[#allocation2 + $0xf0] sm:$0xf] }
 0x27d   : > { %v6803_v35 = vrot.slane %v6801_v9, 5  ;;  %v6815_v53 = vshll.u32 %v6395_v41, 16  ;;  %v6821_v37 = vshll.u32 %v6396_v59, 16  ;;  %15637 = vmatprep.mubr.msk.bf16.mxu0 %vm3701_vm9, %v13762_v22  ;;  %v6826_v46 = vshrl.u32 %v6397_v12, 16  ;;  %v6406_v9 = vld [vmem:[#allocation2 + $0x124] sm:$0x1] }
 0x27e   : > { %v6782_v49 = vsel %vm17657_vm4, %v6777_v23, %v6781_v52  ;;  %v6791_v36 = vrot.slane %v6790_v2, 4  ;;  %v6814_v56 = vrot.slane %v6812_v47, 4  ;;  %v6809_v11 = vrot.slane %v6807_v27, 5  ;;  %v16953_v52 = vld [vmem:[#allocation2 + $0xf8] sm:$0xf] }
 0x27f   : > { %v14036_v51 = vcombine.low %v6768_v6, %v6782_v49  ;;  %v6804_v26 = vor.u32 %v6803_v35, %v6800_v40  ;;  %v6817_v60 = vrot.slane %v6815_v53, 5  ;;  %v6823_v18 = vrot.slane %v6821_v37, 5  ;;  %v6407_v22 = vld [vmem:[#allocation2 + $0x128] sm:$0xf]  ;;  %v6408_v53 = vld [vmem:[#allocation2 + $0x12c] sm:$0x1] }
 0x280   : > { %v6828_v16 = vrot.slane %v6826_v46, 4  ;;  %v6829_v39 = vshll.u32 %v6397_v12, 16  ;;  %v6835_v0 = vshll.u32 %v6398_v62, 16  ;;  %v13763_v33 = vcombine.low %v16951_v34, %v16950_v3  ;;  %v6409_v46 = vld [vmem:[#allocation2 + $0x130] sm:$0xf] }
 0x281   : > { %15841 = vmatprep.mubr.msk.bf16.mxu1 %vm3701_vm9, %v14036_v51  ;;  %v6805_v15 = vrot.slane %v6804_v26, 4  ;;  %v6818_v55 = vor.u32 %v6817_v60, %v6814_v56  ;;  %v6840_v50 = vshrl.u32 %v6399_v61, 16  ;;  %v6796_v29 = vsel %vm17657_vm4, %v6791_v36, %v6795_v25  ;;  %v16954_v26 = vld [vmem:[#allocation2 + $0x100] sm:$0xf] }
 0x282   : > { %v6831_v20 = vrot.slane %v6829_v39, 5  ;;  %v6843_v42 = vshll.u32 %v6399_v61, 16  ;;  %v6849_v1 = vshll.u32 %v6400_v13, 16  ;;  %15638 = vmatmul.mubr.msk.bf16.gmra.mrb[84].mxu0 %vm3701_vm9, %v13763_v33  ;;  %v6854_v54 = vshrl.u32 %v6401_v45, 16  ;;  %v6410_v39 = vld [vmem:[#allocation2 + $0x134] sm:$0x1] }
 0x283   : > { %v6810_v17 = vsel %vm17657_vm4, %v6805_v15, %v6809_v11  ;;  %v6819_v32 = vrot.slane %v6818_v55, 4  ;;  %v6842_v8 = vrot.slane %v6840_v50, 4  ;;  %v6837_v4 = vrot.slane %v6835_v0, 5  ;;  %v16955_v11 = vld [vmem:[#allocation2 + $0x108] sm:$0xf] }
 0x284   : > { %v14037_v19 = vcombine.low %v6796_v29, %v6810_v17  ;;  %v6832_v57 = vor.u32 %v6831_v20, %v6828_v16  ;;  %v6845_v10 = vrot.slane %v6843_v42, 5  ;;  %v6851_v43 = vrot.slane %v6849_v1, 5  ;;  %v6411_v33 = vld [vmem:[#allocation2 + $0x148] sm:$0xf]  ;;  %v6412_v42 = vld [vmem:[#allocation2 + $0x14c] sm:$0x1] }
 0x285   : > { %v6856_v31 = vrot.slane %v6854_v54, 4  ;;  %v6857_v24 = vshll.u32 %v6401_v45, 16  ;;  %v6863_v38 = vshll.u32 %v6402_v5, 16  ;;  %v13764_v48 = vcombine.low %v16952_v7, %v16953_v52  ;;  %v6413_v54 = vld [vmem:[#allocation2 + $0x150] sm:$0xf] }
 0x286   : > { %15842 = vmatmul.mubr.msk.bf16.gmra.mrb[60].mxu1 %vm3701_vm9, %v14037_v19  ;;  %v6833_v41 = vrot.slane %v6832_v57, 4  ;;  %v6846_v44 = vor.u32 %v6845_v10, %v6842_v8  ;;  %v6868_v59 = vshrl.u32 %v6403_v21, 16  ;;  %v6824_v25 = vsel %vm17657_vm4, %v6819_v32, %v6823_v18  ;;  %v16956_v57 = vld [vmem:[#allocation2 + $0x110] sm:$0xf] }
 0x287   : > { %v6859_v40 = vrot.slane %v6857_v24, 5  ;;  %v6871_v27 = vshll.u32 %v6403_v21, 16  ;;  %v6877_v12 = vshll.u32 %v6404_v63, 16  ;;  %15641 = vmatprep.mubr.msk.bf16.mxu0 %vm3701_vm9, %v13764_v48  ;;  %v6882_v28 = vshrl.u32 %v6405_v30, 16  ;;  %v6414_v24 = vld [vmem:[#allocation2 + $0x154] sm:$0x1] }
 0x288   : > { %v6838_v23 = vsel %vm17657_vm4, %v6833_v41, %v6837_v4  ;;  %v6847_v2 = vrot.slane %v6846_v44, 4  ;;  %v6870_v58 = vrot.slane %v6868_v59, 4  ;;  %v6865_v35 = vrot.slane %v6863_v38, 5  ;;  %v16957_v4 = vld [vmem:[#allocation2 + $0x118] sm:$0xf] }
 0x289   : > { %v14038_v47 = vcombine.low %v6824_v25, %v6838_v23  ;;  %v6860_v6 = vor.u32 %v6859_v40, %v6856_v31  ;;  %v6873_v62 = vrot.slane %v6871_v27, 5  ;;  %v6879_v37 = vrot.slane %v6877_v12, 5  ;;  %v6415_v48 = vld [vmem:[#allocation2 + $0x158] sm:$0xf]  ;;  %v6416_v27 = vld [vmem:[#allocation2 + $0x15c] sm:$0x1] }
 0x28a   : > { %v6884_v49 = vrot.slane %v6882_v28, 4  ;;  %v6885_v36 = vshll.u32 %v6405_v30, 16  ;;  %v6891_v56 = vshll.u32 %v6406_v9, 16  ;;  %v13765_v60 = vcombine.low %v16954_v26, %v16955_v11  ;;  %v6417_v28 = vld [vmem:[#allocation2 + $0x160] sm:$0xf] }
 0x28b   : > { %15845 = vmatprep.mubr.msk.bf16.mxu1 %vm3701_vm9, %v14038_v47  ;;  %v6861_v61 = vrot.slane %v6860_v6, 4  ;;  %v6874_v51 = vor.u32 %v6873_v62, %v6870_v58  ;;  %v6896_v13 = vshrl.u32 %v6407_v22, 16  ;;  %v6852_v18 = vsel %vm17657_vm4, %v6847_v2, %v6851_v43  ;;  %v16958_v6 = vld [vmem:[#allocation2 + $0x120] sm:$0xf] }
 0x28c   : > { %v6887_v16 = vrot.slane %v6885_v36, 5  ;;  %v6899_v0 = vshll.u32 %v6407_v22, 16  ;;  %v6905_v45 = vshll.u32 %v6408_v53, 16  ;;  %15642 = vmatmul.mubr.msk.bf16.gmra.mrb[88].mxu0 %vm3701_vm9, %v13765_v60  ;;  %v6910_v34 = vshrl.u32 %v6409_v46, 16  ;;  %v6418_v36 = vld [vmem:[#allocation2 + $0x164] sm:$0x1] }
 0x28d   : > { %v6866_v15 = vsel %vm17657_vm4, %v6861_v61, %v6865_v35  ;;  %v6875_v55 = vrot.slane %v6874_v51, 4  ;;  %v6898_v3 = vrot.slane %v6896_v13, 4  ;;  %v6893_v20 = vrot.slane %v6891_v56, 5  ;;  %v16959_v35 = vld [vmem:[#allocation2 + $0x128] sm:$0xf] }
 0x28e   : > { %v14039_v50 = vcombine.low %v6852_v18, %v6866_v15  ;;  %v6888_v29 = vor.u32 %v6887_v16, %v6884_v49  ;;  %v6901_v5 = vrot.slane %v6899_v0, 5  ;;  %v6907_v1 = vrot.slane %v6905_v45, 5  ;;  %v6419_v60 = vld [vmem:[#allocation2 + $0x168] sm:$0xf]  ;;  %v6420_v0 = vld [vmem:[#allocation2 + $0x16c] sm:$0x1] }
 0x28f   : > { %v6912_v17 = vrot.slane %v6910_v34, 4  ;;  %v6913_v32 = vshll.u32 %v6409_v46, 16  ;;  %v6919_v8 = vshll.u32 %v6410_v39, 16  ;;  %v13766_v10 = vcombine.low %v16956_v57, %v16957_v4  ;;  %v6421_v34 = vld [vmem:[#allocation2 + $0x170] sm:$0xf] }
 0x290   : > { %15846 = vmatmul.mubr.msk.bf16.gmra.mrb[0].mxu1 %vm3701_vm9, %v14039_v50  ;;  %v6889_v21 = vrot.slane %v6888_v29, 4  ;;  %v6902_v19 = vor.u32 %v6901_v5, %v6898_v3  ;;  %v6924_v63 = vshrl.u32 %v6411_v33, 16  ;;  %v6880_v43 = vsel %vm17657_vm4, %v6875_v55, %v6879_v37  ;;  %v16960_v29 = vld [vmem:[#allocation2 + $0x140] sm:$0xf] }
 0x291   : > { %v6915_v31 = vrot.slane %v6913_v32, 5  ;;  %v6927_v38 = vshll.u32 %v6411_v33, 16  ;;  %v6933_v30 = vshll.u32 %v6412_v42, 16  ;;  %15645 = vmatprep.mubr.msk.bf16.mxu0 %vm3701_vm9, %v13766_v10  ;;  %v6938_v52 = vshrl.u32 %v6413_v54, 16  ;;  %v6422_v32 = vld [vmem:[#allocation2 + $0x174] sm:$0x1] }
 0x292   : > { %v6894_v41 = vsel %vm17657_vm4, %v6889_v21, %v6893_v20  ;;  %v6903_v44 = vrot.slane %v6902_v19, 4  ;;  %v6926_v7 = vrot.slane %v6924_v63, 4  ;;  %v6921_v40 = vrot.slane %v6919_v8, 5  ;;  %v16961_v20 = vld [vmem:[#allocation2 + $0x148] sm:$0xf] }
 0x293   : > { %v14040_v59 = vcombine.low %v6880_v43, %v6894_v41  ;;  %v6916_v25 = vor.u32 %v6915_v31, %v6912_v17  ;;  %v6929_v9 = vrot.slane %v6927_v38, 5  ;;  %v6935_v12 = vrot.slane %v6933_v30, 5  ;;  %v6423_v10 = vld [vmem:[#allocation2 + $0x178] sm:$0xf]  ;;  %v6424_v38 = vld [vmem:[#allocation2 + $0x17c] sm:$0x1] }
 0x294   : > { %v6940_v23 = vrot.slane %v6938_v52, 4  ;;  %v6941_v2 = vshll.u32 %v6413_v54, 16  ;;  %v6947_v58 = vshll.u32 %v6414_v24, 16  ;;  %v13767_v62 = vcombine.low %v16958_v6, %v16959_v35  ;;  %v6425_v52 = vld [vmem:[#allocation2 + $0x180] sm:$0xf] }
 0x295   : > { %15849 = vmatprep.mubr.msk.bf16.mxu1 %vm3701_vm9, %v14040_v59  ;;  %v6917_v22 = vrot.slane %v6916_v25, 4  ;;  %v6930_v47 = vor.u32 %v6929_v9, %v6926_v7  ;;  %v6952_v53 = vshrl.u32 %v6415_v48, 16  ;;  %v6908_v37 = vsel %vm17657_vm4, %v6903_v44, %v6907_v1  ;;  %v16962_v25 = vld [vmem:[#allocation2 + $0x158] sm:$0xf] }
 0x296   : > { %v6943_v49 = vrot.slane %v6941_v2, 5  ;;  %v6955_v56 = vshll.u32 %v6415_v48, 16  ;;  %v6961_v46 = vshll.u32 %v6416_v27, 16  ;;  %15646 = vmatmul.mubr.msk.bf16.gmra.mrb[92].mxu0 %vm3701_vm9, %v13767_v62  ;;  %v6966_v11 = vshrl.u32 %v6417_v28, 16  ;;  %v6426_v2 = vld [vmem:[#allocation2 + $0x184] sm:$0x1] }
 0x297   : > { %v6922_v61 = vsel %vm17657_vm4, %v6917_v22, %v6921_v40  ;;  %v6931_v51 = vrot.slane %v6930_v47, 4  ;;  %v6954_v26 = vrot.slane %v6952_v53, 4  ;;  %v6949_v16 = vrot.slane %v6947_v58, 5  ;;  %v16963_v40 = vld [vmem:[#allocation2 + $0x150] sm:$0xf] }
 0x298   : > { %v14041_v13 = vcombine.low %v6908_v37, %v6922_v61  ;;  %v6944_v18 = vor.u32 %v6943_v49, %v6940_v23  ;;  %v6957_v39 = vrot.slane %v6955_v56, 5  ;;  %v6963_v45 = vrot.slane %v6961_v46, 5  ;;  %v6427_v62 = vld [vmem:[#allocation2 + $0x198] sm:$0xf]  ;;  %v6428_v56 = vld [vmem:[#allocation2 + $0x19c] sm:$0x1] }
 0x299   : > { %v6968_v15 = vrot.slane %v6966_v11, 4  ;;  %v6969_v55 = vshll.u32 %v6417_v28, 16  ;;  %v6975_v3 = vshll.u32 %v6418_v36, 16  ;;  %v13768_v5 = vcombine.low %v16960_v29, %v16961_v20  ;;  %v6429_v11 = vld [vmem:[#allocation2 + $0x1a0] sm:$0xf] }
 0x29a   : > { %15850 = vmatmul.mubr.msk.bf16.gmra.mrb[4].mxu1 %vm3701_vm9, %v14041_v13  ;;  %v6945_v33 = vrot.slane %v6944_v18, 4  ;;  %v6958_v50 = vor.u32 %v6957_v39, %v6954_v26  ;;  %v6980_v42 = vshrl.u32 %v6419_v60, 16  ;;  %v6936_v1 = vsel %vm17657_vm4, %v6931_v51, %v6935_v12  ;;  %v16964_v18 = vld [vmem:[#allocation2 + $0x160] sm:$0xf] }
 0x29b   : > { %v6971_v17 = vrot.slane %v6969_v55, 5  ;;  %v6983_v8 = vshll.u32 %v6419_v60, 16  ;;  %v6989_v54 = vshll.u32 %v6420_v0, 16  ;;  %15649 = vmatprep.mubr.msk.bf16.mxu0 %vm3701_vm9, %v13768_v5  ;;  %v6994_v4 = vshrl.u32 %v6421_v34, 16  ;;  %v6430_v55 = vld [vmem:[#allocation2 + $0x1a4] sm:$0x1] }
 0x29c   : > { %v6950_v21 = vsel %vm17657_vm4, %v6945_v33, %v6949_v16  ;;  %v6959_v19 = vrot.slane %v6958_v50, 4  ;;  %v6982_v57 = vrot.slane %v6980_v42, 4  ;;  %v6977_v31 = vrot.slane %v6975_v3, 5  ;;  %v16965_v16 = vld [vmem:[#allocation2 + $0x168] sm:$0xf] }
 0x29d   : > { %v14042_v63 = vcombine.low %v6936_v1, %v6950_v21  ;;  %v6972_v43 = vor.u32 %v6971_v17, %v6968_v15  ;;  %v6985_v24 = vrot.slane %v6983_v8, 5  ;;  %v6991_v30 = vrot.slane %v6989_v54, 5  ;;  %v6431_v5 = vld [vmem:[#allocation2 + $0x1a8] sm:$0xf]  ;;  %v6432_v8 = vld [vmem:[#allocation2 + $0x1ac] sm:$0x1] }
 0x29e   : > { %v6996_v41 = vrot.slane %v6994_v4, 4  ;;  %v6997_v44 = vshll.u32 %v6421_v34, 16  ;;  %v7003_v7 = vshll.u32 %v6422_v32, 16  ;;  %v13769_v9 = vcombine.low %v16963_v40, %v16962_v25  ;;  %v6433_v4 = vld [vmem:[#allocation2 + $0x1b0] sm:$0xf] }
 0x29f   : > { %15853 = vmatprep.mubr.msk.bf16.mxu1 %vm3701_vm9, %v14042_v63  ;;  %v6973_v48 = vrot.slane %v6972_v43, 4  ;;  %v6986_v59 = vor.u32 %v6985_v24, %v6982_v57  ;;  %v7008_v27 = vshrl.u32 %v6423_v10, 16  ;;  %v6964_v12 = vsel %vm17657_vm4, %v6959_v19, %v6963_v45  ;;  %v16966_v43 = vld [vmem:[#allocation2 + $0x170] sm:$0xf] }
 0x2a0   : > { %v6999_v23 = vrot.slane %v6997_v44, 5  ;;  %v7011_v58 = vshll.u32 %v6423_v10, 16  ;;  %v7017_v28 = vshll.u32 %v6424_v38, 16  ;;  %15650 = vmatmul.mubr.msk.bf16.gmra.mrb[96].mxu0 %vm3701_vm9, %v13769_v9  ;;  %v7022_v35 = vshrl.u32 %v6425_v52, 16  ;;  %v6434_v44 = vld [vmem:[#allocation2 + $0x1b4] sm:$0x1] }
 0x2a1   : > { %v6978_v22 = vsel %vm17657_vm4, %v6973_v48, %v6977_v31  ;;  %v6987_v47 = vrot.slane %v6986_v59, 4  ;;  %v7010_v6 = vrot.slane %v7008_v27, 4  ;;  %v7005_v49 = vrot.slane %v7003_v7, 5  ;;  %v16967_v31 = vld [vmem:[#allocation2 + $0x178] sm:$0xf] }
 0x2a2   : > { %v14043_v53 = vcombine.low %v6964_v12, %v6978_v22  ;;  %v7000_v37 = vor.u32 %v6999_v23, %v6996_v41  ;;  %v7013_v36 = vrot.slane %v7011_v58, 5  ;;  %v7019_v46 = vrot.slane %v7017_v28, 5  ;;  %v6435_v9 = vld [vmem:[#allocation2 + $0x1b8] sm:$0xf]  ;;  %v6436_v58 = vld [vmem:[#allocation2 + $0x1bc] sm:$0x1] }
 0x2a3   : > { %v7024_v61 = vrot.slane %v7022_v35, 4  ;;  %v7025_v51 = vshll.u32 %v6425_v52, 16  ;;  %v7031_v26 = vshll.u32 %v6426_v2, 16  ;;  %v13770_v39 = vcombine.low %v16964_v18, %v16965_v16  ;;  %v6437_v35 = vld [vmem:[#allocation2 + $0x1c0] sm:$0xf] }
 0x2a4   : > { %15854 = vmatmul.mubr.msk.bf16.gmra.mrb[8].mxu1 %vm3701_vm9, %v14043_v53  ;;  %v7001_v60 = vrot.slane %v7000_v37, 4  ;;  %v7014_v13 = vor.u32 %v7013_v36, %v7010_v6  ;;  %v7036_v0 = vshrl.u32 %v6427_v62, 16  ;;  %v6992_v45 = vsel %vm17657_vm4, %v6987_v47, %v6991_v30  ;;  %v16968_v37 = vld [vmem:[#allocation2 + $0x190] sm:$0xf] }
 0x2a5   : > { %v7027_v15 = vrot.slane %v7025_v51, 5  ;;  %v7039_v3 = vshll.u32 %v6427_v62, 16  ;;  %v7045_v34 = vshll.u32 %v6428_v56, 16  ;;  %15653 = vmatprep.mubr.msk.bf16.mxu0 %vm3701_vm9, %v13770_v39  ;;  %v7050_v20 = vshrl.u32 %v6429_v11, 16  ;;  %v6438_v51 = vld [vmem:[#allocation2 + $0x1c4] sm:$0x1] }
 0x2a6   : > { %v7006_v33 = vsel %vm17657_vm4, %v7001_v60, %v7005_v49  ;;  %v7015_v50 = vrot.slane %v7014_v13, 4  ;;  %v7038_v29 = vrot.slane %v7036_v0, 4  ;;  %v7033_v17 = vrot.slane %v7031_v26, 5  ;;  %v16969_v49 = vld [vmem:[#allocation2 + $0x198] sm:$0xf] }
 0x2a7   : > { %v14044_v42 = vcombine.low %v6992_v45, %v7006_v33  ;;  %v7028_v1 = vor.u32 %v7027_v15, %v7024_v61  ;;  %v7041_v32 = vrot.slane %v7039_v3, 5  ;;  %v7047_v54 = vrot.slane %v7045_v34, 5  ;;  %v6439_v39 = vld [vmem:[#allocation2 + $0x1c8] sm:$0xf]  ;;  %v6440_v3 = vld [vmem:[#allocation2 + $0x1cc] sm:$0x1] }
 0x2a8   : > { %v7052_v21 = vrot.slane %v7050_v20, 4  ;;  %v7053_v19 = vshll.u32 %v6429_v11, 16  ;;  %v7059_v57 = vshll.u32 %v6430_v55, 16  ;;  %v13771_v24 = vcombine.low %v16966_v43, %v16967_v31  ;;  %v6441_v20 = vld [vmem:[#allocation2 + $0x1d0] sm:$0xf] }
 0x2a9   : > { %15857 = vmatprep.mubr.msk.bf16.mxu1 %vm3701_vm9, %v14044_v42  ;;  %v7029_v10 = vrot.slane %v7028_v1, 4  ;;  %v7042_v63 = vor.u32 %v7041_v32, %v7038_v29  ;;  %v7064_v38 = vshrl.u32 %v6431_v5, 16  ;;  %v7020_v30 = vsel %vm17657_vm4, %v7015_v50, %v7019_v46  ;;  %v16970_v1 = vld [vmem:[#allocation2 + $0x1a0] sm:$0xf] }
 0x2aa   : > { %v7055_v41 = vrot.slane %v7053_v19, 5  ;;  %v7067_v7 = vshll.u32 %v6431_v5, 16  ;;  %v7073_v52 = vshll.u32 %v6432_v8, 16  ;;  %15654 = vmatmul.mubr.msk.bf16.gmra.mrb[100].mxu0 %vm3701_vm9, %v13771_v24  ;;  %v7078_v40 = vshrl.u32 %v6433_v4, 16  ;;  %v6442_v19 = vld [vmem:[#allocation2 + $0x1d4] sm:$0x1] }
 0x2ab   : > { %v7034_v48 = vsel %vm17657_vm4, %v7029_v10, %v7033_v17  ;;  %v7043_v59 = vrot.slane %v7042_v63, 4  ;;  %v7066_v25 = vrot.slane %v7064_v38, 4  ;;  %v7061_v23 = vrot.slane %v7059_v57, 5  ;;  %v16971_v17 = vld [vmem:[#allocation2 + $0x1a8] sm:$0xf] }
 0x2ac   : > { %v14045_v27 = vcombine.low %v7020_v30, %v7034_v48  ;;  %v7056_v12 = vor.u32 %v7055_v41, %v7052_v21  ;;  %v7069_v2 = vrot.slane %v7067_v7, 5  ;;  %v7075_v28 = vrot.slane %v7073_v52, 5  ;;  %v6443_v24 = vld [vmem:[#allocation2 + $0x1e8] sm:$0xf]  ;;  %v6444_v7 = vld [vmem:[#allocation2 + $0x1ec] sm:$0x1] }
 0x2ad   : > { %v7080_v22 = vrot.slane %v7078_v40, 4  ;;  %v7081_v47 = vshll.u32 %v6433_v4, 16  ;;  %v7087_v6 = vshll.u32 %v6434_v44, 16  ;;  %v13772_v36 = vcombine.low %v16968_v37, %v16969_v49  ;;  %v6445_v40 = vld [vmem:[#allocation2 + $0x1f0] sm:$0xf] }
 0x2ae   : > { %15858 = vmatmul.mubr.msk.bf16.gmra.mrb[12].mxu1 %vm3701_vm9, %v14045_v27  ;;  %v7057_v62 = vrot.slane %v7056_v12, 4  ;;  %v7070_v53 = vor.u32 %v7069_v2, %v7066_v25  ;;  %v7092_v56 = vshrl.u32 %v6435_v9, 16  ;;  %v7048_v46 = vsel %vm17657_vm4, %v7043_v59, %v7047_v54  ;;  %v16972_v12 = vld [vmem:[#allocation2 + $0x1b0] sm:$0xf] }
 0x2af   : > { %v7083_v61 = vrot.slane %v7081_v47, 5  ;;  %v7095_v26 = vshll.u32 %v6435_v9, 16  ;;  %v7101_v11 = vshll.u32 %v6436_v58, 16  ;;  %15657 = vmatprep.mubr.msk.bf16.mxu0 %vm3701_vm9, %v13772_v36  ;;  %v7106_v16 = vshrl.u32 %v6437_v35, 16  ;;  %v6446_v47 = vld [vmem:[#allocation2 + $0x1f4] sm:$0x1] }
 0x2b0   : > { %v7062_v60 = vsel %vm17657_vm4, %v7057_v62, %v7061_v23  ;;  %v7071_v13 = vrot.slane %v7070_v53, 4  ;;  %v7094_v18 = vrot.slane %v7092_v56, 4  ;;  %v7089_v15 = vrot.slane %v7087_v6, 5  ;;  %v16973_v23 = vld [vmem:[#allocation2 + $0x1b8] sm:$0xf] }
 0x2b1   : > { %v14046_v0 = vcombine.low %v7048_v46, %v7062_v60  ;;  %v7084_v45 = vor.u32 %v7083_v61, %v7080_v22  ;;  %v7097_v55 = vrot.slane %v7095_v26, 5  ;;  %v7103_v34 = vrot.slane %v7101_v11, 5  ;;  %v6447_v36 = vld [vmem:[#allocation2 + $0x1f8] sm:$0xf]  ;;  %v6448_v26 = vld [vmem:[#allocation2 + $0x1fc] sm:$0x1] }
 0x2b2   : > { %v7108_v33 = vrot.slane %v7106_v16, 4  ;;  %v7109_v50 = vshll.u32 %v6437_v35, 16  ;;  %v7115_v29 = vshll.u32 %v6438_v51, 16  ;;  %v13773_v32 = vcombine.low %v16970_v1, %v16971_v17  ;;  %v6449_v16 = vld [vmem:[#allocation2 + $0x200] sm:$0xf] }
 0x2b3   : > { %15861 = vmatprep.mubr.msk.bf16.mxu1 %vm3701_vm9, %v14046_v0  ;;  %v7085_v5 = vrot.slane %v7084_v45, 4  ;;  %v7098_v42 = vor.u32 %v7097_v55, %v7094_v18  ;;  %v7120_v8 = vshrl.u32 %v6439_v39, 16  ;;  %v7076_v54 = vsel %vm17657_vm4, %v7071_v13, %v7075_v28  ;;  %v16974_v45 = vld [vmem:[#allocation2 + $0x1c0] sm:$0xf] }
 0x2b4   : > { %v7111_v21 = vrot.slane %v7109_v50, 5  ;;  %v7123_v57 = vshll.u32 %v6439_v39, 16  ;;  %v7129_v4 = vshll.u32 %v6440_v3, 16  ;;  %15658 = vmatmul.mubr.msk.bf16.gmra.mrb[104].mxu0 %vm3701_vm9, %v13773_v32  ;;  %v7134_v31 = vshrl.u32 %v6441_v20, 16  ;;  %v6450_v50 = vld [vmem:[#allocation2 + $0x204] sm:$0x1] }
 0x2b5   : > { %v7090_v10 = vsel %vm17657_vm4, %v7085_v5, %v7089_v15  ;;  %v7099_v63 = vrot.slane %v7098_v42, 4  ;;  %v7122_v43 = vrot.slane %v7120_v8, 4  ;;  %v7117_v41 = vrot.slane %v7115_v29, 5  ;;  %v16975_v15 = vld [vmem:[#allocation2 + $0x1c8] sm:$0xf] }
 0x2b6   : > { %v14047_v38 = vcombine.low %v7076_v54, %v7090_v10  ;;  %v7112_v30 = vor.u32 %v7111_v21, %v7108_v33  ;;  %v7125_v44 = vrot.slane %v7123_v57, 5  ;;  %v7131_v52 = vrot.slane %v7129_v4, 5  ;;  %v6451_v32 = vld [vmem:[#allocation2 + $0x208] sm:$0xf]  ;;  %v6452_v57 = vld [vmem:[#allocation2 + $0x20c] sm:$0x1] }
 0x2b7   : > { %v7136_v48 = vrot.slane %v7134_v31, 4  ;;  %v7137_v59 = vshll.u32 %v6441_v20, 16  ;;  %v7143_v25 = vshll.u32 %v6442_v19, 16  ;;  %v13774_v2 = vcombine.low %v16972_v12, %v16973_v23  ;;  %v6453_v31 = vld [vmem:[#allocation2 + $0x210] sm:$0xf] }
 0x2b8   : > { %15862 = vmatmul.mubr.msk.bf16.gmra.mrb[16].mxu1 %vm3701_vm9, %v14047_v38  ;;  %v7113_v9 = vrot.slane %v7112_v30, 4  ;;  %v7126_v27 = vor.u32 %v7125_v44, %v7122_v43  ;;  %v7148_v58 = vshrl.u32 %v6443_v24, 16  ;;  %v7104_v28 = vsel %vm17657_vm4, %v7099_v63, %v7103_v34  ;;  %v16976_v30 = vld [vmem:[#allocation2 + $0x1e0] sm:$0xf] }
 0x2b9   : > { %v7139_v22 = vrot.slane %v7137_v59, 5  ;;  %v7151_v6 = vshll.u32 %v6443_v24, 16  ;;  %v7157_v35 = vshll.u32 %v6444_v7, 16  ;;  %15661 = vmatprep.mubr.msk.bf16.mxu0 %vm3701_vm9, %v13774_v2  ;;  %v7162_v49 = vshrl.u32 %v6445_v40, 16  ;;  %v6454_v59 = vld [vmem:[#allocation2 + $0x214] sm:$0x1] }
 0x2ba   : > { %v7118_v62 = vsel %vm17657_vm4, %v7113_v9, %v7117_v41  ;;  %v7127_v53 = vrot.slane %v7126_v27, 4  ;;  %v7150_v37 = vrot.slane %v7148_v58, 4  ;;  %v7145_v61 = vrot.slane %v7143_v25, 5  ;;  %v16977_v41 = vld [vmem:[#allocation2 + $0x1e8] sm:$0xf] }
 0x2bb   : > { %v14048_v56 = vcombine.low %v7104_v28, %v7118_v62  ;;  %v7140_v46 = vor.u32 %v7139_v22, %v7136_v48  ;;  %v7153_v51 = vrot.slane %v7151_v6, 5  ;;  %v7159_v11 = vrot.slane %v7157_v35, 5  ;;  %v6455_v2 = vld [vmem:[#allocation2 + $0x218] sm:$0xf]  ;;  %v6456_v6 = vld [vmem:[#allocation2 + $0x21c] sm:$0x1] }
 0x2bc   : > { %v7164_v60 = vrot.slane %v7162_v49, 4  ;;  %v7165_v13 = vshll.u32 %v6445_v40, 16  ;;  %v7171_v18 = vshll.u32 %v6446_v47, 16  ;;  %v13775_v55 = vcombine.low %v16974_v45, %v16975_v15  ;;  %v6457_v49 = vld [vmem:[#allocation2 + $0x220] sm:$0xf] }
 0x2bd   : > { %15865 = vmatprep.mubr.msk.bf16.mxu1 %vm3701_vm9, %v14048_v56  ;;  %v7141_v39 = vrot.slane %v7140_v46, 4  ;;  %v7154_v0 = vor.u32 %v7153_v51, %v7150_v37  ;;  %v7176_v3 = vshrl.u32 %v6447_v36, 16  ;;  %v7132_v34 = vsel %vm17657_vm4, %v7127_v53, %v7131_v52  ;;  %v16978_v46 = vld [vmem:[#allocation2 + $0x1f0] sm:$0xf] }
 0x2be   : > { %v7167_v33 = vrot.slane %v7165_v13, 5  ;;  %v7179_v29 = vshll.u32 %v6447_v36, 16  ;;  %v7185_v20 = vshll.u32 %v6448_v26, 16  ;;  %15662 = vmatmul.mubr.msk.bf16.gmra.mrb[108].mxu0 %vm3701_vm9, %v13775_v55  ;;  %v7190_v17 = vshrl.u32 %v6449_v16, 16  ;;  %v6458_v13 = vld [vmem:[#allocation2 + $0x224] sm:$0x1] }
 0x2bf   : > { %v7146_v5 = vsel %vm17657_vm4, %v7141_v39, %v7145_v61  ;;  %v7155_v42 = vrot.slane %v7154_v0, 4  ;;  %v7178_v1 = vrot.slane %v7176_v3, 4  ;;  %v7173_v21 = vrot.slane %v7171_v18, 5  ;;  %v16979_v61 = vld [vmem:[#allocation2 + $0x1f8] sm:$0xf] }
 0x2c0   : > { %v14049_v8 = vcombine.low %v7132_v34, %v7146_v5  ;;  %v7168_v54 = vor.u32 %v7167_v33, %v7164_v60  ;;  %v7181_v19 = vrot.slane %v7179_v29, 5  ;;  %v7187_v4 = vrot.slane %v7185_v20, 5  ;;  %v6459_v55 = vld [vmem:[#allocation2 + $0x238] sm:$0xf]  ;;  %v6460_v29 = vld [vmem:[#allocation2 + $0x23c] sm:$0x1] }
 0x2c1   : > { %v7192_v10 = vrot.slane %v7190_v17, 4  ;;  %v7193_v63 = vshll.u32 %v6449_v16, 16  ;;  %v7199_v43 = vshll.u32 %v6450_v50, 16  ;;  %v13776_v44 = vcombine.low %v16976_v30, %v16977_v41  ;;  %v6461_v17 = vld [vmem:[#allocation2 + $0x240] sm:$0xf] }
 0x2c2   : > { %15866 = vmatmul.mubr.msk.bf16.gmra.mrb[20].mxu1 %vm3701_vm9, %v14049_v8  ;;  %v7169_v24 = vrot.slane %v7168_v54, 4  ;;  %v7182_v38 = vor.u32 %v7181_v19, %v7178_v1  ;;  %v7204_v7 = vshrl.u32 %v6451_v32, 16  ;;  %v7160_v52 = vsel %vm17657_vm4, %v7155_v42, %v7159_v11  ;;  %v16980_v54 = vld [vmem:[#allocation2 + $0x200] sm:$0xf] }
 0x2c3   : > { %v7195_v48 = vrot.slane %v7193_v63, 5  ;;  %v7207_v25 = vshll.u32 %v6451_v32, 16  ;;  %v7213_v40 = vshll.u32 %v6452_v57, 16  ;;  %15665 = vmatprep.mubr.msk.bf16.mxu0 %vm3701_vm9, %v13776_v44  ;;  %v7218_v23 = vshrl.u32 %v6453_v31, 16  ;;  %v6462_v63 = vld [vmem:[#allocation2 + $0x244] sm:$0x1] }
 0x2c4   : > { %v7174_v9 = vsel %vm17657_vm4, %v7169_v24, %v7173_v21  ;;  %v7183_v27 = vrot.slane %v7182_v38, 4  ;;  %v7206_v12 = vrot.slane %v7204_v7, 4  ;;  %v7201_v22 = vrot.slane %v7199_v43, 5  ;;  %v16981_v21 = vld [vmem:[#allocation2 + $0x208] sm:$0xf] }
 0x2c5   : > { %v14050_v58 = vcombine.low %v7160_v52, %v7174_v9  ;;  %v7196_v28 = vor.u32 %v7195_v48, %v7192_v10  ;;  %v7209_v47 = vrot.slane %v7207_v25, 5  ;;  %v7215_v35 = vrot.slane %v7213_v40, 5  ;;  %v6463_v44 = vld [vmem:[#allocation2 + $0x248] sm:$0xf]  ;;  %v6464_v25 = vld [vmem:[#allocation2 + $0x24c] sm:$0x1] }
 0x2c6   : > { %v7220_v62 = vrot.slane %v7218_v23, 4  ;;  %v7221_v53 = vshll.u32 %v6453_v31, 16  ;;  %v7227_v37 = vshll.u32 %v6454_v59, 16  ;;  %v13777_v51 = vcombine.low %v16978_v46, %v16979_v61  ;;  %v6465_v23 = vld [vmem:[#allocation2 + $0x250] sm:$0xf] }
 0x2c7   : > { %15869 = vmatprep.mubr.msk.bf16.mxu1 %vm3701_vm9, %v14050_v58  ;;  %v7197_v36 = vrot.slane %v7196_v28, 4  ;;  %v7210_v56 = vor.u32 %v7209_v47, %v7206_v12  ;;  %v7232_v26 = vshrl.u32 %v6455_v2, 16  ;;  %v7188_v11 = vsel %vm17657_vm4, %v7183_v27, %v7187_v4  ;;  %v16982_v28 = vld [vmem:[#allocation2 + $0x210] sm:$0xf] }
 0x2c8   : > { %v7223_v60 = vrot.slane %v7221_v53, 5  ;;  %v7235_v18 = vshll.u32 %v6455_v2, 16  ;;  %v7241_v16 = vshll.u32 %v6456_v6, 16  ;;  %15666 = vmatmul.mubr.msk.bf16.gmra.mrb[112].mxu0 %vm3701_vm9, %v13777_v51  ;;  %v7246_v15 = vshrl.u32 %v6457_v49, 16  ;;  %v6466_v53 = vld [vmem:[#allocation2 + $0x254] sm:$0x1] }
 0x2c9   : > { %v7202_v39 = vsel %vm17657_vm4, %v7197_v36, %v7201_v22  ;;  %v7211_v0 = vrot.slane %v7210_v56, 4  ;;  %v7234_v45 = vrot.slane %v7232_v26, 4  ;;  %v7229_v33 = vrot.slane %v7227_v37, 5  ;;  %v16983_v22 = vld [vmem:[#allocation2 + $0x218] sm:$0xf] }
 0x2ca   : > { %v14051_v3 = vcombine.low %v7188_v11, %v7202_v39  ;;  %v7224_v34 = vor.u32 %v7223_v60, %v7220_v62  ;;  %v7237_v50 = vrot.slane %v7235_v18, 5  ;;  %v7243_v20 = vrot.slane %v7241_v16, 5  ;;  %v6467_v51 = vld [vmem:[#allocation2 + $0x258] sm:$0xf]  ;;  %v6468_v18 = vld [vmem:[#allocation2 + $0x25c] sm:$0x1] }
 0x2cb   : > { %v7248_v5 = vrot.slane %v7246_v15, 4  ;;  %v7249_v42 = vshll.u32 %v6457_v49, 16  ;;  %v7255_v1 = vshll.u32 %v6458_v13, 16  ;;  %v13778_v19 = vcombine.low %v16980_v54, %v16981_v21  ;;  %v6469_v15 = vld [vmem:[#allocation2 + $0x260] sm:$0xf] }
 0x2cc   : > { %15870 = vmatmul.mubr.msk.bf16.gmra.mrb[24].mxu1 %vm3701_vm9, %v14051_v3  ;;  %v7225_v32 = vrot.slane %v7224_v34, 4  ;;  %v7238_v8 = vor.u32 %v7237_v50, %v7234_v45  ;;  %v7260_v57 = vshrl.u32 %v6459_v55, 16  ;;  %v7216_v4 = vsel %vm17657_vm4, %v7211_v0, %v7215_v35  ;;  %v16984_v34 = vld [vmem:[#allocation2 + $0x230] sm:$0xf] }
 0x2cd   : > { %v7251_v10 = vrot.slane %v7249_v42, 5  ;;  %v7263_v43 = vshll.u32 %v6459_v55, 16  ;;  %v7269_v31 = vshll.u32 %v6460_v29, 16  ;;  %15669 = vmatprep.mubr.msk.bf16.mxu0 %vm3701_vm9, %v13778_v19  ;;  %v7274_v41 = vshrl.u32 %v6461_v17, 16  ;;  %v6470_v42 = vld [vmem:[#allocation2 + $0x264] sm:$0x1] }
 0x2ce   : > { %v7230_v24 = vsel %vm17657_vm4, %v7225_v32, %v7229_v33  ;;  %v7239_v38 = vrot.slane %v7238_v8, 4  ;;  %v7262_v30 = vrot.slane %v7260_v57, 4  ;;  %v7257_v48 = vrot.slane %v7255_v1, 5  ;;  %v16985_v33 = vld [vmem:[#allocation2 + $0x238] sm:$0xf] }
 0x2cf   : > { %v14052_v7 = vcombine.low %v7216_v4, %v7230_v24  ;;  %v7252_v52 = vor.u32 %v7251_v10, %v7248_v5  ;;  %v7265_v59 = vrot.slane %v7263_v43, 5  ;;  %v7271_v40 = vrot.slane %v7269_v31, 5  ;;  %v6471_v19 = vld [vmem:[#allocation2 + $0x268] sm:$0xf]  ;;  %v6472_v43 = vld [vmem:[#allocation2 + $0x26c] sm:$0x1] }
 0x2d0   : > { %v7276_v9 = vrot.slane %v7274_v41, 4  ;;  %v7277_v27 = vshll.u32 %v6461_v17, 16  ;;  %v7283_v12 = vshll.u32 %v6462_v63, 16  ;;  %v13779_v47 = vcombine.low %v16982_v28, %v16983_v22  ;;  %v6473_v41 = vld [vmem:[#allocation2 + $0x270] sm:$0xf] }
 0x2d1   : > { %15873 = vmatprep.mubr.msk.bf16.mxu1 %vm3701_vm9, %v14052_v7  ;;  %v7253_v2 = vrot.slane %v7252_v52, 4  ;;  %v7266_v58 = vor.u32 %v7265_v59, %v7262_v30  ;;  %v7288_v6 = vshrl.u32 %v6463_v44, 16  ;;  %v7244_v35 = vsel %vm17657_vm4, %v7239_v38, %v7243_v20  ;;  %v16986_v52 = vld [vmem:[#allocation2 + $0x240] sm:$0xf] }
 0x2d2   : > { %v7279_v62 = vrot.slane %v7277_v27, 5  ;;  %v7291_v37 = vshll.u32 %v6463_v44, 16  ;;  %v7297_v49 = vshll.u32 %v6464_v25, 16  ;;  %15670 = vmatmul.mubr.msk.bf16.gmra.mrb[116].mxu0 %vm3701_vm9, %v13779_v47  ;;  %v7302_v61 = vshrl.u32 %v6465_v23, 16  ;;  %v6474_v27 = vld [vmem:[#allocation2 + $0x274] sm:$0x1] }
 0x2d3   : > { %v7258_v36 = vsel %vm17657_vm4, %v7253_v2, %v7257_v48  ;;  %v7267_v56 = vrot.slane %v7266_v58, 4  ;;  %v7290_v46 = vrot.slane %v7288_v6, 4  ;;  %v7285_v60 = vrot.slane %v7283_v12, 5  ;;  %v16987_v48 = vld [vmem:[#allocation2 + $0x248] sm:$0xf] }
 0x2d4   : > { %v14053_v26 = vcombine.low %v7244_v35, %v7258_v36  ;;  %v7280_v11 = vor.u32 %v7279_v62, %v7276_v9  ;;  %v7293_v13 = vrot.slane %v7291_v37, 5  ;;  %v7299_v16 = vrot.slane %v7297_v49, 5 }
 0x2d5   : > { %v7304_v39 = vrot.slane %v7302_v61, 4  ;;  %v7305_v0 = vshll.u32 %v6465_v23, 16  ;;  %v7311_v45 = vshll.u32 %v6466_v53, 16  ;;  %v13780_v50 = vcombine.low %v16984_v34, %v16985_v33  ;;  %v7933_v53 = vld [vmem:[#allocation2 + $0x8] sm:$0xe] }
 0x2d6   : > { %15874 = vmatmul.mubr.msk.bf16.gmra.mrb[28].mxu1 %vm3701_vm9, %v14053_v26  ;;  %v7281_v55 = vrot.slane %v7280_v11, 4  ;;  %v7294_v3 = vor.u32 %v7293_v13, %v7290_v46  ;;  %v7316_v29 = vshrl.u32 %v6467_v51, 16  ;;  %v7272_v20 = vsel %vm17657_vm4, %v7267_v56, %v7271_v40  ;;  %v7934_v46 = vld [vmem:[#allocation2 + $0x10] sm:$0xe]  ;;  %v16989_v11 = vld [vmem:[#allocation2 + $0x258] sm:$0xf] }
 0x2d7   : > { %v7307_v5 = vrot.slane %v7305_v0, 5  ;;  %v7319_v1 = vshll.u32 %v6467_v51, 16  ;;  %v7325_v17 = vshll.u32 %v6468_v18, 16  ;;  %15673 = vmatprep.mubr.msk.bf16.mxu0 %vm3701_vm9, %v13780_v50  ;;  %v7330_v21 = vshrl.u32 %v6469_v15, 16  ;;  %v16988_v26 = vld [vmem:[#allocation2 + $0x250] sm:$0xf] }
 0x2d8   : > { %v7286_v32 = vsel %vm17657_vm4, %v7281_v55, %v7285_v60  ;;  %v7295_v8 = vrot.slane %v7294_v3, 4  ;;  %v7318_v54 = vrot.slane %v7316_v29, 4  ;;  %v7313_v10 = vrot.slane %v7311_v45, 5  ;;  %v16990_v45 = vld [vmem:[#allocation2 + $0xc] sm:$0x1] }
 0x2d9   : > { %v14054_v57 = vcombine.low %v7272_v20, %v7286_v32  ;;  %v7308_v4 = vor.u32 %v7307_v5, %v7304_v39  ;;  %v7321_v63 = vrot.slane %v7319_v1, 5  ;;  %v7327_v31 = vrot.slane %v7325_v17, 5  ;;  %v7935_v3 = vld [vmem:[#allocation2 + $0x18] sm:$0xe]  ;;  %v16991_v29 = vld [vmem:[#allocation2 + $0x14] sm:$0x1] }
 0x2da   : > { %v7332_v24 = vrot.slane %v7330_v21, 4  ;;  %v7333_v38 = vshll.u32 %v6469_v15, 16  ;;  %v7339_v30 = vshll.u32 %v6470_v42, 16  ;;  %v13781_v59 = vcombine.low %v16986_v52, %v16987_v48  ;;  %v16992_v5 = vld [vmem:[#allocation2 + $0x260] sm:$0xf] }
 0x2db   : > { %15877 = vmatprep.mubr.msk.bf16.mxu1 %vm3701_vm9, %v14054_v57  ;;  %v7309_v44 = vrot.slane %v7308_v4, 4  ;;  %v7322_v7 = vor.u32 %v7321_v63, %v7318_v54  ;;  %v7344_v25 = vshrl.u32 %v6471_v19, 16  ;;  %v7300_v40 = vsel %vm17657_vm4, %v7295_v8, %v7299_v16  ;;  %v16993_v42 = vld [vmem:[#allocation2 + $0x268] sm:$0xf]  ;;  %v7936_v17 = vld [vmem:[#allocation2 + $0x20] sm:$0xe] }
 0x2dc   : > { %v7335_v9 = vrot.slane %v7333_v38, 5  ;;  %v7347_v12 = vshll.u32 %v6471_v19, 16  ;;  %v7353_v23 = vshll.u32 %v6472_v43, 16  ;;  %15674 = vmatmul.mubr.msk.bf16.gmra.mrb[120].mxu0 %vm3701_vm9, %v13781_v59  ;;  %v7358_v22 = vshrl.u32 %v6473_v41, 16  ;;  %v4644_v32 = vld [vmem:[#allocation2] sm:$0xe] }
 0x2dd   : > { %v7314_v2 = vsel %vm17657_vm4, %v7309_v44, %v7313_v10  ;;  %v7323_v58 = vrot.slane %v7322_v7, 4  ;;  %v7346_v28 = vrot.slane %v7344_v25, 4  ;;  %v7341_v35 = vrot.slane %v7339_v30, 5  ;;  %v4645_v21 = vld [vmem:[#allocation2 + $0x8] sm:$0xe] }
 0x2de   : > { %v14055_v47 = vcombine.low %v7300_v40, %v7314_v2  ;;  %v7336_v6 = vor.u32 %v7335_v9, %v7332_v24  ;;  %v7349_v62 = vrot.slane %v7347_v12, 5  ;;  %v7355_v37 = vrot.slane %v7353_v23, 5  ;;  %v16994_v10 = vld [vmem:[#allocation2 + $0x1c] sm:$0x1]  ;;  %v4646_v43 = vld [vmem:[#allocation2 + $0x10] sm:$0xe] }
 0x2df   : > { %v7360_v49 = vrot.slane %v7358_v22, 4  ;;  %v7361_v36 = vshll.u32 %v6473_v41, 16  ;;  %v7367_v56 = vshll.u32 %v6474_v27, 16  ;;  %v13782_v60 = vcombine.low %v16988_v26, %v16989_v11  ;;  %v16995_v30 = vld [vmem:[#allocation2 + $0x4] sm:$0x1] }
 0x2e0   : > { %15878 = vmatmul.mubr.msk.bf16.gmra.mrb[32].mxu1 %vm3701_vm9, %v14055_v47  ;;  %v7337_v61 = vrot.slane %v7336_v6, 4  ;;  %v7350_v51 = vor.u32 %v7349_v62, %v7346_v28  ;;  %v7328_v13 = vsel %vm17657_vm4, %v7323_v58, %v7327_v31  ;;  %v14092_v16 = vrot.slane %v7933_v53, 9  ;;  %v7938_v44 = vld [vmem:[#allocation2 + $0x30] sm:$0xe]  ;;  %v16996_v52 = vld [vmem:[#allocation2 + $0x24] sm:$0x1] }
 0x2e1   : > { %v7363_v18 = vrot.slane %v7361_v36, 5  ;;  %15677 = vmatprep.mubr.msk.bf16.mxu0 %vm3701_vm9, %v13782_v60  ;;  %v8127_v15 = vrot.slane %v16990_v45, 5  ;;  %v14093_v55 = vrot.slane %v7934_v46, 9  ;;  %v8131_v20 = vrot.slane %v16991_v29, 5  ;;  %v16997_v25 = vld [vmem:[#allocation2 + $0xc] sm:$0x1] }
 0x2e2   : > { %v7342_v39 = vsel %vm17657_vm4, %v7337_v61, %v7341_v35  ;;  %v7351_v0 = vrot.slane %v7350_v51, 4  ;;  %v13783_v1 = vcombine.low %v16992_v5, %v16993_v42  ;;  %v7369_v54 = vrot.slane %v7367_v56, 5  ;;  %v4647_v9 = vld [vmem:[#allocation2 + $0x18] sm:$0xe]  ;;  %v7937_v2 = vld [vmem:[#allocation2 + $0x28] sm:$0xe] }
 0x2e3   : > { %v14056_v34 = vcombine.low %v7328_v13, %v7342_v39  ;;  %v7364_v33 = vor.u32 %v7363_v18, %v7360_v49  ;;  %v8132_v57 = vsel %vm18562_vm12, %v14093_v55, %v8131_v20  ;;  %v14094_v4 = vrot.slane %v7935_v3, 9  ;;  %v16998_v47 = vld [vmem:[#allocation2 + $0x34] sm:$0x1]  ;;  %v7939_v35 = vld [vmem:[#allocation2 + $0x38] sm:$0xe] }
 0x2e4   : > { %v7356_v8 = vsel %vm17657_vm4, %v7351_v0, %v7355_v37  ;;  %15678 = vmatmul.mubr.msk.bf16.gmra.mrb[124].mxu0 %vm3701_vm9, %v13783_v1  ;;  %v8135_v63 = vrot.slane %v16994_v10, 5  ;;  %v8128_v31 = vsel %vm18562_vm12, %v14092_v16, %v8127_v15  ;;  %v14095_v24 = vrot.slane %v7936_v17, 9  ;;  %v7940_v62 = vld [vmem:[#allocation2 + $0x40] sm:$0xe]  ;;  %v16999_v49 = vld [vmem:[#allocation2 + $0x14] sm:$0x1] }
 0x2e5   : > { %15881 = vmatprep.mubr.msk.bf16.mxu1 %vm3701_vm9, %v14056_v34  ;;  %v7365_v19 = vrot.slane %v7364_v33, 4  ;;  %v13818_v38 = vrot.slane %v4644_v32, 9  ;;  %v4841_v41 = vrot.slane %v16995_v30, 5  ;;  %v8139_v48 = vrot.slane %v16996_v52, 5  ;;  %v4648_v46 = vld [vmem:[#allocation2 + $0x20] sm:$0xe] }
 0x2e6   : > { %v13819_v59 = vrot.slane %v4645_v21, 9  ;;  %v4845_v40 = vrot.slane %v16997_v25, 5  ;;  %v14160_v12 = vcombine.low %v8128_v31, %v8132_v57  ;;  %v18580_v58 = vsel %vm18562_vm12, %v14094_v4, %v8135_v63  ;;  %v17000_v26 = vld [vmem:[#allocation2 + $0x2c] sm:$0x1]  ;;  %v17001_v60 = vld [vmem:[#allocation2 + $0x1c] sm:$0x1] }
 0x2e7   : > { %v7370_v7 = vsel %vm17657_vm4, %v7365_v19, %v7369_v54  ;;  %v4842_v23 = vsel %vm18562_vm12, %v13818_v38, %v4841_v41  ;;  %v14097_v22 = vrot.slane %v7938_v44, 9  ;;  %v8147_v6 = vrot.slane %v16998_v47, 5  ;;  %v4649_v18 = vld [vmem:[#allocation2 + $0x28] sm:$0xe]  ;;  %v7941_v15 = vld [vmem:[#allocation2 + $0x58] sm:$0xe] }
 0x2e8   : > { %v14057_v27 = vcombine.low %v7356_v8, %v7370_v7  ;;  %v4846_v28 = vsel %vm18562_vm12, %v13819_v59, %v4845_v40  ;;  %v13820_v37 = vrot.slane %v4646_v43, 9  ;;  %v4849_v36 = vrot.slane %v16999_v49, 5  ;;  %v17002_v3 = vld [vmem:[#allocation2 + $0x44] sm:$0x1]  ;;  %v7942_v5 = vld [vmem:[#allocation2 + $0x60] sm:$0xe] }
 0x2e9   : > { %v13886_v53 = vcombine.low %v4842_v23, %v4846_v28  ;;  %v13821_v56 = vrot.slane %v4647_v9, 9  ;;  %v8140_v61 = vsel %vm18562_vm12, %v14095_v24, %v8139_v48  ;;  %v14096_v51 = vrot.slane %v7937_v2, 9  ;;  %v17003_v29 = vld [vmem:[#allocation2 + $0x24] sm:$0x1]  ;;  %v17004_v1 = vld [vmem:[#allocation2 + $0x3c] sm:$0x1] }
 0x2ea   : > { %15882 = vmatmul.mubr.msk.bf16.gmra.mrb[36].mxu1 %vm3701_vm9, %v14057_v27  ;;  %v8143_v11 = vrot.slane %v17000_v26, 5  ;;  %v4853_v13 = vrot.slane %v17001_v60, 5  ;;  %v8148_v16 = vsel %vm18562_vm12, %v14097_v22, %v8147_v6  ;;  %v4850_v39 = vsel %vm18562_vm12, %v13820_v37, %v4849_v36  ;;  %v17005_v8 = vld [vmem:[#allocation2 + $0x2c] sm:$0x1]  ;;  %v4650_v21 = vld [vmem:[#allocation2 + $0x30] sm:$0xe] }
 0x2eb   : > { %15889 = vmatprep.mubr.msk.bf16.mxu1 %vm3701_vm9, %v14160_v12  ;;  %15685 = vmatprep.mubr.msk.bf16.mxu0 %vm3701_vm9, %v13886_v53  ;;  %v14098_v0 = vrot.slane %v7939_v35, 9  ;;  %v14099_v45 = vrot.slane %v7940_v62, 9  ;;  %v8155_v34 = vrot.slane %v17002_v3, 5  ;;  %v13822_v33 = vrot.slane %v4648_v46, 9  ;;  %v4651_v63 = vld [vmem:[#allocation2 + $0x38] sm:$0xe] }
 0x2ec   : > { %v4854_v55 = vsel %vm18562_vm12, %v13821_v56, %v4853_v13  ;;  %v4857_v20 = vrot.slane %v17003_v29, 5  ;;  %v8151_v17 = vrot.slane %v17004_v1, 5  ;;  %v13823_v32 = vrot.slane %v4649_v18, 9  ;;  %v17006_v31 = vld [vmem:[#allocation2 + $0x5c] sm:$0x1]  ;;  %v16872_v44 = vld [vmem:[%s17280_s20 + $0x68] sm:$0xff]  }
 0x2ed   : > { %v13887_v42 = vcombine.low %v4850_v39, %v4854_v55  ;;  %v4861_v54 = vrot.slane %v17005_v8, 5  ;;  %v14161_v19 = vcombine.low %v18580_v58, %v8140_v61  ;;  %v8144_v57 = vsel %vm18562_vm12, %v14096_v51, %v8143_v11  ;;  %v17007_v30 = vld [vmem:[#allocation2 + $0x64] sm:$0x1]  ;;  %v17008_v59 = vld [vmem:[#allocation2 + $0x34] sm:$0x1]  ;;  %v17011_v47 = vld [vmem:[%s17280_s20 + $0x38] sm:$0xff]  }
 0x2ee   : > { %v18600_v4 = vsel %vm18562_vm12, %v14099_v45, %v8155_v34  ;;  %v14100_v10 = vrot.slane %v7941_v15, 9  ;;  %v8159_v24 = vrot.slane %v17006_v31, 5  ;;  %v14101_v38 = vrot.slane %v7942_v5, 9  ;;  %v4652_v40 = vld [vmem:[#allocation2 + $0x50] sm:$0xe]  ;;  %v17012_v6 = vld [vmem:[%s17280_s20 + $0x60] sm:$0xff]  }
 0x2ef   : > { %15686 = vmatmul.mubr.msk.bf16.vlgmr.msra.gmra.mrb[64].mxu0 %vm3701_vm9, %v13887_v42  ;;  %v4862_v43 = vsel %vm18562_vm12, %v13823_v32, %v4861_v54  ;;  %v8163_v41 = vrot.slane %v17007_v30, 5  ;;  %v14162_v7 = vcombine.low %v8144_v57, %v8148_v16  ;;  %v4858_v52 = vsel %vm18562_vm12, %v13822_v33, %v4857_v20  ;;  %v17009_v9 = vld [vmem:[%s17280_s20 + $0x30] sm:$0xff]   ;;  %v17010_v2 = vld [vmem:[#allocation2 + $0x3c] sm:$0x1]  ;;  %v18612_v28 = vld [vmem:[#allocation2 + $0x68] sm:$0xe] }
 0x2f0   : > { %v13824_v48 = vrot.slane %v4650_v21, 9  ;;  %v4865_v25 = vrot.slane %v17008_v59, 5  ;;  %15750 = vmatpush3.bf16.msra.mxu0 %v17009_v9  ;;  %v8152_v27 = vsel %vm18562_vm12, %v14098_v0, %v8151_v17  ;;  %v13888_v12 = vcombine.low %v4858_v52, %v4862_v43  ;;  %v4653_v22 = vld [vmem:[#allocation2 + $0x58] sm:$0xe]  ;;  %v7944_v53 = vld [vmem:[#allocation2 + $0x70] sm:$0xe] }
 0x2f1   : > { %v13825_v23 = vrot.slane %v4651_v63, 9  ;;  %v4869_v58 = vrot.slane %v17010_v2, 5  ;;  %15751 = vmatprep.subr.bf16.mxu0 %v17011_v47  ;;  %v14163_v35 = vcombine.low %v8152_v27, %v18600_v4  ;;  %v8160_v37 = vsel %vm18562_vm12, %v14100_v10, %v8159_v24  ;;  %v17013_v56 = vld [vmem:[#allocation2 + $0x54] sm:$0x1]  ;;  %v7945_v61 = vld [vmem:[#allocation2 + $0x78] sm:$0xe] }
 0x2f2   : > { %15890 = vmatmul.mubr.msk.bf16.vlgmr.msra.gmra.mrb[40].mxu1 %vm3701_vm9, %v14161_v19  ;;  %v4866_v62 = vsel %vm18562_vm12, %v13824_v48, %v4865_v25  ;;  %15689 = vmatprep.mubr.msk.bf16.mxu0 %vm3701_vm9, %v13888_v12  ;;  %v8164_v49 = vsel %vm18562_vm12, %v14101_v38, %v8163_v41  ;;  %v13826_v36 = vrot.slane %v4652_v40, 9  ;;  %v4873_v46 = vrot.slane %v17013_v56, 5  ;;  %v16874_v51 = vld [vmem:[%s17280_s20 + $0x70] sm:$0xff]   ;;  %v17014_v13 = vld [vmem:[#allocation2 + $0x5c] sm:$0x1] }
 0x2f3   : > { %15954 = vmatpush3.bf16.msra.mxu1 %v17012_v6  ;;  %15893 = vmatprep.mubr.msk.bf16.mxu1 %vm3701_vm9, %v14162_v7  ;;  %v4870_v26 = vsel %vm18562_vm12, %v13825_v23, %v4869_v58  ;;  %v14102_v11 = vrot.slane %v18612_v28, 9  ;;  %v13827_v60 = vrot.slane %v4653_v22, 9  ;;  %v4877_v18 = vrot.slane %v17014_v13, 5  ;;  %v4654_v16 = vld [vmem:[#allocation2 + $0x60] sm:$0xe] }
 0x2f4   : > { %15955 = vmatprep.subr.bf16.mxu1 %v16872_v44  ;;  %15752 = vmatpush3.bf16.msra.mxu0 %v17011_v47  ;;  %v13889_v39 = vcombine.low %v4866_v62, %v4870_v26  ;;  %v14103_v0 = vrot.slane %v7944_v53, 9  ;;  %v17015_v45 = vld [vmem:[#allocation2 + $0x74] sm:$0x1]  ;;  %v4874_v55 = vsel %vm18562_vm12, %v13826_v36, %v4873_v46  ;;  %v7946_v3 = vld [vmem:[#allocation2 + $0x80] sm:$0xe]  ;;  %v14164_v33 = vcombine.low %v8160_v37, %v8164_v49 }
 0x2f5   : > { %v8171_v15 = vrot.slane %v17015_v45, 5  ;;  %v4655_v34 = vld [vmem:[#allocation2 + $0x68] sm:$0xe]  ;;  %v17016_v29 = vld [vmem:[#allocation2 + $0x6c] sm:$0x1]  ;;  %v4878_v5 = vsel %vm18562_vm12, %v13827_v60, %v4877_v18  ;;  %v14104_v42 = vrot.slane %v7945_v61, 9 }
 0x2f6   : > { %v8167_v20 = vrot.slane %v17016_v29, 5  ;;  %v13890_v1 = vcombine.low %v4874_v55, %v4878_v5  ;;  %v17017_v17 = vld [vmem:[#allocation2 + $0x7c] sm:$0x1]  ;;  %v13828_v8 = vrot.slane %v4654_v16, 9  ;;  %v17018_v54 = vld [vmem:[#allocation2 + $0x64] sm:$0x1] }
 0x2f7   : > { %15956 = vmatpush3.bf16.msra.mxu1 %v16872_v44  ;;  %15690 = vmatmul.mubr.msk.bf16.gmra.mrb[68].mxu0 %vm3701_vm9, %v13889_v39  ;;  %v8175_v32 = vrot.slane %v17017_v17, 5  ;;  %v4881_v21 = vrot.slane %v17018_v54, 5  ;;  %v4656_v19 = vld [vmem:[#allocation2 + $0x70] sm:$0xe]  ;;  %v14105_v57 = vrot.slane %v7946_v3, 9  ;;  %v13829_v63 = vrot.slane %v4655_v34, 9 }
 0x2f8   : > { %16021 = vmatprep.subr.bf16.mxu1 %v16874_v51  ;;  %v17019_v4 = vld [vmem:[#allocation2 + $0x84] sm:$0x1]  ;;  %v17020_v43 = vld [vmem:[#allocation2 + $0x6c] sm:$0x1]  ;;  %v4657_v24 = vld [vmem:[#allocation2 + $0x78] sm:$0xe]  ;;  %v8172_v38 = vsel %vm18562_vm12, %v14103_v0, %v8171_v15  ;;  %15693 = vmatprep.mubr.msk.bf16.mxu0 %vm3701_vm9, %v13890_v1  ;;  %v8168_v48 = vsel %vm18562_vm12, %v14102_v11, %v8167_v20 }
 0x2f9   : > { %v8179_v10 = vrot.slane %v17019_v4, 5  ;;  %v4885_v31 = vrot.slane %v17020_v43, 5  ;;  %v4882_v30 = vsel %vm18562_vm12, %v13828_v8, %v4881_v21  ;;  %v7948_v41 = vld [vmem:[#allocation2 + $0x90] sm:$0xe]  ;;  %v13830_v44 = vrot.slane %v4656_v19, 9 }
 0x2fa   : > { %15894 = vmatmul.mubr.msk.bf16.gmra.mrb[44].mxu1 %vm3701_vm9, %v14163_v35  ;;  %v17021_v7 = vld [vmem:[#allocation2 + $0x74] sm:$0x1]  ;;  %v13831_v59 = vrot.slane %v4657_v24, 9  ;;  %v17022_v25 = vld [vmem:[#allocation2 + $0x7c] sm:$0x1]  ;;  %v14165_v27 = vcombine.low %v8168_v48, %v8172_v38  ;;  %v8176_v12 = vsel %vm18562_vm12, %v14104_v42, %v8175_v32  ;;  %v14107_v6 = vrot.slane %v7948_v41, 9 }
 0x2fb   : > { %15897 = vmatprep.mubr.msk.bf16.mxu1 %vm3701_vm9, %v14164_v33  ;;  %v4889_v52 = vrot.slane %v17021_v7, 5  ;;  %v4893_v40 = vrot.slane %v17022_v25, 5  ;;  %v4658_v9 = vld [vmem:[#allocation2 + $0x80] sm:$0xe]  ;;  %v8180_v23 = vsel %vm18562_vm12, %v14105_v57, %v8179_v10  ;;  %v4886_v2 = vsel %vm18562_vm12, %v13829_v63, %v4885_v31  ;;  %v7950_v58 = vld [vmem:[#allocation2 + $0xb0] sm:$0xe] }
 0x2fc   : > { %v4659_v28 = vld [vmem:[#allocation2 + $0x88] sm:$0xe]  ;;  %v13891_v22 = vcombine.low %v4882_v30, %v4886_v2  ;;  %v17023_v37 = vld [vmem:[#allocation2 + $0x94] sm:$0x1]  ;;  %v13832_v56 = vrot.slane %v4658_v9, 9  ;;  %v14109_v26 = vrot.slane %v7950_v58, 9  ;;  %v14166_v0 = vcombine.low %v8176_v12, %v8180_v23 }
 0x2fd   : > { %v7947_v47 = vld [vmem:[#allocation2 + $0x88] sm:$0xe]  ;;  %v4890_v35 = vsel %vm18562_vm12, %v13830_v44, %v4889_v52  ;;  %v4894_v62 = vsel %vm18562_vm12, %v13831_v59, %v4893_v40  ;;  %v8187_v49 = vrot.slane %v17023_v37, 5  ;;  %v17024_v46 = vld [vmem:[#allocation2 + $0x84] sm:$0x1]  ;;  %v13833_v13 = vrot.slane %v4659_v28, 9 }
 0x2fe   : > { %v7949_v53 = vld [vmem:[#allocation2 + $0xa8] sm:$0xe]  ;;  %v13892_v36 = vcombine.low %v4890_v35, %v4894_v62  ;;  %v4897_v61 = vrot.slane %v17024_v46, 5  ;;  %v4660_v51 = vld [vmem:[#allocation2 + $0xa0] sm:$0xe]  ;;  %v14106_v45 = vrot.slane %v7947_v47, 9 }
 0x2ff   : > { %15694 = vmatmul.mubr.msk.bf16.gmra.mrb[72].mxu0 %vm3701_vm9, %v13891_v22  ;;  %v17025_v11 = vld [vmem:[#allocation2 + $0xb4] sm:$0x1]  ;;  %v17026_v18 = vld [vmem:[#allocation2 + $0x8c] sm:$0x1]  ;;  %v4661_v39 = vld [vmem:[#allocation2 + $0xa8] sm:$0xe]  ;;  %v8188_v17 = vsel %vm18562_vm12, %v14107_v6, %v8187_v49 }
 0x300   : > { %v8195_v60 = vrot.slane %v17025_v11, 5  ;;  %v4901_v16 = vrot.slane %v17026_v18, 5  ;;  %v17027_v15 = vld [vmem:[#allocation2 + $0x8c] sm:$0x1]  ;;  %15697 = vmatprep.mubr.msk.bf16.mxu0 %vm3701_vm9, %v13892_v36  ;;  %v7952_v3 = vld [vmem:[#allocation2 + $0xc0] sm:$0xe]  ;;  %v4898_v32 = vsel %vm18562_vm12, %v13832_v56, %v4897_v61 }
 0x301   : > { %v8183_v55 = vrot.slane %v17027_v15, 5  ;;  %v14108_v34 = vrot.slane %v7949_v53, 9  ;;  %v17028_v33 = vld [vmem:[#allocation2 + $0xac] sm:$0x1]  ;;  %v13834_v20 = vrot.slane %v4660_v51, 9  ;;  %v13835_v54 = vrot.slane %v4661_v39, 9 }
 0x302   : > { %15898 = vmatmul.mubr.msk.bf16.gmra.mrb[48].mxu1 %vm3701_vm9, %v14165_v27  ;;  %v8191_v29 = vrot.slane %v17028_v33, 5  ;;  %v17029_v5 = vld [vmem:[#allocation2 + $0xa4] sm:$0x1]  ;;  %v7954_v1 = vld [vmem:[#allocation2 + $0xd0] sm:$0xe]  ;;  %v8196_v57 = vsel %vm18562_vm12, %v14109_v26, %v8195_v60  ;;  %v4902_v4 = vsel %vm18562_vm12, %v13833_v13, %v4901_v16  ;;  %v14111_v10 = vrot.slane %v7952_v3, 9 }
 0x303   : > { %v4905_v42 = vrot.slane %v17029_v5, 5  ;;  %15901 = vmatprep.mubr.msk.bf16.mxu1 %vm3701_vm9, %v14166_v0  ;;  %v7951_v8 = vld [vmem:[#allocation2 + $0xb8] sm:$0xe]  ;;  %v17030_v21 = vld [vmem:[#allocation2 + $0xac] sm:$0x1]  ;;  %v14113_v41 = vrot.slane %v7954_v1, 9  ;;  %v8184_v52 = vsel %vm18562_vm12, %v14106_v45, %v8183_v55  ;;  %v13893_v59 = vcombine.low %v4898_v32, %v4902_v4 }
 0x304   : > { %v4909_v19 = vrot.slane %v17030_v21, 5  ;;  %v4662_v43 = vld [vmem:[#allocation2 + $0xb0] sm:$0xe]  ;;  %v17031_v31 = vld [vmem:[#allocation2 + $0xc4] sm:$0x1]  ;;  %v8192_v48 = vsel %vm18562_vm12, %v14108_v34, %v8191_v29  ;;  %v14110_v25 = vrot.slane %v7951_v8, 9  ;;  %v14167_v47 = vcombine.low %v8184_v52, %v8188_v17 }
 0x305   : > { %v4906_v63 = vsel %vm18562_vm12, %v13834_v20, %v4905_v42  ;;  %v8203_v24 = vrot.slane %v17031_v31, 5  ;;  %v7953_v30 = vld [vmem:[#allocation2 + $0xc8] sm:$0xe]  ;;  %v17032_v44 = vld [vmem:[#allocation2 + $0xd4] sm:$0x1]  ;;  %v13836_v2 = vrot.slane %v4662_v43, 9  ;;  %v14168_v6 = vcombine.low %v8192_v48, %v8196_v57 }
 0x306   : > { %v4910_v38 = vsel %vm18562_vm12, %v13835_v54, %v4909_v19  ;;  %v8211_v7 = vrot.slane %v17032_v44, 5  ;;  %v4663_v40 = vld [vmem:[#allocation2 + $0xb8] sm:$0xe]  ;;  %v4664_v9 = vld [vmem:[#allocation2 + $0xc0] sm:$0xe]  ;;  %v14112_v35 = vrot.slane %v7953_v30, 9 }
 0x307   : > { %v17033_v27 = vld [vmem:[#allocation2 + $0xbc] sm:$0x1]  ;;  %v13894_v23 = vcombine.low %v4906_v63, %v4910_v38  ;;  %v17034_v58 = vld [vmem:[#allocation2 + $0xb4] sm:$0x1]  ;;  %v4665_v22 = vld [vmem:[#allocation2 + $0xc8] sm:$0xe]  ;;  %15698 = vmatmul.mubr.msk.bf16.gmra.mrb[76].mxu0 %vm3701_vm9, %v13893_v59  ;;  %v8204_v49 = vsel %vm18562_vm12, %v14111_v10, %v8203_v24 }
 0x308   : > { %v8199_v12 = vrot.slane %v17033_v27, 5  ;;  %v4913_v28 = vrot.slane %v17034_v58, 5  ;;  %v17035_v62 = vld [vmem:[#allocation2 + $0xcc] sm:$0x1]  ;;  %v7956_v37 = vld [vmem:[#allocation2 + $0xe0] sm:$0xe]  ;;  %v18679_v36 = vsel %vm18562_vm12, %v14113_v41, %v8211_v7 }
 0x309   : > { %v8207_v53 = vrot.slane %v17035_v62, 5  ;;  %15701 = vmatprep.mubr.msk.bf16.mxu0 %vm3701_vm9, %v13894_v23  ;;  %v13837_v56 = vrot.slane %v4663_v40, 9  ;;  %v17036_v46 = vld [vmem:[#allocation2 + $0xbc] sm:$0x1]  ;;  %v7955_v51 = vld [vmem:[#allocation2 + $0xd8] sm:$0xe] }
 0x30a   : > { %v4917_v61 = vrot.slane %v17036_v46, 5  ;;  %15902 = vmatmul.mubr.msk.bf16.gmra.mrb[52].mxu1 %vm3701_vm9, %v14167_v47  ;;  %v13838_v26 = vrot.slane %v4664_v9, 9  ;;  %v17037_v11 = vld [vmem:[#allocation2 + $0xc4] sm:$0x1]  ;;  %v13839_v13 = vrot.slane %v4665_v22, 9  ;;  %v8200_v39 = vsel %vm18562_vm12, %v14110_v25, %v8199_v12 }
 0x30b   : > { %v4921_v60 = vrot.slane %v17037_v11, 5  ;;  %v17038_v18 = vld [vmem:[#allocation2 + $0xcc] sm:$0x1]  ;;  %15905 = vmatprep.mubr.msk.bf16.mxu1 %vm3701_vm9, %v14168_v6  ;;  %v4914_v0 = vsel %vm18562_vm12, %v13836_v2, %v4913_v28  ;;  %v14115_v45 = vrot.slane %v7956_v37, 9  ;;  %v17039_v15 = vld [vmem:[#allocation2 + $0xe4] sm:$0x1]  ;;  %v14169_v34 = vcombine.low %v8200_v39, %v8204_v49 }
 0x30c   : > { %v4925_v16 = vrot.slane %v17038_v18, 5  ;;  %v8219_v55 = vrot.slane %v17039_v15, 5  ;;  %v4666_v3 = vld [vmem:[#allocation2 + $0xd0] sm:$0xe]  ;;  %v8208_v33 = vsel %vm18562_vm12, %v14112_v35, %v8207_v53  ;;  %v7957_v20 = vld [vmem:[#allocation2 + $0xf8] sm:$0xe]  ;;  %v4918_v42 = vsel %vm18562_vm12, %v13837_v56, %v4917_v61 }
 0x30d   : > { %v14170_v5 = vcombine.low %v8208_v33, %v18679_v36  ;;  %v14114_v1 = vrot.slane %v7955_v51, 9  ;;  %v17040_v17 = vld [vmem:[#allocation2 + $0xdc] sm:$0x1]  ;;  %v4667_v8 = vld [vmem:[#allocation2 + $0xd8] sm:$0xe]  ;;  %v13895_v21 = vcombine.low %v4914_v0, %v4918_v42  ;;  %v4922_v19 = vsel %vm18562_vm12, %v13838_v26, %v4921_v60 }
 0x30e   : > { %v4926_v29 = vsel %vm18562_vm12, %v13839_v13, %v4925_v16  ;;  %v8215_v32 = vrot.slane %v17040_v17, 5  ;;  %v4668_v54 = vld [vmem:[#allocation2 + $0xf0] sm:$0xe]  ;;  %v7958_v57 = vld [vmem:[#allocation2 + $0x100] sm:$0xe]  ;;  %v13840_v4 = vrot.slane %v4666_v3, 9  ;;  %v18698_v31 = vsel %vm18562_vm12, %v14115_v45, %v8219_v55 }
 0x30f   : > { %v17041_v10 = vld [vmem:[#allocation2 + $0xd4] sm:$0x1]  ;;  %v4669_v43 = vld [vmem:[#allocation2 + $0xf8] sm:$0xe]  ;;  %v13896_v24 = vcombine.low %v4922_v19, %v4926_v29  ;;  %v14116_v38 = vrot.slane %v7957_v20, 9  ;;  %15702 = vmatmul.mubr.msk.bf16.gmra.mrb[80].mxu0 %vm3701_vm9, %v13895_v21  ;;  %v13841_v7 = vrot.slane %v4667_v8, 9 }
 0x310   : > { %v4929_v63 = vrot.slane %v17041_v10, 5  ;;  %v17042_v30 = vld [vmem:[#allocation2 + $0xfc] sm:$0x1]  ;;  %v7960_v44 = vld [vmem:[#allocation2 + $0x110] sm:$0xe]  ;;  %v13842_v59 = vrot.slane %v4668_v54, 9  ;;  %v8216_v28 = vsel %vm18562_vm12, %v14114_v1, %v8215_v32 }
 0x311   : > { %v8223_v41 = vrot.slane %v17042_v30, 5  ;;  %v17043_v52 = vld [vmem:[#allocation2 + $0xdc] sm:$0x1]  ;;  %v17044_v25 = vld [vmem:[#allocation2 + $0xf4] sm:$0x1]  ;;  %15705 = vmatprep.mubr.msk.bf16.mxu0 %vm3701_vm9, %v13896_v24  ;;  %v14117_v9 = vrot.slane %v7958_v57, 9  ;;  %v14171_v53 = vcombine.low %v8216_v28, %v18698_v31 }
 0x312   : > { %v4933_v48 = vrot.slane %v17043_v52, 5  ;;  %v4937_v40 = vrot.slane %v17044_v25, 5  ;;  %v17045_v27 = vld [vmem:[#allocation2 + $0x104] sm:$0x1]  ;;  %v13843_v23 = vrot.slane %v4669_v43, 9  ;;  %15906 = vmatmul.mubr.msk.bf16.gmra.mrb[56].mxu1 %vm3701_vm9, %v14169_v34  ;;  %v4930_v22 = vsel %vm18562_vm12, %v13840_v4, %v4929_v63 }
 0x313   : > { %v8227_v12 = vrot.slane %v17045_v27, 5  ;;  %v17046_v2 = vld [vmem:[#allocation2 + $0xfc] sm:$0x1]  ;;  %v7959_v47 = vld [vmem:[#allocation2 + $0x108] sm:$0xe]  ;;  %v14119_v6 = vrot.slane %v7960_v44, 9  ;;  %15909 = vmatprep.mubr.msk.bf16.mxu1 %vm3701_vm9, %v14170_v5  ;;  %v8224_v36 = vsel %vm18562_vm12, %v14116_v38, %v8223_v41 }
 0x314   : > { %v4941_v58 = vrot.slane %v17046_v2, 5  ;;  %v17047_v35 = vld [vmem:[#allocation2 + $0x114] sm:$0x1]  ;;  %v7961_v37 = vld [vmem:[#allocation2 + $0x118] sm:$0xe]  ;;  %v4934_v56 = vsel %vm18562_vm12, %v13841_v7, %v4933_v48  ;;  %v4938_v46 = vsel %vm18562_vm12, %v13842_v59, %v4937_v40  ;;  %v14118_v60 = vrot.slane %v7959_v47, 9 }
 0x315   : > { %v8235_v62 = vrot.slane %v17047_v35, 5  ;;  %v4670_v49 = vld [vmem:[#allocation2 + $0x100] sm:$0xe]  ;;  %v8228_v26 = vsel %vm18562_vm12, %v14117_v9, %v8227_v12  ;;  %v13897_v11 = vcombine.low %v4930_v22, %v4934_v56  ;;  %v17048_v13 = vld [vmem:[#allocation2 + $0x10c] sm:$0x1]  ;;  %v14120_v45 = vrot.slane %v7961_v37, 9 }
 0x316   : > { %v4942_v61 = vsel %vm18562_vm12, %v13843_v23, %v4941_v58  ;;  %v7962_v51 = vld [vmem:[#allocation2 + $0x120] sm:$0xe]  ;;  %v8231_v18 = vrot.slane %v17048_v13, 5  ;;  %v4671_v16 = vld [vmem:[#allocation2 + $0x108] sm:$0xe]  ;;  %v13844_v15 = vrot.slane %v4670_v49, 9  ;;  %v14172_v57 = vcombine.low %v8224_v36, %v8228_v26 }
 0x317   : > { %v4673_v39 = vld [vmem:[#allocation2 + $0x118] sm:$0xe]  ;;  %v18721_v0 = vsel %vm18562_vm12, %v14119_v6, %v8235_v62  ;;  %v17049_v55 = vld [vmem:[#allocation2 + $0x104] sm:$0x1]  ;;  %v13898_v34 = vcombine.low %v4938_v46, %v4942_v61  ;;  %v17050_v33 = vld [vmem:[#allocation2 + $0x11c] sm:$0x1]  ;;  %15706 = vmatmul.mubr.msk.bf16.gmra.mrb[84].mxu0 %vm3701_vm9, %v13897_v11 }
 0x318   : > { %v4945_v3 = vrot.slane %v17049_v55, 5  ;;  %v8239_v29 = vrot.slane %v17050_v33, 5  ;;  %v14121_v20 = vrot.slane %v7962_v51, 9  ;;  %v17051_v5 = vld [vmem:[#allocation2 + $0x124] sm:$0x1]  ;;  %v13845_v17 = vrot.slane %v4671_v16, 9 }
 0x319   : > { %v8243_v42 = vrot.slane %v17051_v5, 5  ;;  %v4672_v1 = vld [vmem:[#allocation2 + $0x110] sm:$0xe]  ;;  %v17052_v32 = vld [vmem:[#allocation2 + $0x10c] sm:$0x1]  ;;  %v13847_v54 = vrot.slane %v4673_v39, 9  ;;  %15709 = vmatprep.mubr.msk.bf16.mxu0 %vm3701_vm9, %v13898_v34  ;;  %v8232_v10 = vsel %vm18562_vm12, %v14118_v60, %v8231_v18 }
 0x31a   : > { %v4949_v8 = vrot.slane %v17052_v32, 5  ;;  %v17053_v21 = vld [vmem:[#allocation2 + $0x11c] sm:$0x1]  ;;  %v7963_v4 = vld [vmem:[#allocation2 + $0x128] sm:$0xe]  ;;  %15910 = vmatmul.mubr.msk.bf16.gmra.mrb[60].mxu1 %vm3701_vm9, %v14171_v53  ;;  %v4946_v63 = vsel %vm18562_vm12, %v13844_v15, %v4945_v3  ;;  %v13846_v31 = vrot.slane %v4672_v1, 9  ;;  %v14173_v30 = vcombine.low %v8232_v10, %v18721_v0 }
 0x31b   : > { %v4957_v19 = vrot.slane %v17053_v21, 5  ;;  %v7964_v43 = vld [vmem:[#allocation2 + $0x130] sm:$0xe]  ;;  %v17054_v24 = vld [vmem:[#allocation2 + $0x114] sm:$0x1]  ;;  %15913 = vmatprep.mubr.msk.bf16.mxu1 %vm3701_vm9, %v14172_v57  ;;  %v8240_v41 = vsel %vm18562_vm12, %v14120_v45, %v8239_v29  ;;  %v8244_v52 = vsel %vm18562_vm12, %v14121_v20, %v8243_v42  ;;  %v14122_v59 = vrot.slane %v7963_v4, 9 }
 0x31c   : > { %v4953_v38 = vrot.slane %v17054_v24, 5  ;;  %v7965_v44 = vld [vmem:[#allocation2 + $0x148] sm:$0xe]  ;;  %v7966_v7 = vld [vmem:[#allocation2 + $0x150] sm:$0xe]  ;;  %v4950_v48 = vsel %vm18562_vm12, %v13845_v17, %v4949_v8  ;;  %v14123_v2 = vrot.slane %v7964_v43, 9  ;;  %v14174_v39 = vcombine.low %v8240_v41, %v8244_v52 }
 0x31d   : > { %v4958_v25 = vsel %vm18562_vm12, %v13847_v54, %v4957_v19  ;;  %v4674_v40 = vld [vmem:[#allocation2 + $0x120] sm:$0xe]  ;;  %v13899_v27 = vcombine.low %v4946_v63, %v4950_v48  ;;  %v17055_v12 = vld [vmem:[#allocation2 + $0x12c] sm:$0x1]  ;;  %v17056_v58 = vld [vmem:[#allocation2 + $0x134] sm:$0x1] }
 0x31e   : > { %v4676_v9 = vld [vmem:[#allocation2 + $0x140] sm:$0xe]  ;;  %v8247_v23 = vrot.slane %v17055_v12, 5  ;;  %v8251_v28 = vrot.slane %v17056_v58, 5  ;;  %v4677_v22 = vld [vmem:[#allocation2 + $0x148] sm:$0xe]  ;;  %v4954_v47 = vsel %vm18562_vm12, %v13846_v31, %v4953_v38 }
 0x31f   : > { %v14124_v6 = vrot.slane %v7965_v44, 9  ;;  %v17057_v35 = vld [vmem:[#allocation2 + $0x14c] sm:$0x1]  ;;  %v14125_v53 = vrot.slane %v7966_v7, 9  ;;  %v4675_v37 = vld [vmem:[#allocation2 + $0x128] sm:$0xe]  ;;  %v13900_v49 = vcombine.low %v4954_v47, %v4958_v25  ;;  %15710 = vmatmul.mubr.msk.bf16.gmra.mrb[88].mxu0 %vm3701_vm9, %v13899_v27 }
 0x320   : > { %v8255_v62 = vrot.slane %v17057_v35, 5  ;;  %v17058_v36 = vld [vmem:[#allocation2 + $0x154] sm:$0x1]  ;;  %v13848_v46 = vrot.slane %v4674_v40, 9  ;;  %v17059_v61 = vld [vmem:[#allocation2 + $0x124] sm:$0x1]  ;;  %v8248_v34 = vsel %vm18562_vm12, %v14122_v59, %v8247_v23  ;;  %v8252_v33 = vsel %vm18562_vm12, %v14123_v2, %v8251_v28 }
 0x321   : > { %v8259_v56 = vrot.slane %v17058_v36, 5  ;;  %v4961_v51 = vrot.slane %v17059_v61, 5  ;;  %v13850_v26 = vrot.slane %v4676_v9, 9  ;;  %v17060_v11 = vld [vmem:[#allocation2 + $0x144] sm:$0x1]  ;;  %v13851_v13 = vrot.slane %v4677_v22, 9  ;;  %15713 = vmatprep.mubr.msk.bf16.mxu0 %vm3701_vm9, %v13900_v49 }
 0x322   : > { %v4969_v60 = vrot.slane %v17060_v11, 5  ;;  %v17061_v18 = vld [vmem:[#allocation2 + $0x14c] sm:$0x1]  ;;  %v13849_v0 = vrot.slane %v4675_v37, 9  ;;  %v7968_v55 = vld [vmem:[#allocation2 + $0x160] sm:$0xe]  ;;  %15914 = vmatmul.mubr.msk.bf16.gmra.mrb[0].mxu1 %vm3701_vm9, %v14173_v30  ;;  %v8256_v42 = vsel %vm18562_vm12, %v14124_v6, %v8255_v62  ;;  %v14175_v31 = vcombine.low %v8248_v34, %v8252_v33 }
 0x323   : > { %v4973_v16 = vrot.slane %v17061_v18, 5  ;;  %v17062_v45 = vld [vmem:[#allocation2 + $0x12c] sm:$0x1]  ;;  %v7970_v3 = vld [vmem:[#allocation2 + $0x170] sm:$0xe]  ;;  %15917 = vmatprep.mubr.msk.bf16.mxu1 %vm3701_vm9, %v14174_v39  ;;  %v8260_v29 = vsel %vm18562_vm12, %v14125_v53, %v8259_v56  ;;  %v4962_v20 = vsel %vm18562_vm12, %v13848_v46, %v4961_v51  ;;  %v14127_v1 = vrot.slane %v7968_v55, 9 }
 0x324   : > { %v4965_v15 = vrot.slane %v17062_v45, 5  ;;  %v7967_v5 = vld [vmem:[#allocation2 + $0x158] sm:$0xe]  ;;  %v4970_v17 = vsel %vm18562_vm12, %v13850_v26, %v4969_v60  ;;  %v7969_v8 = vld [vmem:[#allocation2 + $0x168] sm:$0xe]  ;;  %v14129_v4 = vrot.slane %v7970_v3, 9  ;;  %v14176_v24 = vcombine.low %v8256_v42, %v8260_v29 }
 0x325   : > { %v4974_v32 = vsel %vm18562_vm12, %v13851_v13, %v4973_v16  ;;  %v4678_v54 = vld [vmem:[#allocation2 + $0x150] sm:$0xe]  ;;  %v17063_v19 = vld [vmem:[#allocation2 + $0x164] sm:$0x1]  ;;  %v17064_v10 = vld [vmem:[#allocation2 + $0x174] sm:$0x1] }
 0x326   : > { %v4966_v21 = vsel %vm18562_vm12, %v13849_v0, %v4965_v15  ;;  %v8267_v57 = vrot.slane %v17063_v19, 5  ;;  %v8275_v63 = vrot.slane %v17064_v10, 5  ;;  %v4681_v43 = vld [vmem:[#allocation2 + $0x168] sm:$0xe]  ;;  %v14126_v30 = vrot.slane %v7967_v5, 9 }
 0x327   : > { %v13901_v38 = vcombine.low %v4962_v20, %v4966_v21  ;;  %v4679_v41 = vld [vmem:[#allocation2 + $0x158] sm:$0xe]  ;;  %v4680_v44 = vld [vmem:[#allocation2 + $0x160] sm:$0xe]  ;;  %v17065_v7 = vld [vmem:[#allocation2 + $0x15c] sm:$0x1]  ;;  %v13902_v48 = vcombine.low %v4970_v17, %v4974_v32 }
 0x328   : > { %v8263_v52 = vrot.slane %v17065_v7, 5  ;;  %v13852_v59 = vrot.slane %v4678_v54, 9  ;;  %v17066_v25 = vld [vmem:[#allocation2 + $0x154] sm:$0x1]  ;;  %v7972_v9 = vld [vmem:[#allocation2 + $0x180] sm:$0xe]  ;;  %v8268_v22 = vsel %vm18562_vm12, %v14127_v1, %v8267_v57  ;;  %v8276_v47 = vsel %vm18562_vm12, %v14129_v4, %v8275_v63 }
 0x329   : > { %v4977_v40 = vrot.slane %v17066_v25, 5  ;;  %15714 = vmatmul.mubr.msk.bf16.gmra.mrb[92].mxu0 %vm3701_vm9, %v13901_v38  ;;  %v14128_v27 = vrot.slane %v7969_v8, 9  ;;  %v17067_v12 = vld [vmem:[#allocation2 + $0x16c] sm:$0x1]  ;;  %v13855_v2 = vrot.slane %v4681_v43, 9  ;;  %v13853_v6 = vrot.slane %v4679_v41, 9 }
 0x32a   : > { %v8271_v23 = vrot.slane %v17067_v12, 5  ;;  %v17068_v58 = vld [vmem:[#allocation2 + $0x16c] sm:$0x1]  ;;  %15717 = vmatprep.mubr.msk.bf16.mxu0 %vm3701_vm9, %v13902_v48  ;;  %v17069_v35 = vld [vmem:[#allocation2 + $0x15c] sm:$0x1]  ;;  %15918 = vmatmul.mubr.msk.bf16.gmra.mrb[4].mxu1 %vm3701_vm9, %v14175_v31  ;;  %v14131_v37 = vrot.slane %v7972_v9, 9  ;;  %v8264_v51 = vsel %vm18562_vm12, %v14126_v30, %v8263_v52 }
 0x32b   : > { %v4989_v28 = vrot.slane %v17068_v58, 5  ;;  %v4981_v62 = vrot.slane %v17069_v35, 5  ;;  %v7971_v53 = vld [vmem:[#allocation2 + $0x178] sm:$0xe]  ;;  %v17070_v49 = vld [vmem:[#allocation2 + $0x184] sm:$0x1]  ;;  %15921 = vmatprep.mubr.msk.bf16.mxu1 %vm3701_vm9, %v14176_v24  ;;  %v4978_v26 = vsel %vm18562_vm12, %v13852_v59, %v4977_v40  ;;  %v14177_v60 = vcombine.low %v8264_v51, %v8268_v22 }
 0x32c   : > { %v8283_v36 = vrot.slane %v17070_v49, 5  ;;  %v13854_v56 = vrot.slane %v4680_v44, 9  ;;  %v17071_v46 = vld [vmem:[#allocation2 + $0x164] sm:$0x1]  ;;  %v7973_v11 = vld [vmem:[#allocation2 + $0x198] sm:$0xe]  ;;  %v8272_v13 = vsel %vm18562_vm12, %v14128_v27, %v8271_v23 }
 0x32d   : > { %v4985_v61 = vrot.slane %v17071_v46, 5  ;;  %v4990_v18 = vsel %vm18562_vm12, %v13855_v2, %v4989_v28  ;;  %v4682_v16 = vld [vmem:[#allocation2 + $0x170] sm:$0xe]  ;;  %v14178_v39 = vcombine.low %v8272_v13, %v8276_v47  ;;  %v4982_v0 = vsel %vm18562_vm12, %v13853_v6, %v4981_v62  ;;  %v17072_v15 = vld [vmem:[#allocation2 + $0x17c] sm:$0x1] }
 0x32e   : > { %v14130_v45 = vrot.slane %v7971_v53, 9  ;;  %v8279_v55 = vrot.slane %v17072_v15, 5  ;;  %v4684_v3 = vld [vmem:[#allocation2 + $0x190] sm:$0xe]  ;;  %v4685_v34 = vld [vmem:[#allocation2 + $0x198] sm:$0xe]  ;;  %v13903_v33 = vcombine.low %v4978_v26, %v4982_v0  ;;  %v18782_v29 = vsel %vm18562_vm12, %v14131_v37, %v8283_v36 }
 0x32f   : > { %v4986_v20 = vsel %vm18562_vm12, %v13854_v56, %v4985_v61  ;;  %v7974_v5 = vld [vmem:[#allocation2 + $0x1a0] sm:$0xe]  ;;  %v14132_v42 = vrot.slane %v7973_v11, 9  ;;  %v4683_v1 = vld [vmem:[#allocation2 + $0x178] sm:$0xe]  ;;  %v13856_v54 = vrot.slane %v4682_v16, 9 }
 0x330   : > { %v13904_v17 = vcombine.low %v4986_v20, %v4990_v18  ;;  %v17073_v32 = vld [vmem:[#allocation2 + $0x19c] sm:$0x1]  ;;  %v17074_v21 = vld [vmem:[#allocation2 + $0x174] sm:$0x1]  ;;  %v13858_v57 = vrot.slane %v4684_v3, 9  ;;  %v13859_v63 = vrot.slane %v4685_v34, 9  ;;  %v8280_v48 = vsel %vm18562_vm12, %v14130_v45, %v8279_v55 }
 0x331   : > { %v8287_v8 = vrot.slane %v17073_v32, 5  ;;  %v4993_v19 = vrot.slane %v17074_v21, 5  ;;  %15718 = vmatmul.mubr.msk.bf16.gmra.mrb[96].mxu0 %vm3701_vm9, %v13903_v33  ;;  %v17075_v4 = vld [vmem:[#allocation2 + $0x194] sm:$0x1]  ;;  %v17076_v43 = vld [vmem:[#allocation2 + $0x19c] sm:$0x1]  ;;  %v14179_v9 = vcombine.low %v8280_v48, %v18782_v29 }
 0x332   : > { %v5001_v10 = vrot.slane %v17075_v4, 5  ;;  %v5005_v31 = vrot.slane %v17076_v43, 5  ;;  %15721 = vmatprep.mubr.msk.bf16.mxu0 %vm3701_vm9, %v13904_v17  ;;  %v14133_v24 = vrot.slane %v7974_v5, 9  ;;  %v17077_v38 = vld [vmem:[#allocation2 + $0x1a4] sm:$0x1]  ;;  %v13857_v41 = vrot.slane %v4683_v1, 9  ;;  %15922 = vmatmul.mubr.msk.bf16.gmra.mrb[8].mxu1 %vm3701_vm9, %v14177_v60 }
 0x333   : > { %v8291_v30 = vrot.slane %v17077_v38, 5  ;;  %v17078_v44 = vld [vmem:[#allocation2 + $0x17c] sm:$0x1]  ;;  %v7976_v52 = vld [vmem:[#allocation2 + $0x1b0] sm:$0xe]  ;;  %15925 = vmatprep.mubr.msk.bf16.mxu1 %vm3701_vm9, %v14178_v39  ;;  %v4994_v59 = vsel %vm18562_vm12, %v13856_v54, %v4993_v19  ;;  %v8288_v27 = vsel %vm18562_vm12, %v14132_v42, %v8287_v8 }
 0x334   : > { %v4997_v7 = vrot.slane %v17078_v44, 5  ;;  %v7975_v25 = vld [vmem:[#allocation2 + $0x1a8] sm:$0xe]  ;;  %v7978_v40 = vld [vmem:[#allocation2 + $0x1c0] sm:$0xe]  ;;  %v5002_v12 = vsel %vm18562_vm12, %v13858_v57, %v5001_v10  ;;  %v5006_v23 = vsel %vm18562_vm12, %v13859_v63, %v5005_v31  ;;  %v14135_v22 = vrot.slane %v7976_v52, 9 }
 0x335   : > { %v4686_v2 = vld [vmem:[#allocation2 + $0x1a0] sm:$0xe]  ;;  %v8292_v58 = vsel %vm18562_vm12, %v14133_v24, %v8291_v30  ;;  %v17079_v47 = vld [vmem:[#allocation2 + $0x1b4] sm:$0x1]  ;;  %v7977_v35 = vld [vmem:[#allocation2 + $0x1b8] sm:$0xe]  ;;  %v13906_v26 = vcombine.low %v5002_v12, %v5006_v23 }
 0x336   : > { %v4998_v28 = vsel %vm18562_vm12, %v13857_v41, %v4997_v7  ;;  %v8299_v6 = vrot.slane %v17079_v47, 5  ;;  %v4689_v62 = vld [vmem:[#allocation2 + $0x1b8] sm:$0xe]  ;;  %v14134_v37 = vrot.slane %v7975_v25, 9  ;;  %v14137_v49 = vrot.slane %v7978_v40, 9 }
 0x337   : > { %v13905_v53 = vcombine.low %v4994_v59, %v4998_v28  ;;  %v17080_v36 = vld [vmem:[#allocation2 + $0x1c4] sm:$0x1]  ;;  %v4687_v46 = vld [vmem:[#allocation2 + $0x1a8] sm:$0xe]  ;;  %v17081_v61 = vld [vmem:[#allocation2 + $0x1ac] sm:$0x1]  ;;  %v14180_v3 = vcombine.low %v8288_v27, %v8292_v58 }
 0x338   : > { %v8307_v56 = vrot.slane %v17080_v36, 5  ;;  %v8295_v51 = vrot.slane %v17081_v61, 5  ;;  %v13860_v11 = vrot.slane %v4686_v2, 9  ;;  %v17082_v60 = vld [vmem:[#allocation2 + $0x1a4] sm:$0x1]  ;;  %v14136_v16 = vrot.slane %v7977_v35, 9 }
 0x339   : > { %v5009_v13 = vrot.slane %v17082_v60, 5  ;;  %v4688_v18 = vld [vmem:[#allocation2 + $0x1b0] sm:$0xe]  ;;  %15722 = vmatmul.mubr.msk.bf16.gmra.mrb[100].mxu0 %vm3701_vm9, %v13905_v53  ;;  %v17083_v39 = vld [vmem:[#allocation2 + $0x1bc] sm:$0x1]  ;;  %v13863_v45 = vrot.slane %v4689_v62, 9  ;;  %v8300_v34 = vsel %vm18562_vm12, %v14135_v22, %v8299_v6 }
 0x33a   : > { %v8303_v0 = vrot.slane %v17083_v39, 5  ;;  %v17084_v15 = vld [vmem:[#allocation2 + $0x1bc] sm:$0x1]  ;;  %15725 = vmatprep.mubr.msk.bf16.mxu0 %vm3701_vm9, %v13906_v26  ;;  %v13861_v33 = vrot.slane %v4687_v46, 9  ;;  %v17085_v29 = vld [vmem:[#allocation2 + $0x1ac] sm:$0x1]  ;;  %15926 = vmatmul.mubr.msk.bf16.gmra.mrb[12].mxu1 %vm3701_vm9, %v14179_v9  ;;  %v8308_v42 = vsel %vm18562_vm12, %v14137_v49, %v8307_v56  ;;  %v8296_v54 = vsel %vm18562_vm12, %v14134_v37, %v8295_v51 }
 0x33b   : > { %v5021_v55 = vrot.slane %v17084_v15, 5  ;;  %v5013_v20 = vrot.slane %v17085_v29, 5  ;;  %v7979_v5 = vld [vmem:[#allocation2 + $0x1c8] sm:$0xe]  ;;  %v7980_v1 = vld [vmem:[#allocation2 + $0x1d0] sm:$0xe]  ;;  %15929 = vmatprep.mubr.msk.bf16.mxu1 %vm3701_vm9, %v14180_v3  ;;  %v5010_v21 = vsel %vm18562_vm12, %v13860_v11, %v5009_v13  ;;  %v14181_v57 = vcombine.low %v8296_v54, %v8300_v34 }
 0x33c   : > { %v13862_v17 = vrot.slane %v4688_v18, 9  ;;  %v17086_v32 = vld [vmem:[#allocation2 + $0x1b4] sm:$0x1]  ;;  %v7982_v19 = vld [vmem:[#allocation2 + $0x1f0] sm:$0xe]  ;;  %v8304_v4 = vsel %vm18562_vm12, %v14136_v16, %v8303_v0  ;;  %v14138_v10 = vrot.slane %v7979_v5, 9 }
 0x33d   : > { %v5017_v8 = vrot.slane %v17086_v32, 5  ;;  %v5022_v63 = vsel %vm18562_vm12, %v13863_v45, %v5021_v55  ;;  %v4690_v43 = vld [vmem:[#allocation2 + $0x1c0] sm:$0xe]  ;;  %v14182_v31 = vcombine.low %v8304_v4, %v8308_v42  ;;  %v5014_v24 = vsel %vm18562_vm12, %v13861_v33, %v5013_v20  ;;  %v17087_v38 = vld [vmem:[#allocation2 + $0x1cc] sm:$0x1] }
 0x33e   : > { %v8311_v30 = vrot.slane %v17087_v38, 5  ;;  %v14139_v41 = vrot.slane %v7980_v1, 9  ;;  %v4692_v44 = vld [vmem:[#allocation2 + $0x1e0] sm:$0xe]  ;;  %v4693_v7 = vld [vmem:[#allocation2 + $0x1e8] sm:$0xe]  ;;  %v13907_v52 = vcombine.low %v5010_v21, %v5014_v24 }
 0x33f   : > { %v17088_v48 = vld [vmem:[#allocation2 + $0x1d4] sm:$0x1]  ;;  %v5018_v25 = vsel %vm18562_vm12, %v13862_v17, %v5017_v8  ;;  %v7981_v40 = vld [vmem:[#allocation2 + $0x1e8] sm:$0xe]  ;;  %v14141_v9 = vrot.slane %v7982_v19, 9  ;;  %v13864_v58 = vrot.slane %v4690_v43, 9 }
 0x340   : > { %v8315_v59 = vrot.slane %v17088_v48, 5  ;;  %v4691_v27 = vld [vmem:[#allocation2 + $0x1c8] sm:$0xe]  ;;  %v13908_v12 = vcombine.low %v5018_v25, %v5022_v63  ;;  %v17089_v23 = vld [vmem:[#allocation2 + $0x1f4] sm:$0x1]  ;;  %v13866_v6 = vrot.slane %v4692_v44, 9  ;;  %v8312_v45 = vsel %vm18562_vm12, %v14138_v10, %v8311_v30 }
 0x341   : > { %v8323_v2 = vrot.slane %v17089_v23, 5  ;;  %v17090_v28 = vld [vmem:[#allocation2 + $0x1c4] sm:$0x1]  ;;  %15726 = vmatmul.mubr.msk.bf16.gmra.mrb[104].mxu0 %vm3701_vm9, %v13907_v52  ;;  %v7984_v47 = vld [vmem:[#allocation2 + $0x200] sm:$0xe]  ;;  %v13867_v53 = vrot.slane %v4693_v7, 9 }
 0x342   : > { %v5025_v22 = vrot.slane %v17090_v28, 5  ;;  %v17091_v35 = vld [vmem:[#allocation2 + $0x1e4] sm:$0x1]  ;;  %v17092_v37 = vld [vmem:[#allocation2 + $0x1ec] sm:$0x1]  ;;  %15729 = vmatprep.mubr.msk.bf16.mxu0 %vm3701_vm9, %v13908_v12  ;;  %v14140_v36 = vrot.slane %v7981_v40, 9  ;;  %15930 = vmatmul.mubr.msk.bf16.gmra.mrb[16].mxu1 %vm3701_vm9, %v14181_v57  ;;  %v8316_v11 = vsel %vm18562_vm12, %v14139_v41, %v8315_v59 }
 0x343   : > { %v5033_v62 = vrot.slane %v17091_v35, 5  ;;  %v5037_v49 = vrot.slane %v17092_v37, 5  ;;  %v17093_v56 = vld [vmem:[#allocation2 + $0x1ec] sm:$0x1]  ;;  %v13865_v61 = vrot.slane %v4691_v27, 9  ;;  %15933 = vmatprep.mubr.msk.bf16.mxu1 %vm3701_vm9, %v14182_v31  ;;  %v8324_v60 = vsel %vm18562_vm12, %v14141_v9, %v8323_v2 }
 0x344   : > { %v8319_v46 = vrot.slane %v17093_v56, 5  ;;  %v17094_v51 = vld [vmem:[#allocation2 + $0x1cc] sm:$0x1]  ;;  %v5026_v13 = vsel %vm18562_vm12, %v13864_v58, %v5025_v22  ;;  %v7983_v18 = vld [vmem:[#allocation2 + $0x1f8] sm:$0xe]  ;;  %v14143_v16 = vrot.slane %v7984_v47, 9  ;;  %v14183_v34 = vcombine.low %v8312_v45, %v8316_v11 }
 0x345   : > { %v5029_v26 = vrot.slane %v17094_v51, 5  ;;  %v17095_v39 = vld [vmem:[#allocation2 + $0x204] sm:$0x1]  ;;  %v5034_v15 = vsel %vm18562_vm12, %v13866_v6, %v5033_v62  ;;  %v5038_v55 = vsel %vm18562_vm12, %v13867_v53, %v5037_v49  ;;  %v4694_v3 = vld [vmem:[#allocation2 + $0x1f0] sm:$0xe]  ;;  %v14142_v17 = vrot.slane %v7983_v18, 9 }
 0x346   : > { %v8331_v0 = vrot.slane %v17095_v39, 5  ;;  %v8320_v33 = vsel %vm18562_vm12, %v14140_v36, %v8319_v46  ;;  %v7985_v20 = vld [vmem:[#allocation2 + $0x208] sm:$0xe]  ;;  %v17096_v32 = vld [vmem:[#allocation2 + $0x1fc] sm:$0x1]  ;;  %v13910_v57 = vcombine.low %v5034_v15, %v5038_v55  ;;  %v13868_v4 = vrot.slane %v4694_v3, 9 }
 0x347   : > { %v5030_v29 = vsel %vm18562_vm12, %v13865_v61, %v5029_v26  ;;  %v4697_v5 = vld [vmem:[#allocation2 + $0x208] sm:$0xe]  ;;  %v14184_v42 = vcombine.low %v8320_v33, %v8324_v60  ;;  %v8327_v8 = vrot.slane %v17096_v32, 5  ;;  %v7986_v54 = vld [vmem:[#allocation2 + $0x210] sm:$0xe]  ;;  %v14144_v31 = vrot.slane %v7985_v20, 9 }
 0x348   : > { %v13909_v1 = vcombine.low %v5026_v13, %v5030_v29  ;;  %v4695_v21 = vld [vmem:[#allocation2 + $0x1f8] sm:$0xe]  ;;  %v18847_v19 = vsel %vm18562_vm12, %v14143_v16, %v8331_v0  ;;  %v17097_v10 = vld [vmem:[#allocation2 + $0x1f4] sm:$0x1]  ;;  %v4696_v43 = vld [vmem:[#allocation2 + $0x200] sm:$0xe] }
 0x349   : > { %v5041_v63 = vrot.slane %v17097_v10, 5  ;;  %v17098_v24 = vld [vmem:[#allocation2 + $0x20c] sm:$0x1]  ;;  %v13871_v30 = vrot.slane %v4697_v5, 9  ;;  %v14145_v7 = vrot.slane %v7986_v54, 9  ;;  %v13869_v59 = vrot.slane %v4695_v21, 9 }
 0x34a   : > { %15730 = vmatmul.mubr.msk.bf16.gmra.mrb[108].mxu0 %vm3701_vm9, %v13909_v1  ;;  %v8335_v38 = vrot.slane %v17098_v24, 5  ;;  %v17099_v41 = vld [vmem:[#allocation2 + $0x20c] sm:$0x1]  ;;  %v17100_v52 = vld [vmem:[#allocation2 + $0x214] sm:$0x1]  ;;  %15934 = vmatmul.mubr.msk.bf16.gmra.mrb[20].mxu1 %vm3701_vm9, %v14183_v34  ;;  %v13870_v12 = vrot.slane %v4696_v43, 9  ;;  %v8328_v58 = vsel %vm18562_vm12, %v14142_v17, %v8327_v8 }
 0x34b   : > { %v5053_v44 = vrot.slane %v17099_v41, 5  ;;  %15733 = vmatprep.mubr.msk.bf16.mxu0 %vm3701_vm9, %v13910_v57  ;;  %v8339_v48 = vrot.slane %v17100_v52, 5  ;;  %v17101_v25 = vld [vmem:[#allocation2 + $0x1fc] sm:$0x1]  ;;  %v7987_v9 = vld [vmem:[#allocation2 + $0x218] sm:$0xe]  ;;  %15937 = vmatprep.mubr.msk.bf16.mxu1 %vm3701_vm9, %v14184_v42  ;;  %v5042_v28 = vsel %vm18562_vm12, %v13868_v4, %v5041_v63  ;;  %v14185_v47 = vcombine.low %v8328_v58, %v18847_v19 }
 0x34c   : > { %v5045_v40 = vrot.slane %v17101_v25, 5  ;;  %v7988_v27 = vld [vmem:[#allocation2 + $0x220] sm:$0xe]  ;;  %v17102_v23 = vld [vmem:[#allocation2 + $0x204] sm:$0x1]  ;;  %v8336_v6 = vsel %vm18562_vm12, %v14144_v31, %v8335_v38  ;;  %v14146_v49 = vrot.slane %v7987_v9, 9 }
 0x34d   : > { %v5049_v2 = vrot.slane %v17102_v23, 5  ;;  %v7990_v22 = vld [vmem:[#allocation2 + $0x240] sm:$0xe]  ;;  %v5054_v35 = vsel %vm18562_vm12, %v13871_v30, %v5053_v44  ;;  %v4698_v62 = vld [vmem:[#allocation2 + $0x210] sm:$0xe]  ;;  %v8340_v53 = vsel %vm18562_vm12, %v14145_v7, %v8339_v48  ;;  %v14147_v36 = vrot.slane %v7988_v27, 9 }
 0x34e   : > { %v5046_v37 = vsel %vm18562_vm12, %v13869_v59, %v5045_v40  ;;  %v4700_v56 = vld [vmem:[#allocation2 + $0x230] sm:$0xe]  ;;  %v4701_v46 = vld [vmem:[#allocation2 + $0x238] sm:$0xe]  ;;  %v17103_v51 = vld [vmem:[#allocation2 + $0x224] sm:$0x1]  ;;  %v14186_v42 = vcombine.low %v8336_v6, %v8340_v53 }
 0x34f   : > { %v13911_v61 = vcombine.low %v5042_v28, %v5046_v37  ;;  %v8347_v26 = vrot.slane %v17103_v51, 5  ;;  %v5050_v11 = vsel %vm18562_vm12, %v13870_v12, %v5049_v2  ;;  %v14149_v60 = vrot.slane %v7990_v22, 9  ;;  %v4699_v13 = vld [vmem:[#allocation2 + $0x218] sm:$0xe]  ;;  %v17104_v39 = vld [vmem:[#allocation2 + $0x244] sm:$0x1] }
 0x350   : > { %v13912_v18 = vcombine.low %v5050_v11, %v5054_v35  ;;  %v7989_v16 = vld [vmem:[#allocation2 + $0x238] sm:$0xe]  ;;  %v8355_v0 = vrot.slane %v17104_v39, 5  ;;  %v13872_v45 = vrot.slane %v4698_v62, 9  ;;  %v17105_v15 = vld [vmem:[#allocation2 + $0x214] sm:$0x1] }
 0x351   : > { %v5057_v55 = vrot.slane %v17105_v15, 5  ;;  %v13874_v3 = vrot.slane %v4700_v56, 9  ;;  %v17106_v34 = vld [vmem:[#allocation2 + $0x234] sm:$0x1]  ;;  %v13875_v29 = vrot.slane %v4701_v46, 9  ;;  %v13873_v32 = vrot.slane %v4699_v13, 9 }
 0x352   : > { %15734 = vmatmul.mubr.msk.bf16.gmra.mrb[112].mxu0 %vm3701_vm9, %v13911_v61  ;;  %v5065_v33 = vrot.slane %v17106_v34, 5  ;;  %v17107_v20 = vld [vmem:[#allocation2 + $0x23c] sm:$0x1]  ;;  %15938 = vmatmul.mubr.msk.bf16.gmra.mrb[24].mxu1 %vm3701_vm9, %v14185_v47  ;;  %v14148_v21 = vrot.slane %v7989_v16, 9  ;;  %v8348_v4 = vsel %vm18562_vm12, %v14147_v36, %v8347_v26  ;;  %v8356_v63 = vsel %vm18562_vm12, %v14149_v60, %v8355_v0  ;;  %v4702_v24 = vld [vmem:[#allocation2 + $0x240] sm:$0xe] }
 0x353   : > { %v5069_v5 = vrot.slane %v17107_v20, 5  ;;  %v17108_v1 = vld [vmem:[#allocation2 + $0x21c] sm:$0x1]  ;;  %15737 = vmatprep.mubr.msk.bf16.mxu0 %vm3701_vm9, %v13912_v18  ;;  %15941 = vmatprep.mubr.msk.bf16.mxu1 %vm3701_vm9, %v14186_v42  ;;  %v5058_v10 = vsel %vm18562_vm12, %v13872_v45, %v5057_v55  ;;  %v7992_v41 = vld [vmem:[#allocation2 + $0x250] sm:$0xe]  ;;  %v13876_v12 = vrot.slane %v4702_v24, 9 }
 0x354   : > { %v8343_v17 = vrot.slane %v17108_v1, 5  ;;  %v17109_v8 = vld [vmem:[#allocation2 + $0x21c] sm:$0x1]  ;;  %v5066_v43 = vsel %vm18562_vm12, %v13874_v3, %v5065_v33  ;;  %v4705_v44 = vld [vmem:[#allocation2 + $0x258] sm:$0xe]  ;;  %v14151_v28 = vrot.slane %v7992_v41, 9 }
 0x355   : > { %v5061_v54 = vrot.slane %v17109_v8, 5  ;;  %v17110_v19 = vld [vmem:[#allocation2 + $0x23c] sm:$0x1]  ;;  %v5070_v31 = vsel %vm18562_vm12, %v13875_v29, %v5069_v5  ;;  %v7994_v59 = vld [vmem:[#allocation2 + $0x260] sm:$0xe]  ;;  %v13879_v35 = vrot.slane %v4705_v44, 9 }
 0x356   : > { %v8351_v57 = vrot.slane %v17110_v19, 5  ;;  %v8344_v38 = vsel %vm18562_vm12, %v14146_v49, %v8343_v17  ;;  %v4703_v25 = vld [vmem:[#allocation2 + $0x248] sm:$0xe]  ;;  %v13914_v27 = vcombine.low %v5066_v43, %v5070_v31  ;;  %v17111_v23 = vld [vmem:[#allocation2 + $0x244] sm:$0x1]  ;;  %v14153_v37 = vrot.slane %v7994_v59, 9 }
 0x357   : > { %v5062_v30 = vsel %vm18562_vm12, %v13873_v32, %v5061_v54  ;;  %v14187_v7 = vcombine.low %v8344_v38, %v8348_v4  ;;  %v7991_v9 = vld [vmem:[#allocation2 + $0x248] sm:$0xe]  ;;  %v5073_v2 = vrot.slane %v17111_v23, 5  ;;  %v4704_v58 = vld [vmem:[#allocation2 + $0x250] sm:$0xe]  ;;  %v13877_v56 = vrot.slane %v4703_v25, 9 }
 0x358   : > { %v8352_v52 = vsel %vm18562_vm12, %v14148_v21, %v8351_v57  ;;  %v13913_v48 = vcombine.low %v5058_v10, %v5062_v30  ;;  %v17112_v22 = vld [vmem:[#allocation2 + $0x254] sm:$0x1]  ;;  %v7993_v6 = vld [vmem:[#allocation2 + $0x258] sm:$0xe]  ;;  %v17113_v62 = vld [vmem:[#allocation2 + $0x25c] sm:$0x1] }
 0x359   : > { %v14188_v40 = vcombine.low %v8352_v52, %v8356_v63  ;;  %v8363_v47 = vrot.slane %v17112_v22, 5  ;;  %v5085_v53 = vrot.slane %v17113_v62, 5  ;;  %v17114_v49 = vld [vmem:[#allocation2 + $0x264] sm:$0x1]  ;;  %v17115_v46 = vld [vmem:[#allocation2 + $0x24c] sm:$0x1]  ;;  %v5074_v45 = vsel %vm18562_vm12, %v13876_v12, %v5073_v2 }
 0x35a   : > { %15738 = vmatmul.mubr.msk.bf16.gmra.mrb[116].mxu0 %vm3701_vm9, %v13913_v48  ;;  %v8371_v36 = vrot.slane %v17114_v49, 5  ;;  %v5077_v61 = vrot.slane %v17115_v46, 5  ;;  %15942 = vmatmul.mubr.msk.bf16.gmra.mrb[28].mxu1 %vm3701_vm9, %v14187_v7  ;;  %v14150_v51 = vrot.slane %v7991_v9, 9  ;;  %v17116_v26 = vld [vmem:[#allocation2 + $0x24c] sm:$0x1]  ;;  %v13878_v60 = vrot.slane %v4704_v58, 9 }
 0x35b   : > { %15741 = vmatprep.mubr.msk.bf16.mxu0 %vm3701_vm9, %v13914_v27  ;;  %v8359_v11 = vrot.slane %v17116_v26, 5  ;;  %v17117_v13 = vld [vmem:[#allocation2 + $0x254] sm:$0x1]  ;;  %15945 = vmatprep.mubr.msk.bf16.mxu1 %vm3701_vm9, %v14188_v40  ;;  %v14152_v16 = vrot.slane %v7993_v6, 9  ;;  %v17118_v39 = vld [vmem:[#allocation2 + $0x25c] sm:$0x1]  ;;  %v5086_v15 = vsel %vm18562_vm12, %v13879_v35, %v5085_v53  ;;  %v8364_v3 = vsel %vm18562_vm12, %v14151_v28, %v8363_v47 }
 0x35c   : > { %v5081_v18 = vrot.slane %v17117_v13, 5  ;;  %v8367_v0 = vrot.slane %v17118_v39, 5  ;;  %v4706_v55 = vld [vmem:[#allocation2 + $0x260] sm:$0xe]  ;;  %v8372_v34 = vsel %vm18562_vm12, %v14153_v37, %v8371_v36  ;;  %v5078_v33 = vsel %vm18562_vm12, %v13877_v56, %v5077_v61  ;;  %v7996_v5 = vld [vmem:[#allocation2 + $0x270] sm:$0xe] }
 0x35d   : > { %v8360_v29 = vsel %vm18562_vm12, %v14150_v51, %v8359_v11  ;;  %v13915_v20 = vcombine.low %v5074_v45, %v5078_v33  ;;  %v4707_v1 = vld [vmem:[#allocation2 + $0x268] sm:$0xe]  ;;  %v13880_v8 = vrot.slane %v4706_v55, 9  ;;  %v17119_v54 = vld [vmem:[#allocation2 + $0x264] sm:$0x1]  ;;  %v14155_v10 = vrot.slane %v7996_v5, 9 }
 0x35e   : > { %v5082_v42 = vsel %vm18562_vm12, %v13878_v60, %v5081_v18  ;;  %v8368_v17 = vsel %vm18562_vm12, %v14152_v16, %v8367_v0  ;;  %v5089_v21 = vrot.slane %v17119_v54, 5  ;;  %v14189_v19 = vcombine.low %v8360_v29, %v8364_v3  ;;  %v7995_v4 = vld [vmem:[#allocation2 + $0x268] sm:$0xe]  ;;  %v17120_v63 = vld [vmem:[#allocation2 + $0x274] sm:$0x1]  ;;  %v16903_v58 = vld [vmem:[%s17280_s20 + $0x78] sm:$0xff]  }
 0x35f   : > { %v13916_v32 = vcombine.low %v5082_v42, %v5086_v15  ;;  %v14190_v57 = vcombine.low %v8368_v17, %v8372_v34  ;;  %v8379_v43 = vrot.slane %v17120_v63, 5  ;;  %v13881_v31 = vrot.slane %v4707_v1, 9  ;;  %v17121_v24 = vld [vmem:[#allocation2 + $0x26c] sm:$0x1]  ;;  %v16876_v40 = vld [vmem:[#allocation2 + $0x8] ss:$8 sps:$4 sm:$0xff]  }
 0x360   : > { %v5093_v38 = vrot.slane %v17121_v24, 5  ;;  %v14154_v30 = vrot.slane %v7995_v4, 9  ;;  %v17122_v41 = vld [vmem:[#allocation2 + $0x26c] sm:$0x1]  ;;  %v5090_v7 = vsel %vm18562_vm12, %v13880_v8, %v5089_v21  ;;  %v16873_v27 = vld [vmem:[#allocation2 + $0x10] ss:$8 sps:$4 sm:$0xff]  }
 0x361   : > { %v8375_v44 = vrot.slane %v17122_v41, 5  ;;  %v8380_v52 = vsel %vm18562_vm12, %v14155_v10, %v8379_v43  ;;  %v16878_v12 = vld [vmem:[#allocation2 + $0x18] ss:$8 sps:$4 sm:$0xff]   ;;  %v16880_v23 = vld [vmem:[#allocation2 + $0x28] ss:$8 sps:$4 sm:$0xff]  }
 0x362   : > { %15742 = vmatmul.mubr.msk.bf16.gmra.mrb[120].mxu0 %vm3701_vm9, %v13915_v20  ;;  %15946 = vmatmul.mubr.msk.bf16.gmra.mrb[32].mxu1 %vm3701_vm9, %v14189_v19  ;;  %v5094_v48 = vsel %vm18562_vm12, %v13881_v31, %v5093_v38  ;;  %v16875_v2 = vld [vmem:[#allocation2 + $0x20] ss:$8 sps:$4 sm:$0xff]   ;;  %v16877_v28 = vld [vmem:[#allocation2 + $0x30] ss:$8 sps:$4 sm:$0xff]  }
 0x363   : > { %15745 = vmatprep.mubr.msk.bf16.mxu0 %vm3701_vm9, %v13916_v32  ;;  %15949 = vmatprep.mubr.msk.bf16.mxu1 %vm3701_vm9, %v14190_v57  ;;  %v13917_v59 = vcombine.low %v5090_v7, %v5094_v48  ;;  %v8376_v25 = vsel %vm18562_vm12, %v14154_v30, %v8375_v44  ;;  %v17123_v22 = vld [vmem:[%s17280_s20 + $0x70] sm:$0xff]   ;;  %v18931_v47 = vld [vmem:[%s17280_s20 + $0x80] sm:$0xff]   ;;  %v9636_v42 = vld [vmem:[#allocation2 + $0x18] sm:$0xf] }
 0x364   : > { %v14191_v9 = vcombine.low %v8376_v25, %v8380_v52  ;;  %v16882_v6 = vld [vmem:[#allocation2 + $0x38] ss:$8 sps:$4 sm:$0xff]   ;;  %v16886_v37 = vld [vmem:[#allocation2 + $0x68] ss:$8 sps:$4 sm:$0xff]   ;;  %v9777_v21 = vshrl.u32 %v9636_v42, 16  ;;  %v9780_v19 = vshll.u32 %v9636_v42, 16 }
 0x365   : > { %v16884_v35 = vld [vmem:[#allocation2 + $0x58] ss:$8 sps:$4 sm:$0xff]   ;;  %v16890_v46 = vld [vmem:[#allocation2 + $0x88] ss:$8 sps:$4 sm:$0xff]   ;;  %v9635_v30 = vld [vmem:[#allocation2 + $0x14] sm:$0x1] }
 0x366   : > { %v16879_v62 = vld [vmem:[#allocation2 + $0x40] ss:$8 sps:$4 sm:$0xff]   ;;  %v16883_v36 = vld [vmem:[#allocation2 + $0x70] ss:$8 sps:$4 sm:$0xff]   ;;  %v9779_v41 = vrot.slane %v9777_v21, 4  ;;  %v9782_v44 = vrot.slane %v9780_v19, 5 }
 0x367   : > { %v16881_v53 = vld [vmem:[#allocation2 + $0x60] ss:$8 sps:$4 sm:$0xff]   ;;  %v16887_v51 = vld [vmem:[#allocation2 + $0x90] ss:$8 sps:$4 sm:$0xff]   ;;  %v9637_v25 = vld [vmem:[#allocation2 + $0x1c] sm:$0x1] }
 0x368   : > { %v16888_v49 = vld [vmem:[#allocation2 + $0x78] ss:$8 sps:$4 sm:$0xff]   ;;  %v16892_v61 = vld [vmem:[#allocation2 + $0xa8] ss:$8 sps:$4 sm:$0xff]  }
 0x369   : > { %v16885_v56 = vld [vmem:[#allocation2 + $0x80] ss:$8 sps:$4 sm:$0xff]   ;;  %v16889_v26 = vld [vmem:[#allocation2 + $0xb0] ss:$8 sps:$4 sm:$0xff]  }
 0x36a   : > { %15746 = vmatmul.mubr.msk.bf16.gmra.mrb[124].mxu0 %vm3701_vm9, %v13917_v59  ;;  %15950 = vmatmul.mubr.msk.bf16.gmra.mrb[36].mxu1 %vm3701_vm9, %v14191_v9  ;;  %v16894_v11 = vld [vmem:[#allocation2 + $0xb8] ss:$8 sps:$4 sm:$0xff]   ;;  %v16896_v60 = vld [vmem:[#allocation2 + $0xc8] ss:$8 sps:$4 sm:$0xff]  }
 0x36b   : > { %15753 = vmatprep.mubr.msk.bf16.mxu0 %vm3701_vm9, %v16876_v40  ;;  %15957 = vmatprep.mubr.msk.bf16.mxu1 %vm3701_vm9, %v16873_v27  ;;  %v16891_v13 = vld [vmem:[#allocation2 + $0xc0] ss:$8 sps:$4 sm:$0xff]   ;;  %v16893_v18 = vld [vmem:[#allocation2 + $0xd0] ss:$8 sps:$4 sm:$0xff]  }
 0x36c   : > { %v16898_v16 = vld [vmem:[#allocation2 + $0xd8] ss:$8 sps:$4 sm:$0xff]   ;;  %v9634_v5 = vld [vmem:[#allocation2 + $0x10] sm:$0xf]  ;;  %v9640_v1 = vld [vmem:[#allocation2 + $0x28] sm:$0xf] }
 0x36d   : > { %v16895_v39 = vld [vmem:[#allocation2 + $0xe0] ss:$8 sps:$4 sm:$0xff]   ;;  %v16899_v45 = vld [vmem:[#allocation2 + $0x110] ss:$8 sps:$4 sm:$0xff]   ;;  %v9763_v17 = vshrl.u32 %v9634_v5, 16  ;;  %v9766_v32 = vshll.u32 %v9634_v5, 16 }
 0x36e   : > { %v16897_v0 = vld [vmem:[#allocation2 + $0x100] ss:$8 sps:$4 sm:$0xff]   ;;  %v16901_v55 = vld [vmem:[#allocation2 + $0x130] ss:$8 sps:$4 sm:$0xff]   ;;  %v9805_v57 = vshrl.u32 %v9640_v1, 16  ;;  %v9808_v4 = vshll.u32 %v9640_v1, 16 }
 0x36f   : > { %v16900_v15 = vld [vmem:[#allocation2 + $0x120] ss:$8 sps:$4 sm:$0xff]   ;;  %v16902_v3 = vld [vmem:[#allocation2 + $0x150] ss:$8 sps:$4 sm:$0xff]   ;;  %v9765_v63 = vrot.slane %v9763_v17, 4  ;;  %v9768_v43 = vrot.slane %v9766_v32, 5 }
 0x370   : > { %v16904_v34 = vld [vmem:[#allocation2 + $0x160] ss:$8 sps:$4 sm:$0xff]   ;;  %v16905_v33 = vld [vmem:[#allocation2 + $0x170] ss:$8 sps:$4 sm:$0xff]   ;;  %v9807_v7 = vrot.slane %v9805_v57, 4  ;;  %v9810_v52 = vrot.slane %v9808_v4, 5 }
 0x371   : > { %v16906_v29 = vld [vmem:[#allocation2 + $0x180] ss:$8 sps:$4 sm:$0xff]   ;;  %v16908_v54 = vld [vmem:[#allocation2 + $0x1b0] ss:$8 sps:$4 sm:$0xff]   ;;  %v9769_v40 = vor.u32 %v9768_v43, %v9765_v63 }
 0x372   : > { %15754 = vmatmul.mubr.msk.bf16.vlgmr.msra.gmra.mrb[64].mxu0 %vm3701_vm9, %v16878_v12  ;;  %15958 = vmatmul.mubr.msk.bf16.vlgmr.msra.gmra.mrb[40].mxu1 %vm3701_vm9, %v16875_v2  ;;  %v16907_v20 = vld [vmem:[#allocation2 + $0x1a0] ss:$8 sps:$4 sm:$0xff]   ;;  %v9642_v38 = vld [vmem:[#allocation2 + $0x30] sm:$0xf]  ;;  %v9644_v12 = vld [vmem:[#allocation2 + $0x38] sm:$0xf] }
 0x373   : > { %15757 = vmatprep.mubr.msk.bf16.mxu0 %vm3701_vm9, %v16880_v23  ;;  %16022 = vmatpush3.bf16.msra.mxu1 %v17123_v22  ;;  %v9638_v8 = vld [vmem:[#allocation2 + $0x20] sm:$0xf]  ;;  %v9819_v48 = vshrl.u32 %v9642_v38, 16  ;;  %v9822_v59 = vshll.u32 %v9642_v38, 16  ;;  %v16910_v23 = vld [vmem:[#allocation2 + $0x1d0] ss:$8 sps:$4 sm:$0xff]  }
 0x374   : > { %15961 = vmatprep.mubr.msk.bf16.mxu1 %vm3701_vm9, %v16877_v28  ;;  %16023 = vmatprep.subr.bf16.mxu1 %v16903_v58  ;;  %v16909_v10 = vld [vmem:[#allocation2 + $0x1c0] ss:$8 sps:$4 sm:$0xff]   ;;  %v9791_v31 = vshrl.u32 %v9638_v8, 16  ;;  %v9794_v24 = vshll.u32 %v9638_v8, 16  ;;  %v16911_v2 = vld [vmem:[#allocation2 + $0x1f0] ss:$8 sps:$4 sm:$0xff]   ;;  %v9783_v28 = vor.u32 %v9782_v44, %v9779_v41 }
 0x375   : > { %v9639_v22 = vld [vmem:[#allocation2 + $0x24] sm:$0x1]  ;;  %v16913_v17 = vld [vmem:[#allocation2 + $0x210] ss:$8 sps:$4 sm:$0xff]   ;;  %v9650_v43 = vld [vmem:[#allocation2 + $0x60] sm:$0xf] }
 0x376   : > { %v9793_v9 = vrot.slane %v9791_v31, 4  ;;  %v9796_v27 = vrot.slane %v9794_v24, 5  ;;  %v9649_v41 = vld [vmem:[#allocation2 + $0x4c] sm:$0x1]  ;;  %v9652_v44 = vld [vmem:[#allocation2 + $0x68] sm:$0xf] }
 0x377   : > { %16024 = vmatpush3.bf16.msra.mxu1 %v16903_v58  ;;  %v9772_v58 = vshll.u32 %v9635_v30, 16 }
 0x378   : > { %16089 = vmatprep.subr.bf16.mxu1 %v18931_v47 }
 0x37a   : > { %15758 = vmatmul.mubr.msk.bf16.gmra.mrb[68].mxu0 %vm3701_vm9, %v16882_v6  ;;  %15962 = vmatmul.mubr.msk.bf16.gmra.mrb[44].mxu1 %vm3701_vm9, %v16879_v62  ;;  %v9641_v6 = vld [vmem:[#allocation2 + $0x2c] sm:$0x1]  ;;  %v9646_v62 = vld [vmem:[#allocation2 + $0x40] sm:$0xf] }
 0x37b   : > { %15761 = vmatprep.mubr.msk.bf16.mxu0 %vm3701_vm9, %v16884_v35  ;;  %15965 = vmatprep.mubr.msk.bf16.mxu1 %vm3701_vm9, %v16881_v53  ;;  %v9811_v35 = vor.u32 %v9810_v52, %v9807_v7  ;;  %v9821_v53 = vrot.slane %v9819_v48, 4 }
 0x382   : > { %15762 = vmatmul.mubr.msk.bf16.gmra.mrb[72].mxu0 %vm3701_vm9, %v16886_v37  ;;  %15966 = vmatmul.mubr.msk.bf16.gmra.mrb[48].mxu1 %vm3701_vm9, %v16883_v36  ;;  %v9824_v37 = vrot.slane %v9822_v59, 5  ;;  %v9836_v36 = vshll.u32 %v9644_v12, 16  ;;  %v9870_v59 = vshll.u32 %v9649_v41, 16 }
 0x383   : > { %15765 = vmatprep.mubr.msk.bf16.mxu0 %vm3701_vm9, %v16888_v49  ;;  %15969 = vmatprep.mubr.msk.bf16.mxu1 %vm3701_vm9, %v16885_v56  ;;  %v9833_v49 = vshrl.u32 %v9644_v12, 16  ;;  %v9648_v56 = vld [vmem:[#allocation2 + $0x48] sm:$0xf]  ;;  %v9878_v12 = vshll.u32 %v9650_v43, 16 }
 0x38a   : > { %15766 = vmatmul.mubr.msk.bf16.gmra.mrb[76].mxu0 %vm3701_vm9, %v16890_v46  ;;  %15970 = vmatmul.mubr.msk.bf16.gmra.mrb[52].mxu1 %vm3701_vm9, %v16887_v51  ;;  %v9770_v46 = vrot.slane %v9769_v40, 4  ;;  %v9797_v51 = vor.u32 %v9796_v27, %v9793_v9  ;;  %v9875_v27 = vshrl.u32 %v9650_v43, 16 }
 0x38b   : > { %15769 = vmatprep.mubr.msk.bf16.mxu0 %vm3701_vm9, %v16892_v61  ;;  %15973 = vmatprep.mubr.msk.bf16.mxu1 %vm3701_vm9, %v16889_v26  ;;  %v9786_v61 = vshll.u32 %v9637_v25, 16  ;;  %v9774_v26 = vrot.slane %v9772_v58, 5  ;;  %v9656_v25 = vld [vmem:[#allocation2 + $0x78] sm:$0xf] }
 0x38c   : > { %v9798_v42 = vrot.slane %v9797_v51, 4 }
 0x38d   : > { %v9788_v5 = vrot.slane %v9786_v61, 5 }
 0x392   : > { %15770 = vmatmul.mubr.msk.bf16.gmra.mrb[80].mxu0 %vm3701_vm9, %v16894_v11  ;;  %15974 = vmatmul.mubr.msk.bf16.gmra.mrb[56].mxu1 %vm3701_vm9, %v16891_v13  ;;  %v9814_v11 = vshll.u32 %v9641_v6, 16  ;;  %v9847_v13 = vshrl.u32 %v9646_v62, 16  ;;  %v9892_v6 = vshll.u32 %v9652_v44, 16 }
 0x393   : > { %15773 = vmatprep.mubr.msk.bf16.mxu0 %vm3701_vm9, %v16896_v60  ;;  %15977 = vmatprep.mubr.msk.bf16.mxu1 %vm3701_vm9, %v16893_v18  ;;  %v9643_v60 = vld [vmem:[#allocation2 + $0x34] sm:$0x1]  ;;  %v9850_v18 = vshll.u32 %v9646_v62, 16 }
 0x394   : > { %v9828_v1 = vshll.u32 %v9643_v60, 16  ;;  %v9816_v32 = vrot.slane %v9814_v11, 5  ;;  %v9849_v21 = vrot.slane %v9847_v13, 4  ;;  %v9877_v60 = vrot.slane %v9875_v27, 4 }
 0x395   : > { %v9852_v19 = vrot.slane %v9850_v18, 5  ;;  %v9880_v13 = vrot.slane %v9878_v12, 5 }
 0x396   : > { %v9830_v52 = vrot.slane %v9828_v1, 5 }
 0x397   : > { %v9853_v9 = vor.u32 %v9852_v19, %v9849_v21  ;;  %v9881_v21 = vor.u32 %v9880_v13, %v9877_v60 }
 0x399   : > { %v9854_v11 = vrot.slane %v9853_v9, 4  ;;  %v16917_v9 = vld [vmem:[#allocation2 + $0x260] ss:$8 sps:$4 sm:$0xff]  }
 0x39a   : > { %15774 = vmatmul.mubr.msk.bf16.gmra.mrb[84].mxu0 %vm3701_vm9, %v16898_v16  ;;  %15978 = vmatmul.mubr.msk.bf16.gmra.mrb[60].mxu1 %vm3701_vm9, %v16895_v39  ;;  %v9784_v16 = vrot.slane %v9783_v28, 4  ;;  %v9800_v39 = vshll.u32 %v9639_v22, 16  ;;  %v9651_v28 = vld [vmem:[#allocation2 + $0x64] sm:$0x1]  ;;  %v9889_v22 = vshrl.u32 %v9652_v44, 16 }
 0x39b   : > { %15981 = vmatprep.mubr.msk.bf16.mxu1 %vm3701_vm9, %v16897_v0  ;;  %v9645_v0 = vld [vmem:[#allocation2 + $0x3c] sm:$0x1]  ;;  %v9884_v18 = vshll.u32 %v9651_v28, 16 }
 0x39c   : > { %v9842_v8 = vshll.u32 %v9645_v0, 16  ;;  %v9789_v57 = vsel %vm17657_vm4, %v9784_v16, %v9788_v5  ;;  %v9802_v4 = vrot.slane %v9800_v39, 5  ;;  %v9660_v16 = vld [vmem:[#allocation2 + $0x88] sm:$0xf]  ;;  %v9653_v0 = vld [vmem:[#allocation2 + $0x6c] sm:$0x1] }
 0x39d   : > { %v9945_v1 = vshrl.u32 %v9660_v16, 16  ;;  %v9898_v19 = vshll.u32 %v9653_v0, 16  ;;  %v9886_v27 = vrot.slane %v9884_v18, 5  ;;  %v9668_v18 = vld [vmem:[#allocation2 + $0xb8] sm:$0xf] }
 0x39e   : > { %v9803_v7 = vsel %vm17657_vm4, %v9798_v42, %v9802_v4  ;;  %v9844_v40 = vrot.slane %v9842_v8, 5 }
 0x39f   : > { %v9900_v12 = vrot.slane %v9898_v19, 5 }
 0x3a2   : > { %15982 = vmatmul.mubr.msk.bf16.gmra.mrb[0].mxu1 %vm3701_vm9, %v16899_v45  ;;  %v9861_v45 = vshrl.u32 %v9648_v56, 16 }
 0x3a3   : > { %15985 = vmatprep.mubr.msk.bf16.mxu1 %vm3701_vm9, %v16900_v15  ;;  %v9864_v15 = vshll.u32 %v9648_v56, 16 }
 0x3a5   : > { %v9866_v63 = vrot.slane %v9864_v15, 5  ;;  %v9894_v15 = vrot.slane %v9892_v6, 5  ;;  %v9882_v6 = vrot.slane %v9881_v21, 4 }
 0x3a7   : > { %v9887_v0 = vsel %vm17657_vm4, %v9882_v6, %v9886_v27  ;;  %v9676_v6 = vld [vmem:[#allocation2 + $0xd8] sm:$0xf] }
 0x3aa   : > { %15986 = vmatmul.mubr.msk.bf16.gmra.mrb[4].mxu1 %vm3701_vm9, %v16901_v55  ;;  %v9812_v55 = vrot.slane %v9811_v35, 4 }
 0x3ab   : > { %15989 = vmatprep.mubr.msk.bf16.mxu1 %vm3701_vm9, %v16902_v3  ;;  %v9825_v3 = vor.u32 %v9824_v37, %v9821_v53  ;;  %v9917_v53 = vshrl.u32 %v9656_v25, 16  ;;  %v9920_v37 = vshll.u32 %v9656_v25, 16  ;;  %v9947_v25 = vrot.slane %v9945_v1, 4 }
 0x3ac   : > { %v9817_v24 = vsel %vm17657_vm4, %v9812_v55, %v9816_v32  ;;  %v9662_v32 = vld [vmem:[#allocation2 + $0x90] sm:$0xf] }
 0x3ad   : > { %v9826_v38 = vrot.slane %v9825_v3, 4  ;;  %v9959_v44 = vshrl.u32 %v9662_v32, 16 }
 0x3af   : > { %v9831_v35 = vsel %vm17657_vm4, %v9826_v38, %v9830_v52  ;;  %v16916_v52 = vld [vmem:[#allocation2 + $0x250] ss:$8 sps:$4 sm:$0xff]  }
 0x3b2   : > { %15990 = vmatmul.mubr.msk.bf16.gmra.mrb[8].mxu1 %vm3701_vm9, %v16904_v34  ;;  %v9835_v34 = vrot.slane %v9833_v49, 4  ;;  %v9658_v49 = vld [vmem:[#allocation2 + $0x80] sm:$0xf] }
 0x3b3   : > { %15993 = vmatprep.mubr.msk.bf16.mxu1 %vm3701_vm9, %v16905_v33  ;;  %v9838_v33 = vrot.slane %v9836_v36, 5  ;;  %v16914_v36 = vld [vmem:[#allocation2 + $0x220] ss:$8 sps:$4 sm:$0xff]   ;;  %v9931_v55 = vshrl.u32 %v9658_v49, 16 }
 0x3b5   : > { %v9839_v30 = vor.u32 %v9838_v33, %v9835_v34  ;;  %v9655_v34 = vld [vmem:[#allocation2 + $0x74] sm:$0x1]  ;;  %v9919_v33 = vrot.slane %v9917_v53, 4  ;;  %v9933_v43 = vrot.slane %v9931_v55, 4  ;;  %v9666_v53 = vld [vmem:[#allocation2 + $0xb0] sm:$0xf] }
 0x3b7   : > { %v9840_v62 = vrot.slane %v9839_v30, 4  ;;  %v9659_v30 = vld [vmem:[#allocation2 + $0x84] sm:$0x1] }
 0x3b9   : > { %v9845_v3 = vsel %vm17657_vm4, %v9840_v62, %v9844_v40  ;;  %v9940_v62 = vshll.u32 %v9659_v30, 16  ;;  %v9667_v30 = vld [vmem:[#allocation2 + $0xb4] sm:$0x1] }
 0x3ba   : > { %15994 = vmatmul.mubr.msk.bf16.gmra.mrb[12].mxu1 %vm3701_vm9, %v16906_v29  ;;  %v16912_v29 = vld [vmem:[#allocation2 + $0x200] ss:$8 sps:$4 sm:$0xff]   ;;  %v18985_v8 = vcombine.low %v9831_v35, %v9845_v3 }
 0x3bb   : > { %15997 = vmatprep.mubr.msk.bf16.mxu1 %vm3701_vm9, %v16907_v20  ;;  %v9775_v20 = vsel %vm17657_vm4, %v9770_v46, %v9774_v26  ;;  %v9872_v46 = vrot.slane %v9870_v59, 5  ;;  %v16915_v26 = vld [vmem:[#allocation2 + $0x240] ss:$8 sps:$4 sm:$0xff]  }
 0x3bc   : > { %v18969_v31 = vcombine.low %v9775_v20, %v9789_v57  ;;  %v9934_v20 = vshll.u32 %v9658_v49, 16  ;;  %v9657_v57 = vld [vmem:[#allocation2 + $0x7c] sm:$0x1] }
 0x3bd   : > { %v9926_v59 = vshll.u32 %v9657_v57, 16  ;;  %v10004_v57 = vshll.u32 %v9668_v18, 16 }
 0x3be   : > { %v9936_v41 = vrot.slane %v9934_v20, 5 }
 0x3c0   : > { %v9937_v49 = vor.u32 %v9936_v41, %v9933_v43 }
 0x3c2   : > { %15998 = vmatmul.mubr.msk.bf16.gmra.mrb[16].mxu1 %vm3701_vm9, %v16908_v54  ;;  %v9647_v54 = vld [vmem:[#allocation2 + $0x44] sm:$0x1] }
 0x3c3   : > { %16001 = vmatprep.mubr.msk.bf16.mxu1 %vm3701_vm9, %v16909_v10  ;;  %v9863_v10 = vrot.slane %v9861_v45, 4  ;;  %v9856_v48 = vshll.u32 %v9647_v54, 16  ;;  %v9891_v45 = vrot.slane %v9889_v22, 4 }
 0x3c5   : > { %v9867_v58 = vor.u32 %v9866_v63, %v9863_v10  ;;  %v9858_v56 = vrot.slane %v9856_v48, 5  ;;  %v9895_v10 = vor.u32 %v9894_v15, %v9891_v45  ;;  %v9912_v63 = vshll.u32 %v9655_v34, 16 }
 0x3c6   : > { %v9938_v34 = vrot.slane %v9937_v49, 4 }
 0x3c7   : > { %v9868_v39 = vrot.slane %v9867_v58, 4  ;;  %v9859_v54 = vsel %vm17657_vm4, %v9854_v11, %v9858_v56  ;;  %v9896_v35 = vrot.slane %v9895_v10, 4  ;;  %v9961_v56 = vrot.slane %v9959_v44, 4  ;;  %v16918_v10 = vld [vmem:[#allocation2 + $0x270] ss:$8 sps:$4 sm:$0xff]  }
 0x3c9   : > { %v9873_v4 = vsel %vm17657_vm4, %v9868_v39, %v9872_v46  ;;  %v9990_v39 = vshll.u32 %v9666_v53, 16  ;;  %v9901_v45 = vsel %vm17657_vm4, %v9896_v35, %v9900_v12 }
 0x3ca   : > { %16002 = vmatmul.mubr.msk.bf16.gmra.mrb[20].mxu1 %vm3701_vm9, %v16910_v23  ;;  %v9654_v23 = vld [vmem:[#allocation2 + $0x70] sm:$0xf]  ;;  %v18991_v22 = vcombine.low %v9859_v54, %v9873_v4  ;;  %v9672_v4 = vld [vmem:[#allocation2 + $0xc8] sm:$0xf] }
 0x3cb   : > { %16005 = vmatprep.mubr.msk.bf16.mxu1 %vm3701_vm9, %v16911_v2  ;;  %v18977_v2 = vcombine.low %v9803_v7, %v9817_v24  ;;  %v9903_v61 = vshrl.u32 %v9654_v23, 16  ;;  %v9906_v51 = vshll.u32 %v9654_v23, 16  ;;  %v9664_v24 = vld [vmem:[#allocation2 + $0x98] sm:$0xf]  ;;  %v9962_v7 = vshll.u32 %v9662_v32, 16 }
 0x3cc   : > { %v9661_v23 = vld [vmem:[#allocation2 + $0x8c] sm:$0x1]  ;;  %v9973_v58 = vshrl.u32 %v9664_v24, 16  ;;  %v9976_v28 = vshll.u32 %v9664_v24, 16  ;;  %v9670_v32 = vld [vmem:[#allocation2 + $0xc0] sm:$0xf] }
 0x3cd   : > { %v9905_v5 = vrot.slane %v9903_v61, 4  ;;  %v9908_v42 = vrot.slane %v9906_v51, 5  ;;  %v9964_v46 = vrot.slane %v9962_v7, 5  ;;  %v9914_v51 = vrot.slane %v9912_v63, 5 }
 0x3ce   : > { %v9975_v60 = vrot.slane %v9973_v58, 4  ;;  %v9978_v13 = vrot.slane %v9976_v28, 5  ;;  %v9954_v15 = vshll.u32 %v9661_v23, 16  ;;  %v9992_v19 = vrot.slane %v9990_v39, 5 }
 0x3cf   : > { %v9909_v48 = vor.u32 %v9908_v42, %v9905_v5  ;;  %v9965_v20 = vor.u32 %v9964_v46, %v9961_v56  ;;  %v19003_v63 = vcombine.low %v9887_v0, %v9901_v45  ;;  %v10015_v7 = vshrl.u32 %v9670_v32, 16  ;;  %v9673_v0 = vld [vmem:[#allocation2 + $0xcc] sm:$0x1] }
 0x3d0   : > { %v9979_v54 = vor.u32 %v9978_v13, %v9975_v60  ;;  %v9956_v24 = vrot.slane %v9954_v15, 5  ;;  %v10032_v27 = vshll.u32 %v9672_v4, 16  ;;  %v10006_v28 = vrot.slane %v10004_v57, 5  ;;  %v9680_v13 = vld [vmem:[#allocation2 + $0xe8] sm:$0xf] }
 0x3d1   : > { %v9910_v61 = vrot.slane %v9909_v48, 4  ;;  %v9966_v44 = vrot.slane %v9965_v20, 4  ;;  %v9674_v48 = vld [vmem:[#allocation2 + $0xd0] sm:$0xf]  ;;  %v10017_v46 = vrot.slane %v10015_v7, 4  ;;  %v10060_v60 = vshll.u32 %v9676_v6, 16 }
 0x3d2   : > { %16006 = vmatmul.mubr.msk.bf16.gmra.mrb[24].mxu1 %vm3701_vm9, %v16912_v29  ;;  %v9922_v29 = vrot.slane %v9920_v37, 5  ;;  %v9980_v12 = vrot.slane %v9979_v54, 4  ;;  %v10046_v49 = vshll.u32 %v9674_v48, 16 }
 0x3d3   : > { %16009 = vmatprep.mubr.msk.bf16.mxu1 %vm3701_vm9, %v16913_v17  ;;  %v9948_v17 = vshll.u32 %v9660_v16, 16  ;;  %v9987_v16 = vshrl.u32 %v9666_v53, 16  ;;  %v9915_v5 = vsel %vm17657_vm4, %v9910_v61, %v9914_v51  ;;  %v9671_v53 = vld [vmem:[#allocation2 + $0xc4] sm:$0x1]  ;;  %v9678_v51 = vld [vmem:[#allocation2 + $0xe0] sm:$0xf] }
 0x3d4   : > { %v9923_v38 = vor.u32 %v9922_v29, %v9919_v33  ;;  %v9942_v33 = vrot.slane %v9940_v62, 5  ;;  %v9665_v29 = vld [vmem:[#allocation2 + $0x9c] sm:$0x1]  ;;  %v9996_v62 = vshll.u32 %v9667_v30, 16  ;;  %v10024_v45 = vshll.u32 %v9671_v53, 16 }
 0x3d5   : > { %v9950_v40 = vrot.slane %v9948_v17, 5  ;;  %v9982_v1 = vshll.u32 %v9665_v29, 16  ;;  %v10001_v17 = vshrl.u32 %v9668_v18, 16  ;;  %v9989_v21 = vrot.slane %v9987_v16, 4  ;;  %v9679_v30 = vld [vmem:[#allocation2 + $0xe4] sm:$0x1] }
 0x3d6   : > { %v9924_v37 = vrot.slane %v9923_v38, 4  ;;  %v9943_v41 = vsel %vm17657_vm4, %v9938_v34, %v9942_v33  ;;  %v10074_v34 = vshll.u32 %v9678_v51, 16  ;;  %v16920_v33 = vld [vmem:[%s17280_s20 + $0x88] sm:$0xff]   ;;  %v9998_v29 = vrot.slane %v9996_v62, 5 }
 0x3d7   : > { %v9951_v11 = vor.u32 %v9950_v40, %v9947_v25  ;;  %v9984_v25 = vrot.slane %v9982_v1, 5  ;;  %v9669_v40 = vld [vmem:[#allocation2 + $0xbc] sm:$0x1]  ;;  %v9993_v23 = vor.u32 %v9992_v19, %v9989_v21  ;;  %v10003_v58 = vrot.slane %v10001_v17, 4  ;;  %v9682_v19 = vld [vmem:[#allocation2 + $0x100] sm:$0xf] }
 0x3d8   : > { %v10010_v56 = vshll.u32 %v9669_v40, 16  ;;  %v10062_v21 = vrot.slane %v10060_v60, 5  ;;  %v10099_v40 = vshrl.u32 %v9682_v19, 16  ;;  %v9681_v53 = vld [vmem:[#allocation2 + $0xec] sm:$0x1] }
 0x3d9   : > { %v9952_v42 = vrot.slane %v9951_v11, 4  ;;  %v10057_v11 = vshrl.u32 %v9676_v6, 16  ;;  %v9985_v18 = vsel %vm17657_vm4, %v9980_v12, %v9984_v25  ;;  %v19020_v16 = vrot.slane %v9993_v23, 4 }
 0x3da   : > { %16010 = vmatmul.mubr.msk.bf16.gmra.mrb[28].mxu1 %vm3701_vm9, %v16914_v36  ;;  %v9663_v36 = vld [vmem:[#allocation2 + $0x94] sm:$0x1]  ;;  %v10007_v39 = vor.u32 %v10006_v28, %v10003_v58  ;;  %v10012_v20 = vrot.slane %v10010_v56, 5 }
 0x3db   : > { %16013 = vmatprep.mubr.msk.bf16.mxu1 %vm3701_vm9, %v16915_v26  ;;  %v9928_v26 = vrot.slane %v9926_v59, 5  ;;  %v9968_v55 = vshll.u32 %v9663_v36, 16  ;;  %v9957_v59 = vsel %vm17657_vm4, %v9952_v42, %v9956_v24  ;;  %v10088_v42 = vshll.u32 %v9680_v13, 16 }
 0x3dc   : > { %v19014_v35 = vcombine.low %v9943_v41, %v9957_v59  ;;  %v10059_v54 = vrot.slane %v10057_v11, 4  ;;  %v19032_v24 = vrot.slane %v10024_v45, 5  ;;  %v10101_v11 = vrot.slane %v10099_v40, 4  ;;  %v9688_v45 = vld [vmem:[#allocation2 + $0x118] sm:$0xf] }
 0x3dd   : > { %v9929_v3 = vsel %vm17657_vm4, %v9924_v37, %v9928_v26  ;;  %v9970_v38 = vrot.slane %v9968_v55, 5  ;;  %v10043_v37 = vshrl.u32 %v9674_v48, 16  ;;  %v10034_v26 = vrot.slane %v10032_v27, 5 }
 0x3de   : > { %v19005_v43 = vcombine.low %v9915_v5, %v9929_v3  ;;  %v10048_v55 = vrot.slane %v10046_v49, 5  ;;  %v10071_v3 = vshrl.u32 %v9678_v51, 16  ;;  %v10085_v5 = vshrl.u32 %v9680_v13, 16  ;;  %v9686_v51 = vld [vmem:[#allocation2 + $0x110] sm:$0xf] }
 0x3df   : > { %v9971_v36 = vsel %vm17657_vm4, %v9966_v44, %v9970_v38  ;;  %v10045_v15 = vrot.slane %v10043_v37, 4  ;;  %v10038_v38 = vshll.u32 %v9673_v0, 16  ;;  %v9999_v44 = vsel %vm17657_vm4, %v19020_v16, %v9998_v29  ;;  %v9683_v0 = vld [vmem:[#allocation2 + $0x104] sm:$0x1] }
 0x3e0   : > { %v10073_v7 = vrot.slane %v10071_v3, 4  ;;  %v10087_v59 = vrot.slane %v10085_v5, 4  ;;  %v10090_v25 = vrot.slane %v10088_v42, 5  ;;  %v10063_v28 = vor.u32 %v10062_v21, %v10059_v54 }
 0x3e1   : > { %v10040_v62 = vrot.slane %v10038_v38, 5 }
 0x3e2   : > { %16014 = vmatmul.mubr.msk.bf16.gmra.mrb[32].mxu1 %vm3701_vm9, %v16916_v52  ;;  %v10018_v52 = vshll.u32 %v9670_v32, 16  ;;  %v9675_v32 = vld [vmem:[#allocation2 + $0xd4] sm:$0x1] }
 0x3e3   : > { %16017 = vmatprep.mubr.msk.bf16.mxu1 %vm3701_vm9, %v16917_v9  ;;  %v10029_v9 = vshrl.u32 %v9672_v4, 16  ;;  %v19030_v4 = vcombine.low %v9971_v36, %v9985_v18  ;;  %v10052_v58 = vshll.u32 %v9675_v32, 16 }
 0x3e4   : > { %v10020_v61 = vrot.slane %v10018_v52, 5  ;;  %v10076_v52 = vrot.slane %v10074_v34, 5  ;;  %v10127_v34 = vshrl.u32 %v9686_v51, 16 }
 0x3e5   : > { %v10054_v16 = vrot.slane %v10052_v58, 5 }
 0x3e6   : > { %v10021_v1 = vor.u32 %v10020_v61, %v10017_v46  ;;  %v10077_v46 = vor.u32 %v10076_v52, %v10073_v7  ;;  %v10080_v61 = vshll.u32 %v9679_v30, 16  ;;  %v9687_v30 = vld [vmem:[#allocation2 + $0x114] sm:$0x1]  ;;  %v10129_v52 = vrot.slane %v10127_v34, 4 }
 0x3e8   : > { %v10022_v12 = vrot.slane %v10021_v1, 4  ;;  %v10078_v5 = vrot.slane %v10077_v46, 4  ;;  %v10082_v42 = vrot.slane %v10080_v61, 5  ;;  %v9685_v1 = vld [vmem:[#allocation2 + $0x10c] sm:$0x1] }
 0x3ea   : > { %16018 = vmatmul.mubr.msk.bf16.gmra.mrb[36].mxu1 %vm3701_vm9, %v16918_v10  ;;  %v10008_v10 = vrot.slane %v10007_v39, 4  ;;  %v10064_v39 = vrot.slane %v10063_v28, 4  ;;  %v10083_v40 = vsel %vm17657_vm4, %v10078_v5, %v10082_v42 }
 0x3eb   : > { %16025 = vmatprep.mubr.msk.bf16.mxu1 %vm3701_vm9, %v18969_v31  ;;  %v10031_v31 = vrot.slane %v10029_v9, 4  ;;  %v10102_v9 = vshll.u32 %v9682_v19, 16  ;;  %v9690_v19 = vld [vmem:[#allocation2 + $0x120] sm:$0xf] }
 0x3ec   : > { %v10013_v6 = vsel %vm17657_vm4, %v10008_v10, %v10012_v20 }
 0x3ed   : > { %v10035_v17 = vor.u32 %v10034_v26, %v10031_v31  ;;  %v10091_v31 = vor.u32 %v10090_v25, %v10087_v59  ;;  %v10094_v26 = vshll.u32 %v9681_v53, 16  ;;  %v10104_v60 = vrot.slane %v10102_v9, 5  ;;  %v9692_v59 = vld [vmem:[#allocation2 + $0x128] sm:$0xf]  ;;  %v9689_v9 = vld [vmem:[#allocation2 + $0x11c] sm:$0x1] }
 0x3ee   : > { %v19047_v13 = vcombine.low %v9999_v44, %v10013_v6  ;;  %v10144_v44 = vshll.u32 %v9688_v45, 16  ;;  %v10122_v6 = vshll.u32 %v9685_v1, 16  ;;  %v9694_v53 = vld [vmem:[#allocation2 + $0x130] sm:$0xf]  ;;  %v10172_v46 = vshll.u32 %v9692_v59, 16 }
 0x3ef   : > { %v10036_v23 = vrot.slane %v10035_v17, 4  ;;  %v10092_v32 = vrot.slane %v10091_v31, 4  ;;  %v10096_v54 = vrot.slane %v10094_v26, 5  ;;  %v10105_v21 = vor.u32 %v10104_v60, %v10101_v11  ;;  %v9696_v60 = vld [vmem:[#allocation2 + $0x138] sm:$0xf] }
 0x3f0   : > { %v10150_v11 = vshll.u32 %v9689_v9, 16  ;;  %v10174_v1 = vrot.slane %v10172_v46, 5  ;;  %v9702_v9 = vld [vmem:[#allocation2 + $0x160] sm:$0xf] }
 0x3f1   : > { %v10041_v18 = vsel %vm17657_vm4, %v10036_v23, %v10040_v62  ;;  %v10158_v23 = vshll.u32 %v9690_v19, 16  ;;  %v10097_v58 = vsel %vm17657_vm4, %v10092_v32, %v10096_v54  ;;  %v10106_v28 = vrot.slane %v10105_v21, 4  ;;  %v9695_v21 = vld [vmem:[#allocation2 + $0x134] sm:$0x1] }
 0x3f2   : > { %16026 = vmatmul.mubr.msk.bf16.vlgmr.msra.gmra.mrb[40].mxu1 %vm3701_vm9, %v18977_v2  ;;  %v19028_v57 = vpop.f32.mrb[88].mxu0  ;;  %v9677_v2 = vld [vmem:[#allocation2 + $0xdc] sm:$0x1]  ;;  %v10136_v62 = vshll.u32 %v9687_v30, 16  ;;  %v10152_v54 = vrot.slane %v10150_v11, 5 }
 0x3f3   : > { %16090 = vmatpush3.bf16.msra.mxu1 %v18931_v47  ;;  %16029 = vmatprep.mubr.msk.bf16.mxu1 %vm3701_vm9, %v18985_v8  ;;  %19979 = vst [vmem:[#allocation3_spill] sm:$0xff] %v19028_v57  ;;  %v19034_v41 = vpop.f32.mrb[89].mxu0  ;;  %v10049_v47 = vor.u32 %v10048_v55, %v10045_v15  ;;  %v9684_v8 = vld [vmem:[#allocation2 + $0x108] sm:$0xf]  ;;  %v10066_v56 = vshll.u32 %v9677_v2, 16  ;;  %v10108_v2 = vshll.u32 %v9683_v0, 16 }
 0x3f4   : > { %19980 = vst [vmem:[#allocation4_spill] sm:$0xff] %v19034_v41  ;;  %16091 = vmatprep.subr.bf16.mxu1 %v16920_v33  ;;  %v19039_v48 = vpop.f32.mrb[90].mxu0  ;;  %v10113_v37 = vshrl.u32 %v9684_v8, 16  ;;  %v10116_v49 = vshll.u32 %v9684_v8, 16  ;;  %v10186_v0 = vshll.u32 %v9694_v53, 16  ;;  %v19088_v34 = vrot.slane %v10136_v62, 5 }
 0x3f5   : > { %19981 = vst [vmem:[#allocation5_spill] sm:$0xff] %v19039_v48  ;;  %v19041_v27 = vpop.f32.mrb[91].mxu0  ;;  %v10050_v36 = vrot.slane %v10049_v47, 4  ;;  %v10068_v20 = vrot.slane %v10066_v56, 5  ;;  %v10169_v56 = vshrl.u32 %v9692_v59, 16 }
 0x3f6   : > { %19982 = vst [vmem:[#allocation6_spill] sm:$0xff] %v19041_v27  ;;  %v10115_v55 = vrot.slane %v10113_v37, 4  ;;  %v10118_v3 = vrot.slane %v10116_v49, 5  ;;  %v10146_v49 = vrot.slane %v10144_v44, 5  ;;  %v9752_v27 = vld [vmem:[#allocation2 + $0x258] sm:$0xf] }
 0x3f7   : > { %16092 = vmatpush3.bf16.msra.mxu1 %v16920_v33  ;;  %v10130_v33 = vshll.u32 %v9686_v51, 16  ;;  %v10069_v47 = vsel %vm17657_vm4, %v10064_v39, %v10068_v20  ;;  %v10110_v51 = vrot.slane %v10108_v2, 5  ;;  %v10160_v39 = vrot.slane %v10158_v23, 5  ;;  %v9758_v41 = vld [vmem:[#allocation2 + $0x270] sm:$0xf] }
 0x3f8   : > { %v10119_v7 = vor.u32 %v10118_v3, %v10115_v55  ;;  %v19086_v55 = vcombine.low %v10083_v40, %v10097_v58  ;;  %v10124_v3 = vrot.slane %v10122_v6, 5  ;;  %v10171_v42 = vrot.slane %v10169_v56, 4  ;;  %v9704_v6 = vld [vmem:[#allocation2 + $0x168] sm:$0xf] }
 0x3f9   : > { %v10132_v8 = vrot.slane %v10130_v33, 5  ;;  %v10111_v20 = vsel %vm17657_vm4, %v10106_v28, %v10110_v51  ;;  %v10200_v2 = vshll.u32 %v9696_v60, 16  ;;  %v10192_v28 = vshll.u32 %v9695_v21, 16  ;;  %v9697_v51 = vld [vmem:[#allocation2 + $0x13c] sm:$0x1] }
 0x3fa   : > { %16030 = vmatmul.mubr.msk.bf16.gmra.mrb[44].mxu1 %vm3701_vm9, %v18991_v22  ;;  %v10027_v22 = vsel %vm17657_vm4, %v10022_v12, %v19032_v24  ;;  %v10141_v24 = vshrl.u32 %v9688_v45, 16  ;;  %v10155_v12 = vshrl.u32 %v9690_v19, 16  ;;  %v10120_v31 = vrot.slane %v10119_v7, 4  ;;  %v9700_v7 = vld [vmem:[#allocation2 + $0x158] sm:$0xf] }
 0x3fb   : > { %16033 = vmatprep.mubr.msk.bf16.mxu1 %vm3701_vm9, %v19003_v63  ;;  %v10055_v63 = vsel %vm17657_vm4, %v10050_v36, %v10054_v16  ;;  %v19066_v38 = vcombine.low %v10027_v22, %v10041_v18  ;;  %v9691_v36 = vld [vmem:[#allocation2 + $0x124] sm:$0x1]  ;;  %v10133_v26 = vor.u32 %v10132_v8, %v10129_v52  ;;  %v10197_v19 = vshrl.u32 %v9696_v60, 16 }
 0x3fc   : > { %v19053_v15 = vpop.f32.mrb[92].mxu0  ;;  %v19070_v25 = vcombine.low %v10055_v63, %v10069_v47  ;;  %v10143_v37 = vrot.slane %v10141_v24, 4  ;;  %v10157_v16 = vrot.slane %v10155_v12, 4  ;;  %v10164_v33 = vshll.u32 %v9691_v36, 16  ;;  %v9698_v63 = vld [vmem:[#allocation2 + $0x150] sm:$0xf] }
 0x3fd   : > { %19983 = vst [vmem:[#allocation7_spill] sm:$0xff] %v19053_v15  ;;  %v19055_v29 = vpop.f32.mrb[93].mxu0  ;;  %v10134_v32 = vrot.slane %v10133_v26, 4  ;;  %v10125_v30 = vsel %vm17657_vm4, %v10120_v31, %v10124_v3  ;;  %v10188_v47 = vrot.slane %v10186_v0, 5  ;;  %v10211_v59 = vshrl.u32 %v9698_v63, 16 }
 0x3fe   : > { %19984 = vst [vmem:[#allocation8_spill] sm:$0xff] %v19055_v29  ;;  %v19060_v17 = vpop.f32.mrb[94].mxu0  ;;  %v10147_v5 = vor.u32 %v10146_v49, %v10143_v37  ;;  %v10161_v24 = vor.u32 %v10160_v39, %v10157_v16  ;;  %v19096_v52 = vcombine.low %v10111_v20, %v10125_v30  ;;  %v10166_v8 = vrot.slane %v10164_v33, 5 }
 0x3ff   : > { %19985 = vst [vmem:[#allocation9_spill] sm:$0xff] %v19060_v17  ;;  %v19064_v10 = vpop.f32.mrb[95].mxu0  ;;  %v10214_v40 = vshll.u32 %v9698_v63, 16  ;;  %v10175_v23 = vor.u32 %v10174_v1, %v10171_v42  ;;  %v10202_v37 = vrot.slane %v10200_v2, 5  ;;  %v10225_v49 = vshrl.u32 %v9700_v7, 16 }
 0x400   : > { %19986 = vst [vmem:[#allocation10_spill] sm:$0xff] %v19064_v10  ;;  %v10148_v12 = vrot.slane %v10147_v5, 4  ;;  %v10228_v36 = vshll.u32 %v9700_v7, 16  ;;  %v10162_v46 = vrot.slane %v10161_v24, 4  ;;  %v10242_v26 = vshll.u32 %v9702_v9, 16 }
 0x401   : > { %v10213_v60 = vrot.slane %v10211_v59, 4  ;;  %v10216_v16 = vrot.slane %v10214_v40, 5  ;;  %v10253_v39 = vshrl.u32 %v9704_v6, 16  ;;  %v10139_v0 = vsel %vm17657_vm4, %v10134_v32, %v19088_v34  ;;  %v9699_v42 = vld [vmem:[#allocation2 + $0x154] sm:$0x1] }
 0x402   : > { %16034 = vmatmul.mubr.msk.bf16.gmra.mrb[48].mxu1 %vm3701_vm9, %v19005_v43  ;;  %v10183_v43 = vshrl.u32 %v9694_v53, 16  ;;  %v10199_v53 = vrot.slane %v10197_v19, 4  ;;  %v10176_v3 = vrot.slane %v10175_v23, 4  ;;  %v10206_v33 = vshll.u32 %v9697_v51, 16  ;;  %v9701_v2 = vld [vmem:[#allocation2 + $0x15c] sm:$0x1] }
 0x403   : > { %16037 = vmatprep.mubr.msk.bf16.mxu1 %vm3701_vm9, %v19014_v35  ;;  %v9693_v35 = vld [vmem:[#allocation2 + $0x12c] sm:$0x1]  ;;  %v10153_v20 = vsel %vm17657_vm4, %v10148_v12, %v10152_v54  ;;  %v10227_v1 = vrot.slane %v10225_v49, 4  ;;  %v10230_v63 = vrot.slane %v10228_v36, 5  ;;  %v10167_v21 = vsel %vm17657_vm4, %v10162_v46, %v10166_v8  ;;  %v9706_v7 = vld [vmem:[#allocation2 + $0x170] sm:$0xf] }
 0x404   : > { %v19080_v61 = vpop.f32.mrb[96].mxu0  ;;  %v10185_v44 = vrot.slane %v10183_v43, 4  ;;  %v10178_v58 = vshll.u32 %v9693_v35, 16  ;;  %v10256_v43 = vshll.u32 %v9704_v6, 16  ;;  %v10203_v5 = vor.u32 %v10202_v37, %v10199_v53  ;;  %v9708_v12 = vld [vmem:[#allocation2 + $0x178] sm:$0xf] }
 0x405   : > { %19987 = vst [vmem:[#allocation11_spill] sm:$0xff] %v19080_v61  ;;  %v19082_v18 = vpop.f32.mrb[97].mxu0  ;;  %v10244_v24 = vrot.slane %v10242_v26, 5  ;;  %v10217_v34 = vor.u32 %v10216_v16, %v10213_v60  ;;  %v10255_v32 = vrot.slane %v10253_v39, 4  ;;  %v19121_v54 = vcombine.low %v10139_v0, %v10153_v20  ;;  %v9705_v36 = vld [vmem:[#allocation2 + $0x16c] sm:$0x1] }
 0x406   : > { %19988 = vst [vmem:[#allocation12_spill] sm:$0xff] %v19082_v18  ;;  %v19084_v45 = vpop.f32.mrb[98].mxu0  ;;  %v10189_v31 = vor.u32 %v10188_v47, %v10185_v44  ;;  %v10180_v35 = vrot.slane %v10178_v58, 5  ;;  %v10194_v44 = vrot.slane %v10192_v28, 5  ;;  %v10258_v47 = vrot.slane %v10256_v43, 5 }
 0x407   : > { %19989 = vst [vmem:[#allocation13_spill] sm:$0xff] %v19084_v45  ;;  %v19090_v22 = vpop.f32.mrb[99].mxu0  ;;  %v10208_v40 = vrot.slane %v10206_v33, 5  ;;  %v10220_v8 = vshll.u32 %v9699_v42, 16  ;;  %v10204_v28 = vrot.slane %v10203_v5, 4  ;;  %v10231_v6 = vor.u32 %v10230_v63, %v10227_v1 }
 0x408   : > { %19990 = vst [vmem:[#allocation14_spill] sm:$0xff] %v19090_v22  ;;  %v19117_v19 = vrot.slane %v10189_v31, 4  ;;  %v10181_v59 = vsel %vm17657_vm4, %v10176_v3, %v10180_v35  ;;  %v10234_v53 = vshll.u32 %v9701_v2, 16  ;;  %v10267_v51 = vshrl.u32 %v9706_v7, 16  ;;  %v9707_v16 = vld [vmem:[#allocation2 + $0x174] sm:$0x1] }
 0x409   : > { %v19129_v58 = vcombine.low %v10167_v21, %v10181_v59  ;;  %v10270_v31 = vshll.u32 %v9706_v7, 16  ;;  %v10259_v60 = vor.u32 %v10258_v47, %v10255_v32  ;;  %v10281_v39 = vshrl.u32 %v9708_v12, 16  ;;  %v9712_v63 = vld [vmem:[#allocation2 + $0x188] sm:$0xf]  ;;  %v9714_v59 = vld [vmem:[#allocation2 + $0x1a0] sm:$0xf] }
 0x40a   : > { %16038 = vmatmul.mubr.msk.bf16.gmra.mrb[52].mxu1 %vm3701_vm9, %v19030_v4  ;;  %v10239_v4 = vshrl.u32 %v9702_v9, 16  ;;  %v9703_v9 = vld [vmem:[#allocation2 + $0x164] sm:$0x1]  ;;  %v10195_v49 = vsel %vm17657_vm4, %v19117_v19, %v10194_v44  ;;  %v10222_v0 = vrot.slane %v10220_v8, 5  ;;  %v10284_v3 = vshll.u32 %v9708_v12, 16 }
 0x40b   : > { %16041 = vmatprep.mubr.msk.bf16.mxu1 %vm3701_vm9, %v19047_v13  ;;  %v10248_v26 = vshll.u32 %v9703_v9, 16  ;;  %v10209_v20 = vsel %vm17657_vm4, %v10204_v28, %v10208_v40  ;;  %v10232_v5 = vrot.slane %v10231_v6, 4  ;;  %v10236_v42 = vrot.slane %v10234_v53, 5  ;;  %v19144_v19 = vld [vmem:[#allocation2 + $0x17c] sm:$0x1] }
 0x40c   : > { %v19102_v62 = vpop.f32.mrb[100].mxu0  ;;  %v10241_v30 = vrot.slane %v10239_v4, 4  ;;  %v10262_v1 = vshll.u32 %v9705_v36, 16  ;;  %v19146_v2 = vrot.slane %v10267_v51, 4  ;;  %v19150_v44 = vld [vmem:[#allocation2 + $0x184] sm:$0x1] }
 0x40d   : > { %19991 = vst [vmem:[#allocation15_spill] sm:$0xff] %v19102_v62  ;;  %v19104_v56 = vpop.f32.mrb[101].mxu0  ;;  %v19154_v32 = vrot.slane %v10248_v26, 5  ;;  %v19156_v47 = vrot.slane %v10259_v60, 4  ;;  %v19158_v7 = vrot.slane %v10281_v39, 4  ;;  %v19162_v40 = vrot.slane %v10284_v3, 5 }
 0x40e   : > { %19992 = vst [vmem:[#allocation16_spill] sm:$0xff] %v19104_v56  ;;  %v19106_v11 = vpop.f32.mrb[102].mxu0  ;;  %v10245_v46 = vor.u32 %v10244_v24, %v10241_v30  ;;  %v19148_v30 = vrot.slane %v10270_v31, 5  ;;  %v10276_v24 = vshll.u32 %v9707_v16, 16  ;;  %v10309_v12 = vshrl.u32 %v9712_v63, 16 }
 0x40f   : > { %19993 = vst [vmem:[#allocation17_spill] sm:$0xff] %v19106_v11  ;;  %v19108_v13 = vpop.f32.mrb[103].mxu0  ;;  %v9716_v28 = vld [vmem:[#allocation2 + $0x1a8] sm:$0xf]  ;;  %v19168_v6 = vld [vmem:[#allocation2 + $0x264] sm:$0x1] }
 0x410   : > { %19994 = vst [vmem:[#allocation18_spill] sm:$0xff] %v19108_v13  ;;  %v19142_v21 = vrot.slane %v10245_v46, 4  ;;  %v19178_v36 = vrot.slane %v10262_v1, 5  ;;  %v10312_v46 = vshll.u32 %v9712_v63, 16  ;;  %v19180_v51 = vld [vmem:[#allocation2 + $0x26c] sm:$0x1]  ;;  %v10287_v63 = vor.u32 %v19162_v40, %v19158_v7 }
 0x411   : > { %v19192_v26 = vrot.slane %v10276_v24, 5  ;;  %v19194_v60 = vld [vmem:[#allocation2 + $0x274] sm:$0x1]  ;;  %v11280_v16 = vld [vmem:[#allocation2 + $0x260] sm:$0xe]  ;;  %v10290_v3 = vshll.u32 %v19144_v19, 16 }
 0x412   : > { %16042 = vmatmul.mubr.msk.bf16.gmra.mrb[56].mxu1 %vm3701_vm9, %v19066_v38  ;;  %v9710_v38 = vld [vmem:[#allocation2 + $0x180] sm:$0xf]  ;;  %v11282_v24 = vld [vmem:[#allocation2 + $0x270] sm:$0xe]  ;;  %v10337_v19 = vshrl.u32 %v9716_v28, 16 }
 0x413   : > { %16045 = vmatprep.mubr.msk.bf16.mxu1 %vm3701_vm9, %v19070_v25  ;;  %v10218_v25 = vrot.slane %v10217_v34, 4  ;;  %v10295_v35 = vshrl.u32 %v9710_v38, 16  ;;  %v10298_v33 = vshll.u32 %v9710_v38, 16  ;;  %v19174_v38 = vcombine.low %v10195_v49, %v10209_v20  ;;  %v9718_v7 = vld [vmem:[#allocation2 + $0x1b0] sm:$0xf] }
 0x414   : > { %v19127_v23 = vpop.f32.mrb[104].mxu0  ;;  %v10273_v49 = vor.u32 %v19148_v30, %v19146_v2  ;;  %v10323_v20 = vshrl.u32 %v9714_v59, 16  ;;  %v10311_v2 = vrot.slane %v10309_v12, 4  ;;  %v10326_v30 = vshll.u32 %v9714_v59, 16  ;;  %v9720_v12 = vld [vmem:[#allocation2 + $0x1b8] sm:$0xf] }
 0x415   : > { %19995 = vst [vmem:[#allocation19_spill] sm:$0xff] %v19127_v23  ;;  %v19131_v37 = vpop.f32.mrb[105].mxu0  ;;  %v10223_v34 = vsel %vm17657_vm4, %v10218_v25, %v10222_v0  ;;  %v19164_v8 = vrot.slane %v10295_v35, 4  ;;  %v19166_v9 = vrot.slane %v10298_v33, 5  ;;  %v10265_v0 = vsel %vm17657_vm4, %v19156_v47, %v19178_v36  ;;  %v9713_v35 = vld [vmem:[#allocation2 + $0x18c] sm:$0x1] }
 0x416   : > { %19996 = vst [vmem:[#allocation20_spill] sm:$0xff] %v19131_v37  ;;  %v19136_v4 = vpop.f32.mrb[106].mxu0  ;;  %v10304_v33 = vshll.u32 %v19150_v44, 16  ;;  %v11654_v44 = vrot.slane %v19168_v6, 5  ;;  %v11283_v47 = vld [vmem:[#allocation2 + $0x278] sm:$0xe] }
 0x417   : > { %19997 = vst [vmem:[#allocation21_spill] sm:$0xff] %v19136_v4  ;;  %v19138_v43 = vpop.f32.mrb[107].mxu0  ;;  %v10340_v36 = vshll.u32 %v9716_v28, 16  ;;  %v14428_v59 = vrot.slane %v11282_v24, 9  ;;  %v9719_v37 = vld [vmem:[#allocation2 + $0x1b4] sm:$0x1] }
 0x418   : > { %19998 = vst [vmem:[#allocation22_spill] sm:$0xff] %v19138_v43  ;;  %v9721_v13 = vld [vmem:[#allocation2 + $0x1bc] sm:$0x1]  ;;  %v9746_v56 = vld [vmem:[#allocation2 + $0x240] sm:$0xf] }
 0x41a   : > { %16046 = vmatmul.mubr.msk.bf16.gmra.mrb[60].mxu1 %vm3701_vm9, %v19086_v55  ;;  %v10237_v55 = vsel %vm17657_vm4, %v10232_v5, %v10236_v42  ;;  %v19204_v5 = vld [vmem:[#allocation2 + $0x27c] sm:$0x1]  ;;  %v11281_v42 = vld [vmem:[#allocation2 + $0x268] sm:$0xe] }
 0x41b   : > { %16049 = vmatprep.mubr.msk.bf16.mxu1 %vm3701_vm9, %v19096_v52  ;;  %v19184_v25 = vcombine.low %v10223_v34, %v10237_v55  ;;  %v10251_v52 = vsel %vm17657_vm4, %v19142_v21, %v19154_v32  ;;  %v10301_v21 = vor.u32 %v19166_v9, %v19164_v8  ;;  %v10314_v34 = vrot.slane %v10312_v46, 5 }
 0x41c   : > { %v14426_v32 = vrot.slane %v11280_v16, 9  ;;  %v10318_v55 = vshll.u32 %v9713_v35, 16  ;;  %v11662_v8 = vrot.slane %v19194_v60, 5  ;;  %v10328_v9 = vrot.slane %v10326_v30, 5 }
 0x41d   : > { %v19172_v53 = vpop.f32.mrb[108].mxu0  ;;  %v14429_v46 = vrot.slane %v11283_v47, 9  ;;  %v11666_v16 = vrot.slane %v19204_v5, 5  ;;  %v10302_v43 = vrot.slane %v10301_v21, 4 }
 0x41e   : > { %19999 = vst [vmem:[#allocation23_spill] sm:$0xff] %v19172_v53  ;;  %v19182_v31 = vpop.f32.mrb[109].mxu0  ;;  %v19218_v40 = vsel %vm18562_vm12, %v14426_v32, %v11654_v44  ;;  %v10351_v32 = vshrl.u32 %v9718_v7, 16  ;;  %v10354_v44 = vshll.u32 %v9718_v7, 16  ;;  %v9717_v7 = vld [vmem:[#allocation2 + $0x1ac] sm:$0x1] }
 0x41f   : > { %20000 = vst [vmem:[#allocation24_spill] sm:$0xff] %v19182_v31  ;;  %v19196_v39 = vpop.f32.mrb[110].mxu0  ;;  %v19214_v31 = vrot.slane %v10323_v20, 4  ;;  %v10315_v20 = vor.u32 %v10314_v34, %v10311_v2  ;;  %v10274_v2 = vrot.slane %v10273_v49, 4  ;;  %v10365_v34 = vshrl.u32 %v9720_v12, 16 }
 0x420   : > { %20001 = vst [vmem:[#allocation25_spill] sm:$0xff] %v19196_v39  ;;  %v19206_v1 = vpop.f32.mrb[111].mxu0  ;;  %v14427_v39 = vrot.slane %v11281_v42, 9  ;;  %v10339_v42 = vrot.slane %v10337_v19, 4  ;;  %v10368_v19 = vshll.u32 %v9720_v12, 16  ;;  %v10353_v23 = vrot.slane %v10351_v32, 4 }
 0x421   : > { %20002 = vst [vmem:[#allocation26_spill] sm:$0xff] %v19206_v1  ;;  %v11658_v1 = vrot.slane %v19180_v51, 5  ;;  %v9722_v53 = vld [vmem:[#allocation2 + $0x1c0] sm:$0xf]  ;;  %v9724_v49 = vld [vmem:[#allocation2 + $0x1c8] sm:$0xf] }
 0x422   : > { %16050 = vmatmul.mubr.msk.bf16.gmra.mrb[0].mxu1 %vm3701_vm9, %v19121_v54  ;;  %v19236_v54 = vsel %vm18562_vm12, %v14428_v59, %v11662_v8  ;;  %v19250_v8 = vcombine.low %v10251_v52, %v10265_v0  ;;  %v10316_v4 = vrot.slane %v10315_v20, 4  ;;  %v10356_v24 = vrot.slane %v10354_v44, 5  ;;  %v19270_v44 = vld [vmem:[#allocation2 + $0x1c4] sm:$0x1] }
 0x423   : > { %v19225_v28 = vsel %vm18562_vm12, %v14427_v39, %v11658_v1  ;;  %16053 = vmatprep.mubr.msk.bf16.mxu1 %vm3701_vm9, %v19129_v58  ;;  %v9715_v39 = vld [vmem:[#allocation2 + $0x1a4] sm:$0x1]  ;;  %v10342_v1 = vrot.slane %v10340_v36, 5  ;;  %v19242_v58 = vsel %vm18562_vm12, %v14429_v46, %v11666_v16  ;;  %v10292_v36 = vrot.slane %v10290_v3, 5 }
 0x424   : > { %v10320_v46 = vrot.slane %v10318_v55, 5  ;;  %v10329_v16 = vor.u32 %v10328_v9, %v19214_v31  ;;  %v10370_v52 = vrot.slane %v10368_v19, 5  ;;  %v10379_v0 = vshrl.u32 %v9722_v53, 16 }
 0x425   : > { %v19230_v35 = vpop.f32.mrb[112].mxu0  ;;  %v10343_v12 = vor.u32 %v10342_v1, %v10339_v42  ;;  %v10279_v3 = vsel %vm17657_vm4, %v10274_v2, %v19192_v26  ;;  %v10396_v21 = vshll.u32 %v9724_v49, 16  ;;  %v10346_v20 = vshll.u32 %v9717_v7, 16  ;;  %v9726_v42 = vld [vmem:[#allocation2 + $0x1d0] sm:$0xf] }
 0x426   : > { %20003 = vst [vmem:[#allocation27_spill] sm:$0xff] %v19230_v35  ;;  %v19238_v30 = vpop.f32.mrb[113].mxu0  ;;  %v10306_v35 = vrot.slane %v10304_v33, 5  ;;  %v10393_v33 = vshrl.u32 %v9724_v49, 16  ;;  %v10321_v26 = vsel %vm17657_vm4, %v10316_v4, %v10320_v46  ;;  %v10357_v1 = vor.u32 %v10356_v24, %v10353_v23 }
 0x427   : > { %20004 = vst [vmem:[#allocation28_spill] sm:$0xff] %v19238_v30  ;;  %v19244_v47 = vpop.f32.mrb[114].mxu0  ;;  %v10288_v30 = vrot.slane %v10287_v63, 4  ;;  %v10382_v63 = vshll.u32 %v9722_v53, 16  ;;  %v10374_v32 = vshll.u32 %v9721_v13, 16  ;;  %v10344_v2 = vrot.slane %v10343_v12, 4 }
 0x428   : > { %20005 = vst [vmem:[#allocation29_spill] sm:$0xff] %v19244_v47  ;;  %v19248_v59 = vpop.f32.mrb[115].mxu0  ;;  %v10332_v47 = vshll.u32 %v9715_v39, 16  ;;  %v10307_v53 = vsel %vm17657_vm4, %v10302_v43, %v10306_v35  ;;  %v10381_v19 = vrot.slane %v10379_v0, 4  ;;  %v9728_v35 = vld [vmem:[#allocation2 + $0x1d8] sm:$0xf] }
 0x429   : > { %20006 = vst [vmem:[#allocation30_spill] sm:$0xff] %v19248_v59  ;;  %v10367_v59 = vrot.slane %v10365_v34, 4  ;;  %v10293_v31 = vsel %vm17657_vm4, %v10288_v30, %v10292_v36  ;;  %v10330_v30 = vrot.slane %v10329_v16, 4  ;;  %v10384_v43 = vrot.slane %v10382_v63, 5  ;;  %v19279_v12 = vld [vmem:[#allocation2 + $0x1cc] sm:$0x1] }
 0x42a   : > { %16054 = vmatmul.mubr.msk.bf16.gmra.mrb[4].mxu1 %vm3701_vm9, %v19174_v38  ;;  %v10334_v9 = vrot.slane %v10332_v47, 5  ;;  %v10360_v38 = vshll.u32 %v9719_v37, 16  ;;  %v10395_v37 = vrot.slane %v10393_v33, 4  ;;  %v10398_v36 = vrot.slane %v10396_v21, 5  ;;  %v19283_v21 = vld [vmem:[#allocation2 + $0x1d4] sm:$0x1] }
 0x42b   : > { %16057 = vmatprep.mubr.msk.bf16.mxu1 %vm3701_vm9, %v19184_v25  ;;  %v10371_v34 = vor.u32 %v10370_v52, %v10367_v59  ;;  %v10407_v7 = vshrl.u32 %v9726_v42, 16  ;;  %v10410_v49 = vshll.u32 %v9726_v42, 16  ;;  %v10348_v4 = vrot.slane %v10346_v20, 5  ;;  %v9730_v52 = vld [vmem:[#allocation2 + $0x1f0] sm:$0xf] }
 0x42c   : > { %v10362_v46 = vrot.slane %v10360_v38, 5  ;;  %v10388_v13 = vshll.u32 %v19270_v44, 16  ;;  %v14319_v23 = vcombine.low %v10307_v53, %v10321_v26  ;;  %v10335_v24 = vsel %vm17657_vm4, %v10330_v30, %v10334_v9 }
 0x42d   : > { %v19262_v55 = vpop.f32.mrb[116].mxu0  ;;  %v10358_v16 = vrot.slane %v10357_v1, 4  ;;  %v10376_v59 = vrot.slane %v10374_v32, 5  ;;  %v10349_v0 = vsel %vm17657_vm4, %v10344_v2, %v10348_v4  ;;  %v10372_v63 = vrot.slane %v10371_v34, 4  ;;  %v9734_v2 = vld [vmem:[#allocation2 + $0x200] sm:$0xf] }
 0x42e   : > { %20007 = vst [vmem:[#allocation31_spill] sm:$0xff] %v19262_v55  ;;  %v19266_v39 = vpop.f32.mrb[117].mxu0  ;;  %v10385_v33 = vor.u32 %v10384_v43, %v10381_v19  ;;  %v10399_v53 = vor.u32 %v10398_v36, %v10395_v37  ;;  %v10409_v20 = vrot.slane %v10407_v7, 4  ;;  %v10412_v9 = vrot.slane %v10410_v49, 5  ;;  %v19300_v49 = vld [vmem:[#allocation2 + $0x1dc] sm:$0x1] }
 0x42f   : > { %20008 = vst [vmem:[#allocation32_spill] sm:$0xff] %v19266_v39  ;;  %v19272_v25 = vpop.f32.mrb[118].mxu0  ;;  %v14318_v39 = vcombine.low %v10279_v3, %v10293_v31  ;;  %v10421_v3 = vshrl.u32 %v9728_v35, 16  ;;  %v9732_v31 = vld [vmem:[#allocation2 + $0x1f8] sm:$0xf]  ;;  %v10424_v38 = vshll.u32 %v9728_v35, 16  ;;  %v14320_v42 = vcombine.low %v10335_v24, %v10349_v0 }
 0x430   : > { %20009 = vst [vmem:[#allocation33_spill] sm:$0xff] %v19272_v25  ;;  %v19274_v47 = vpop.f32.mrb[119].mxu0  ;;  %v10390_v30 = vrot.slane %v10388_v13, 5  ;;  %v10435_v1 = vshrl.u32 %v9730_v52, 16  ;;  %v10438_v32 = vshll.u32 %v9730_v52, 16  ;;  %v10402_v19 = vshll.u32 %v19279_v12, 16 }
 0x431   : > { %20010 = vst [vmem:[#allocation34_spill] sm:$0xff] %v19274_v47  ;;  %v10416_v43 = vshll.u32 %v19283_v21, 16  ;;  %v10452_v37 = vshll.u32 %v9732_v31, 16  ;;  %v10377_v35 = vsel %vm17657_vm4, %v10372_v63, %v10376_v59  ;;  %v10386_v7 = vrot.slane %v10385_v33, 4 }
 0x432   : > { %16058 = vmatmul.mubr.msk.bf16.gmra.mrb[8].mxu1 %vm3701_vm9, %v19250_v8  ;;  %v10449_v8 = vshrl.u32 %v9732_v31, 16  ;;  %v10423_v4 = vrot.slane %v10421_v3, 4  ;;  %v10400_v24 = vrot.slane %v10399_v53, 4  ;;  %v10413_v52 = vor.u32 %v10412_v9, %v10409_v20  ;;  %v9736_v31 = vld [vmem:[#allocation2 + $0x208] sm:$0xf] }
 0x433   : > { %16061 = vmatprep.mubr.msk.bf16.mxu1 %vm3701_vm9, %v14318_v39  ;;  %v10363_v39 = vsel %vm17657_vm4, %v10358_v16, %v10362_v46  ;;  %v10426_v0 = vrot.slane %v10424_v38, 5  ;;  %v10440_v47 = vrot.slane %v10438_v32, 5  ;;  %v10463_v46 = vshrl.u32 %v9734_v2, 16  ;;  %v9738_v38 = vld [vmem:[#allocation2 + $0x210] sm:$0xf] }
 0x434   : > { %v10466_v16 = vshll.u32 %v9734_v2, 16  ;;  %v10404_v25 = vrot.slane %v10402_v19, 5  ;;  %v19307_v59 = vrot.slane %v10416_v43, 5  ;;  %v10451_v63 = vrot.slane %v10449_v8, 4  ;;  %v19316_v19 = vld [vmem:[#allocation2 + $0x1fc] sm:$0x1] }
 0x435   : > { %v19288_v26 = vpop.f32.mrb[120].mxu0  ;;  %v10454_v33 = vrot.slane %v10452_v37, 5  ;;  %v14321_v3 = vcombine.low %v10363_v39, %v10377_v35  ;;  %v10391_v53 = vsel %vm17657_vm4, %v10386_v7, %v10390_v30  ;;  %v10477_v20 = vshrl.u32 %v9736_v31, 16  ;;  %v19324_v39 = vld [vmem:[#allocation2 + $0x204] sm:$0x1] }
 0x436   : > { %20011 = vst [vmem:[#allocation35_spill] sm:$0xff] %v19288_v26  ;;  %v19290_v34 = vpop.f32.mrb[121].mxu0  ;;  %v19305_v26 = vld [vmem:[#allocation2 + $0x1f4] sm:$0x1]  ;;  %v10480_v9 = vshll.u32 %v9736_v31, 16  ;;  %v19314_v32 = vrot.slane %v10413_v52, 4  ;;  %v10427_v2 = vor.u32 %v10426_v0, %v10423_v4 }
 0x437   : > { %20012 = vst [vmem:[#allocation36_spill] sm:$0xff] %v19290_v34  ;;  %v19294_v36 = vpop.f32.mrb[122].mxu0  ;;  %v10430_v34 = vshll.u32 %v19300_v49, 16  ;;  %v10444_v43 = vshll.u32 %v19305_v26, 16  ;;  %v10468_v35 = vrot.slane %v10466_v16, 5  ;;  %v10491_v4 = vshrl.u32 %v9738_v38, 16 }
 0x438   : > { %20013 = vst [vmem:[#allocation37_spill] sm:$0xff] %v19294_v36  ;;  %v19302_v13 = vpop.f32.mrb[123].mxu0  ;;  %v10437_v36 = vrot.slane %v10435_v1, 4  ;;  %v10405_v1 = vsel %vm17657_vm4, %v10400_v24, %v10404_v25  ;;  %v10455_v25 = vor.u32 %v10454_v33, %v10451_v63  ;;  %v19328_v24 = vld [vmem:[#allocation2 + $0x20c] sm:$0x1]  ;;  %v10494_v52 = vshll.u32 %v9738_v38, 16 }
 0x439   : > { %20014 = vst [vmem:[#allocation38_spill] sm:$0xff] %v19302_v13  ;;  %v9740_v13 = vld [vmem:[#allocation2 + $0x218] sm:$0xf]  ;;  %v19322_v30 = vrot.slane %v10430_v34, 5  ;;  %v14322_v31 = vcombine.low %v10391_v53, %v10405_v1  ;;  %v10458_v16 = vshll.u32 %v19316_v19, 16 }
 0x43a   : > { %16062 = vmatmul.mubr.msk.bf16.gmra.mrb[12].mxu1 %vm3701_vm9, %v14319_v23  ;;  %v10441_v37 = vor.u32 %v10440_v47, %v10437_v36  ;;  %v10465_v23 = vrot.slane %v10463_v46, 4  ;;  %v10505_v0 = vshrl.u32 %v9740_v13, 16  ;;  %v10508_v34 = vshll.u32 %v9740_v13, 16  ;;  %v19339_v63 = vld [vmem:[#allocation2 + $0x214] sm:$0x1] }
 0x43b   : > { %16065 = vmatprep.mubr.msk.bf16.mxu1 %vm3701_vm9, %v14320_v42  ;;  %v10479_v42 = vrot.slane %v10477_v20, 4  ;;  %v10419_v47 = vsel %vm17657_vm4, %v19314_v32, %v19307_v59  ;;  %v10428_v36 = vrot.slane %v10427_v2, 4  ;;  %v10446_v46 = vrot.slane %v10444_v43, 5  ;;  %v9742_v33 = vld [vmem:[#allocation2 + $0x220] sm:$0xf] }
 0x43c   : > { %v10442_v53 = vrot.slane %v10441_v37, 4  ;;  %v10469_v38 = vor.u32 %v10468_v35, %v10465_v23  ;;  %v10472_v20 = vshll.u32 %v19324_v39, 16  ;;  %v10486_v13 = vshll.u32 %v19328_v24, 16  ;;  %v19347_v35 = vld [vmem:[#allocation2 + $0x21c] sm:$0x1] }
 0x43d   : > { %v19320_v8 = vpop.f32.mrb[124].mxu0  ;;  %v10456_v1 = vrot.slane %v10455_v25, 4  ;;  %v10510_v32 = vrot.slane %v10508_v34, 5  ;;  %v10519_v2 = vshrl.u32 %v9742_v33, 16  ;;  %v10522_v43 = vshll.u32 %v9742_v33, 16 }
 0x43e   : > { %20015 = vst [vmem:[#allocation39_spill] sm:$0xff] %v19320_v8  ;;  %v19326_v7 = vpop.f32.mrb[125].mxu0  ;;  %v10482_v8 = vrot.slane %v10480_v9, 5  ;;  %v9744_v9 = vld [vmem:[#allocation2 + $0x228] sm:$0xf]  ;;  %v10433_v37 = vsel %vm17657_vm4, %v10428_v36, %v19322_v30  ;;  %v10460_v23 = vrot.slane %v10458_v16, 5  ;;  %v10447_v25 = vsel %vm17657_vm4, %v10442_v53, %v10446_v46 }
 0x43f   : > { %20016 = vst [vmem:[#allocation40_spill] sm:$0xff] %v19326_v7  ;;  %v19330_v55 = vpop.f32.mrb[126].mxu0  ;;  %v10507_v7 = vrot.slane %v10505_v0, 4  ;;  %v10533_v62 = vshrl.u32 %v9744_v9, 16  ;;  %v10536_v22 = vshll.u32 %v9744_v9, 16  ;;  %v10550_v0 = vshll.u32 %v9746_v56, 16 }
 0x440   : > { %20017 = vst [vmem:[#allocation41_spill] sm:$0xff] %v19330_v55  ;;  %v19332_v11 = vpop.f32.mrb[127].mxu0  ;;  %v10496_v55 = vrot.slane %v10494_v52, 5  ;;  %v10483_v59 = vor.u32 %v10482_v8, %v10479_v42  ;;  %v19355_v52 = vld [vmem:[#allocation2 + $0x224] sm:$0x1]  ;;  %v10461_v30 = vsel %vm17657_vm4, %v10456_v1, %v10460_v23  ;;  %v10470_v34 = vrot.slane %v10469_v38, 4 }
 0x441   : > { %20018 = vst [vmem:[#allocation42_spill] sm:$0xff] %v19332_v11  ;;  %v10493_v11 = vrot.slane %v10491_v4, 4  ;;  %v10500_v4 = vshll.u32 %v19339_v63, 16  ;;  %v10488_v36 = vrot.slane %v10486_v13, 5  ;;  %v10511_v53 = vor.u32 %v10510_v32, %v10507_v7 }
 0x442   : > { %16066 = vmatmul.mubr.msk.bf16.gmra.mrb[16].mxu1 %vm3701_vm9, %v14321_v3  ;;  %v10547_v3 = vshrl.u32 %v9746_v56, 16  ;;  %v10484_v46 = vrot.slane %v10483_v59, 4  ;;  %v10521_v9 = vrot.slane %v10519_v2, 4  ;;  %v10524_v45 = vrot.slane %v10522_v43, 5  ;;  %v19367_v59 = vld [vmem:[#allocation2 + $0x22c] sm:$0x1] }
 0x443   : > { %16069 = vmatprep.mubr.msk.bf16.mxu1 %vm3701_vm9, %v14322_v31  ;;  %v10497_v16 = vor.u32 %v10496_v55, %v10493_v11  ;;  %v9748_v31 = vld [vmem:[#allocation2 + $0x248] sm:$0xf]  ;;  %v10514_v61 = vshll.u32 %v19347_v35, 16  ;;  %v10528_v56 = vshll.u32 %v19355_v52, 16  ;;  %v10535_v10 = vrot.slane %v10533_v62, 4 }
 0x444   : > { %v10538_v1 = vrot.slane %v10536_v22, 5  ;;  %v10549_v23 = vrot.slane %v10547_v3, 4  ;;  %v10552_v17 = vrot.slane %v10550_v0, 5  ;;  %v10561_v38 = vshrl.u32 %v9748_v31, 16 }
 0x445   : > { %v19352_v8 = vpop.f32.mrb[64].mxu0  ;;  %v10564_v13 = vshll.u32 %v9748_v31, 16  ;;  %v14323_v11 = vcombine.low %v10419_v47, %v10433_v37  ;;  %v14324_v55 = vcombine.low %v10447_v25, %v10461_v30  ;;  %v10474_v29 = vrot.slane %v10472_v20, 5  ;;  %v19375_v20 = vld [vmem:[#allocation2 + $0x244] sm:$0x1] }
 0x446   : > { %v19359_v42 = vpop.f32.mrb[65].mxu0  ;;  %v10498_v15 = vrot.slane %v10497_v16, 4  ;;  %v10489_v7 = vsel %vm17657_vm4, %v10484_v46, %v10488_v36  ;;  %v10512_v32 = vrot.slane %v10511_v53, 4  ;;  %v10525_v2 = vor.u32 %v10524_v45, %v10521_v9  ;;  %v19377_v25 = vld [vmem:[#allocation2 + $0x24c] sm:$0x1] }
 0x447   : > { %v19361_v33 = vpop.f32.mrb[66].mxu0  ;;  %v10542_v43 = vshll.u32 %v19367_v59, 16  ;;  %v10475_v22 = vsel %vm17657_vm4, %v10470_v34, %v10474_v29  ;;  %v10502_v62 = vrot.slane %v10500_v4, 5  ;;  %v10516_v47 = vrot.slane %v10514_v61, 5  ;;  %v9754_v16 = vld [vmem:[#allocation2 + $0x260] sm:$0xf] }
 0x448   : > { %v19363_v18 = vpop.f32.mrb[67].mxu0  ;;  %v10539_v37 = vor.u32 %v10538_v1, %v10535_v10  ;;  %v10530_v45 = vrot.slane %v10528_v56, 5  ;;  %v10553_v0 = vor.u32 %v10552_v17, %v10549_v23  ;;  %v10563_v30 = vrot.slane %v10561_v38, 4  ;;  %v9750_v10 = vld [vmem:[#allocation2 + $0x250] sm:$0xf] }
 0x449   : > { %v10566_v36 = vrot.slane %v10564_v13, 5  ;;  %v14325_v31 = vcombine.low %v10475_v22, %v10489_v7  ;;  %v10503_v29 = vsel %vm17657_vm4, %v10498_v15, %v10502_v62  ;;  %v10589_v61 = vshrl.u32 %v9752_v27, 16  ;;  %v9756_v1 = vld [vmem:[#allocation2 + $0x268] sm:$0xf] }
 0x44a   : > { %16070 = vmatmul.mubr.msk.bf16.gmra.mrb[20].mxu1 %vm3701_vm9, %v14323_v11  ;;  %v10592_v34 = vshll.u32 %v9752_v27, 16  ;;  %v10517_v46 = vsel %vm17657_vm4, %v10512_v32, %v10516_v47  ;;  %v10526_v9 = vrot.slane %v10525_v2, 4  ;;  %v10544_v56 = vrot.slane %v10542_v43, 5 }
 0x44b   : > { %16073 = vmatprep.mubr.msk.bf16.mxu1 %vm3701_vm9, %v14324_v55  ;;  %v10556_v17 = vshll.u32 %v19375_v20, 16  ;;  %v10540_v38 = vrot.slane %v10539_v37, 4  ;;  %v10570_v15 = vshll.u32 %v19377_v25, 16  ;;  %v10603_v13 = vshrl.u32 %v9754_v16, 16 }
 0x44c   : > { %v10606_v11 = vshll.u32 %v9754_v16, 16  ;;  %v10554_v55 = vrot.slane %v10553_v0, 4  ;;  %v10567_v7 = vor.u32 %v10566_v36, %v10563_v30  ;;  %v10575_v27 = vshrl.u32 %v9750_v10, 16  ;;  %v9760_v16 = vld [vmem:[#allocation2 + $0x278] sm:$0xf] }
 0x44d   : > { %v19380_v3 = vpop.f32.mrb[68].mxu0  ;;  %v10578_v22 = vshll.u32 %v9750_v10, 16  ;;  %v10591_v62 = vrot.slane %v10589_v61, 4  ;;  %v10594_v32 = vrot.slane %v10592_v34, 5  ;;  %v10617_v47 = vshrl.u32 %v9756_v1, 16 }
 0x44e   : > { %v19384_v4 = vpop.f32.mrb[69].mxu0  ;;  %v10620_v48 = vshll.u32 %v9756_v1, 16  ;;  %v14326_v2 = vcombine.low %v10503_v29, %v10517_v46  ;;  %v10531_v43 = vsel %vm17657_vm4, %v10526_v9, %v10530_v45  ;;  %v10558_v37 = vrot.slane %v10556_v17, 5  ;;  %v19402_v29 = vld [vmem:[#allocation2 + $0x254] sm:$0x1] }
 0x44f   : > { %v19388_v53 = vpop.f32.mrb[70].mxu0  ;;  %v10572_v57 = vrot.slane %v10570_v15, 5  ;;  %v10545_v0 = vsel %vm17657_vm4, %v10540_v38, %v10544_v56  ;;  %v10568_v30 = vrot.slane %v10567_v7, 4  ;;  %v10577_v10 = vrot.slane %v10575_v27, 4  ;;  %v19408_v34 = vld [vmem:[#allocation2 + $0x25c] sm:$0x1] }
 0x450   : > { %20019 = vst [vmem:[#allocation43_spill] sm:$0xff] %v19388_v53  ;;  %v19391_v23 = vpop.f32.mrb[71].mxu0  ;;  %v10608_v53 = vrot.slane %v10606_v11, 5  ;;  %v10580_v45 = vrot.slane %v10578_v22, 5  ;;  %v10595_v46 = vor.u32 %v10594_v32, %v10591_v62  ;;  %v10619_v9 = vrot.slane %v10617_v47, 4 }
 0x451   : > { %20020 = vst [vmem:[#allocation44_spill] sm:$0xff] %v19391_v23  ;;  %v10605_v23 = vrot.slane %v10603_v13, 4  ;;  %v10622_v17 = vrot.slane %v10620_v48, 5  ;;  %v10631_v56 = vshrl.u32 %v9758_v41, 16  ;;  %v10634_v38 = vshll.u32 %v9758_v41, 16 }
 0x452   : > { %16074 = vmatmul.mubr.msk.bf16.gmra.mrb[24].mxu1 %vm3701_vm9, %v14325_v31  ;;  %v10559_v31 = vsel %vm17657_vm4, %v10554_v55, %v10558_v37  ;;  %v10645_v15 = vshrl.u32 %v9760_v16, 16  ;;  %v10648_v13 = vshll.u32 %v9760_v16, 16  ;;  %v10584_v7 = vshll.u32 %v19402_v29, 16 }
 0x453   : > { %16077 = vmatprep.mubr.msk.bf16.mxu1 %vm3701_vm9, %v14326_v2  ;;  %v10609_v27 = vor.u32 %v10608_v53, %v10605_v23  ;;  %v14327_v22 = vcombine.low %v10531_v43, %v10545_v0  ;;  %v10573_v55 = vsel %vm17657_vm4, %v10568_v30, %v10572_v57  ;;  %v10581_v2 = vor.u32 %v10580_v45, %v10577_v10 }
 0x454   : > { %v10598_v62 = vshll.u32 %v19408_v34, 16  ;;  %v14328_v32 = vcombine.low %v10559_v31, %v10573_v55  ;;  %v10596_v48 = vrot.slane %v10595_v46, 4  ;;  %v10612_v47 = vshll.u32 %v19168_v6, 16 }
 0x455   : > { %v19400_v36 = vpop.f32.mrb[72].mxu0  ;;  %v10623_v37 = vor.u32 %v10622_v17, %v10619_v9  ;;  %v10633_v41 = vrot.slane %v10631_v56, 4  ;;  %v10647_v16 = vrot.slane %v10645_v15, 4  ;;  %v10626_v53 = vshll.u32 %v19180_v51, 16 }
 0x456   : > { %v19406_v61 = vpop.f32.mrb[73].mxu0  ;;  %v10582_v57 = vrot.slane %v10581_v2, 4  ;;  %v10600_v23 = vrot.slane %v10598_v62, 5  ;;  %v10586_v0 = vrot.slane %v10584_v7, 5  ;;  %v10614_v30 = vrot.slane %v10612_v47, 5 }
 0x457   : > { %20021 = vst [vmem:[#allocation45_spill] sm:$0xff] %v19406_v61  ;;  %v19410_v1 = vpop.f32.mrb[74].mxu0  ;;  %v10650_v61 = vrot.slane %v10648_v13, 5  ;;  %v10624_v10 = vrot.slane %v10623_v37, 4  ;;  %v10654_v51 = vshll.u32 %v19204_v5, 16  ;;  %v10628_v56 = vrot.slane %v10626_v53, 5 }
 0x458   : > { %20022 = vst [vmem:[#allocation46_spill] sm:$0xff] %v19410_v1  ;;  %v19412_v11 = vpop.f32.mrb[75].mxu0  ;;  %v10636_v1 = vrot.slane %v10634_v38, 5  ;;  %v10601_v45 = vsel %vm17657_vm4, %v10596_v48, %v10600_v23  ;;  %v10587_v15 = vsel %vm17657_vm4, %v10582_v57, %v10586_v0  ;;  %v10640_v13 = vshll.u32 %v19194_v60, 16  ;;  %v11220_v7 = vld [vmem:[#allocation2 + $0x10] sm:$0xe] }
 0x459   : > { %20023 = vst [vmem:[#allocation47_spill] sm:$0xff] %v19412_v11  ;;  %v10610_v11 = vrot.slane %v10609_v27, 4  ;;  %v10651_v9 = vor.u32 %v10650_v61, %v10647_v16  ;;  %v14329_v27 = vcombine.low %v10587_v15, %v10601_v45  ;;  %v10656_v5 = vrot.slane %v10654_v51, 5  ;;  %v11221_v2 = vld [vmem:[#allocation2 + $0x18] sm:$0xe] }
 0x45a   : > { %16078 = vmatmul.mubr.msk.bf16.gmra.mrb[28].mxu1 %vm3701_vm9, %v14327_v22  ;;  %v10637_v46 = vor.u32 %v10636_v1, %v10633_v41  ;;  %v10629_v22 = vsel %vm17657_vm4, %v10624_v10, %v10628_v56  ;;  %v17124_v62 = vld [vmem:[#allocation2 + $0x14] sm:$0x1]  ;;  %v10642_v48 = vrot.slane %v10640_v13, 5  ;;  %v14367_v60 = vrot.slane %v11221_v2, 9  ;;  %v17125_v37 = vld [vmem:[#allocation2 + $0x1c] sm:$0x1] }
 0x45b   : > { %16081 = vmatprep.mubr.msk.bf16.mxu1 %vm3701_vm9, %v14328_v32  ;;  %v10615_v17 = vsel %vm17657_vm4, %v10610_v11, %v10614_v30  ;;  %v10652_v55 = vrot.slane %v10651_v9, 4  ;;  %v14366_v11 = vrot.slane %v11220_v7, 9  ;;  %v11414_v32 = vrot.slane %v17124_v62, 5  ;;  %v11223_v10 = vld [vmem:[#allocation2 + $0x28] sm:$0xe] }
 0x45c   : > { %v14330_v1 = vcombine.low %v10615_v17, %v10629_v22  ;;  %v10638_v61 = vrot.slane %v10637_v46, 4  ;;  %v11418_v41 = vrot.slane %v17125_v37, 5  ;;  %v11224_v45 = vld [vmem:[#allocation2 + $0x30] sm:$0xe]  ;;  %v11222_v51 = vld [vmem:[#allocation2 + $0x20] sm:$0xe] }
 0x45d   : > { %v19422_v43 = vpop.f32.mrb[76].mxu0  ;;  %v10657_v57 = vsel %vm17657_vm4, %v10652_v55, %v10656_v5  ;;  %v11415_v0 = vsel %vm18562_vm12, %v14366_v11, %v11414_v32  ;;  %v11225_v17 = vld [vmem:[#allocation2 + $0x38] sm:$0xe]  ;;  %v14369_v15 = vrot.slane %v11223_v10, 9  ;;  %v11426_v13 = vrot.slane %v17126_v14, 5 }
 0x45e   : > { %v19424_v6 = vpop.f32.mrb[77].mxu0  ;;  %v10643_v53 = vsel %vm17657_vm4, %v10638_v61, %v10642_v48  ;;  %v11419_v9 = vsel %vm18562_vm12, %v14367_v60, %v11418_v41  ;;  %v14370_v7 = vrot.slane %v11224_v45, 9  ;;  %v17128_v61 = vld [vmem:[#allocation2 + $0x24] sm:$0x1]  ;;  %v14371_v5 = vrot.slane %v11225_v17, 9 }
 0x45f   : > { %v19428_v31 = vpop.f32.mrb[78].mxu0  ;;  %v14331_v46 = vcombine.low %v10643_v53, %v10657_v57  ;;  %v14434_v56 = vcombine.low %v11415_v0, %v11419_v9  ;;  %v11422_v55 = vrot.slane %v17128_v61, 5  ;;  %v17129_v2 = vld [vmem:[#allocation2 + $0x3c] sm:$0x1]  ;;  %v11226_v32 = vld [vmem:[#allocation2 + $0x40] sm:$0xe]  ;;  %v11427_v37 = vsel %vm18562_vm12, %v14369_v15, %v11426_v13 }
 0x460   : > { %v19433_v38 = vpop.f32.mrb[79].mxu0  ;;  %v11434_v11 = vrot.slane %v17129_v2, 5  ;;  %v16921_v60 = vld [vmem:[%s476_s9] sm:$0xff]   ;;  %v16922_v53 = vld [vmem:[%s476_s9 + $0x8] sm:$0xff]   ;;  %v14372_v17 = vrot.slane %v11226_v32, 9 }
 0x461   : > { %v11227_v10 = vld [vmem:[#allocation2 + $0x48] sm:$0xe]  ;;  %16157 = vmatprep.subr.bf16.mxu0 %v16921_v60  ;;  %v17130_v15 = vld [vmem:[#allocation2 + $0x44] sm:$0x1] }
 0x462   : > { %16082 = vmatmul.mubr.msk.bf16.gmra.mrb[32].mxu1 %vm3701_vm9, %v14329_v27  ;;  %v17127_v27 = vld [vmem:[#allocation2 + $0x34] sm:$0x1]  ;;  %16158 = vmatpush3.bf16.msra.mxu0 %v16921_v60  ;;  %v11438_v14 = vrot.slane %v17130_v15, 5  ;;  %v14373_v13 = vrot.slane %v11227_v10, 9  ;;  %v17132_v2 = vld [vmem:[#allocation2 + $0x64] sm:$0x1] }
 0x463   : > { %16085 = vmatprep.mubr.msk.bf16.mxu1 %vm3701_vm9, %v14330_v1  ;;  %v11430_v22 = vrot.slane %v17127_v27, 5  ;;  %v14368_v1 = vrot.slane %v11222_v51, 9  ;;  %v11435_v51 = vsel %vm18562_vm12, %v14371_v5, %v11434_v11  ;;  %16159 = vmatprep.subr.bf16.mxu0 %v16922_v53  ;;  %v17133_v60 = vld [vmem:[#allocation2 + $0x6c] sm:$0x1]  ;;  %v11232_v10 = vld [vmem:[#allocation2 + $0x80] sm:$0xe] }
 0x464   : > { %v11450_v5 = vrot.slane %v17133_v60, 5  ;;  %v11439_v11 = vsel %vm18562_vm12, %v14372_v17, %v11438_v14  ;;  %v14378_v17 = vrot.slane %v11232_v10, 9  ;;  %v17135_v14 = vld [vmem:[#allocation2 + $0x84] sm:$0x1] }
 0x465   : > { %v19442_v47 = vpop.f32.mrb[80].mxu0  ;;  %v11431_v57 = vsel %vm18562_vm12, %v14370_v7, %v11430_v22  ;;  %v11423_v45 = vsel %vm18562_vm12, %v14368_v1, %v11422_v55  ;;  %v17131_v7 = vld [vmem:[#allocation2 + $0x4c] sm:$0x1]  ;;  %v11229_v22 = vld [vmem:[#allocation2 + $0x68] sm:$0xe]  ;;  %v11446_v1 = vrot.slane %v17132_v2, 5 }
 0x466   : > { %v19444_v16 = vpop.f32.mrb[81].mxu0  ;;  %v14435_v9 = vcombine.low %v11423_v45, %v11427_v37  ;;  %v11442_v27 = vrot.slane %v17131_v7, 5  ;;  %16160 = vmatpush3.bf16.msra.mxu0 %v16922_v53  ;;  %v14375_v55 = vrot.slane %v11229_v22, 9  ;;  %v11233_v7 = vld [vmem:[#allocation2 + $0x88] sm:$0xe] }
 0x467   : > { %v19450_v23 = vpop.f32.mrb[82].mxu0  ;;  %v17136_v22 = vld [vmem:[#allocation2 + $0x74] sm:$0x1]  ;;  %v14379_v2 = vrot.slane %v11233_v7, 9 }
 0x468   : > { %v19454_v30 = vpop.f32.mrb[83].mxu0  ;;  %v11443_v32 = vsel %vm18562_vm12, %v14373_v13, %v11442_v27  ;;  %v11462_v13 = vrot.slane %v17135_v14, 5  ;;  %v17139_v14 = vld [vmem:[#allocation2 + $0x9c] sm:$0x1] }
 0x469   : > { %v14437_v45 = vcombine.low %v11439_v11, %v11443_v32  ;;  %v11235_v32 = vld [vmem:[#allocation2 + $0x98] sm:$0xe] }
 0x46a   : > { %16086 = vmatmul.mubr.msk.bf16.gmra.mrb[36].mxu1 %vm3701_vm9, %v14331_v46  ;;  %v11228_v46 = vld [vmem:[#allocation2 + $0x60] sm:$0xe]  ;;  %v11463_v11 = vsel %vm18562_vm12, %v14378_v17, %v11462_v13  ;;  %v14381_v7 = vrot.slane %v11235_v32, 9  ;;  %v17140_v13 = vld [vmem:[#allocation2 + $0xb4] sm:$0x1] }
 0x46b   : > { %16093 = vmatprep.mubr.msk.bf16.mxu1 %vm3701_vm9, %v14434_v56  ;;  %v14436_v56 = vcombine.low %v11431_v57, %v11435_v51  ;;  %v14374_v61 = vrot.slane %v11228_v46, 9  ;;  %v11231_v57 = vld [vmem:[#allocation2 + $0x78] sm:$0xe]  ;;  %v11451_v46 = vsel %vm18562_vm12, %v14375_v55, %v11450_v5  ;;  %v11234_v5 = vld [vmem:[#allocation2 + $0x90] sm:$0xe] }
 0x46c   : > { %v14377_v51 = vrot.slane %v11231_v57, 9  ;;  %v11236_v57 = vld [vmem:[#allocation2 + $0xb0] sm:$0xe] }
 0x46d   : > { %v19461_v62 = vpop.f32.mrb[84].mxu0  ;;  %v11447_v37 = vsel %vm18562_vm12, %v14374_v61, %v11446_v1  ;;  %v11454_v61 = vrot.slane %v17136_v22, 5  ;;  %v17137_v1 = vld [vmem:[#allocation2 + $0x8c] sm:$0x1]  ;;  %v14382_v17 = vrot.slane %v11236_v57, 9  ;;  %v11478_v22 = vrot.slane %v17140_v13, 5 }
 0x46e   : > { %v19466_v48 = vpop.f32.mrb[85].mxu0  ;;  %v14438_v53 = vcombine.low %v11447_v37, %v11451_v46  ;;  %v11466_v60 = vrot.slane %v17137_v1, 5  ;;  %v14380_v46 = vrot.slane %v11234_v5, 9  ;;  %v11239_v5 = vld [vmem:[#allocation2 + $0xc8] sm:$0xe] }
 0x46f   : > { %v19470_v41 = vpop.f32.mrb[86].mxu0  ;;  %v11238_v57 = vld [vmem:[#allocation2 + $0xc0] sm:$0xe] }
 0x470   : > { %v19474_v0 = vpop.f32.mrb[87].mxu0 }
 0x472   : > { %16094 = vmatmul.mubr.msk.bf16.vlgmr.msra.gmra.mrb[40].mxu1 %vm3701_vm9, %v14435_v9  ;;  %v11230_v9 = vld [vmem:[#allocation2 + $0x70] sm:$0xe] }
 0x473   : > { %16097 = vmatprep.mubr.msk.bf16.mxu1 %vm3701_vm9, %v14436_v56  ;;  %v17134_v56 = vld [vmem:[#allocation2 + $0x7c] sm:$0x1]  ;;  %v14376_v27 = vrot.slane %v11230_v9, 9 }
 0x474   : > { %v11458_v15 = vrot.slane %v17134_v56, 5 }
 0x475   : > { %v11455_v37 = vsel %vm18562_vm12, %v14376_v27, %v11454_v61  ;;  %v17141_v61 = vld [vmem:[#allocation2 + $0xbc] sm:$0x1] }
 0x476   : > { %v11459_v55 = vsel %vm18562_vm12, %v14377_v51, %v11458_v15  ;;  %v11474_v51 = vrot.slane %v17139_v14, 5  ;;  %v11237_v15 = vld [vmem:[#allocation2 + $0xb8] sm:$0xe]  ;;  %v11482_v1 = vrot.slane %v17141_v61, 5 }
 0x477   : > { %v14439_v10 = vcombine.low %v11455_v37, %v11459_v55  ;;  %v14383_v27 = vrot.slane %v11237_v15, 9  ;;  %v11479_v55 = vsel %vm18562_vm12, %v14382_v17, %v11478_v22  ;;  %v11241_v14 = vld [vmem:[#allocation2 + $0xd8] sm:$0xe]  ;;  %v17144_v15 = vld [vmem:[#allocation2 + $0xc4] sm:$0x1] }
 0x478   : > { %v11486_v17 = vrot.slane %v17144_v15, 5  ;;  %v14387_v13 = vrot.slane %v11241_v14, 9  ;;  %v17145_v22 = vld [vmem:[#allocation2 + $0xdc] sm:$0x1] }
 0x479   : > { %v11483_v37 = vsel %vm18562_vm12, %v14383_v27, %v11482_v1  ;;  %v11498_v61 = vrot.slane %v17145_v22, 5  ;;  %v11242_v1 = vld [vmem:[#allocation2 + $0xe0] sm:$0xe] }
 0x47a   : > { %16098 = vmatmul.mubr.msk.bf16.gmra.mrb[44].mxu1 %vm3701_vm9, %v14437_v45  ;;  %v11467_v45 = vsel %vm18562_vm12, %v14379_v2, %v11466_v60  ;;  %v11475_v60 = vsel %vm18562_vm12, %v14381_v7, %v11474_v51  ;;  %v14384_v51 = vrot.slane %v11238_v57, 9 }
 0x47b   : > { %16101 = vmatprep.mubr.msk.bf16.mxu1 %vm3701_vm9, %v14438_v53  ;;  %v14440_v9 = vcombine.low %v11463_v11, %v11467_v45  ;;  %v17138_v53 = vld [vmem:[#allocation2 + $0x94] sm:$0x1]  ;;  %v11240_v11 = vld [vmem:[#allocation2 + $0xd0] sm:$0xe]  ;;  %v14385_v45 = vrot.slane %v11239_v5, 9 }
 0x47c   : > { %v11470_v56 = vrot.slane %v17138_v53, 5  ;;  %v11244_v5 = vld [vmem:[#allocation2 + $0x100] sm:$0xe] }
 0x47e   : > { %v11471_v2 = vsel %vm18562_vm12, %v14380_v46, %v11470_v56  ;;  %v14386_v46 = vrot.slane %v11240_v11, 9  ;;  %v17143_v56 = vld [vmem:[#allocation2 + $0xd4] sm:$0x1] }
 0x47f   : > { %v14441_v32 = vcombine.low %v11471_v2, %v11475_v60  ;;  %v11494_v7 = vrot.slane %v17143_v56, 5  ;;  %v11243_v60 = vld [vmem:[#allocation2 + $0xe8] sm:$0xe]  ;;  %v17147_v56 = vld [vmem:[#allocation2 + $0xec] sm:$0x1] }
 0x480   : > { %v14389_v14 = vrot.slane %v11243_v60, 9 }
 0x481   : > { %v11495_v2 = vsel %vm18562_vm12, %v14386_v46, %v11494_v7  ;;  %v14390_v46 = vrot.slane %v11244_v5, 9  ;;  %v17148_v7 = vld [vmem:[#allocation2 + $0x104] sm:$0x1]  ;;  %v11246_v5 = vld [vmem:[#allocation2 + $0x110] sm:$0xe] }
 0x482   : > { %16102 = vmatmul.mubr.msk.bf16.gmra.mrb[48].mxu1 %vm3701_vm9, %v14439_v10  ;;  %v14442_v10 = vcombine.low %v11479_v55, %v11483_v37  ;;  %v11487_v55 = vsel %vm18562_vm12, %v14384_v51, %v11486_v17  ;;  %v14388_v37 = vrot.slane %v11242_v1, 9  ;;  %v11510_v15 = vrot.slane %v17148_v7, 5  ;;  %v17149_v17 = vld [vmem:[#allocation2 + $0x10c] sm:$0x1]  ;;  %v11247_v1 = vld [vmem:[#allocation2 + $0x118] sm:$0xe] }
 0x483   : > { %16105 = vmatprep.mubr.msk.bf16.mxu1 %vm3701_vm9, %v14440_v9  ;;  %v17142_v9 = vld [vmem:[#allocation2 + $0xcc] sm:$0x1]  ;;  %v11514_v22 = vrot.slane %v17149_v17, 5 }
 0x484   : > { %v11490_v53 = vrot.slane %v17142_v9, 5 }
 0x486   : > { %v11491_v27 = vsel %vm18562_vm12, %v14385_v45, %v11490_v53  ;;  %v11506_v45 = vrot.slane %v17147_v56, 5  ;;  %v11245_v53 = vld [vmem:[#allocation2 + $0x108] sm:$0xe] }
 0x487   : > { %v14443_v11 = vcombine.low %v11487_v55, %v11491_v27  ;;  %v14391_v51 = vrot.slane %v11245_v53, 9  ;;  %v11511_v27 = vsel %vm18562_vm12, %v14390_v46, %v11510_v15  ;;  %v11249_v56 = vld [vmem:[#allocation2 + $0x128] sm:$0xe]  ;;  %v17152_v53 = vld [vmem:[#allocation2 + $0x114] sm:$0x1] }
 0x488   : > { %v11518_v46 = vrot.slane %v17152_v53, 5  ;;  %v14395_v7 = vrot.slane %v11249_v56, 9  ;;  %v17153_v15 = vld [vmem:[#allocation2 + $0x12c] sm:$0x1] }
 0x489   : > { %v11515_v55 = vsel %vm18562_vm12, %v14391_v51, %v11514_v22  ;;  %v11530_v17 = vrot.slane %v17153_v15, 5  ;;  %v11250_v22 = vld [vmem:[#allocation2 + $0x130] sm:$0xe] }
 0x48a   : > { %16106 = vmatmul.mubr.msk.bf16.gmra.mrb[52].mxu1 %vm3701_vm9, %v14441_v32  ;;  %v11499_v32 = vsel %vm18562_vm12, %v14387_v13, %v11498_v61  ;;  %v11507_v61 = vsel %vm18562_vm12, %v14389_v14, %v11506_v45  ;;  %v14392_v45 = vrot.slane %v11246_v5, 9 }
 0x48b   : > { %16109 = vmatprep.mubr.msk.bf16.mxu1 %vm3701_vm9, %v14442_v10  ;;  %v14444_v57 = vcombine.low %v11495_v2, %v11499_v32  ;;  %v17146_v10 = vld [vmem:[#allocation2 + $0xe4] sm:$0x1]  ;;  %v11248_v2 = vld [vmem:[#allocation2 + $0x120] sm:$0xe]  ;;  %v14393_v32 = vrot.slane %v11247_v1, 9 }
 0x48c   : > { %v11502_v9 = vrot.slane %v17146_v10, 5  ;;  %v11252_v1 = vld [vmem:[#allocation2 + $0x150] sm:$0xe] }
 0x48e   : > { %v11503_v13 = vsel %vm18562_vm12, %v14388_v37, %v11502_v9  ;;  %v14394_v37 = vrot.slane %v11248_v2, 9  ;;  %v17151_v9 = vld [vmem:[#allocation2 + $0x124] sm:$0x1] }
 0x48f   : > { %v14445_v60 = vcombine.low %v11503_v13, %v11507_v61  ;;  %v11526_v14 = vrot.slane %v17151_v9, 5  ;;  %v11251_v61 = vld [vmem:[#allocation2 + $0x138] sm:$0xe]  ;;  %v17155_v9 = vld [vmem:[#allocation2 + $0x13c] sm:$0x1] }
 0x490   : > { %v14397_v56 = vrot.slane %v11251_v61, 9 }
 0x491   : > { %v11527_v13 = vsel %vm18562_vm12, %v14394_v37, %v11526_v14  ;;  %v14398_v37 = vrot.slane %v11252_v1, 9  ;;  %v17156_v14 = vld [vmem:[#allocation2 + $0x154] sm:$0x1]  ;;  %v11254_v1 = vld [vmem:[#allocation2 + $0x160] sm:$0xe] }
 0x492   : > { %16110 = vmatmul.mubr.msk.bf16.gmra.mrb[56].mxu1 %vm3701_vm9, %v14443_v11  ;;  %v14446_v11 = vcombine.low %v11511_v27, %v11515_v55  ;;  %v11519_v27 = vsel %vm18562_vm12, %v14392_v45, %v11518_v46  ;;  %v14396_v55 = vrot.slane %v11250_v22, 9  ;;  %v11542_v53 = vrot.slane %v17156_v14, 5  ;;  %v17157_v46 = vld [vmem:[#allocation2 + $0x15c] sm:$0x1]  ;;  %v11255_v22 = vld [vmem:[#allocation2 + $0x168] sm:$0xe] }
 0x493   : > { %16113 = vmatprep.mubr.msk.bf16.mxu1 %vm3701_vm9, %v14444_v57  ;;  %v17150_v57 = vld [vmem:[#allocation2 + $0x11c] sm:$0x1]  ;;  %v11546_v15 = vrot.slane %v17157_v46, 5 }
 0x494   : > { %v11522_v10 = vrot.slane %v17150_v57, 5 }
 0x496   : > { %v11523_v51 = vsel %vm18562_vm12, %v14393_v32, %v11522_v10  ;;  %v11538_v32 = vrot.slane %v17155_v9, 5  ;;  %v11253_v10 = vld [vmem:[#allocation2 + $0x158] sm:$0xe] }
 0x497   : > { %v14447_v2 = vcombine.low %v11519_v27, %v11523_v51  ;;  %v14399_v45 = vrot.slane %v11253_v10, 9  ;;  %v11543_v51 = vsel %vm18562_vm12, %v14398_v37, %v11542_v53  ;;  %v11257_v9 = vld [vmem:[#allocation2 + $0x178] sm:$0xe]  ;;  %v17160_v10 = vld [vmem:[#allocation2 + $0x164] sm:$0x1] }
 0x498   : > { %v11550_v37 = vrot.slane %v17160_v10, 5  ;;  %v14403_v14 = vrot.slane %v11257_v9, 9  ;;  %v17161_v53 = vld [vmem:[#allocation2 + $0x17c] sm:$0x1] }
 0x499   : > { %v11547_v27 = vsel %vm18562_vm12, %v14399_v45, %v11546_v15  ;;  %v11562_v46 = vrot.slane %v17161_v53, 5  ;;  %v11258_v15 = vld [vmem:[#allocation2 + $0x180] sm:$0xe] }
 0x49a   : > { %16114 = vmatmul.mubr.msk.bf16.gmra.mrb[60].mxu1 %vm3701_vm9, %v14445_v60  ;;  %v11531_v60 = vsel %vm18562_vm12, %v14395_v7, %v11530_v17  ;;  %v11539_v17 = vsel %vm18562_vm12, %v14397_v56, %v11538_v32  ;;  %v14400_v32 = vrot.slane %v11254_v1, 9 }
 0x49b   : > { %16117 = vmatprep.mubr.msk.bf16.mxu1 %vm3701_vm9, %v14446_v11  ;;  %v14448_v5 = vcombine.low %v11527_v13, %v11531_v60  ;;  %v17154_v11 = vld [vmem:[#allocation2 + $0x134] sm:$0x1]  ;;  %v11256_v13 = vld [vmem:[#allocation2 + $0x170] sm:$0xe]  ;;  %v14401_v60 = vrot.slane %v11255_v22, 9 }
 0x49c   : > { %v11534_v57 = vrot.slane %v17154_v11, 5  ;;  %v11260_v22 = vld [vmem:[#allocation2 + $0x1a0] sm:$0xe] }
 0x49e   : > { %v11535_v7 = vsel %vm18562_vm12, %v14396_v55, %v11534_v57  ;;  %v14402_v55 = vrot.slane %v11256_v13, 9  ;;  %v17159_v57 = vld [vmem:[#allocation2 + $0x174] sm:$0x1] }
 0x49f   : > { %v14449_v61 = vcombine.low %v11535_v7, %v11539_v17  ;;  %v11558_v56 = vrot.slane %v17159_v57, 5  ;;  %v11259_v17 = vld [vmem:[#allocation2 + $0x188] sm:$0xe]  ;;  %v17163_v57 = vld [vmem:[#allocation2 + $0x18c] sm:$0x1] }
 0x4a0   : > { %v14405_v9 = vrot.slane %v11259_v17, 9 }
 0x4a1   : > { %v11559_v7 = vsel %vm18562_vm12, %v14402_v55, %v11558_v56  ;;  %v14406_v55 = vrot.slane %v11260_v22, 9  ;;  %v17164_v56 = vld [vmem:[#allocation2 + $0x1a4] sm:$0x1]  ;;  %v11262_v22 = vld [vmem:[#allocation2 + $0x1b0] sm:$0xe] }
 0x4a2   : > { %16118 = vmatmul.mubr.msk.bf16.gmra.mrb[0].mxu1 %vm3701_vm9, %v14447_v2  ;;  %v14450_v2 = vcombine.low %v11543_v51, %v11547_v27  ;;  %v11551_v51 = vsel %vm18562_vm12, %v14400_v32, %v11550_v37  ;;  %v14404_v27 = vrot.slane %v11258_v15, 9  ;;  %v11574_v10 = vrot.slane %v17164_v56, 5  ;;  %v17165_v37 = vld [vmem:[#allocation2 + $0x1ac] sm:$0x1]  ;;  %v11263_v15 = vld [vmem:[#allocation2 + $0x1b8] sm:$0xe] }
 0x4a3   : > { %16121 = vmatprep.mubr.msk.bf16.mxu1 %vm3701_vm9, %v14448_v5  ;;  %v17158_v5 = vld [vmem:[#allocation2 + $0x16c] sm:$0x1]  ;;  %v11578_v53 = vrot.slane %v17165_v37, 5  ;;  %v11594_v56 = vrot.slane %v19279_v12, 5  ;;  %v11598_v12 = vrot.slane %v19283_v21, 5 }
 0x4a4   : > { %v11554_v11 = vrot.slane %v17158_v5, 5 }
 0x4a6   : > { %v11555_v45 = vsel %vm18562_vm12, %v14401_v60, %v11554_v11  ;;  %v11570_v60 = vrot.slane %v17163_v57, 5  ;;  %v11261_v11 = vld [vmem:[#allocation2 + $0x1a8] sm:$0xe] }
 0x4a7   : > { %v14451_v13 = vcombine.low %v11551_v51, %v11555_v45  ;;  %v14407_v32 = vrot.slane %v11261_v11, 9  ;;  %v11575_v45 = vsel %vm18562_vm12, %v14406_v55, %v11574_v10  ;;  %v11265_v57 = vld [vmem:[#allocation2 + $0x1c8] sm:$0xe] }
 0x4a8   : > { %v14411_v55 = vrot.slane %v11265_v57, 9 }
 0x4a9   : > { %v11579_v51 = vsel %vm18562_vm12, %v14407_v32, %v11578_v53  ;;  %v11266_v32 = vld [vmem:[#allocation2 + $0x1d0] sm:$0xe]  ;;  %v11267_v53 = vld [vmem:[#allocation2 + $0x1d8] sm:$0xe] }
 0x4aa   : > { %16122 = vmatmul.mubr.msk.bf16.gmra.mrb[4].mxu1 %vm3701_vm9, %v14449_v61  ;;  %v11563_v61 = vsel %vm18562_vm12, %v14403_v14, %v11562_v46  ;;  %v11571_v46 = vsel %vm18562_vm12, %v14405_v9, %v11570_v60  ;;  %v14408_v9 = vrot.slane %v11262_v22, 9  ;;  %v17167_v60 = vld [vmem:[#allocation2 + $0x1b4] sm:$0x1]  ;;  %v11269_v22 = vld [vmem:[#allocation2 + $0x1f8] sm:$0xe] }
 0x4ab   : > { %16125 = vmatprep.mubr.msk.bf16.mxu1 %vm3701_vm9, %v14450_v2  ;;  %v14452_v1 = vcombine.low %v11559_v7, %v11563_v61  ;;  %v17162_v2 = vld [vmem:[#allocation2 + $0x184] sm:$0x1]  ;;  %v11264_v7 = vld [vmem:[#allocation2 + $0x1c0] sm:$0xe]  ;;  %v14409_v61 = vrot.slane %v11263_v15, 9  ;;  %v11582_v11 = vrot.slane %v17167_v60, 5 }
 0x4ac   : > { %v11566_v5 = vrot.slane %v17162_v2, 5  ;;  %v14412_v15 = vrot.slane %v11266_v32, 9  ;;  %v11270_v60 = vld [vmem:[#allocation2 + $0x200] sm:$0xe]  ;;  %v11622_v32 = vrot.slane %v19339_v63, 5 }
 0x4ad   : > { %v11276_v63 = vld [vmem:[#allocation2 + $0x240] sm:$0xe] }
 0x4ae   : > { %v11567_v14 = vsel %vm18562_vm12, %v14404_v27, %v11566_v5  ;;  %v14410_v27 = vrot.slane %v11264_v7, 9  ;;  %v11590_v5 = vrot.slane %v19270_v44, 5  ;;  %v11268_v44 = vld [vmem:[#allocation2 + $0x1f0] sm:$0xe]  ;;  %v11599_v57 = vsel %vm18562_vm12, %v14412_v15, %v11598_v12  ;;  %v11275_v15 = vld [vmem:[#allocation2 + $0x228] sm:$0xe] }
 0x4af   : > { %v14453_v17 = vcombine.low %v11567_v14, %v11571_v46  ;;  %v11583_v14 = vsel %vm18562_vm12, %v14408_v9, %v11582_v11 }
 0x4b0   : > { %v11591_v37 = vsel %vm18562_vm12, %v14410_v27, %v11590_v5  ;;  %v11271_v27 = vld [vmem:[#allocation2 + $0x208] sm:$0xe]  ;;  %v11272_v5 = vld [vmem:[#allocation2 + $0x210] sm:$0xe] }
 0x4b2   : > { %16126 = vmatmul.mubr.msk.bf16.gmra.mrb[8].mxu1 %vm3701_vm9, %v14451_v13  ;;  %v14454_v13 = vcombine.low %v11575_v45, %v11579_v51  ;;  %v11595_v45 = vsel %vm18562_vm12, %v14411_v55, %v11594_v56  ;;  %v11602_v51 = vrot.slane %v19300_v49, 5  ;;  %v14417_v55 = vrot.slane %v11271_v27, 9  ;;  %v11273_v56 = vld [vmem:[#allocation2 + $0x218] sm:$0xe] }
 0x4b3   : > { %16129 = vmatprep.mubr.msk.bf16.mxu1 %vm3701_vm9, %v14452_v1  ;;  %v17166_v1 = vld [vmem:[#allocation2 + $0x1bc] sm:$0x1]  ;;  %v14456_v7 = vcombine.low %v11591_v37, %v11595_v45  ;;  %v14416_v37 = vrot.slane %v11270_v60, 9  ;;  %v11274_v45 = vld [vmem:[#allocation2 + $0x220] sm:$0xe] }
 0x4b4   : > { %v11586_v2 = vrot.slane %v17166_v1, 5  ;;  %v14415_v1 = vrot.slane %v11269_v22, 9  ;;  %v14421_v22 = vrot.slane %v11275_v15, 9  ;;  %v11279_v27 = vld [vmem:[#allocation2 + $0x258] sm:$0xe] }
 0x4b5   : > { %v14425_v60 = vrot.slane %v11279_v27, 9 }
 0x4b6   : > { %v11587_v10 = vsel %vm18562_vm12, %v14409_v61, %v11586_v2  ;;  %v11606_v61 = vrot.slane %v19305_v26, 5  ;;  %v11610_v2 = vrot.slane %v19316_v19, 5  ;;  %v11618_v19 = vrot.slane %v19328_v24, 5 }
 0x4b7   : > { %v14455_v46 = vcombine.low %v11583_v14, %v11587_v10  ;;  %v14418_v10 = vrot.slane %v11272_v5, 9  ;;  %v14419_v14 = vrot.slane %v11273_v56, 9 }
 0x4b8   : > { %v11611_v26 = vsel %vm18562_vm12, %v14415_v1, %v11610_v2  ;;  %v14422_v1 = vrot.slane %v11276_v63, 9  ;;  %v11638_v2 = vrot.slane %v19375_v20, 5 }
 0x4b9   : > { %v11623_v24 = vsel %vm18562_vm12, %v14418_v10, %v11622_v32  ;;  %v20024_v32 = vcombine.low %v19218_v40, %v19225_v28 }
 0x4ba   : > { %16130 = vmatmul.mubr.msk.bf16.gmra.mrb[12].mxu1 %vm3701_vm9, %v14453_v17  ;;  %v14413_v17 = vrot.slane %v11267_v53, 9  ;;  %v11614_v53 = vrot.slane %v19324_v39, 5  ;;  %v14420_v39 = vrot.slane %v11274_v45, 9 }
 0x4bb   : > { %16133 = vmatprep.mubr.msk.bf16.mxu1 %vm3701_vm9, %v14454_v13  ;;  %v14414_v13 = vrot.slane %v11268_v44, 9  ;;  %v11626_v44 = vrot.slane %v19347_v35, 5  ;;  %v11630_v35 = vrot.slane %v19355_v52, 5 }
 0x4bc   : > { %v11603_v21 = vsel %vm18562_vm12, %v14413_v17, %v11602_v51 }
 0x4bd   : > { %v11607_v49 = vsel %vm18562_vm12, %v14414_v13, %v11606_v61  ;;  %v14457_v9 = vcombine.low %v11599_v57, %v11603_v21  ;;  %v11627_v17 = vsel %vm18562_vm12, %v14419_v14, %v11626_v44  ;;  %v11634_v13 = vrot.slane %v19367_v59, 5  ;;  %v11277_v61 = vld [vmem:[#allocation2 + $0x248] sm:$0xe] }
 0x4be   : > { %v14458_v11 = vcombine.low %v11607_v49, %v11611_v26  ;;  %v14460_v51 = vcombine.low %v11623_v24, %v11627_v17  ;;  %v14423_v57 = vrot.slane %v11277_v61, 9  ;;  %v11642_v21 = vrot.slane %v19377_v25, 5 }
 0x4bf   : > { %v11631_v49 = vsel %vm18562_vm12, %v14420_v39, %v11630_v35  ;;  %v11635_v52 = vsel %vm18562_vm12, %v14421_v22, %v11634_v13  ;;  %v11639_v59 = vsel %vm18562_vm12, %v14422_v1, %v11638_v2  ;;  %v11650_v25 = vrot.slane %v19408_v34, 5  ;;  %v20027_v2 = vld [vmem:[#allocation44_spill] sm:$0xff] }
 0x4c0   : > { %v14461_v5 = vcombine.low %v11631_v49, %v11635_v52  ;;  %v11643_v20 = vsel %vm18562_vm12, %v14423_v57, %v11642_v21  ;;  %v20025_v34 = vcombine.low %v19236_v54, %v19242_v58 }
 0x4c1   : > { %v14462_v26 = vcombine.low %v11639_v59, %v11643_v20 }
 0x4c2   : > { %16134 = vmatmul.mubr.msk.bf16.gmra.mrb[16].mxu1 %vm3701_vm9, %v14455_v46  ;;  %v11619_v46 = vsel %vm18562_vm12, %v14417_v55, %v11618_v19  ;;  %v11646_v55 = vrot.slane %v19402_v29, 5  ;;  %v11651_v19 = vsel %vm18562_vm12, %v14425_v60, %v11650_v25  ;;  %v19645_v29 = vld [vmem:[%s471_s12] ss:$0 sm:$0xff]  ;;  %v20028_v60 = vld [vmem:[#allocation45_spill] sm:$0xff] }
 0x4c3   : > { %16137 = vmatprep.mubr.msk.bf16.mxu1 %vm3701_vm9, %v14456_v7  ;;  %v11615_v7 = vsel %vm18562_vm12, %v14416_v37, %v11614_v53 }
 0x4c4   : > { %v14459_v12 = vcombine.low %v11615_v7, %v11619_v46 }
 0x4ca   : > { %16138 = vmatmul.mubr.msk.bf16.gmra.mrb[20].mxu1 %vm3701_vm9, %v14457_v9  ;;  %v11278_v9 = vld [vmem:[#allocation2 + $0x250] sm:$0xe] }
 0x4cb   : > { %16141 = vmatprep.mubr.msk.bf16.mxu1 %vm3701_vm9, %v14458_v11  ;;  %v14424_v11 = vrot.slane %v11278_v9, 9 }
 0x4cd   : > { %v11647_v56 = vsel %vm18562_vm12, %v14424_v11, %v11646_v55 }
 0x4ce   : > { %v14463_v10 = vcombine.low %v11647_v56, %v11651_v19  ;;  %v20029_v19 = vld [vmem:[#allocation46_spill] sm:$0xff] }
 0x4d2   : > { %16142 = vmatmul.mubr.msk.bf16.gmra.mrb[24].mxu1 %vm3701_vm9, %v14459_v12 }
 0x4d3   : > { %16145 = vmatprep.mubr.msk.bf16.mxu1 %vm3701_vm9, %v14460_v51 }
 0x4da   : > { %16146 = vmatmul.mubr.msk.bf16.gmra.mrb[28].mxu1 %vm3701_vm9, %v14461_v5 }
 0x4db   : > { %16149 = vmatprep.mubr.msk.bf16.mxu1 %vm3701_vm9, %v14462_v26 }
 0x4e2   : > { %16150 = vmatmul.mubr.msk.bf16.gmra.mrb[32].mxu1 %vm3701_vm9, %v14463_v10 }
 0x4e3   : > { %16153 = vmatprep.mubr.msk.bf16.mxu1 %vm3701_vm9, %v20024_v32 }
 0x4ea   : > { %16154 = vmatmul.mubr.msk.bf16.gmra.mrb[36].mxu1 %vm3701_vm9, %v20025_v34  ;;  %v20030_v34 = vld [vmem:[#allocation47_spill] sm:$0xff] }
 0x545   : > { %v16095_v50 = vpop.f32.mrb[40].mxu1 }
 0x546   : > { %v16229_v37 = vadd.f32 %v16095_v50, %v19352_v8  ;;  %v11911_v53 = vpop.f32.mrb[41].mxu1 }
 0x547   : > { %v16230_v14 = vadd.f32 %v11911_v53, %v19359_v42  ;;  %v16096_v40 = vpop.f32.mrb[42].mxu1 }
 0x548   : > { %v12239_v28 = vadd.f32 %v16229_v37, %v19645_v29  ;;  %v16231_v44 = vadd.f32 %v16096_v40, %v19361_v33  ;;  %v11914_v54 = vpop.f32.mrb[43].mxu1 }
 0x549   : > { %v12237_v58 = vadd.f32 %v16230_v14, %v19645_v29  ;;  %v16232_v46 = vadd.f32 %v11914_v54, %v19363_v18  ;;  %v20026_v18 = vld [vmem:[#allocation43_spill] sm:$0xff] }
 0x54a   : > { %v12240_v45 = vadd.f32 %v16231_v44, %v19645_v29  ;;  %v12303_v15 = vmax.f32 %v12239_v28, 0.0 }
 0x54b   : > { %v12238_v24 = vadd.f32 %v16232_v46, %v19645_v29  ;;  %v12301_v8 = vmax.f32 %v12237_v58, 0.0 }
 0x54c   : > { %v12304_v7 = vmax.f32 %v12240_v45, 0.0 }
 0x54d   : > { %v12302_v63 = vmax.f32 %v12238_v24, 0.0  ;;  %v16099_v12 = vpop.f32.mrb[44].mxu1 }
 0x54e   : > { %v12366_v42 = vpack.c.bf16 %v12304_v7, %v12303_v15  ;;  %v16233_v17 = vadd.f32 %v16099_v12, %v19380_v3  ;;  %v11927_v39 = vpop.f32.mrb[45].mxu1 }
 0x54f   : > { %v12365_v51 = vpack.c.bf16 %v12302_v63, %v12301_v8  ;;  %v16234_v33 = vadd.f32 %v11927_v39, %v19384_v4  ;;  %v16100_v35 = vpop.f32.mrb[46].mxu1 }
 0x550   : > { %v12243_v22 = vadd.f32 %v16233_v17, %v19645_v29  ;;  %v16235_v13 = vadd.f32 %v16100_v35, %v20026_v18  ;;  %v11930_v61 = vpop.f32.mrb[47].mxu1 }
 0x551   : > { %v12241_v1 = vadd.f32 %v16234_v33, %v19645_v29  ;;  %v16236_v57 = vadd.f32 %v11930_v61, %v20027_v2  ;;  %16161 = vmatprep.mubr.msk.bf16.mxu0 %vm3701_vm9, %v12365_v51 }
 0x552   : > { %v12244_v21 = vadd.f32 %v16235_v13, %v19645_v29  ;;  %16162 = vmatmul.mubr.msk.bf16.vlgmr.msra.gmra.mrb[128].mxu0 %vm3701_vm9, %v12366_v42  ;;  %v12307_v49 = vmax.f32 %v12243_v22, 0.0 }
 0x553   : > { %v12242_v3 = vadd.f32 %v16236_v57, %v19645_v29  ;;  %v12305_v52 = vmax.f32 %v12241_v1, 0.0 }
 0x554   : > { %v12308_v4 = vmax.f32 %v12244_v21, 0.0 }
 0x555   : > { %v12306_v59 = vmax.f32 %v12242_v3, 0.0  ;;  %v16103_v27 = vpop.f32.mrb[48].mxu1 }
 0x556   : > { %v12368_v5 = vpack.c.bf16 %v12308_v4, %v12307_v49  ;;  %v16237_v20 = vadd.f32 %v16103_v27, %v19400_v36  ;;  %v11943_v9 = vpop.f32.mrb[49].mxu1 }
 0x557   : > { %v12367_v26 = vpack.c.bf16 %v12306_v59, %v12305_v52  ;;  %v16238_v25 = vadd.f32 %v11943_v9, %v20028_v60  ;;  %v16104_v11 = vpop.f32.mrb[50].mxu1 }
 0x558   : > { %v12247_v55 = vadd.f32 %v16237_v20, %v19645_v29  ;;  %v16239_v56 = vadd.f32 %v16104_v11, %v20029_v19  ;;  %v11946_v10 = vpop.f32.mrb[51].mxu1 }
 0x559   : > { %v12245_v32 = vadd.f32 %v16238_v25, %v19645_v29  ;;  %v16240_v50 = vadd.f32 %v11946_v10, %v20030_v34  ;;  %16165 = vmatprep.mubr.msk.bf16.mxu0 %vm3701_vm9, %v12367_v26 }
 0x55a   : > { %v12248_v37 = vadd.f32 %v16239_v56, %v19645_v29  ;;  %16166 = vmatmul.mubr.msk.bf16.gmra.mrb[132].mxu0 %vm3701_vm9, %v12368_v5  ;;  %v12311_v53 = vmax.f32 %v12247_v55, 0.0 }
 0x55b   : > { %v12246_v36 = vadd.f32 %v16240_v50, %v19645_v29  ;;  %v12309_v40 = vmax.f32 %v12245_v32, 0.0 }
 0x55c   : > { %v12312_v14 = vmax.f32 %v12248_v37, 0.0 }
 0x55d   : > { %v12310_v28 = vmax.f32 %v12246_v36, 0.0  ;;  %v16107_v44 = vpop.f32.mrb[52].mxu1 }
 0x55e   : > { %v12370_v54 = vpack.c.bf16 %v12312_v14, %v12311_v53  ;;  %v16241_v58 = vadd.f32 %v16107_v44, %v19422_v43  ;;  %v11959_v46 = vpop.f32.mrb[53].mxu1 }
 0x55f   : > { %v12369_v45 = vpack.c.bf16 %v12310_v28, %v12309_v40  ;;  %v16242_v24 = vadd.f32 %v11959_v46, %v19424_v6  ;;  %v16108_v15 = vpop.f32.mrb[54].mxu1  ;;  %v20032_v40 = vld [vmem:[#allocation4_spill] sm:$0xff] }
 0x560   : > { %v12251_v7 = vadd.f32 %v16241_v58, %v19645_v29  ;;  %v16243_v8 = vadd.f32 %v16108_v15, %v19428_v31  ;;  %v11962_v63 = vpop.f32.mrb[55].mxu1 }
 0x561   : > { %v12249_v12 = vadd.f32 %v16242_v24, %v19645_v29  ;;  %v16244_v42 = vadd.f32 %v11962_v63, %v19433_v38  ;;  %16169 = vmatprep.mubr.msk.bf16.mxu0 %vm3701_vm9, %v12369_v45  ;;  %v20034_v24 = vld [vmem:[#allocation6_spill] sm:$0xff] }
 0x562   : > { %v12252_v17 = vadd.f32 %v16243_v8, %v19645_v29  ;;  %16170 = vmatmul.mubr.msk.bf16.gmra.mrb[136].mxu0 %vm3701_vm9, %v12370_v54  ;;  %v12315_v39 = vmax.f32 %v12251_v7, 0.0  ;;  %v20033_v54 = vld [vmem:[#allocation5_spill] sm:$0xff] }
 0x563   : > { %v12250_v43 = vadd.f32 %v16244_v42, %v19645_v29  ;;  %v12313_v51 = vmax.f32 %v12249_v12, 0.0 }
 0x564   : > { %v12316_v6 = vmax.f32 %v12252_v17, 0.0 }
 0x565   : > { %v12314_v33 = vmax.f32 %v12250_v43, 0.0  ;;  %v16111_v35 = vpop.f32.mrb[56].mxu1 }
 0x566   : > { %v12372_v22 = vpack.c.bf16 %v12316_v6, %v12315_v39  ;;  %v16245_v31 = vadd.f32 %v16111_v35, %v19442_v47  ;;  %v11975_v18 = vpop.f32.mrb[57].mxu1  ;;  %v20035_v6 = vld [vmem:[#allocation7_spill] sm:$0xff] }
 0x567   : > { %v12371_v13 = vpack.c.bf16 %v12314_v33, %v12313_v51  ;;  %v16246_v38 = vadd.f32 %v11975_v18, %v19444_v16  ;;  %v16112_v61 = vpop.f32.mrb[58].mxu1 }
 0x568   : > { %v12255_v1 = vadd.f32 %v16245_v31, %v19645_v29  ;;  %v16247_v2 = vadd.f32 %v16112_v61, %v19450_v23  ;;  %v11978_v57 = vpop.f32.mrb[59].mxu1 }
 0x569   : > { %v12253_v21 = vadd.f32 %v16246_v38, %v19645_v29  ;;  %v16248_v3 = vadd.f32 %v11978_v57, %v19454_v30  ;;  %16173 = vmatprep.mubr.msk.bf16.mxu0 %vm3701_vm9, %v12371_v13  ;;  %v20037_v38 = vld [vmem:[#allocation9_spill] sm:$0xff]  ;;  %v20038_v57 = vld [vmem:[#allocation10_spill] sm:$0xff] }
 0x56a   : > { %v12256_v49 = vadd.f32 %v16247_v2, %v19645_v29  ;;  %16174 = vmatmul.mubr.msk.bf16.gmra.mrb[140].mxu0 %vm3701_vm9, %v12372_v22  ;;  %v12319_v4 = vmax.f32 %v12255_v1, 0.0  ;;  %v20036_v22 = vld [vmem:[#allocation8_spill] sm:$0xff] }
 0x56b   : > { %v12254_v47 = vadd.f32 %v16248_v3, %v19645_v29  ;;  %v12317_v52 = vmax.f32 %v12253_v21, 0.0 }
 0x56c   : > { %v12320_v16 = vmax.f32 %v12256_v49, 0.0 }
 0x56d   : > { %v12318_v59 = vmax.f32 %v12254_v47, 0.0  ;;  %v16115_v27 = vpop.f32.mrb[60].mxu1 }
 0x56e   : > { %v12374_v5 = vpack.c.bf16 %v12320_v16, %v12319_v4  ;;  %v16249_v23 = vadd.f32 %v16115_v27, %v19461_v62  ;;  %v11991_v20 = vpop.f32.mrb[61].mxu1 }
 0x56f   : > { %v12373_v9 = vpack.c.bf16 %v12318_v59, %v12317_v52  ;;  %v16250_v30 = vadd.f32 %v11991_v20, %v19466_v48  ;;  %v16116_v26 = vpop.f32.mrb[62].mxu1 }
 0x570   : > { %v12259_v60 = vadd.f32 %v16249_v23, %v19645_v29  ;;  %v16251_v25 = vadd.f32 %v16116_v26, %v19470_v41  ;;  %v11994_v11 = vpop.f32.mrb[63].mxu1  ;;  %v20031_v41 = vld [vmem:[#allocation3_spill] sm:$0xff] }
 0x571   : > { %v12257_v55 = vadd.f32 %v16250_v30, %v19645_v29  ;;  %v16252_v19 = vadd.f32 %v11994_v11, %v19474_v0  ;;  %16177 = vmatprep.mubr.msk.bf16.mxu0 %vm3701_vm9, %v12373_v9  ;;  %v20040_v30 = vld [vmem:[#allocation12_spill] sm:$0xff]  ;;  %v20041_v11 = vld [vmem:[#allocation13_spill] sm:$0xff] }
 0x572   : > { %v12260_v56 = vadd.f32 %v16251_v25, %v19645_v29  ;;  %16178 = vmatmul.mubr.msk.bf16.gmra.mrb[144].mxu0 %vm3701_vm9, %v12374_v5  ;;  %v12323_v10 = vmax.f32 %v12259_v60, 0.0  ;;  %v20039_v5 = vld [vmem:[#allocation11_spill] sm:$0xff] }
 0x573   : > { %v12258_v62 = vadd.f32 %v16252_v19, %v19645_v29  ;;  %v12321_v32 = vmax.f32 %v12257_v55, 0.0 }
 0x574   : > { %v12324_v48 = vmax.f32 %v12260_v56, 0.0 }
 0x575   : > { %v12322_v34 = vmax.f32 %v12258_v62, 0.0  ;;  %v16119_v50 = vpop.f32.mrb[0].mxu1  ;;  %v20042_v62 = vld [vmem:[#allocation14_spill] sm:$0xff] }
 0x576   : > { %v12376_v37 = vpack.c.bf16 %v12324_v48, %v12323_v10  ;;  %v16253_v36 = vadd.f32 %v16119_v50, %v20031_v41  ;;  %v12007_v53 = vpop.f32.mrb[1].mxu1 }
 0x577   : > { %v12375_v14 = vpack.c.bf16 %v12322_v34, %v12321_v32  ;;  %v16254_v0 = vadd.f32 %v12007_v53, %v20032_v40  ;;  %v16120_v28 = vpop.f32.mrb[2].mxu1 }
 0x578   : > { %v12263_v44 = vadd.f32 %v16253_v36, %v19645_v29  ;;  %v16255_v58 = vadd.f32 %v16120_v28, %v20033_v54  ;;  %v12010_v46 = vpop.f32.mrb[3].mxu1 }
 0x579   : > { %v12261_v45 = vadd.f32 %v16254_v0, %v19645_v29  ;;  %v16256_v15 = vadd.f32 %v12010_v46, %v20034_v24  ;;  %16181 = vmatprep.mubr.msk.bf16.mxu0 %vm3701_vm9, %v12375_v14  ;;  %v20043_v14 = vld [vmem:[#allocation15_spill] sm:$0xff] }
 0x57a   : > { %v12264_v7 = vadd.f32 %v16255_v58, %v19645_v29  ;;  %16182 = vmatmul.mubr.msk.bf16.gmra.mrb[148].mxu0 %vm3701_vm9, %v12376_v37  ;;  %v12327_v63 = vmax.f32 %v12263_v44, 0.0  ;;  %v20044_v44 = vld [vmem:[#allocation16_spill] sm:$0xff] }
 0x57b   : > { %v12262_v8 = vadd.f32 %v16256_v15, %v19645_v29  ;;  %v12325_v42 = vmax.f32 %v12261_v45, 0.0  ;;  %v20045_v45 = vld [vmem:[#allocation17_spill] sm:$0xff] }
 0x57c   : > { %v12328_v12 = vmax.f32 %v12264_v7, 0.0 }
 0x57d   : > { %v12326_v17 = vmax.f32 %v12262_v8, 0.0  ;;  %v16123_v43 = vpop.f32.mrb[4].mxu1  ;;  %v20046_v8 = vld [vmem:[#allocation18_spill] sm:$0xff] }
 0x57e   : > { %v12378_v39 = vpack.c.bf16 %v12328_v12, %v12327_v63  ;;  %v16257_v51 = vadd.f32 %v16123_v43, %v20035_v6  ;;  %v12023_v33 = vpop.f32.mrb[5].mxu1 }
 0x57f   : > { %v12377_v35 = vpack.c.bf16 %v12326_v17, %v12325_v42  ;;  %v16258_v31 = vadd.f32 %v12023_v33, %v20036_v22  ;;  %v16124_v18 = vpop.f32.mrb[6].mxu1 }
 0x580   : > { %v12267_v13 = vadd.f32 %v16257_v51, %v19645_v29  ;;  %v16259_v61 = vadd.f32 %v16124_v18, %v20037_v38  ;;  %v12026_v1 = vpop.f32.mrb[7].mxu1 }
 0x581   : > { %v12265_v2 = vadd.f32 %v16258_v31, %v19645_v29  ;;  %v16260_v21 = vadd.f32 %v12026_v1, %v20038_v57  ;;  %16185 = vmatprep.mubr.msk.bf16.mxu0 %vm3701_vm9, %v12377_v35  ;;  %v20047_v35 = vld [vmem:[#allocation19_spill] sm:$0xff] }
 0x582   : > { %v12268_v3 = vadd.f32 %v16259_v61, %v19645_v29  ;;  %16186 = vmatmul.mubr.msk.bf16.gmra.mrb[152].mxu0 %vm3701_vm9, %v12378_v39  ;;  %v12331_v47 = vmax.f32 %v12267_v13, 0.0  ;;  %v20048_v13 = vld [vmem:[#allocation20_spill] sm:$0xff] }
 0x583   : > { %v12266_v49 = vadd.f32 %v16260_v21, %v19645_v29  ;;  %v12329_v16 = vmax.f32 %v12265_v2, 0.0  ;;  %v20049_v2 = vld [vmem:[#allocation21_spill] sm:$0xff] }
 0x584   : > { %v12332_v4 = vmax.f32 %v12268_v3, 0.0 }
 0x585   : > { %v12330_v52 = vmax.f32 %v12266_v49, 0.0  ;;  %v16127_v59 = vpop.f32.mrb[8].mxu1  ;;  %v20050_v49 = vld [vmem:[#allocation22_spill] sm:$0xff] }
 0x586   : > { %v12380_v27 = vpack.c.bf16 %v12332_v4, %v12331_v47  ;;  %v16261_v23 = vadd.f32 %v16127_v59, %v20039_v5  ;;  %v12039_v20 = vpop.f32.mrb[9].mxu1 }
 0x587   : > { %v12379_v9 = vpack.c.bf16 %v12330_v52, %v12329_v16  ;;  %v16262_v26 = vadd.f32 %v12039_v20, %v20040_v30  ;;  %v16128_v60 = vpop.f32.mrb[10].mxu1 }
 0x588   : > { %v12271_v25 = vadd.f32 %v16261_v23, %v19645_v29  ;;  %v16263_v55 = vadd.f32 %v16128_v60, %v20041_v11  ;;  %v12042_v19 = vpop.f32.mrb[11].mxu1 }
 0x589   : > { %v12269_v56 = vadd.f32 %v16262_v26, %v19645_v29  ;;  %v16264_v10 = vadd.f32 %v12042_v19, %v20042_v62  ;;  %16189 = vmatprep.mubr.msk.bf16.mxu0 %vm3701_vm9, %v12379_v9  ;;  %v20051_v9 = vld [vmem:[#allocation23_spill] sm:$0xff] }
 0x58a   : > { %v12272_v48 = vadd.f32 %v16263_v55, %v19645_v29  ;;  %16190 = vmatmul.mubr.msk.bf16.gmra.mrb[156].mxu0 %vm3701_vm9, %v12380_v27  ;;  %v12335_v34 = vmax.f32 %v12271_v25, 0.0  ;;  %v20052_v25 = vld [vmem:[#allocation24_spill] sm:$0xff] }
 0x58b   : > { %v12270_v32 = vadd.f32 %v16264_v10, %v19645_v29  ;;  %v12333_v37 = vmax.f32 %v12269_v56, 0.0  ;;  %v20053_v56 = vld [vmem:[#allocation25_spill] sm:$0xff] }
 0x58c   : > { %v12336_v50 = vmax.f32 %v12272_v48, 0.0 }
 0x58d   : > { %v12334_v41 = vmax.f32 %v12270_v32, 0.0  ;;  %v16131_v36 = vpop.f32.mrb[12].mxu1  ;;  %v20054_v32 = vld [vmem:[#allocation26_spill] sm:$0xff] }
 0x58e   : > { %v12382_v53 = vpack.c.bf16 %v12336_v50, %v12335_v34  ;;  %v16265_v40 = vadd.f32 %v16131_v36, %v20043_v14  ;;  %v12055_v0 = vpop.f32.mrb[13].mxu1 }
 0x58f   : > { %v12381_v28 = vpack.c.bf16 %v12334_v41, %v12333_v37  ;;  %v16266_v54 = vadd.f32 %v12055_v0, %v20044_v44  ;;  %v16132_v58 = vpop.f32.mrb[14].mxu1 }
 0x590   : > { %v12275_v46 = vadd.f32 %v16265_v40, %v19645_v29  ;;  %v16267_v24 = vadd.f32 %v16132_v58, %v20045_v45  ;;  %v12058_v15 = vpop.f32.mrb[15].mxu1 }
 0x591   : > { %v12273_v7 = vadd.f32 %v16266_v54, %v19645_v29  ;;  %v16268_v63 = vadd.f32 %v12058_v15, %v20046_v8  ;;  %16193 = vmatprep.mubr.msk.bf16.mxu0 %vm3701_vm9, %v12381_v28  ;;  %v20055_v28 = vld [vmem:[#allocation27_spill] sm:$0xff] }
 0x592   : > { %v12276_v12 = vadd.f32 %v16267_v24, %v19645_v29  ;;  %16194 = vmatmul.mubr.msk.bf16.gmra.mrb[160].mxu0 %vm3701_vm9, %v12382_v53  ;;  %v12339_v17 = vmax.f32 %v12275_v46, 0.0  ;;  %v20056_v46 = vld [vmem:[#allocation28_spill] sm:$0xff] }
 0x593   : > { %v12274_v42 = vadd.f32 %v16268_v63, %v19645_v29  ;;  %v12337_v39 = vmax.f32 %v12273_v7, 0.0  ;;  %v20057_v7 = vld [vmem:[#allocation29_spill] sm:$0xff] }
 0x594   : > { %v12340_v43 = vmax.f32 %v12276_v12, 0.0 }
 0x595   : > { %v12338_v6 = vmax.f32 %v12274_v42, 0.0  ;;  %v16135_v51 = vpop.f32.mrb[16].mxu1  ;;  %v20058_v42 = vld [vmem:[#allocation30_spill] sm:$0xff] }
 0x596   : > { %v12384_v33 = vpack.c.bf16 %v12340_v43, %v12339_v17  ;;  %v16269_v22 = vadd.f32 %v16135_v51, %v20047_v35  ;;  %v12071_v31 = vpop.f32.mrb[17].mxu1 }
 0x597   : > { %v12383_v18 = vpack.c.bf16 %v12338_v6, %v12337_v39  ;;  %v16270_v38 = vadd.f32 %v12071_v31, %v20048_v13  ;;  %v16136_v61 = vpop.f32.mrb[18].mxu1 }
 0x598   : > { %v12279_v1 = vadd.f32 %v16269_v22, %v19645_v29  ;;  %v16271_v57 = vadd.f32 %v16136_v61, %v20049_v2  ;;  %v12074_v21 = vpop.f32.mrb[19].mxu1 }
 0x599   : > { %v12277_v3 = vadd.f32 %v16270_v38, %v19645_v29  ;;  %v16272_v47 = vadd.f32 %v12074_v21, %v20050_v49  ;;  %16197 = vmatprep.mubr.msk.bf16.mxu0 %vm3701_vm9, %v12383_v18  ;;  %v20059_v18 = vld [vmem:[#allocation31_spill] sm:$0xff] }
 0x59a   : > { %v12280_v4 = vadd.f32 %v16271_v57, %v19645_v29  ;;  %16198 = vmatmul.mubr.msk.bf16.gmra.mrb[164].mxu0 %vm3701_vm9, %v12384_v33  ;;  %v12343_v52 = vmax.f32 %v12279_v1, 0.0  ;;  %v20060_v1 = vld [vmem:[#allocation32_spill] sm:$0xff] }
 0x59b   : > { %v12278_v16 = vadd.f32 %v16272_v47, %v19645_v29  ;;  %v12341_v27 = vmax.f32 %v12277_v3, 0.0  ;;  %v20061_v3 = vld [vmem:[#allocation33_spill] sm:$0xff] }
 0x59c   : > { %v12344_v59 = vmax.f32 %v12280_v4, 0.0 }
 0x59d   : > { %v12342_v5 = vmax.f32 %v12278_v16, 0.0  ;;  %v16139_v23 = vpop.f32.mrb[20].mxu1  ;;  %v20062_v16 = vld [vmem:[#allocation34_spill] sm:$0xff] }
 0x59e   : > { %v12386_v20 = vpack.c.bf16 %v12344_v59, %v12343_v52  ;;  %v16273_v30 = vadd.f32 %v16139_v23, %v20051_v9  ;;  %v12087_v26 = vpop.f32.mrb[21].mxu1 }
 0x59f   : > { %v12385_v60 = vpack.c.bf16 %v12342_v5, %v12341_v27  ;;  %v16274_v11 = vadd.f32 %v12087_v26, %v20052_v25  ;;  %v16140_v55 = vpop.f32.mrb[22].mxu1 }
 0x5a0   : > { %v12283_v19 = vadd.f32 %v16273_v30, %v19645_v29  ;;  %v16275_v62 = vadd.f32 %v16140_v55, %v20053_v56  ;;  %v12090_v10 = vpop.f32.mrb[23].mxu1 }
 0x5a1   : > { %v12281_v48 = vadd.f32 %v16274_v11, %v19645_v29  ;;  %v16276_v34 = vadd.f32 %v12090_v10, %v20054_v32  ;;  %16201 = vmatprep.mubr.msk.bf16.mxu0 %vm3701_vm9, %v12385_v60  ;;  %v20063_v60 = vld [vmem:[#allocation35_spill] sm:$0xff] }
 0x5a2   : > { %v12284_v50 = vadd.f32 %v16275_v62, %v19645_v29  ;;  %16202 = vmatmul.mubr.msk.bf16.gmra.mrb[168].mxu0 %vm3701_vm9, %v12386_v20  ;;  %v12347_v41 = vmax.f32 %v12283_v19, 0.0  ;;  %v20064_v19 = vld [vmem:[#allocation36_spill] sm:$0xff] }
 0x5a3   : > { %v12282_v37 = vadd.f32 %v16276_v34, %v19645_v29  ;;  %v12345_v53 = vmax.f32 %v12281_v48, 0.0  ;;  %v20065_v48 = vld [vmem:[#allocation37_spill] sm:$0xff] }
 0x5a4   : > { %v12348_v36 = vmax.f32 %v12284_v50, 0.0 }
 0x5a5   : > { %v12346_v14 = vmax.f32 %v12282_v37, 0.0  ;;  %v16143_v40 = vpop.f32.mrb[24].mxu1  ;;  %v20066_v37 = vld [vmem:[#allocation38_spill] sm:$0xff] }
 0x5a6   : > { %v12388_v0 = vpack.c.bf16 %v12348_v36, %v12347_v41  ;;  %v16277_v44 = vadd.f32 %v16143_v40, %v20055_v28  ;;  %v12103_v54 = vpop.f32.mrb[25].mxu1 }
 0x5a7   : > { %v12387_v58 = vpack.c.bf16 %v12346_v14, %v12345_v53  ;;  %v16278_v45 = vadd.f32 %v12103_v54, %v20056_v46  ;;  %v16144_v24 = vpop.f32.mrb[26].mxu1 }
 0x5a8   : > { %v12287_v15 = vadd.f32 %v16277_v44, %v19645_v29  ;;  %v16279_v8 = vadd.f32 %v16144_v24, %v20057_v7  ;;  %v12106_v63 = vpop.f32.mrb[27].mxu1 }
 0x5a9   : > { %v12285_v12 = vadd.f32 %v16278_v45, %v19645_v29  ;;  %v16280_v17 = vadd.f32 %v12106_v63, %v20058_v42  ;;  %16205 = vmatprep.mubr.msk.bf16.mxu0 %vm3701_vm9, %v12387_v58  ;;  %v20067_v58 = vld [vmem:[#allocation39_spill] sm:$0xff] }
 0x5aa   : > { %v12288_v43 = vadd.f32 %v16279_v8, %v19645_v29  ;;  %16206 = vmatmul.mubr.msk.bf16.gmra.mrb[172].mxu0 %vm3701_vm9, %v12388_v0  ;;  %v12351_v6 = vmax.f32 %v12287_v15, 0.0  ;;  %v20068_v15 = vld [vmem:[#allocation40_spill] sm:$0xff] }
 0x5ab   : > { %v12286_v39 = vadd.f32 %v16280_v17, %v19645_v29  ;;  %v12349_v33 = vmax.f32 %v12285_v12, 0.0  ;;  %v20069_v12 = vld [vmem:[#allocation41_spill] sm:$0xff] }
 0x5ac   : > { %v12352_v51 = vmax.f32 %v12288_v43, 0.0 }
 0x5ad   : > { %v12350_v35 = vmax.f32 %v12286_v39, 0.0  ;;  %v16147_v22 = vpop.f32.mrb[28].mxu1  ;;  %v20070_v39 = vld [vmem:[#allocation42_spill] sm:$0xff] }
 0x5ae   : > { %v12390_v31 = vpack.c.bf16 %v12352_v51, %v12351_v6  ;;  %v16281_v13 = vadd.f32 %v16147_v22, %v20059_v18  ;;  %v12119_v38 = vpop.f32.mrb[29].mxu1 }
 0x5af   : > { %v12389_v61 = vpack.c.bf16 %v12350_v35, %v12349_v33  ;;  %v16282_v2 = vadd.f32 %v12119_v38, %v20060_v1  ;;  %v16148_v57 = vpop.f32.mrb[30].mxu1  ;;  %v19819_v1 = vld [vmem:[%s479_s19] ss:$0 sm:$0xff] }
 0x5b0   : > { %v12291_v21 = vadd.f32 %v16281_v13, %v19645_v29  ;;  %v16283_v49 = vadd.f32 %v16148_v57, %v20061_v3  ;;  %v12122_v47 = vpop.f32.mrb[31].mxu1 }
 0x5b1   : > { %v12289_v4 = vadd.f32 %v16282_v2, %v19645_v29  ;;  %v16284_v52 = vadd.f32 %v12122_v47, %v20062_v16  ;;  %16209 = vmatprep.mubr.msk.bf16.mxu0 %vm3701_vm9, %v12389_v61  ;;  %v14736_v61 = vld [vmem:[%s19811_s16] sm:$0xff]  }
 0x5b2   : > { %v12292_v59 = vadd.f32 %v16283_v49, %v19645_v29  ;;  %16210 = vmatmul.mubr.msk.bf16.gmra.mrb[176].mxu0 %vm3701_vm9, %v12390_v31  ;;  %v12355_v5 = vmax.f32 %v12291_v21, 0.0  ;;  %v14737_v21 = vunpack.c.l.bf16 %v14736_v61 }
 0x5b3   : > { %v12290_v27 = vadd.f32 %v16284_v52, %v19645_v29  ;;  %v12353_v20 = vmax.f32 %v12289_v4, 0.0  ;;  %v14738_v52 = vunpack.c.h.bf16 %v14736_v61  ;;  %v15029_v61 = vld [vmem:[%s19811_s16 + $0x38] sm:$0xff]  }
 0x5b4   : > { %v12356_v23 = vmax.f32 %v12292_v59, 0.0 }
 0x5b5   : > { %v12354_v9 = vmax.f32 %v12290_v27, 0.0  ;;  %v16151_v30 = vpop.f32.mrb[32].mxu1 }
 0x5b6   : > { %v12392_v26 = vpack.c.bf16 %v12356_v23, %v12355_v5  ;;  %v16285_v25 = vadd.f32 %v16151_v30, %v20063_v60  ;;  %v12135_v11 = vpop.f32.mrb[33].mxu1 }
 0x5b7   : > { %v12391_v55 = vpack.c.bf16 %v12354_v9, %v12353_v20  ;;  %v16286_v56 = vadd.f32 %v12135_v11, %v20064_v19  ;;  %v16152_v62 = vpop.f32.mrb[34].mxu1  ;;  %v15025_v9 = vld [vmem:[%s19811_s16 + $0x18] sm:$0xff]  }
 0x5b8   : > { %v12295_v10 = vadd.f32 %v16285_v25, %v19645_v29  ;;  %v16287_v32 = vadd.f32 %v16152_v62, %v20065_v48  ;;  %v12138_v34 = vpop.f32.mrb[35].mxu1 }
 0x5b9   : > { %v12293_v50 = vadd.f32 %v16286_v56, %v19645_v29  ;;  %v16288_v41 = vadd.f32 %v12138_v34, %v20066_v37  ;;  %16213 = vmatprep.mubr.msk.bf16.mxu0 %vm3701_vm9, %v12391_v55  ;;  %v14749_v55 = vunpack.c.l.bf16 %v15025_v9 }
 0x5ba   : > { %v12296_v36 = vadd.f32 %v16287_v32, %v19645_v29  ;;  %16214 = vmatmul.mubr.msk.bf16.gmra.mrb[180].mxu0 %vm3701_vm9, %v12392_v26  ;;  %v12359_v14 = vmax.f32 %v12295_v10, 0.0  ;;  %v15024_v26 = vld [vmem:[%s19811_s16 + $0x10] sm:$0xff]  }
 0x5bb   : > { %v12294_v53 = vadd.f32 %v16288_v41, %v19645_v29  ;;  %v12357_v0 = vmax.f32 %v12293_v50, 0.0  ;;  %v14745_v10 = vunpack.c.l.bf16 %v15024_v26  ;;  %v14750_v50 = vunpack.c.h.bf16 %v15025_v9 }
 0x5bc   : > { %v12360_v40 = vmax.f32 %v12296_v36, 0.0 }
 0x5bd   : > { %v12358_v28 = vmax.f32 %v12294_v53, 0.0  ;;  %v16155_v44 = vpop.f32.mrb[36].mxu1  ;;  %v14746_v53 = vunpack.c.h.bf16 %v15024_v26 }
 0x5be   : > { %v12394_v54 = vpack.c.bf16 %v12360_v40, %v12359_v14  ;;  %v16289_v46 = vadd.f32 %v16155_v44, %v20067_v58  ;;  %v12151_v45 = vpop.f32.mrb[37].mxu1 }
 0x5bf   : > { %v12393_v24 = vpack.c.bf16 %v12358_v28, %v12357_v0  ;;  %v16290_v7 = vadd.f32 %v12151_v45, %v20068_v15  ;;  %v16156_v8 = vpop.f32.mrb[38].mxu1 }
 0x5c0   : > { %v12299_v63 = vadd.f32 %v16289_v46, %v19645_v29  ;;  %v16291_v42 = vadd.f32 %v16156_v8, %v20069_v12  ;;  %v12154_v17 = vpop.f32.mrb[39].mxu1  ;;  %v15026_v46 = vld [vmem:[%s19811_s16 + $0x20] sm:$0xff]  }
 0x5c1   : > { %v12297_v43 = vadd.f32 %v16290_v7, %v19645_v29  ;;  %v16292_v6 = vadd.f32 %v12154_v17, %v20070_v39  ;;  %16217 = vmatprep.mubr.msk.bf16.mxu0 %vm3701_vm9, %v12393_v24 }
 0x5c2   : > { %v12300_v51 = vadd.f32 %v16291_v42, %v19645_v29  ;;  %16218 = vmatmul.mubr.msk.bf16.gmra.mrb[184].mxu0 %vm3701_vm9, %v12394_v54  ;;  %v12363_v35 = vmax.f32 %v12299_v63, 0.0  ;;  %v15027_v54 = vld [vmem:[%s19811_s16 + $0x28] sm:$0xff]   ;;  %v14753_v42 = vunpack.c.l.bf16 %v15026_v46 }
 0x5c3   : > { %v12298_v33 = vadd.f32 %v16292_v6, %v19645_v29  ;;  %v12361_v31 = vmax.f32 %v12297_v43, 0.0  ;;  %v15023_v29 = vld [vmem:[%s19811_s16 + $0x8] sm:$0xff]   ;;  %v14757_v7 = vunpack.c.l.bf16 %v15027_v54  ;;  %v14758_v6 = vunpack.c.h.bf16 %v15027_v54 }
 0x5c4   : > { %v12364_v22 = vmax.f32 %v12300_v51, 0.0  ;;  %v14741_v2 = vunpack.c.l.bf16 %v15023_v29  ;;  %v14742_v47 = vunpack.c.h.bf16 %v15023_v29 }
 0x5c5   : > { %v12362_v18 = vmax.f32 %v12298_v33, 0.0 }
 0x5c6   : > { %v12396_v13 = vpack.c.bf16 %v12364_v22, %v12363_v35  ;;  %v14754_v22 = vunpack.c.h.bf16 %v15026_v46 }
 0x5c7   : > { %v12395_v38 = vpack.c.bf16 %v12362_v18, %v12361_v31 }
 0x5c9   : > { %16221 = vmatprep.mubr.msk.bf16.mxu0 %vm3701_vm9, %v12395_v38 }
 0x5ca   : > { %16222 = vmatmul.mubr.msk.bf16.gmra.mrb[188].mxu0 %vm3701_vm9, %v12396_v13 }
 0x625   : > { %v16163_v57 = vpop.f32.mrb[128].mxu0 }
 0x626   : > { %v12559_v3 = vadd.f32 %v16163_v57, %v19819_v1  ;;  %v12550_v49 = vpop.f32.mrb[129].mxu0  ;;  %v15028_v57 = vld [vmem:[%s19811_s16 + $0x30] sm:$0xff]  }
 0x627   : > { %v12551_v4 = vadd.f32 %v19819_v1, %v12550_v49  ;;  %v16164_v16 = vpop.f32.mrb[130].mxu0 }
 0x628   : > { %v12935_v59 = vadd.f32 %v14741_v2, %v12559_v3  ;;  %v12562_v27 = vadd.f32 %v16164_v16, %v19819_v1  ;;  %v12553_v5 = vpop.f32.mrb[131].mxu0 }
 0x629   : > { %v12933_v23 = vadd.f32 %v14737_v21, %v12551_v4  ;;  %v12554_v20 = vadd.f32 %v19819_v1, %v12553_v5 }
 0x62a   : > { %v12936_v30 = vadd.f32 %v14742_v47, %v12562_v27  ;;  %v12999_v25 = vmax.f32 %v12935_v59, 0.0  ;;  %v14765_v47 = vunpack.c.l.bf16 %v15029_v61  ;;  %v14761_v59 = vunpack.c.l.bf16 %v15028_v57 }
 0x62b   : > { %v12934_v60 = vadd.f32 %v14738_v52, %v12554_v20  ;;  %v12997_v19 = vmax.f32 %v12933_v23, 0.0  ;;  %v14766_v20 = vunpack.c.h.bf16 %v15029_v61 }
 0x62c   : > { %v13000_v11 = vmax.f32 %v12936_v30, 0.0 }
 0x62d   : > { %v12998_v56 = vmax.f32 %v12934_v60, 0.0  ;;  %v16167_v62 = vpop.f32.mrb[132].mxu0  ;;  %v14762_v60 = vunpack.c.h.bf16 %v15028_v57 }
 0x62e   : > { %v14871_v48 = vpack.c.bf16 %v13000_v11, %v12999_v25  ;;  %v12575_v32 = vadd.f32 %v16167_v62, %v19819_v1  ;;  %v12566_v34 = vpop.f32.mrb[133].mxu0  ;;  %v15031_v62 = vld [vmem:[%s19811_s16 + $0x48] sm:$0xff]  }
 0x62f   : > { %v14866_v37 = vpack.c.bf16 %v12998_v56, %v12997_v19  ;;  %v12567_v41 = vadd.f32 %v19819_v1, %v12566_v34  ;;  %v16168_v36 = vpop.f32.mrb[134].mxu0 }
 0x630   : > { %15054 = vst [vmem:[%s19831_s21 + $0x8] sm:$0xff] %v14871_v48   ;;  %v12939_v14 = vadd.f32 %v14749_v55, %v12575_v32  ;;  %v12578_v40 = vadd.f32 %v16168_v36, %v19819_v1  ;;  %v12569_v0 = vpop.f32.mrb[135].mxu0  ;;  %v15030_v48 = vld [vmem:[%s19811_s16 + $0x40] sm:$0xff]  }
 0x631   : > { %14867 = vst [vmem:[%s19831_s21] sm:$0xff] %v14866_v37   ;;  %v12937_v28 = vadd.f32 %v14745_v10, %v12567_v41  ;;  %v12570_v44 = vadd.f32 %v19819_v1, %v12569_v0  ;;  %v14773_v37 = vunpack.c.l.bf16 %v15031_v62 }
 0x632   : > { %v12940_v58 = vadd.f32 %v14750_v50, %v12578_v40  ;;  %v13003_v24 = vmax.f32 %v12939_v14, 0.0  ;;  %v14769_v14 = vunpack.c.l.bf16 %v15030_v48 }
 0x633   : > { %v12938_v45 = vadd.f32 %v14746_v53, %v12570_v44  ;;  %v13001_v8 = vmax.f32 %v12937_v28, 0.0  ;;  %v14774_v44 = vunpack.c.h.bf16 %v15031_v62 }
 0x634   : > { %v13004_v15 = vmax.f32 %v12940_v58, 0.0 }
 0x635   : > { %v13002_v63 = vmax.f32 %v12938_v45, 0.0  ;;  %v16171_v12 = vpop.f32.mrb[136].mxu0  ;;  %v14770_v45 = vunpack.c.h.bf16 %v15030_v48 }
 0x636   : > { %v14881_v17 = vpack.c.bf16 %v13004_v15, %v13003_v24  ;;  %v12591_v43 = vadd.f32 %v16171_v12, %v19819_v1  ;;  %v12582_v39 = vpop.f32.mrb[137].mxu0  ;;  %v15033_v12 = vld [vmem:[%s19811_s16 + $0x58] sm:$0xff]  }
 0x637   : > { %v14876_v51 = vpack.c.bf16 %v13002_v63, %v13001_v8  ;;  %v12583_v33 = vadd.f32 %v19819_v1, %v12582_v39  ;;  %v16172_v35 = vpop.f32.mrb[138].mxu0 }
 0x638   : > { %15056 = vst [vmem:[%s19831_s21 + $0x18] sm:$0xff] %v14881_v17   ;;  %v12943_v31 = vadd.f32 %v14757_v7, %v12591_v43  ;;  %v12594_v18 = vadd.f32 %v16172_v35, %v19819_v1  ;;  %v12585_v13 = vpop.f32.mrb[139].mxu0  ;;  %v15032_v17 = vld [vmem:[%s19811_s16 + $0x50] sm:$0xff]  }
 0x639   : > { %15055 = vst [vmem:[%s19831_s21 + $0x10] sm:$0xff] %v14876_v51   ;;  %v12941_v38 = vadd.f32 %v14753_v42, %v12583_v33  ;;  %v12586_v29 = vadd.f32 %v19819_v1, %v12585_v13  ;;  %v14781_v51 = vunpack.c.l.bf16 %v15033_v12 }
 0x63a   : > { %v12944_v2 = vadd.f32 %v14758_v6, %v12594_v18  ;;  %v13007_v3 = vmax.f32 %v12943_v31, 0.0  ;;  %v14777_v31 = vunpack.c.l.bf16 %v15032_v17 }
 0x63b   : > { %v12942_v21 = vadd.f32 %v14754_v22, %v12586_v29  ;;  %v13005_v4 = vmax.f32 %v12941_v38, 0.0  ;;  %v14782_v29 = vunpack.c.h.bf16 %v15033_v12 }
 0x63c   : > { %v13008_v49 = vmax.f32 %v12944_v2, 0.0 }
 0x63d   : > { %v13006_v16 = vmax.f32 %v12942_v21, 0.0  ;;  %v16175_v52 = vpop.f32.mrb[140].mxu0  ;;  %v14778_v21 = vunpack.c.h.bf16 %v15032_v17 }
 0x63e   : > { %v14891_v27 = vpack.c.bf16 %v13008_v49, %v13007_v3  ;;  %v12607_v5 = vadd.f32 %v16175_v52, %v19819_v1  ;;  %v12598_v23 = vpop.f32.mrb[141].mxu0  ;;  %v15035_v52 = vld [vmem:[%s19811_s16 + $0x68] sm:$0xff]  }
 0x63f   : > { %v14886_v9 = vpack.c.bf16 %v13006_v16, %v13005_v4  ;;  %v12599_v30 = vadd.f32 %v19819_v1, %v12598_v23  ;;  %v16176_v26 = vpop.f32.mrb[142].mxu0 }
 0x640   : > { %15058 = vst [vmem:[%s19831_s21 + $0x28] sm:$0xff] %v14891_v27   ;;  %v12947_v25 = vadd.f32 %v14765_v47, %v12607_v5  ;;  %v12610_v11 = vadd.f32 %v16176_v26, %v19819_v1  ;;  %v12601_v55 = vpop.f32.mrb[143].mxu0  ;;  %v15034_v27 = vld [vmem:[%s19811_s16 + $0x60] sm:$0xff]  }
 0x641   : > { %15057 = vst [vmem:[%s19831_s21 + $0x20] sm:$0xff] %v14886_v9   ;;  %v12945_v19 = vadd.f32 %v14761_v59, %v12599_v30  ;;  %v12602_v56 = vadd.f32 %v19819_v1, %v12601_v55  ;;  %v14789_v9 = vunpack.c.l.bf16 %v15035_v52 }
 0x642   : > { %v12948_v10 = vadd.f32 %v14766_v20, %v12610_v11  ;;  %v13011_v34 = vmax.f32 %v12947_v25, 0.0  ;;  %v14785_v25 = vunpack.c.l.bf16 %v15034_v27 }
 0x643   : > { %v12946_v32 = vadd.f32 %v14762_v60, %v12602_v56  ;;  %v13009_v41 = vmax.f32 %v12945_v19, 0.0  ;;  %v14790_v56 = vunpack.c.h.bf16 %v15035_v52 }
 0x644   : > { %v13012_v50 = vmax.f32 %v12948_v10, 0.0 }
 0x645   : > { %v13010_v36 = vmax.f32 %v12946_v32, 0.0  ;;  %v16179_v53 = vpop.f32.mrb[144].mxu0  ;;  %v14786_v32 = vunpack.c.h.bf16 %v15034_v27 }
 0x646   : > { %v14901_v40 = vpack.c.bf16 %v13012_v50, %v13011_v34  ;;  %v12623_v0 = vadd.f32 %v16179_v53, %v19819_v1  ;;  %v12614_v28 = vpop.f32.mrb[145].mxu0  ;;  %v15037_v53 = vld [vmem:[%s19811_s16 + $0x78] sm:$0xff]  }
 0x647   : > { %v14896_v54 = vpack.c.bf16 %v13010_v36, %v13009_v41  ;;  %v12615_v58 = vadd.f32 %v19819_v1, %v12614_v28  ;;  %v16180_v46 = vpop.f32.mrb[146].mxu0 }
 0x648   : > { %15060 = vst [vmem:[%s19831_s21 + $0x38] sm:$0xff] %v14901_v40   ;;  %v12951_v24 = vadd.f32 %v14773_v37, %v12623_v0  ;;  %v12626_v15 = vadd.f32 %v16180_v46, %v19819_v1  ;;  %v12617_v7 = vpop.f32.mrb[147].mxu0  ;;  %v15036_v40 = vld [vmem:[%s19811_s16 + $0x70] sm:$0xff]  }
 0x649   : > { %15059 = vst [vmem:[%s19831_s21 + $0x30] sm:$0xff] %v14896_v54   ;;  %v12949_v8 = vadd.f32 %v14769_v14, %v12615_v58  ;;  %v12618_v63 = vadd.f32 %v19819_v1, %v12617_v7  ;;  %v14797_v54 = vunpack.c.l.bf16 %v15037_v53 }
 0x64a   : > { %v12952_v42 = vadd.f32 %v14774_v44, %v12626_v15  ;;  %v13015_v39 = vmax.f32 %v12951_v24, 0.0  ;;  %v14793_v24 = vunpack.c.l.bf16 %v15036_v40 }
 0x64b   : > { %v12950_v43 = vadd.f32 %v14770_v45, %v12618_v63  ;;  %v13013_v33 = vmax.f32 %v12949_v8, 0.0  ;;  %v14798_v63 = vunpack.c.h.bf16 %v15037_v53 }
 0x64c   : > { %v13016_v6 = vmax.f32 %v12952_v42, 0.0 }
 0x64d   : > { %v13014_v35 = vmax.f32 %v12950_v43, 0.0  ;;  %v16183_v22 = vpop.f32.mrb[148].mxu0  ;;  %v14794_v43 = vunpack.c.h.bf16 %v15036_v40 }
 0x64e   : > { %v14911_v18 = vpack.c.bf16 %v13016_v6, %v13015_v39  ;;  %v12639_v13 = vadd.f32 %v16183_v22, %v19819_v1  ;;  %v12630_v38 = vpop.f32.mrb[149].mxu0  ;;  %v15039_v22 = vld [vmem:[%s19811_s16 + $0x88] sm:$0xff]  }
 0x64f   : > { %v14906_v61 = vpack.c.bf16 %v13014_v35, %v13013_v33  ;;  %v12631_v2 = vadd.f32 %v19819_v1, %v12630_v38  ;;  %v16184_v57 = vpop.f32.mrb[150].mxu0 }
 0x650   : > { %15062 = vst [vmem:[%s19831_s21 + $0x48] sm:$0xff] %v14911_v18   ;;  %v12955_v3 = vadd.f32 %v14781_v51, %v12639_v13  ;;  %v12642_v49 = vadd.f32 %v16184_v57, %v19819_v1  ;;  %v12633_v47 = vpop.f32.mrb[151].mxu0  ;;  %v15038_v18 = vld [vmem:[%s19811_s16 + $0x80] sm:$0xff]  }
 0x651   : > { %15061 = vst [vmem:[%s19831_s21 + $0x40] sm:$0xff] %v14906_v61   ;;  %v12953_v4 = vadd.f32 %v14777_v31, %v12631_v2  ;;  %v12634_v16 = vadd.f32 %v19819_v1, %v12633_v47  ;;  %v14805_v61 = vunpack.c.l.bf16 %v15039_v22 }
 0x652   : > { %v12956_v59 = vadd.f32 %v14782_v29, %v12642_v49  ;;  %v13019_v23 = vmax.f32 %v12955_v3, 0.0  ;;  %v14801_v3 = vunpack.c.l.bf16 %v15038_v18 }
 0x653   : > { %v12954_v5 = vadd.f32 %v14778_v21, %v12634_v16  ;;  %v13017_v30 = vmax.f32 %v12953_v4, 0.0  ;;  %v14806_v16 = vunpack.c.h.bf16 %v15039_v22 }
 0x654   : > { %v13020_v20 = vmax.f32 %v12956_v59, 0.0 }
 0x655   : > { %v13018_v26 = vmax.f32 %v12954_v5, 0.0  ;;  %v16187_v60 = vpop.f32.mrb[152].mxu0  ;;  %v14802_v5 = vunpack.c.h.bf16 %v15038_v18 }
 0x656   : > { %v14921_v11 = vpack.c.bf16 %v13020_v20, %v13019_v23  ;;  %v12655_v55 = vadd.f32 %v16187_v60, %v19819_v1  ;;  %v12646_v19 = vpop.f32.mrb[153].mxu0  ;;  %v15041_v60 = vld [vmem:[%s19811_s16 + $0x98] sm:$0xff]  }
 0x657   : > { %v14916_v62 = vpack.c.bf16 %v13018_v26, %v13017_v30  ;;  %v12647_v10 = vadd.f32 %v19819_v1, %v12646_v19  ;;  %v16188_v48 = vpop.f32.mrb[154].mxu0 }
 0x658   : > { %15064 = vst [vmem:[%s19831_s21 + $0x58] sm:$0xff] %v14921_v11   ;;  %v12959_v34 = vadd.f32 %v14789_v9, %v12655_v55  ;;  %v12658_v50 = vadd.f32 %v16188_v48, %v19819_v1  ;;  %v12649_v37 = vpop.f32.mrb[155].mxu0  ;;  %v15040_v11 = vld [vmem:[%s19811_s16 + $0x90] sm:$0xff]  }
 0x659   : > { %15063 = vst [vmem:[%s19831_s21 + $0x50] sm:$0xff] %v14916_v62   ;;  %v12957_v41 = vadd.f32 %v14785_v25, %v12647_v10  ;;  %v12650_v36 = vadd.f32 %v19819_v1, %v12649_v37  ;;  %v14813_v62 = vunpack.c.l.bf16 %v15041_v60 }
 0x65a   : > { %v12960_v14 = vadd.f32 %v14790_v56, %v12658_v50  ;;  %v13023_v28 = vmax.f32 %v12959_v34, 0.0  ;;  %v14809_v34 = vunpack.c.l.bf16 %v15040_v11 }
 0x65b   : > { %v12958_v0 = vadd.f32 %v14786_v32, %v12650_v36  ;;  %v13021_v58 = vmax.f32 %v12957_v41, 0.0  ;;  %v14814_v36 = vunpack.c.h.bf16 %v15041_v60 }
 0x65c   : > { %v13024_v44 = vmax.f32 %v12960_v14, 0.0 }
 0x65d   : > { %v13022_v46 = vmax.f32 %v12958_v0, 0.0  ;;  %v16191_v45 = vpop.f32.mrb[156].mxu0  ;;  %v14810_v0 = vunpack.c.h.bf16 %v15040_v11 }
 0x65e   : > { %v14931_v15 = vpack.c.bf16 %v13024_v44, %v13023_v28  ;;  %v12671_v7 = vadd.f32 %v16191_v45, %v19819_v1  ;;  %v12662_v8 = vpop.f32.mrb[157].mxu0  ;;  %v15043_v45 = vld [vmem:[%s19811_s16 + $0xa8] sm:$0xff]  }
 0x65f   : > { %v14926_v12 = vpack.c.bf16 %v13022_v46, %v13021_v58  ;;  %v12663_v42 = vadd.f32 %v19819_v1, %v12662_v8  ;;  %v16192_v17 = vpop.f32.mrb[158].mxu0 }
 0x660   : > { %15066 = vst [vmem:[%s19831_s21 + $0x68] sm:$0xff] %v14931_v15   ;;  %v12963_v39 = vadd.f32 %v14797_v54, %v12671_v7  ;;  %v12674_v6 = vadd.f32 %v16192_v17, %v19819_v1  ;;  %v12665_v51 = vpop.f32.mrb[159].mxu0  ;;  %v15042_v15 = vld [vmem:[%s19811_s16 + $0xa0] sm:$0xff]  }
 0x661   : > { %15065 = vst [vmem:[%s19831_s21 + $0x60] sm:$0xff] %v14926_v12   ;;  %v12961_v33 = vadd.f32 %v14793_v24, %v12663_v42  ;;  %v12666_v35 = vadd.f32 %v19819_v1, %v12665_v51  ;;  %v14821_v12 = vunpack.c.l.bf16 %v15043_v45 }
 0x662   : > { %v12964_v31 = vadd.f32 %v14798_v63, %v12674_v6  ;;  %v13027_v38 = vmax.f32 %v12963_v39, 0.0  ;;  %v14817_v39 = vunpack.c.l.bf16 %v15042_v15 }
 0x663   : > { %v12962_v13 = vadd.f32 %v14794_v43, %v12666_v35  ;;  %v13025_v2 = vmax.f32 %v12961_v33, 0.0  ;;  %v14822_v35 = vunpack.c.h.bf16 %v15043_v45 }
 0x664   : > { %v13028_v29 = vmax.f32 %v12964_v31, 0.0 }
 0x665   : > { %v13026_v57 = vmax.f32 %v12962_v13, 0.0  ;;  %v16195_v21 = vpop.f32.mrb[160].mxu0  ;;  %v14818_v13 = vunpack.c.h.bf16 %v15042_v15 }
 0x666   : > { %v14941_v49 = vpack.c.bf16 %v13028_v29, %v13027_v38  ;;  %v12687_v47 = vadd.f32 %v16195_v21, %v19819_v1  ;;  %v12678_v4 = vpop.f32.mrb[161].mxu0  ;;  %v15045_v21 = vld [vmem:[%s19811_s16 + $0xb8] sm:$0xff]  }
 0x667   : > { %v14936_v52 = vpack.c.bf16 %v13026_v57, %v13025_v2  ;;  %v12679_v59 = vadd.f32 %v19819_v1, %v12678_v4  ;;  %v16196_v27 = vpop.f32.mrb[162].mxu0 }
 0x668   : > { %15068 = vst [vmem:[%s19831_s21 + $0x78] sm:$0xff] %v14941_v49   ;;  %v12967_v23 = vadd.f32 %v14805_v61, %v12687_v47  ;;  %v12690_v20 = vadd.f32 %v16196_v27, %v19819_v1  ;;  %v12681_v9 = vpop.f32.mrb[163].mxu0  ;;  %v15044_v49 = vld [vmem:[%s19811_s16 + $0xb0] sm:$0xff]  }
 0x669   : > { %15067 = vst [vmem:[%s19831_s21 + $0x70] sm:$0xff] %v14936_v52   ;;  %v12965_v30 = vadd.f32 %v14801_v3, %v12679_v59  ;;  %v12682_v26 = vadd.f32 %v19819_v1, %v12681_v9  ;;  %v14829_v52 = vunpack.c.l.bf16 %v15045_v21 }
 0x66a   : > { %v12968_v25 = vadd.f32 %v14806_v16, %v12690_v20  ;;  %v13031_v19 = vmax.f32 %v12967_v23, 0.0  ;;  %v14825_v23 = vunpack.c.l.bf16 %v15044_v49 }
 0x66b   : > { %v12966_v55 = vadd.f32 %v14802_v5, %v12682_v26  ;;  %v13029_v10 = vmax.f32 %v12965_v30, 0.0  ;;  %v14830_v26 = vunpack.c.h.bf16 %v15045_v21 }
 0x66c   : > { %v13032_v56 = vmax.f32 %v12968_v25, 0.0 }
 0x66d   : > { %v13030_v48 = vmax.f32 %v12966_v55, 0.0  ;;  %v16199_v32 = vpop.f32.mrb[164].mxu0  ;;  %v14826_v55 = vunpack.c.h.bf16 %v15044_v49 }
 0x66e   : > { %v14951_v50 = vpack.c.bf16 %v13032_v56, %v13031_v19  ;;  %v12703_v37 = vadd.f32 %v16199_v32, %v19819_v1  ;;  %v12694_v41 = vpop.f32.mrb[165].mxu0  ;;  %v15047_v32 = vld [vmem:[%s19811_s16 + $0xc8] sm:$0xff]  }
 0x66f   : > { %v14946_v53 = vpack.c.bf16 %v13030_v48, %v13029_v10  ;;  %v12695_v14 = vadd.f32 %v19819_v1, %v12694_v41  ;;  %v16200_v40 = vpop.f32.mrb[166].mxu0 }
 0x670   : > { %15070 = vst [vmem:[%s19831_s21 + $0x88] sm:$0xff] %v14951_v50   ;;  %v12971_v28 = vadd.f32 %v14813_v62, %v12703_v37  ;;  %v12706_v44 = vadd.f32 %v16200_v40, %v19819_v1  ;;  %v12697_v54 = vpop.f32.mrb[167].mxu0  ;;  %v15046_v50 = vld [vmem:[%s19811_s16 + $0xc0] sm:$0xff]  }
 0x671   : > { %15069 = vst [vmem:[%s19831_s21 + $0x80] sm:$0xff] %v14946_v53   ;;  %v12969_v58 = vadd.f32 %v14809_v34, %v12695_v14  ;;  %v12698_v46 = vadd.f32 %v19819_v1, %v12697_v54  ;;  %v14837_v53 = vunpack.c.l.bf16 %v15047_v32 }
 0x672   : > { %v12972_v24 = vadd.f32 %v14814_v36, %v12706_v44  ;;  %v13035_v8 = vmax.f32 %v12971_v28, 0.0  ;;  %v14833_v28 = vunpack.c.l.bf16 %v15046_v50 }
 0x673   : > { %v12970_v7 = vadd.f32 %v14810_v0, %v12698_v46  ;;  %v13033_v42 = vmax.f32 %v12969_v58, 0.0  ;;  %v14838_v46 = vunpack.c.h.bf16 %v15047_v32 }
 0x674   : > { %v13036_v63 = vmax.f32 %v12972_v24, 0.0 }
 0x675   : > { %v13034_v17 = vmax.f32 %v12970_v7, 0.0  ;;  %v16203_v43 = vpop.f32.mrb[168].mxu0  ;;  %v14834_v7 = vunpack.c.h.bf16 %v15046_v50 }
 0x676   : > { %v14961_v6 = vpack.c.bf16 %v13036_v63, %v13035_v8  ;;  %v12719_v51 = vadd.f32 %v16203_v43, %v19819_v1  ;;  %v12710_v33 = vpop.f32.mrb[169].mxu0  ;;  %v15049_v43 = vld [vmem:[%s19811_s16 + $0xd8] sm:$0xff]  }
 0x677   : > { %v14956_v22 = vpack.c.bf16 %v13034_v17, %v13033_v42  ;;  %v12711_v31 = vadd.f32 %v19819_v1, %v12710_v33  ;;  %v16204_v18 = vpop.f32.mrb[170].mxu0 }
 0x678   : > { %15072 = vst [vmem:[%s19831_s21 + $0x98] sm:$0xff] %v14961_v6   ;;  %v12975_v38 = vadd.f32 %v14821_v12, %v12719_v51  ;;  %v12722_v29 = vadd.f32 %v16204_v18, %v19819_v1  ;;  %v12713_v61 = vpop.f32.mrb[171].mxu0  ;;  %v15048_v6 = vld [vmem:[%s19811_s16 + $0xd0] sm:$0xff]  }
 0x679   : > { %15071 = vst [vmem:[%s19831_s21 + $0x90] sm:$0xff] %v14956_v22   ;;  %v12973_v2 = vadd.f32 %v14817_v39, %v12711_v31  ;;  %v12714_v57 = vadd.f32 %v19819_v1, %v12713_v61  ;;  %v14845_v22 = vunpack.c.l.bf16 %v15049_v43 }
 0x67a   : > { %v12976_v3 = vadd.f32 %v14822_v35, %v12722_v29  ;;  %v13039_v4 = vmax.f32 %v12975_v38, 0.0  ;;  %v14841_v38 = vunpack.c.l.bf16 %v15048_v6 }
 0x67b   : > { %v12974_v47 = vadd.f32 %v14818_v13, %v12714_v57  ;;  %v13037_v59 = vmax.f32 %v12973_v2, 0.0  ;;  %v14846_v57 = vunpack.c.h.bf16 %v15049_v43 }
 0x67c   : > { %v13040_v16 = vmax.f32 %v12976_v3, 0.0 }
 0x67d   : > { %v13038_v27 = vmax.f32 %v12974_v47, 0.0  ;;  %v16207_v5 = vpop.f32.mrb[172].mxu0  ;;  %v14842_v47 = vunpack.c.h.bf16 %v15048_v6 }
 0x67e   : > { %v14971_v20 = vpack.c.bf16 %v13040_v16, %v13039_v4  ;;  %v12735_v9 = vadd.f32 %v16207_v5, %v19819_v1  ;;  %v12726_v30 = vpop.f32.mrb[173].mxu0  ;;  %v15051_v5 = vld [vmem:[%s19811_s16 + $0xe8] sm:$0xff]  }
 0x67f   : > { %v14966_v60 = vpack.c.bf16 %v13038_v27, %v13037_v59  ;;  %v12727_v25 = vadd.f32 %v19819_v1, %v12726_v30  ;;  %v16208_v11 = vpop.f32.mrb[174].mxu0 }
 0x680   : > { %15074 = vst [vmem:[%s19831_s21 + $0xa8] sm:$0xff] %v14971_v20   ;;  %v12979_v19 = vadd.f32 %v14829_v52, %v12735_v9  ;;  %v12738_v56 = vadd.f32 %v16208_v11, %v19819_v1  ;;  %v12729_v62 = vpop.f32.mrb[175].mxu0  ;;  %v15050_v20 = vld [vmem:[%s19811_s16 + $0xe0] sm:$0xff]  }
 0x681   : > { %15073 = vst [vmem:[%s19831_s21 + $0xa0] sm:$0xff] %v14966_v60   ;;  %v12977_v10 = vadd.f32 %v14825_v23, %v12727_v25  ;;  %v12730_v48 = vadd.f32 %v19819_v1, %v12729_v62  ;;  %v14853_v60 = vunpack.c.l.bf16 %v15051_v5 }
 0x682   : > { %v12980_v34 = vadd.f32 %v14830_v26, %v12738_v56  ;;  %v13043_v41 = vmax.f32 %v12979_v19, 0.0  ;;  %v14849_v19 = vunpack.c.l.bf16 %v15050_v20 }
 0x683   : > { %v12978_v37 = vadd.f32 %v14826_v55, %v12730_v48  ;;  %v13041_v14 = vmax.f32 %v12977_v10, 0.0  ;;  %v14854_v48 = vunpack.c.h.bf16 %v15051_v5 }
 0x684   : > { %v13044_v36 = vmax.f32 %v12980_v34, 0.0 }
 0x685   : > { %v13042_v40 = vmax.f32 %v12978_v37, 0.0  ;;  %v16211_v0 = vpop.f32.mrb[176].mxu0  ;;  %v14850_v37 = vunpack.c.h.bf16 %v15050_v20 }
 0x686   : > { %v14981_v44 = vpack.c.bf16 %v13044_v36, %v13043_v41  ;;  %v12751_v54 = vadd.f32 %v16211_v0, %v19819_v1  ;;  %v12742_v58 = vpop.f32.mrb[177].mxu0  ;;  %v15053_v0 = vld [vmem:[%s19811_s16 + $0xf8] sm:$0xff]  }
 0x687   : > { %v14976_v45 = vpack.c.bf16 %v13042_v40, %v13041_v14  ;;  %v12743_v24 = vadd.f32 %v19819_v1, %v12742_v58  ;;  %v16212_v15 = vpop.f32.mrb[178].mxu0 }
 0x688   : > { %15076 = vst [vmem:[%s19831_s21 + $0xb8] sm:$0xff] %v14981_v44   ;;  %v12983_v8 = vadd.f32 %v14837_v53, %v12751_v54  ;;  %v12754_v63 = vadd.f32 %v16212_v15, %v19819_v1  ;;  %v12745_v12 = vpop.f32.mrb[179].mxu0  ;;  %v15052_v44 = vld [vmem:[%s19811_s16 + $0xf0] sm:$0xff]  }
 0x689   : > { %15075 = vst [vmem:[%s19831_s21 + $0xb0] sm:$0xff] %v14976_v45   ;;  %v12981_v42 = vadd.f32 %v14833_v28, %v12743_v24  ;;  %v12746_v17 = vadd.f32 %v19819_v1, %v12745_v12  ;;  %v14861_v45 = vunpack.c.l.bf16 %v15053_v0 }
 0x68a   : > { %v12984_v39 = vadd.f32 %v14838_v46, %v12754_v63  ;;  %v13047_v33 = vmax.f32 %v12983_v8, 0.0  ;;  %v14857_v8 = vunpack.c.l.bf16 %v15052_v44 }
 0x68b   : > { %v12982_v51 = vadd.f32 %v14834_v7, %v12746_v17  ;;  %v13045_v31 = vmax.f32 %v12981_v42, 0.0  ;;  %v14862_v17 = vunpack.c.h.bf16 %v15053_v0 }
 0x68c   : > { %v13048_v35 = vmax.f32 %v12984_v39, 0.0 }
 0x68d   : > { %v13046_v18 = vmax.f32 %v12982_v51, 0.0  ;;  %v16215_v13 = vpop.f32.mrb[180].mxu0  ;;  %v14858_v51 = vunpack.c.h.bf16 %v15052_v44 }
 0x68e   : > { %v14991_v29 = vpack.c.bf16 %v13048_v35, %v13047_v33  ;;  %v12767_v61 = vadd.f32 %v16215_v13, %v19819_v1  ;;  %v12758_v2 = vpop.f32.mrb[181].mxu0 }
 0x68f   : > { %v14986_v21 = vpack.c.bf16 %v13046_v18, %v13045_v31  ;;  %v12759_v3 = vadd.f32 %v19819_v1, %v12758_v2  ;;  %v16216_v49 = vpop.f32.mrb[182].mxu0 }
 0x690   : > { %15078 = vst [vmem:[%s19831_s21 + $0xc8] sm:$0xff] %v14991_v29   ;;  %v12987_v4 = vadd.f32 %v14845_v22, %v12767_v61  ;;  %v12770_v16 = vadd.f32 %v16216_v49, %v19819_v1  ;;  %v12761_v52 = vpop.f32.mrb[183].mxu0 }
 0x691   : > { %15077 = vst [vmem:[%s19831_s21 + $0xc0] sm:$0xff] %v14986_v21   ;;  %v12985_v59 = vadd.f32 %v14841_v38, %v12759_v3  ;;  %v12762_v27 = vadd.f32 %v19819_v1, %v12761_v52 }
 0x692   : > { %v12988_v23 = vadd.f32 %v14846_v57, %v12770_v16  ;;  %v13051_v30 = vmax.f32 %v12987_v4, 0.0 }
 0x693   : > { %v12986_v9 = vadd.f32 %v14842_v47, %v12762_v27  ;;  %v13049_v25 = vmax.f32 %v12985_v59, 0.0 }
 0x694   : > { %v13052_v26 = vmax.f32 %v12988_v23, 0.0 }
 0x695   : > { %v13050_v11 = vmax.f32 %v12986_v9, 0.0  ;;  %v16219_v55 = vpop.f32.mrb[184].mxu0 }
 0x696   : > { %v15001_v56 = vpack.c.bf16 %v13052_v26, %v13051_v30  ;;  %v12783_v62 = vadd.f32 %v16219_v55, %v19819_v1  ;;  %v12774_v10 = vpop.f32.mrb[185].mxu0 }
 0x697   : > { %v14996_v32 = vpack.c.bf16 %v13050_v11, %v13049_v25  ;;  %v12775_v34 = vadd.f32 %v19819_v1, %v12774_v10  ;;  %v16220_v50 = vpop.f32.mrb[186].mxu0 }
 0x698   : > { %15080 = vst [vmem:[%s19831_s21 + $0xd8] sm:$0xff] %v15001_v56   ;;  %v12991_v41 = vadd.f32 %v14853_v60, %v12783_v62  ;;  %v12786_v36 = vadd.f32 %v16220_v50, %v19819_v1  ;;  %v12777_v53 = vpop.f32.mrb[187].mxu0 }
 0x699   : > { %15079 = vst [vmem:[%s19831_s21 + $0xd0] sm:$0xff] %v14996_v32   ;;  %v12989_v14 = vadd.f32 %v14849_v19, %v12775_v34  ;;  %v12778_v40 = vadd.f32 %v19819_v1, %v12777_v53 }
 0x69a   : > { %v12992_v28 = vadd.f32 %v14854_v48, %v12786_v36  ;;  %v13055_v58 = vmax.f32 %v12991_v41, 0.0 }
 0x69b   : > { %v12990_v54 = vadd.f32 %v14850_v37, %v12778_v40  ;;  %v13053_v24 = vmax.f32 %v12989_v14, 0.0 }
 0x69c   : > { %v13056_v46 = vmax.f32 %v12992_v28, 0.0 }
 0x69d   : > { %v13054_v15 = vmax.f32 %v12990_v54, 0.0  ;;  %v16223_v7 = vpop.f32.mrb[188].mxu0 }
 0x69e   : > { %v15011_v63 = vpack.c.bf16 %v13056_v46, %v13055_v58  ;;  %v12799_v12 = vadd.f32 %v16223_v7, %v19819_v1  ;;  %v12790_v42 = vpop.f32.mrb[189].mxu0 }
 0x69f   : > { %v15006_v43 = vpack.c.bf16 %v13054_v15, %v13053_v24  ;;  %v12791_v39 = vadd.f32 %v19819_v1, %v12790_v42  ;;  %v16224_v6 = vpop.f32.mrb[190].mxu0 }
 0x6a0   : > { %15082 = vst [vmem:[%s19831_s21 + $0xe8] sm:$0xff] %v15011_v63   ;;  %v12995_v33 = vadd.f32 %v14861_v45, %v12799_v12  ;;  %v12802_v35 = vadd.f32 %v16224_v6, %v19819_v1  ;;  %v12793_v22 = vpop.f32.mrb[191].mxu0 }
 0x6a1   : > { %15081 = vst [vmem:[%s19831_s21 + $0xe0] sm:$0xff] %v15006_v43   ;;  %v12993_v31 = vadd.f32 %v14857_v8, %v12791_v39  ;;  %v12794_v18 = vadd.f32 %v19819_v1, %v12793_v22 }
 0x6a2   : > { %v12996_v13 = vadd.f32 %v14862_v17, %v12802_v35  ;;  %v13059_v29 = vmax.f32 %v12995_v33, 0.0 }
 0x6a3   : > { %v12994_v38 = vadd.f32 %v14858_v51, %v12794_v18  ;;  %v13057_v2 = vmax.f32 %v12993_v31, 0.0 }
 0x6a4   : > { %v13060_v61 = vmax.f32 %v12996_v13, 0.0 }
 0x6a5   : > { %v13058_v57 = vmax.f32 %v12994_v38, 0.0 }
 0x6a6   : > { %v15021_v21 = vpack.c.bf16 %v13060_v61, %v13059_v29 }
 0x6a7   : > { %v15016_v3 = vpack.c.bf16 %v13058_v57, %v13057_v2 }
 0x6a8   : > { %15084 = vst [vmem:[%s19831_s21 + $0xf8] sm:$0xff] %v15021_v21  }
 0x6a9   : > { %15083 = vst [vmem:[%s19831_s21 + $0xf0] sm:$0xff] %v15016_v3  }
 0x6aa PF: > { %s18_s29 = sadd.s32 1, %s17190_s29   ;;  %s20071_s27 = smov %s17186_s28 }
 0x6ab   : > { %p15_p5 = scmp.ge.s32.totalorder %s18_s29, 5   ;;  %s20072_s28 = smov %s20074_s30 }
 0x6ad   :  { %17 = sbr.rel (!%p15_p5) target bundleno = 2 (0x2), region = 113 }

</bundles_post_ra>
